<compile_context>
chip_gen: v7x
topology: tpu7x:2x2x1
jax: 0.10.0
libtpu: 0.0.40
codegen_flags: <defaults>
</compile_context>

<pallas_src>
import functools

import jax
import jax.numpy as jnp
from jax import lax
from jax.experimental import pallas as pl
from jax.experimental.pallas import tpu as pltpu


# ----------------------------------------------------------------------------
# Pallas kernel: one batch element per grid step, channel-major (C, HW) layout.
# ----------------------------------------------------------------------------
def _rab_kernel(x_ref,
                c1w_ref, bn1s_ref, bn1b_ref,
                c2w_ref, bn2s_ref, bn2b_ref,
                caw1_ref, cab1_ref, caw2_ref, cab2_ref,
                paw1_ref, pab1_ref, paw2_ref, pab2_ref,
                o_ref, *, H, W):
    C = x_ref.shape[1]
    HW = H * W
    bf = jnp.bfloat16

    x = x_ref[0].astype(jnp.float32)                   # (C, HW) f32, channel-major

    # --- hoisted border masks: built once at full tap shape, shared by all six
    # convolutions; applied as a single multiply against a resident 0/1 vreg ---
    pix = lax.broadcasted_iota(jnp.int32, (C, HW), 1)  # pixel id on the lane axis
    if W & (W - 1) == 0:
        w_idx = jnp.bitwise_and(pix, W - 1)            # p % W (W power of two)
    else:
        w_idx = pix - (pix // W) * W
    w_mask = {-1: jnp.where(w_idx >= 1, 1.0, 0.0),         # dw=-1 valid: w >= 1
              +1: jnp.where(w_idx <= W - 2, 1.0, 0.0)}     # dw=+1 valid: w <= W-2
    h_mask = {-1: jnp.where(pix >= W, 1.0, 0.0),           # dh=-1 valid: h >= 1
              +1: jnp.where(pix < (H - 1) * W, 1.0, 0.0)}  # dh=+1 valid: h <= H-2

    # Folded BatchNorm (inference form) scale/bias, per-channel columns (C, 1).
    bn1s = bn1s_ref[...]
    bn1b = bn1b_ref[...]
    bn2s = bn2s_ref[...]
    bn2b = bn2b_ref[...]

    def roll_pix(t, d):
        # y[:, p] = t[:, p + d]  (modular wrap along lanes; callers mask the wrap).
        return pltpu.roll(t, shift=(-d) % HW, axis=1)

    def conv3x3_bn(t, w_ref, scale, bias):
        # t: (C, HW) f32.  im2col -> single MXU matmul with K = 9*C, N = HW
        # (bf16 operands, f32 accumulation), then folded-BN scale/bias in f32.
        # The two width-shifted columns are computed once and shared by the
        # three kernel rows.
        cols = {0: t,
                -1: roll_pix(t, -1) * w_mask[-1],
                +1: roll_pix(t, +1) * w_mask[+1]}

        def tap(dh, dw):
            c = cols[dw]
            if dh == 0:
                return c.astype(bf)                    # cast BEFORE the concat
            return (roll_pix(c, dh * W) * h_mask[dh]).astype(bf)

        # kh-major, kw next, cin innermost — matches the (9C, C)->(C, 9C)
        # weight reshape/transpose done once in the wrapper.
        patches = jnp.concatenate(
            [tap(dh, dw) for dh in (-1, 0, 1) for dw in (-1, 0, 1)],
            axis=0)                                    # (9C, HW) bf16
        y = jnp.dot(w_ref[...], patches,
                    preferred_element_type=jnp.float32)  # (C, HW) f32
        return y * scale + bias

    def res_block(t):
        h = jnp.maximum(conv3x3_bn(t, c1w_ref, bn1s, bn1b), 0.0)   # Conv-BN-ReLU
        return conv3x3_bn(h, c2w_ref, bn2s, bn2b)                  # Conv-BN

    # Same `self.res` weights applied three times (as in the PyTorch module).
    x1 = x + res_block(x)
    x2 = x1 + res_block(x1)
    x3 = x2 + res_block(x2)
    x3_1 = x1 + x3
    # TODO(synk): PyTorch does `print('x3_1: ', x3_1.size())` here — host-side
    # debug print only, no device compute; intentionally omitted.

    # ---------------- CALayer: global-avg-pool channel attention ------------
    gap = jnp.mean(x3_1, axis=1, keepdims=True)                # (C, 1) f32
    ca = jnp.dot(caw1_ref[...], gap.astype(bf),
                 preferred_element_type=jnp.float32) + cab1_ref[...]   # (Cr, 1)
    ca = jnp.maximum(ca, 0.0)
    ca = jnp.dot(caw2_ref[...], ca.astype(bf),
                 preferred_element_type=jnp.float32) + cab2_ref[...]   # (C, 1)
    ca = jax.nn.sigmoid(ca)
    x4 = x3_1 * ca                                             # lane broadcast

    # ---------------- PALayer: per-pixel spatial attention -------------------
    pa = jnp.dot(paw1_ref[...], x4.astype(bf),
                 preferred_element_type=jnp.float32) + pab1_ref[...]   # (Cr, HW)
    pa = jnp.maximum(pa, 0.0)
    # Second 1x1 conv has a single output channel -> VPU multiply + sublane
    # reduce instead of a 1-row MXU matmul.
    pa = jnp.sum(pa * paw2_ref[...], axis=0, keepdims=True) + pab2_ref[...]  # (1, HW)
    pa = jax.nn.sigmoid(pa)
    x5 = x4 * pa                                               # sublane broadcast

    o_ref[0] = (x5 + x).astype(o_ref.dtype)


# ----------------------------------------------------------------------------
# Wrapper: NCHW in / NCHW out (PyTorch convention).  No transposes — the
# channel-major kernel layout is the native NCHW flatten.
# ----------------------------------------------------------------------------
def residual_attention_block(x_nchw, params):
    N, C, H, W = x_nchw.shape
    HW = H * W

    x = x_nchw.reshape(N, C, HW).astype(jnp.float32)           # free reshape

    bf = jnp.bfloat16
    # Conv weights: HWIO (3,3,Cin,Cout) -> (9*Cin, Cout) -> transpose (Cout, 9*Cin),
    # reshaped ONCE here in the same kh-major / kw / cin order as the kernel's
    # tap concatenation, and cast to bf16 (MXU operand dtype, halves weight DMA).
    weights = [
        params["c1w"].reshape(9 * C, C).T.astype(bf),          # (C, 9C)
        params["bn1s"], params["bn1b"],                        # (C, 1)
        params["c2w"].reshape(9 * C, C).T.astype(bf),
        params["bn2s"], params["bn2b"],
        params["caw1"].astype(bf), params["cab1"],             # (Cr,C), (Cr,1)
        params["caw2"].astype(bf), params["cab2"],             # (C,Cr), (C,1)
        params["paw1"].astype(bf), params["pab1"],             # (Cr,C), (Cr,1)
        params["paw2"], params["pab2"],                        # (Cr,1), (1,1)
    ]

    def full_spec(a):
        nd = a.ndim
        return pl.BlockSpec(a.shape, lambda b, _nd=nd: (0,) * _nd)

    in_specs = [pl.BlockSpec((1, C, HW), lambda b: (b, 0, 0))]
    in_specs += [full_spec(w) for w in weights]

    Cr = params["caw1"].shape[0]
    flops = N * (6 * 2 * HW * (9 * C) * C          # six 3x3 convs (im2col matmuls)
                 + 2 * HW * C * Cr                 # PALayer first 1x1
                 + 2 * HW * Cr                     # PALayer second 1x1 (VPU)
                 + 4 * C * Cr)                     # CALayer
    bytes_accessed = (2 * x.size * 4
                      + sum(int(w.size) * w.dtype.itemsize for w in weights))

    out = pl.pallas_call(
        functools.partial(_rab_kernel, H=H, W=W),
        out_shape=jax.ShapeDtypeStruct((N, C, HW), jnp.float32),
        grid_spec=pltpu.PrefetchScalarGridSpec(
            num_scalar_prefetch=0,
            grid=(N,),
            in_specs=in_specs,
            out_specs=pl.BlockSpec((1, C, HW), lambda b: (b, 0, 0)),
        ),
        compiler_params=pltpu.CompilerParams(
            dimension_semantics=("parallel",),     # batch images are independent
            # Per-image working set here is <1 MiB; raise toward ~96 MiB on
            # v5e/v6e (keep <=~48 MiB on v7x) once spatial tiles grow.
            vmem_limit_bytes=32 * 1024 * 1024,
        ),
        cost_estimate=pl.CostEstimate(
            flops=int(flops),
            transcendentals=int(N * (HW + 2 * C)),
            bytes_accessed=int(bytes_accessed),
        ),
    )(x, *weights)

    return out.reshape(N, C, H, W)                             # free reshape


# ----------------------------------------------------------------------------
# Deterministic parameter initialization (synthetic — no checkpoint load).
# ----------------------------------------------------------------------------
def init_params(key, C):
    Cr = C // 8
    ks = jax.random.split(key, 16)

    def bn_fold(kg, kb, km, kv, n):
        gamma = 0.5 + jax.random.uniform(kg, (n,), jnp.float32)
        beta = 0.1 * jax.random.normal(kb, (n,), jnp.float32)
        mean = 0.1 * jax.random.normal(km, (n,), jnp.float32)
        var = 0.5 + jax.random.uniform(kv, (n,), jnp.float32)
        scale = gamma / jnp.sqrt(var + 1e-5)
        bias = beta - mean * scale
        return scale.reshape(n, 1), bias.reshape(n, 1)

    # Conv weights in PyTorch OIHW, stored as HWIO for the kernel/reference.
    c1w_oihw = 0.05 * jax.random.normal(ks[0], (C, C, 3, 3), jnp.float32)
    c2w_oihw = 0.05 * jax.random.normal(ks[1], (C, C, 3, 3), jnp.float32)
    bn1s, bn1b = bn_fold(ks[2], ks[3], ks[4], ks[5], C)
    bn2s, bn2b = bn_fold(ks[6], ks[7], ks[8], ks[9], C)

    # CALayer 1x1 convs: weight (out, in), bias as a column vector.
    caw1 = 0.1 * jax.random.normal(ks[10], (Cr, C), jnp.float32)
    cab1 = 0.1 * jax.random.normal(ks[11], (Cr, 1), jnp.float32)
    caw2 = 0.1 * jax.random.normal(ks[12], (C, Cr), jnp.float32)
    cab2 = 0.1 * jax.random.normal(ks[13], (C, 1), jnp.float32)

    # PALayer 1x1 convs.  paw2 kept as a (Cr, 1) column (VPU reduce form).
    paw1 = 0.1 * jax.random.normal(ks[14], (Cr, C), jnp.float32)
    pab1 = 0.1 * jax.random.normal(ks[15], (Cr, 1), jnp.float32)
    paw2 = 0.1 * jax.random.normal(jax.random.fold_in(key, 99),
                                   (Cr, 1), jnp.float32)
    pab2 = 0.05 * jnp.ones((1, 1), jnp.float32)

    return {
        "c1w": jnp.transpose(c1w_oihw, (2, 3, 1, 0)),   # HWIO (3,3,Cin,Cout)
        "bn1s": bn1s, "bn1b": bn1b,
        "c2w": jnp.transpose(c2w_oihw, (2, 3, 1, 0)),
        "bn2s": bn2s, "bn2b": bn2b,
        "caw1": caw1, "cab1": cab1, "caw2": caw2, "cab2": cab2,
        "paw1": paw1, "pab1": pab1, "paw2": paw2, "pab2": pab2,
    }


# ----------------------------------------------------------------------------
# Pure-JAX reference (eval-mode BatchNorm).  Matmul operands are cast to bf16
# with f32 accumulation, matching the kernel's MXU precision, so the
# comparison is tight and meaningful.
# ----------------------------------------------------------------------------
def reference_forward(x_nchw, p):
    x = jnp.transpose(x_nchw, (0, 2, 3, 1)).astype(jnp.float32)   # NHWC
    bf = jnp.bfloat16

    def conv_bn(t, w_hwio, s, b):
        y = lax.conv_general_dilated(
            t.astype(bf), w_hwio.astype(bf), (1, 1), "SAME",
            dimension_numbers=("NHWC", "HWIO", "NHWC"),
            preferred_element_type=jnp.float32)
        return y * s.reshape(1, 1, 1, -1) + b.reshape(1, 1, 1, -1)

    def res_block(t):
        h = jnp.maximum(conv_bn(t, p["c1w"], p["bn1s"], p["bn1b"]), 0.0)
        return conv_bn(h, p["c2w"], p["bn2s"], p["bn2b"])

    x1 = x + res_block(x)
    x2 = x1 + res_block(x1)
    x3 = x2 + res_block(x2)
    x3_1 = x1 + x3

    N, H, W, C = x3_1.shape
    gap = jnp.mean(x3_1, axis=(1, 2))                                  # (N, C)
    ca = jnp.dot(gap.astype(bf), p["caw1"].T.astype(bf),
                 preferred_element_type=jnp.float32) + p["cab1"].reshape(1, -1)
    ca = jnp.maximum(ca, 0.0)
    ca = jnp.dot(ca.astype(bf), p["caw2"].T.astype(bf),
                 preferred_element_type=jnp.float32) + p["cab2"].reshape(1, -1)
    ca = jax.nn.sigmoid(ca)
    x4 = x3_1 * ca.reshape(N, 1, 1, C)

    pa = jnp.einsum("nhwc,rc->nhwr", x4.astype(bf), p["paw1"].astype(bf),
                    preferred_element_type=jnp.float32) + p["pab1"].reshape(1, 1, 1, -1)
    pa = jnp.maximum(pa, 0.0)
    pa = (jnp.sum(pa * p["paw2"].reshape(1, 1, 1, -1), axis=-1, keepdims=True)
          + p["pab2"].reshape(1, 1, 1, 1))
    pa = jax.nn.sigmoid(pa)
    x5 = x4 * pa
    return jnp.transpose(x5 + x, (0, 3, 1, 2))                    # NCHW


if __name__ == "__main__":
    key = jax.random.PRNGKey(0)
    k_x, k_p = jax.random.split(key)

    # Module default is 64 channels; small spatial size keeps the test light.
    N, C, H, W = 2, 64, 16, 16
    x = jax.random.normal(k_x, (N, C, H, W), jnp.float32)
    params = init_params(k_p, C)

    out = jax.block_until_ready(residual_attention_block(x, params))
    ref = jax.block_until_ready(reference_forward(x, params))

    assert out.shape == (N, C, H, W)
    err = float(jnp.max(jnp.abs(out - ref)))
    if not jnp.allclose(out, ref, atol=5e-3, rtol=5e-3):
        raise AssertionError(
            f"Pallas kernel does not match JAX reference (max abs err {err:.3e})")

    print("KERNEL_OK")
</pallas_src>

<mosaic_0001>
module attributes {stable_mosaic.version = 11 : i64} {
  func.func @_rab_kernel(%arg0: i32, %arg1: memref<1x64x256xf32, #tpu.memory_space<vmem>>, %arg2: memref<64x576xbf16, #tpu.memory_space<vmem>>, %arg3: memref<64x1xf32, #tpu.memory_space<vmem>>, %arg4: memref<64x1xf32, #tpu.memory_space<vmem>>, %arg5: memref<64x576xbf16, #tpu.memory_space<vmem>>, %arg6: memref<64x1xf32, #tpu.memory_space<vmem>>, %arg7: memref<64x1xf32, #tpu.memory_space<vmem>>, %arg8: memref<8x64xbf16, #tpu.memory_space<vmem>>, %arg9: memref<8x1xf32, #tpu.memory_space<vmem>>, %arg10: memref<64x8xbf16, #tpu.memory_space<vmem>>, %arg11: memref<64x1xf32, #tpu.memory_space<vmem>>, %arg12: memref<8x64xbf16, #tpu.memory_space<vmem>>, %arg13: memref<8x1xf32, #tpu.memory_space<vmem>>, %arg14: memref<8x1xf32, #tpu.memory_space<vmem>>, %arg15: memref<1x1xf32, #tpu.memory_space<vmem>>, %arg16: memref<1x64x256xf32, #tpu.memory_space<vmem>>) attributes {dimension_semantics = [#tpu.dimension_semantics<parallel>], iteration_bounds = array<i64: 2>, scalar_prefetch = 0 : i64, scratch_operands = 0 : i64, tpu.core_type = #tpu.core_type<tc>, window_params = [{transform_indices = @transform_0, window_bounds = array<i64: 1, 64, 256>}, {pipeline_mode = #tpu.pipeline_mode<synchronous>, transform_indices = @transform_1, window_bounds = array<i64: 64, 576>}, {pipeline_mode = #tpu.pipeline_mode<synchronous>, transform_indices = @transform_2, window_bounds = array<i64: 64, 1>}, {pipeline_mode = #tpu.pipeline_mode<synchronous>, transform_indices = @transform_3, window_bounds = array<i64: 64, 1>}, {pipeline_mode = #tpu.pipeline_mode<synchronous>, transform_indices = @transform_4, window_bounds = array<i64: 64, 576>}, {pipeline_mode = #tpu.pipeline_mode<synchronous>, transform_indices = @transform_5, window_bounds = array<i64: 64, 1>}, {pipeline_mode = #tpu.pipeline_mode<synchronous>, transform_indices = @transform_6, window_bounds = array<i64: 64, 1>}, {pipeline_mode = #tpu.pipeline_mode<synchronous>, transform_indices = @transform_7, window_bounds = array<i64: 8, 64>}, {pipeline_mode = #tpu.pipeline_mode<synchronous>, transform_indices = @transform_8, window_bounds = array<i64: 8, 1>}, {pipeline_mode = #tpu.pipeline_mode<synchronous>, transform_indices = @transform_9, window_bounds = array<i64: 64, 8>}, {pipeline_mode = #tpu.pipeline_mode<synchronous>, transform_indices = @transform_10, window_bounds = array<i64: 64, 1>}, {pipeline_mode = #tpu.pipeline_mode<synchronous>, transform_indices = @transform_11, window_bounds = array<i64: 8, 64>}, {pipeline_mode = #tpu.pipeline_mode<synchronous>, transform_indices = @transform_12, window_bounds = array<i64: 8, 1>}, {pipeline_mode = #tpu.pipeline_mode<synchronous>, transform_indices = @transform_13, window_bounds = array<i64: 8, 1>}, {pipeline_mode = #tpu.pipeline_mode<synchronous>, transform_indices = @transform_14, window_bounds = array<i64: 1, 1>}, {transform_indices = @transform_15, window_bounds = array<i64: 1, 64, 256>}]} {
    %c0 = arith.constant 0 : index
    %c0_0 = arith.constant 0 : index
    %c0_1 = arith.constant 0 : index
    %0 = vector.load %arg1[%c0, %c0_0, %c0_1] : memref<1x64x256xf32, #tpu.memory_space<vmem>>, vector<1x64x256xf32>
    %1 = vector.shape_cast %0 : vector<1x64x256xf32> to vector<64x256xf32>
    %2 = tpu.iota {dimensions = array<i32: 1>} : vector<64x256xi32>
    %c15_i32 = arith.constant 15 : i32
    %3 = vector.broadcast %c15_i32 : i32 to vector<64x256xi32>
    %4 = arith.andi %2, %3 : vector<64x256xi32>
    %c1_i32 = arith.constant 1 : i32
    %5 = vector.broadcast %c1_i32 : i32 to vector<64x256xi32>
    %6 = arith.cmpi sge, %4, %5 : vector<64x256xi32>
    %cst = arith.constant 1.000000e+00 : f32
    %cst_2 = arith.constant 0.000000e+00 : f32
    %7 = vector.broadcast %cst : f32 to vector<64x256xf32>
    %8 = vector.broadcast %cst_2 : f32 to vector<64x256xf32>
    %9 = arith.select %6, %7, %8 : vector<64x256xi1>, vector<64x256xf32>
    %c14_i32 = arith.constant 14 : i32
    %10 = vector.broadcast %c14_i32 : i32 to vector<64x256xi32>
    %11 = arith.cmpi sle, %4, %10 : vector<64x256xi32>
    %cst_3 = arith.constant 1.000000e+00 : f32
    %cst_4 = arith.constant 0.000000e+00 : f32
    %12 = vector.broadcast %cst_3 : f32 to vector<64x256xf32>
    %13 = vector.broadcast %cst_4 : f32 to vector<64x256xf32>
    %14 = arith.select %11, %12, %13 : vector<64x256xi1>, vector<64x256xf32>
    %c16_i32 = arith.constant 16 : i32
    %15 = vector.broadcast %c16_i32 : i32 to vector<64x256xi32>
    %16 = arith.cmpi sge, %2, %15 : vector<64x256xi32>
    %cst_5 = arith.constant 1.000000e+00 : f32
    %cst_6 = arith.constant 0.000000e+00 : f32
    %17 = vector.broadcast %cst_5 : f32 to vector<64x256xf32>
    %18 = vector.broadcast %cst_6 : f32 to vector<64x256xf32>
    %19 = arith.select %16, %17, %18 : vector<64x256xi1>, vector<64x256xf32>
    %c240_i32 = arith.constant 240 : i32
    %20 = vector.broadcast %c240_i32 : i32 to vector<64x256xi32>
    %21 = arith.cmpi slt, %2, %20 : vector<64x256xi32>
    %cst_7 = arith.constant 1.000000e+00 : f32
    %cst_8 = arith.constant 0.000000e+00 : f32
    %22 = vector.broadcast %cst_7 : f32 to vector<64x256xf32>
    %23 = vector.broadcast %cst_8 : f32 to vector<64x256xf32>
    %24 = arith.select %21, %22, %23 : vector<64x256xi1>, vector<64x256xf32>
    %c0_9 = arith.constant 0 : index
    %c0_10 = arith.constant 0 : index
    %25 = vector.load %arg3[%c0_9, %c0_10] : memref<64x1xf32, #tpu.memory_space<vmem>>, vector<64x1xf32>
    %c0_11 = arith.constant 0 : index
    %c0_12 = arith.constant 0 : index
    %26 = vector.load %arg4[%c0_11, %c0_12] : memref<64x1xf32, #tpu.memory_space<vmem>>, vector<64x1xf32>
    %c0_13 = arith.constant 0 : index
    %c0_14 = arith.constant 0 : index
    %27 = vector.load %arg6[%c0_13, %c0_14] : memref<64x1xf32, #tpu.memory_space<vmem>>, vector<64x1xf32>
    %c0_15 = arith.constant 0 : index
    %c0_16 = arith.constant 0 : index
    %28 = vector.load %arg7[%c0_15, %c0_16] : memref<64x1xf32, #tpu.memory_space<vmem>>, vector<64x1xf32>
    %c1_i32_17 = arith.constant 1 : i32
    %29 = tpu.dynamic_rotate %1 by %c1_i32_17 dim 1 : vector<64x256xf32>, i32 -> vector<64x256xf32>
    %30 = arith.mulf %29, %9 : vector<64x256xf32>
    %c255_i32 = arith.constant 255 : i32
    %31 = tpu.dynamic_rotate %1 by %c255_i32 dim 1 : vector<64x256xf32>, i32 -> vector<64x256xf32>
    %32 = arith.mulf %31, %14 : vector<64x256xf32>
    %c16_i32_18 = arith.constant 16 : i32
    %33 = tpu.dynamic_rotate %30 by %c16_i32_18 dim 1 : vector<64x256xf32>, i32 -> vector<64x256xf32>
    %34 = arith.mulf %33, %19 : vector<64x256xf32>
    %35 = arith.truncf %34 : vector<64x256xf32> to vector<64x256xbf16>
    %c16_i32_19 = arith.constant 16 : i32
    %36 = tpu.dynamic_rotate %1 by %c16_i32_19 dim 1 : vector<64x256xf32>, i32 -> vector<64x256xf32>
    %37 = arith.mulf %36, %19 : vector<64x256xf32>
    %38 = arith.truncf %37 : vector<64x256xf32> to vector<64x256xbf16>
    %c16_i32_20 = arith.constant 16 : i32
    %39 = tpu.dynamic_rotate %32 by %c16_i32_20 dim 1 : vector<64x256xf32>, i32 -> vector<64x256xf32>
    %40 = arith.mulf %39, %19 : vector<64x256xf32>
    %41 = arith.truncf %40 : vector<64x256xf32> to vector<64x256xbf16>
    %42 = arith.truncf %30 : vector<64x256xf32> to vector<64x256xbf16>
    %43 = arith.truncf %1 : vector<64x256xf32> to vector<64x256xbf16>
    %44 = arith.truncf %32 : vector<64x256xf32> to vector<64x256xbf16>
    %c240_i32_21 = arith.constant 240 : i32
    %45 = tpu.dynamic_rotate %30 by %c240_i32_21 dim 1 : vector<64x256xf32>, i32 -> vector<64x256xf32>
    %46 = arith.mulf %45, %24 : vector<64x256xf32>
    %47 = arith.truncf %46 : vector<64x256xf32> to vector<64x256xbf16>
    %c240_i32_22 = arith.constant 240 : i32
    %48 = tpu.dynamic_rotate %1 by %c240_i32_22 dim 1 : vector<64x256xf32>, i32 -> vector<64x256xf32>
    %49 = arith.mulf %48, %24 : vector<64x256xf32>
    %50 = arith.truncf %49 : vector<64x256xf32> to vector<64x256xbf16>
    %c240_i32_23 = arith.constant 240 : i32
    %51 = tpu.dynamic_rotate %32 by %c240_i32_23 dim 1 : vector<64x256xf32>, i32 -> vector<64x256xf32>
    %52 = arith.mulf %51, %24 : vector<64x256xf32>
    %53 = arith.truncf %52 : vector<64x256xf32> to vector<64x256xbf16>
    %54 = tpu.concatenate %35, %38, %41, %42, %43, %44, %47, %50, %53 in 0 : vector<64x256xbf16>, vector<64x256xbf16>, vector<64x256xbf16>, vector<64x256xbf16>, vector<64x256xbf16>, vector<64x256xbf16>, vector<64x256xbf16>, vector<64x256xbf16>, vector<64x256xbf16> -> vector<576x256xbf16>
    %c0_24 = arith.constant 0 : index
    %c0_25 = arith.constant 0 : index
    %55 = vector.load %arg2[%c0_24, %c0_25] : memref<64x576xbf16, #tpu.memory_space<vmem>>, vector<64x576xbf16>
    %cst_26 = arith.constant dense<0.000000e+00> : vector<64x256xf32>
    %56 = tpu.matmul %55, %54, %cst_26 {dimension_numbers = #tpu.dot_dimension_numbers<[1], [0], [0], [1], [0, 0, 1, 1], [], []>} : vector<64x576xbf16>, vector<576x256xbf16>, vector<64x256xf32> -> vector<64x256xf32>
    %57 = vector.broadcast %25 : vector<64x1xf32> to vector<64x256xf32>
    %58 = arith.mulf %56, %57 : vector<64x256xf32>
    %59 = vector.broadcast %26 : vector<64x1xf32> to vector<64x256xf32>
    %60 = arith.addf %58, %59 : vector<64x256xf32>
    %cst_27 = arith.constant 0.000000e+00 : f32
    %61 = vector.broadcast %cst_27 : f32 to vector<64x256xf32>
    %62 = arith.maximumf %60, %61 : vector<64x256xf32>
    %c1_i32_28 = arith.constant 1 : i32
    %63 = tpu.dynamic_rotate %62 by %c1_i32_28 dim 1 : vector<64x256xf32>, i32 -> vector<64x256xf32>
    %64 = arith.mulf %63, %9 : vector<64x256xf32>
    %c255_i32_29 = arith.constant 255 : i32
    %65 = tpu.dynamic_rotate %62 by %c255_i32_29 dim 1 : vector<64x256xf32>, i32 -> vector<64x256xf32>
    %66 = arith.mulf %65, %14 : vector<64x256xf32>
    %c16_i32_30 = arith.constant 16 : i32
    %67 = tpu.dynamic_rotate %64 by %c16_i32_30 dim 1 : vector<64x256xf32>, i32 -> vector<64x256xf32>
    %68 = arith.mulf %67, %19 : vector<64x256xf32>
    %69 = arith.truncf %68 : vector<64x256xf32> to vector<64x256xbf16>
    %c16_i32_31 = arith.constant 16 : i32
    %70 = tpu.dynamic_rotate %62 by %c16_i32_31 dim 1 : vector<64x256xf32>, i32 -> vector<64x256xf32>
    %71 = arith.mulf %70, %19 : vector<64x256xf32>
    %72 = arith.truncf %71 : vector<64x256xf32> to vector<64x256xbf16>
    %c16_i32_32 = arith.constant 16 : i32
    %73 = tpu.dynamic_rotate %66 by %c16_i32_32 dim 1 : vector<64x256xf32>, i32 -> vector<64x256xf32>
    %74 = arith.mulf %73, %19 : vector<64x256xf32>
    %75 = arith.truncf %74 : vector<64x256xf32> to vector<64x256xbf16>
    %76 = arith.truncf %64 : vector<64x256xf32> to vector<64x256xbf16>
    %77 = arith.truncf %62 : vector<64x256xf32> to vector<64x256xbf16>
    %78 = arith.truncf %66 : vector<64x256xf32> to vector<64x256xbf16>
    %c240_i32_33 = arith.constant 240 : i32
    %79 = tpu.dynamic_rotate %64 by %c240_i32_33 dim 1 : vector<64x256xf32>, i32 -> vector<64x256xf32>
    %80 = arith.mulf %79, %24 : vector<64x256xf32>
    %81 = arith.truncf %80 : vector<64x256xf32> to vector<64x256xbf16>
    %c240_i32_34 = arith.constant 240 : i32
    %82 = tpu.dynamic_rotate %62 by %c240_i32_34 dim 1 : vector<64x256xf32>, i32 -> vector<64x256xf32>
    %83 = arith.mulf %82, %24 : vector<64x256xf32>
    %84 = arith.truncf %83 : vector<64x256xf32> to vector<64x256xbf16>
    %c240_i32_35 = arith.constant 240 : i32
    %85 = tpu.dynamic_rotate %66 by %c240_i32_35 dim 1 : vector<64x256xf32>, i32 -> vector<64x256xf32>
    %86 = arith.mulf %85, %24 : vector<64x256xf32>
    %87 = arith.truncf %86 : vector<64x256xf32> to vector<64x256xbf16>
    %88 = tpu.concatenate %69, %72, %75, %76, %77, %78, %81, %84, %87 in 0 : vector<64x256xbf16>, vector<64x256xbf16>, vector<64x256xbf16>, vector<64x256xbf16>, vector<64x256xbf16>, vector<64x256xbf16>, vector<64x256xbf16>, vector<64x256xbf16>, vector<64x256xbf16> -> vector<576x256xbf16>
    %c0_36 = arith.constant 0 : index
    %c0_37 = arith.constant 0 : index
    %89 = vector.load %arg5[%c0_36, %c0_37] : memref<64x576xbf16, #tpu.memory_space<vmem>>, vector<64x576xbf16>
    %cst_38 = arith.constant dense<0.000000e+00> : vector<64x256xf32>
    %90 = tpu.matmul %89, %88, %cst_38 {dimension_numbers = #tpu.dot_dimension_numbers<[1], [0], [0], [1], [0, 0, 1, 1], [], []>} : vector<64x576xbf16>, vector<576x256xbf16>, vector<64x256xf32> -> vector<64x256xf32>
    %91 = vector.broadcast %27 : vector<64x1xf32> to vector<64x256xf32>
    %92 = arith.mulf %90, %91 : vector<64x256xf32>
    %93 = vector.broadcast %28 : vector<64x1xf32> to vector<64x256xf32>
    %94 = arith.addf %92, %93 : vector<64x256xf32>
    %95 = arith.addf %1, %94 : vector<64x256xf32>
    %c1_i32_39 = arith.constant 1 : i32
    %96 = tpu.dynamic_rotate %95 by %c1_i32_39 dim 1 : vector<64x256xf32>, i32 -> vector<64x256xf32>
    %97 = arith.mulf %96, %9 : vector<64x256xf32>
    %c255_i32_40 = arith.constant 255 : i32
    %98 = tpu.dynamic_rotate %95 by %c255_i32_40 dim 1 : vector<64x256xf32>, i32 -> vector<64x256xf32>
    %99 = arith.mulf %98, %14 : vector<64x256xf32>
    %c16_i32_41 = arith.constant 16 : i32
    %100 = tpu.dynamic_rotate %97 by %c16_i32_41 dim 1 : vector<64x256xf32>, i32 -> vector<64x256xf32>
    %101 = arith.mulf %100, %19 : vector<64x256xf32>
    %102 = arith.truncf %101 : vector<64x256xf32> to vector<64x256xbf16>
    %c16_i32_42 = arith.constant 16 : i32
    %103 = tpu.dynamic_rotate %95 by %c16_i32_42 dim 1 : vector<64x256xf32>, i32 -> vector<64x256xf32>
    %104 = arith.mulf %103, %19 : vector<64x256xf32>
    %105 = arith.truncf %104 : vector<64x256xf32> to vector<64x256xbf16>
    %c16_i32_43 = arith.constant 16 : i32
    %106 = tpu.dynamic_rotate %99 by %c16_i32_43 dim 1 : vector<64x256xf32>, i32 -> vector<64x256xf32>
    %107 = arith.mulf %106, %19 : vector<64x256xf32>
    %108 = arith.truncf %107 : vector<64x256xf32> to vector<64x256xbf16>
    %109 = arith.truncf %97 : vector<64x256xf32> to vector<64x256xbf16>
    %110 = arith.truncf %95 : vector<64x256xf32> to vector<64x256xbf16>
    %111 = arith.truncf %99 : vector<64x256xf32> to vector<64x256xbf16>
    %c240_i32_44 = arith.constant 240 : i32
    %112 = tpu.dynamic_rotate %97 by %c240_i32_44 dim 1 : vector<64x256xf32>, i32 -> vector<64x256xf32>
    %113 = arith.mulf %112, %24 : vector<64x256xf32>
    %114 = arith.truncf %113 : vector<64x256xf32> to vector<64x256xbf16>
    %c240_i32_45 = arith.constant 240 : i32
    %115 = tpu.dynamic_rotate %95 by %c240_i32_45 dim 1 : vector<64x256xf32>, i32 -> vector<64x256xf32>
    %116 = arith.mulf %115, %24 : vector<64x256xf32>
    %117 = arith.truncf %116 : vector<64x256xf32> to vector<64x256xbf16>
    %c240_i32_46 = arith.constant 240 : i32
    %118 = tpu.dynamic_rotate %99 by %c240_i32_46 dim 1 : vector<64x256xf32>, i32 -> vector<64x256xf32>
    %119 = arith.mulf %118, %24 : vector<64x256xf32>
    %120 = arith.truncf %119 : vector<64x256xf32> to vector<64x256xbf16>
    %121 = tpu.concatenate %102, %105, %108, %109, %110, %111, %114, %117, %120 in 0 : vector<64x256xbf16>, vector<64x256xbf16>, vector<64x256xbf16>, vector<64x256xbf16>, vector<64x256xbf16>, vector<64x256xbf16>, vector<64x256xbf16>, vector<64x256xbf16>, vector<64x256xbf16> -> vector<576x256xbf16>
    %c0_47 = arith.constant 0 : index
    %c0_48 = arith.constant 0 : index
    %122 = vector.load %arg2[%c0_47, %c0_48] : memref<64x576xbf16, #tpu.memory_space<vmem>>, vector<64x576xbf16>
    %cst_49 = arith.constant dense<0.000000e+00> : vector<64x256xf32>
    %123 = tpu.matmul %122, %121, %cst_49 {dimension_numbers = #tpu.dot_dimension_numbers<[1], [0], [0], [1], [0, 0, 1, 1], [], []>} : vector<64x576xbf16>, vector<576x256xbf16>, vector<64x256xf32> -> vector<64x256xf32>
    %124 = vector.broadcast %25 : vector<64x1xf32> to vector<64x256xf32>
    %125 = arith.mulf %123, %124 : vector<64x256xf32>
    %126 = vector.broadcast %26 : vector<64x1xf32> to vector<64x256xf32>
    %127 = arith.addf %125, %126 : vector<64x256xf32>
    %cst_50 = arith.constant 0.000000e+00 : f32
    %128 = vector.broadcast %cst_50 : f32 to vector<64x256xf32>
    %129 = arith.maximumf %127, %128 : vector<64x256xf32>
    %c1_i32_51 = arith.constant 1 : i32
    %130 = tpu.dynamic_rotate %129 by %c1_i32_51 dim 1 : vector<64x256xf32>, i32 -> vector<64x256xf32>
    %131 = arith.mulf %130, %9 : vector<64x256xf32>
    %c255_i32_52 = arith.constant 255 : i32
    %132 = tpu.dynamic_rotate %129 by %c255_i32_52 dim 1 : vector<64x256xf32>, i32 -> vector<64x256xf32>
    %133 = arith.mulf %132, %14 : vector<64x256xf32>
    %c16_i32_53 = arith.constant 16 : i32
    %134 = tpu.dynamic_rotate %131 by %c16_i32_53 dim 1 : vector<64x256xf32>, i32 -> vector<64x256xf32>
    %135 = arith.mulf %134, %19 : vector<64x256xf32>
    %136 = arith.truncf %135 : vector<64x256xf32> to vector<64x256xbf16>
    %c16_i32_54 = arith.constant 16 : i32
    %137 = tpu.dynamic_rotate %129 by %c16_i32_54 dim 1 : vector<64x256xf32>, i32 -> vector<64x256xf32>
    %138 = arith.mulf %137, %19 : vector<64x256xf32>
    %139 = arith.truncf %138 : vector<64x256xf32> to vector<64x256xbf16>
    %c16_i32_55 = arith.constant 16 : i32
    %140 = tpu.dynamic_rotate %133 by %c16_i32_55 dim 1 : vector<64x256xf32>, i32 -> vector<64x256xf32>
    %141 = arith.mulf %140, %19 : vector<64x256xf32>
    %142 = arith.truncf %141 : vector<64x256xf32> to vector<64x256xbf16>
    %143 = arith.truncf %131 : vector<64x256xf32> to vector<64x256xbf16>
    %144 = arith.truncf %129 : vector<64x256xf32> to vector<64x256xbf16>
    %145 = arith.truncf %133 : vector<64x256xf32> to vector<64x256xbf16>
    %c240_i32_56 = arith.constant 240 : i32
    %146 = tpu.dynamic_rotate %131 by %c240_i32_56 dim 1 : vector<64x256xf32>, i32 -> vector<64x256xf32>
    %147 = arith.mulf %146, %24 : vector<64x256xf32>
    %148 = arith.truncf %147 : vector<64x256xf32> to vector<64x256xbf16>
    %c240_i32_57 = arith.constant 240 : i32
    %149 = tpu.dynamic_rotate %129 by %c240_i32_57 dim 1 : vector<64x256xf32>, i32 -> vector<64x256xf32>
    %150 = arith.mulf %149, %24 : vector<64x256xf32>
    %151 = arith.truncf %150 : vector<64x256xf32> to vector<64x256xbf16>
    %c240_i32_58 = arith.constant 240 : i32
    %152 = tpu.dynamic_rotate %133 by %c240_i32_58 dim 1 : vector<64x256xf32>, i32 -> vector<64x256xf32>
    %153 = arith.mulf %152, %24 : vector<64x256xf32>
    %154 = arith.truncf %153 : vector<64x256xf32> to vector<64x256xbf16>
    %155 = tpu.concatenate %136, %139, %142, %143, %144, %145, %148, %151, %154 in 0 : vector<64x256xbf16>, vector<64x256xbf16>, vector<64x256xbf16>, vector<64x256xbf16>, vector<64x256xbf16>, vector<64x256xbf16>, vector<64x256xbf16>, vector<64x256xbf16>, vector<64x256xbf16> -> vector<576x256xbf16>
    %c0_59 = arith.constant 0 : index
    %c0_60 = arith.constant 0 : index
    %156 = vector.load %arg5[%c0_59, %c0_60] : memref<64x576xbf16, #tpu.memory_space<vmem>>, vector<64x576xbf16>
    %cst_61 = arith.constant dense<0.000000e+00> : vector<64x256xf32>
    %157 = tpu.matmul %156, %155, %cst_61 {dimension_numbers = #tpu.dot_dimension_numbers<[1], [0], [0], [1], [0, 0, 1, 1], [], []>} : vector<64x576xbf16>, vector<576x256xbf16>, vector<64x256xf32> -> vector<64x256xf32>
    %158 = vector.broadcast %27 : vector<64x1xf32> to vector<64x256xf32>
    %159 = arith.mulf %157, %158 : vector<64x256xf32>
    %160 = vector.broadcast %28 : vector<64x1xf32> to vector<64x256xf32>
    %161 = arith.addf %159, %160 : vector<64x256xf32>
    %162 = arith.addf %95, %161 : vector<64x256xf32>
    %c1_i32_62 = arith.constant 1 : i32
    %163 = tpu.dynamic_rotate %162 by %c1_i32_62 dim 1 : vector<64x256xf32>, i32 -> vector<64x256xf32>
    %164 = arith.mulf %163, %9 : vector<64x256xf32>
    %c255_i32_63 = arith.constant 255 : i32
    %165 = tpu.dynamic_rotate %162 by %c255_i32_63 dim 1 : vector<64x256xf32>, i32 -> vector<64x256xf32>
    %166 = arith.mulf %165, %14 : vector<64x256xf32>
    %c16_i32_64 = arith.constant 16 : i32
    %167 = tpu.dynamic_rotate %164 by %c16_i32_64 dim 1 : vector<64x256xf32>, i32 -> vector<64x256xf32>
    %168 = arith.mulf %167, %19 : vector<64x256xf32>
    %169 = arith.truncf %168 : vector<64x256xf32> to vector<64x256xbf16>
    %c16_i32_65 = arith.constant 16 : i32
    %170 = tpu.dynamic_rotate %162 by %c16_i32_65 dim 1 : vector<64x256xf32>, i32 -> vector<64x256xf32>
    %171 = arith.mulf %170, %19 : vector<64x256xf32>
    %172 = arith.truncf %171 : vector<64x256xf32> to vector<64x256xbf16>
    %c16_i32_66 = arith.constant 16 : i32
    %173 = tpu.dynamic_rotate %166 by %c16_i32_66 dim 1 : vector<64x256xf32>, i32 -> vector<64x256xf32>
    %174 = arith.mulf %173, %19 : vector<64x256xf32>
    %175 = arith.truncf %174 : vector<64x256xf32> to vector<64x256xbf16>
    %176 = arith.truncf %164 : vector<64x256xf32> to vector<64x256xbf16>
    %177 = arith.truncf %162 : vector<64x256xf32> to vector<64x256xbf16>
    %178 = arith.truncf %166 : vector<64x256xf32> to vector<64x256xbf16>
    %c240_i32_67 = arith.constant 240 : i32
    %179 = tpu.dynamic_rotate %164 by %c240_i32_67 dim 1 : vector<64x256xf32>, i32 -> vector<64x256xf32>
    %180 = arith.mulf %179, %24 : vector<64x256xf32>
    %181 = arith.truncf %180 : vector<64x256xf32> to vector<64x256xbf16>
    %c240_i32_68 = arith.constant 240 : i32
    %182 = tpu.dynamic_rotate %162 by %c240_i32_68 dim 1 : vector<64x256xf32>, i32 -> vector<64x256xf32>
    %183 = arith.mulf %182, %24 : vector<64x256xf32>
    %184 = arith.truncf %183 : vector<64x256xf32> to vector<64x256xbf16>
    %c240_i32_69 = arith.constant 240 : i32
    %185 = tpu.dynamic_rotate %166 by %c240_i32_69 dim 1 : vector<64x256xf32>, i32 -> vector<64x256xf32>
    %186 = arith.mulf %185, %24 : vector<64x256xf32>
    %187 = arith.truncf %186 : vector<64x256xf32> to vector<64x256xbf16>
    %188 = tpu.concatenate %169, %172, %175, %176, %177, %178, %181, %184, %187 in 0 : vector<64x256xbf16>, vector<64x256xbf16>, vector<64x256xbf16>, vector<64x256xbf16>, vector<64x256xbf16>, vector<64x256xbf16>, vector<64x256xbf16>, vector<64x256xbf16>, vector<64x256xbf16> -> vector<576x256xbf16>
    %c0_70 = arith.constant 0 : index
    %c0_71 = arith.constant 0 : index
    %189 = vector.load %arg2[%c0_70, %c0_71] : memref<64x576xbf16, #tpu.memory_space<vmem>>, vector<64x576xbf16>
    %cst_72 = arith.constant dense<0.000000e+00> : vector<64x256xf32>
    %190 = tpu.matmul %189, %188, %cst_72 {dimension_numbers = #tpu.dot_dimension_numbers<[1], [0], [0], [1], [0, 0, 1, 1], [], []>} : vector<64x576xbf16>, vector<576x256xbf16>, vector<64x256xf32> -> vector<64x256xf32>
    %191 = vector.broadcast %25 : vector<64x1xf32> to vector<64x256xf32>
    %192 = arith.mulf %190, %191 : vector<64x256xf32>
    %193 = vector.broadcast %26 : vector<64x1xf32> to vector<64x256xf32>
    %194 = arith.addf %192, %193 : vector<64x256xf32>
    %cst_73 = arith.constant 0.000000e+00 : f32
    %195 = vector.broadcast %cst_73 : f32 to vector<64x256xf32>
    %196 = arith.maximumf %194, %195 : vector<64x256xf32>
    %c1_i32_74 = arith.constant 1 : i32
    %197 = tpu.dynamic_rotate %196 by %c1_i32_74 dim 1 : vector<64x256xf32>, i32 -> vector<64x256xf32>
    %198 = arith.mulf %197, %9 : vector<64x256xf32>
    %c255_i32_75 = arith.constant 255 : i32
    %199 = tpu.dynamic_rotate %196 by %c255_i32_75 dim 1 : vector<64x256xf32>, i32 -> vector<64x256xf32>
    %200 = arith.mulf %199, %14 : vector<64x256xf32>
    %c16_i32_76 = arith.constant 16 : i32
    %201 = tpu.dynamic_rotate %198 by %c16_i32_76 dim 1 : vector<64x256xf32>, i32 -> vector<64x256xf32>
    %202 = arith.mulf %201, %19 : vector<64x256xf32>
    %203 = arith.truncf %202 : vector<64x256xf32> to vector<64x256xbf16>
    %c16_i32_77 = arith.constant 16 : i32
    %204 = tpu.dynamic_rotate %196 by %c16_i32_77 dim 1 : vector<64x256xf32>, i32 -> vector<64x256xf32>
    %205 = arith.mulf %204, %19 : vector<64x256xf32>
    %206 = arith.truncf %205 : vector<64x256xf32> to vector<64x256xbf16>
    %c16_i32_78 = arith.constant 16 : i32
    %207 = tpu.dynamic_rotate %200 by %c16_i32_78 dim 1 : vector<64x256xf32>, i32 -> vector<64x256xf32>
    %208 = arith.mulf %207, %19 : vector<64x256xf32>
    %209 = arith.truncf %208 : vector<64x256xf32> to vector<64x256xbf16>
    %210 = arith.truncf %198 : vector<64x256xf32> to vector<64x256xbf16>
    %211 = arith.truncf %196 : vector<64x256xf32> to vector<64x256xbf16>
    %212 = arith.truncf %200 : vector<64x256xf32> to vector<64x256xbf16>
    %c240_i32_79 = arith.constant 240 : i32
    %213 = tpu.dynamic_rotate %198 by %c240_i32_79 dim 1 : vector<64x256xf32>, i32 -> vector<64x256xf32>
    %214 = arith.mulf %213, %24 : vector<64x256xf32>
    %215 = arith.truncf %214 : vector<64x256xf32> to vector<64x256xbf16>
    %c240_i32_80 = arith.constant 240 : i32
    %216 = tpu.dynamic_rotate %196 by %c240_i32_80 dim 1 : vector<64x256xf32>, i32 -> vector<64x256xf32>
    %217 = arith.mulf %216, %24 : vector<64x256xf32>
    %218 = arith.truncf %217 : vector<64x256xf32> to vector<64x256xbf16>
    %c240_i32_81 = arith.constant 240 : i32
    %219 = tpu.dynamic_rotate %200 by %c240_i32_81 dim 1 : vector<64x256xf32>, i32 -> vector<64x256xf32>
    %220 = arith.mulf %219, %24 : vector<64x256xf32>
    %221 = arith.truncf %220 : vector<64x256xf32> to vector<64x256xbf16>
    %222 = tpu.concatenate %203, %206, %209, %210, %211, %212, %215, %218, %221 in 0 : vector<64x256xbf16>, vector<64x256xbf16>, vector<64x256xbf16>, vector<64x256xbf16>, vector<64x256xbf16>, vector<64x256xbf16>, vector<64x256xbf16>, vector<64x256xbf16>, vector<64x256xbf16> -> vector<576x256xbf16>
    %c0_82 = arith.constant 0 : index
    %c0_83 = arith.constant 0 : index
    %223 = vector.load %arg5[%c0_82, %c0_83] : memref<64x576xbf16, #tpu.memory_space<vmem>>, vector<64x576xbf16>
    %cst_84 = arith.constant dense<0.000000e+00> : vector<64x256xf32>
    %224 = tpu.matmul %223, %222, %cst_84 {dimension_numbers = #tpu.dot_dimension_numbers<[1], [0], [0], [1], [0, 0, 1, 1], [], []>} : vector<64x576xbf16>, vector<576x256xbf16>, vector<64x256xf32> -> vector<64x256xf32>
    %225 = vector.broadcast %27 : vector<64x1xf32> to vector<64x256xf32>
    %226 = arith.mulf %224, %225 : vector<64x256xf32>
    %227 = vector.broadcast %28 : vector<64x1xf32> to vector<64x256xf32>
    %228 = arith.addf %226, %227 : vector<64x256xf32>
    %229 = arith.addf %162, %228 : vector<64x256xf32>
    %230 = arith.addf %95, %229 : vector<64x256xf32>
    %cst_85 = arith.constant dense<0.000000e+00> : vector<64xf32>
    %231 = vector.multi_reduction <add>, %230, %cst_85 [1] : vector<64x256xf32> to vector<64xf32>
    %232 = vector.shape_cast %231 : vector<64xf32> to vector<64x1xf32>
    %cst_86 = arith.constant 2.560000e+02 : f32
    %233 = vector.broadcast %cst_86 : f32 to vector<64x1xf32>
    %234 = arith.divf %232, %233 : vector<64x1xf32>
    %c0_87 = arith.constant 0 : index
    %c0_88 = arith.constant 0 : index
    %235 = vector.load %arg8[%c0_87, %c0_88] : memref<8x64xbf16, #tpu.memory_space<vmem>>, vector<8x64xbf16>
    %236 = arith.truncf %234 : vector<64x1xf32> to vector<64x1xbf16>
    %cst_89 = arith.constant dense<0.000000e+00> : vector<8x1xf32>
    %237 = tpu.matmul %235, %236, %cst_89 {dimension_numbers = #tpu.dot_dimension_numbers<[1], [0], [0], [1], [0, 0, 1, 1], [], []>} : vector<8x64xbf16>, vector<64x1xbf16>, vector<8x1xf32> -> vector<8x1xf32>
    %c0_90 = arith.constant 0 : index
    %c0_91 = arith.constant 0 : index
    %238 = vector.load %arg9[%c0_90, %c0_91] : memref<8x1xf32, #tpu.memory_space<vmem>>, vector<8x1xf32>
    %239 = arith.addf %237, %238 : vector<8x1xf32>
    %cst_92 = arith.constant 0.000000e+00 : f32
    %240 = vector.broadcast %cst_92 : f32 to vector<8x1xf32>
    %241 = arith.maximumf %239, %240 : vector<8x1xf32>
    %c0_93 = arith.constant 0 : index
    %c0_94 = arith.constant 0 : index
    %242 = vector.load %arg10[%c0_93, %c0_94] : memref<64x8xbf16, #tpu.memory_space<vmem>>, vector<64x8xbf16>
    %243 = arith.truncf %241 : vector<8x1xf32> to vector<8x1xbf16>
    %cst_95 = arith.constant dense<0.000000e+00> : vector<64x1xf32>
    %244 = tpu.matmul %242, %243, %cst_95 {dimension_numbers = #tpu.dot_dimension_numbers<[1], [0], [0], [1], [0, 0, 1, 1], [], []>} : vector<64x8xbf16>, vector<8x1xbf16>, vector<64x1xf32> -> vector<64x1xf32>
    %c0_96 = arith.constant 0 : index
    %c0_97 = arith.constant 0 : index
    %245 = vector.load %arg11[%c0_96, %c0_97] : memref<64x1xf32, #tpu.memory_space<vmem>>, vector<64x1xf32>
    %246 = arith.addf %244, %245 : vector<64x1xf32>
    %247 = arith.negf %246 : vector<64x1xf32>
    %248 = math.exp %247 : vector<64x1xf32>
    %cst_98 = arith.constant 1.000000e+00 : f32
    %249 = vector.broadcast %cst_98 : f32 to vector<64x1xf32>
    %250 = arith.addf %249, %248 : vector<64x1xf32>
    %251 = arith.divf %249, %250 : vector<64x1xf32>
    %252 = vector.broadcast %251 : vector<64x1xf32> to vector<64x256xf32>
    %253 = arith.mulf %230, %252 : vector<64x256xf32>
    %c0_99 = arith.constant 0 : index
    %c0_100 = arith.constant 0 : index
    %254 = vector.load %arg12[%c0_99, %c0_100] : memref<8x64xbf16, #tpu.memory_space<vmem>>, vector<8x64xbf16>
    %255 = arith.truncf %253 : vector<64x256xf32> to vector<64x256xbf16>
    %cst_101 = arith.constant dense<0.000000e+00> : vector<8x256xf32>
    %256 = tpu.matmul %254, %255, %cst_101 {dimension_numbers = #tpu.dot_dimension_numbers<[1], [0], [0], [1], [0, 0, 1, 1], [], []>} : vector<8x64xbf16>, vector<64x256xbf16>, vector<8x256xf32> -> vector<8x256xf32>
    %c0_102 = arith.constant 0 : index
    %c0_103 = arith.constant 0 : index
    %257 = vector.load %arg13[%c0_102, %c0_103] : memref<8x1xf32, #tpu.memory_space<vmem>>, vector<8x1xf32>
    %258 = vector.broadcast %257 : vector<8x1xf32> to vector<8x256xf32>
    %259 = arith.addf %256, %258 : vector<8x256xf32>
    %cst_104 = arith.constant 0.000000e+00 : f32
    %260 = vector.broadcast %cst_104 : f32 to vector<8x256xf32>
    %261 = arith.maximumf %259, %260 : vector<8x256xf32>
    %c0_105 = arith.constant 0 : index
    %c0_106 = arith.constant 0 : index
    %262 = vector.load %arg14[%c0_105, %c0_106] : memref<8x1xf32, #tpu.memory_space<vmem>>, vector<8x1xf32>
    %263 = vector.broadcast %262 : vector<8x1xf32> to vector<8x256xf32>
    %264 = arith.mulf %261, %263 : vector<8x256xf32>
    %cst_107 = arith.constant dense<0.000000e+00> : vector<256xf32>
    %265 = vector.multi_reduction <add>, %264, %cst_107 [0] : vector<8x256xf32> to vector<256xf32>
    %266 = vector.shape_cast %265 : vector<256xf32> to vector<1x256xf32>
    %c0_108 = arith.constant 0 : index
    %c0_109 = arith.constant 0 : index
    %267 = vector.load %arg15[%c0_108, %c0_109] : memref<1x1xf32, #tpu.memory_space<vmem>>, vector<1x1xf32>
    %268 = vector.broadcast %267 : vector<1x1xf32> to vector<1x256xf32>
    %269 = arith.addf %266, %268 : vector<1x256xf32>
    %270 = arith.negf %269 : vector<1x256xf32>
    %271 = math.exp %270 : vector<1x256xf32>
    %cst_110 = arith.constant 1.000000e+00 : f32
    %272 = vector.broadcast %cst_110 : f32 to vector<1x256xf32>
    %273 = arith.addf %272, %271 : vector<1x256xf32>
    %274 = arith.divf %272, %273 : vector<1x256xf32>
    %275 = vector.broadcast %274 : vector<1x256xf32> to vector<64x256xf32>
    %276 = arith.mulf %253, %275 : vector<64x256xf32>
    %277 = arith.addf %276, %1 : vector<64x256xf32>
    %c0_111 = arith.constant 0 : index
    %c0_112 = arith.constant 0 : index
    %c0_113 = arith.constant 0 : index
    %278 = vector.load %arg16[%c0_111, %c0_112, %c0_113] : memref<1x64x256xf32, #tpu.memory_space<vmem>>, vector<1x64x256xf32>
    %279 = vector.shape_cast %278 : vector<1x64x256xf32> to vector<64x256xf32>
    %280 = vector.shape_cast %277 : vector<64x256xf32> to vector<1x64x256xf32>
    tpu.vector_store %arg16[%c0_111, %c0_112, %c0_113], %280 {strides = array<i32>} : memref<1x64x256xf32, #tpu.memory_space<vmem>>, vector<1x64x256xf32>,
    return
  }
  func.func @transform_0(%arg0: i32) -> (i32, i32, i32) {
    %c0_i32 = arith.constant 0 : i32
    %c0_i32_0 = arith.constant 0 : i32
    %c0_i32_1 = arith.constant 0 : i32
    return %arg0, %c0_i32, %c0_i32_0 : i32, i32, i32
  }
  func.func @transform_1(%arg0: i32) -> (i32, i32) {
    %c0_i32 = arith.constant 0 : i32
    %c0_i32_0 = arith.constant 0 : i32
    %c0_i32_1 = arith.constant 0 : i32
    return %c0_i32, %c0_i32_0 : i32, i32
  }
  func.func @transform_2(%arg0: i32) -> (i32, i32) {
    %c0_i32 = arith.constant 0 : i32
    %c0_i32_0 = arith.constant 0 : i32
    %c0_i32_1 = arith.constant 0 : i32
    return %c0_i32, %c0_i32_0 : i32, i32
  }
  func.func @transform_3(%arg0: i32) -> (i32, i32) {
    %c0_i32 = arith.constant 0 : i32
    %c0_i32_0 = arith.constant 0 : i32
    %c0_i32_1 = arith.constant 0 : i32
    return %c0_i32, %c0_i32_0 : i32, i32
  }
  func.func @transform_4(%arg0: i32) -> (i32, i32) {
    %c0_i32 = arith.constant 0 : i32
    %c0_i32_0 = arith.constant 0 : i32
    %c0_i32_1 = arith.constant 0 : i32
    return %c0_i32, %c0_i32_0 : i32, i32
  }
  func.func @transform_5(%arg0: i32) -> (i32, i32) {
    %c0_i32 = arith.constant 0 : i32
    %c0_i32_0 = arith.constant 0 : i32
    %c0_i32_1 = arith.constant 0 : i32
    return %c0_i32, %c0_i32_0 : i32, i32
  }
  func.func @transform_6(%arg0: i32) -> (i32, i32) {
    %c0_i32 = arith.constant 0 : i32
    %c0_i32_0 = arith.constant 0 : i32
    %c0_i32_1 = arith.constant 0 : i32
    return %c0_i32, %c0_i32_0 : i32, i32
  }
  func.func @transform_7(%arg0: i32) -> (i32, i32) {
    %c0_i32 = arith.constant 0 : i32
    %c0_i32_0 = arith.constant 0 : i32
    %c0_i32_1 = arith.constant 0 : i32
    return %c0_i32, %c0_i32_0 : i32, i32
  }
  func.func @transform_8(%arg0: i32) -> (i32, i32) {
    %c0_i32 = arith.constant 0 : i32
    %c0_i32_0 = arith.constant 0 : i32
    %c0_i32_1 = arith.constant 0 : i32
    return %c0_i32, %c0_i32_0 : i32, i32
  }
  func.func @transform_9(%arg0: i32) -> (i32, i32) {
    %c0_i32 = arith.constant 0 : i32
    %c0_i32_0 = arith.constant 0 : i32
    %c0_i32_1 = arith.constant 0 : i32
    return %c0_i32, %c0_i32_0 : i32, i32
  }
  func.func @transform_10(%arg0: i32) -> (i32, i32) {
    %c0_i32 = arith.constant 0 : i32
    %c0_i32_0 = arith.constant 0 : i32
    %c0_i32_1 = arith.constant 0 : i32
    return %c0_i32, %c0_i32_0 : i32, i32
  }
  func.func @transform_11(%arg0: i32) -> (i32, i32) {
    %c0_i32 = arith.constant 0 : i32
    %c0_i32_0 = arith.constant 0 : i32
    %c0_i32_1 = arith.constant 0 : i32
    return %c0_i32, %c0_i32_0 : i32, i32
  }
  func.func @transform_12(%arg0: i32) -> (i32, i32) {
    %c0_i32 = arith.constant 0 : i32
    %c0_i32_0 = arith.constant 0 : i32
    %c0_i32_1 = arith.constant 0 : i32
    return %c0_i32, %c0_i32_0 : i32, i32
  }
  func.func @transform_13(%arg0: i32) -> (i32, i32) {
    %c0_i32 = arith.constant 0 : i32
    %c0_i32_0 = arith.constant 0 : i32
    %c0_i32_1 = arith.constant 0 : i32
    return %c0_i32, %c0_i32_0 : i32, i32
  }
  func.func @transform_14(%arg0: i32) -> (i32, i32) {
    %c0_i32 = arith.constant 0 : i32
    %c0_i32_0 = arith.constant 0 : i32
    %c0_i32_1 = arith.constant 0 : i32
    return %c0_i32, %c0_i32_0 : i32, i32
  }
  func.func @transform_15(%arg0: i32) -> (i32, i32, i32) {
    %c0_i32 = arith.constant 0 : i32
    %c0_i32_0 = arith.constant 0 : i32
    %c0_i32_1 = arith.constant 0 : i32
    return %arg0, %c0_i32, %c0_i32_0 : i32, i32, i32
  }
}

</mosaic_0001>

<bundles_post_ra>
// kernel: tpu_custom_call.1
= control target key start
LH: loop header
LB: loop body
LE: loop exit
PB: predicated region body
PF: predicated region fallthrough
CT: control target
= control target key end

     0   :  { %s14344_s0 = inlined_call_operand.hbm [shape: f32[2,64,256], index: 0, kind: input, shape index: {}]   ;;  %s14345_s1 = inlined_call_operand.hbm [shape: bf16[64,576], index: 1, kind: input, shape index: {}]   ;;  %s14346_s2 = inlined_call_operand.vmem [shape: f32[64,1], index: 2, kind: input, shape index: {}]   ;;  %s14347_s3 = inlined_call_operand.vmem [shape: f32[64,1], index: 3, kind: input, shape index: {}]   ;;  %s14348_s4 = inlined_call_operand.hbm [shape: bf16[64,576], index: 4, kind: input, shape index: {}]   ;;  %s14349_s5 = inlined_call_operand.vmem [shape: f32[64,1], index: 5, kind: input, shape index: {}]   ;;  %s14350_s6 = inlined_call_operand.vmem [shape: f32[64,1], index: 6, kind: input, shape index: {}]   ;;  %s14351_s7 = inlined_call_operand.vmem [shape: bf16[8,64], index: 7, kind: input, shape index: {}]   ;;  %s14352_s8 = inlined_call_operand.vmem [shape: f32[8,1], index: 8, kind: input, shape index: {}]   ;;  %s14353_s9 = inlined_call_operand.vmem [shape: bf16[64,8], index: 9, kind: input, shape index: {}]   ;;  %s14354_s10 = inlined_call_operand.vmem [shape: f32[64,1], index: 10, kind: input, shape index: {}]   ;;  %s14355_s11 = inlined_call_operand.vmem [shape: bf16[8,64], index: 11, kind: input, shape index: {}]   ;;  %s14356_s12 = inlined_call_operand.vmem [shape: f32[8,1], index: 12, kind: input, shape index: {}]   ;;  %s14357_s13 = inlined_call_operand.vmem [shape: f32[8,1], index: 13, kind: input, shape index: {}]   ;;  %s14358_s14 = inlined_call_operand.<no memory space> [shape: f32[1,1], index: 14, kind: input, shape index: {}]   ;;  %s14359_s15 = inlined_call_operand.hbm [shape: f32[2,64,256], index: 15, kind: output, shape index: {}]  }
   0x1   :  { %14633 = sst [smem:[#allocation97_spill]] %s14355_s11  ;;  %v20_v0 = vstv %s14358_s14 }
   0x2   :  { %14634 = sst [smem:[#allocation98_spill]] %s14356_s12  ;;  %21 = vst [vmem:[#allocation2] sm:$0x1] %v20_v0 }
   0x3   :  { %14635 = sst [smem:[#allocation99_spill]] %s14357_s13 }
   0x4   :  { %14636 = sst [smem:[#allocation100_spill]] %s14359_s15 }
   0x5   :  { %22 = vsyncpa [#allocation4], 0 }
   0x6   :  { %24 = vsyncpa [#allocation4 + $0x1], 0 }
   0x7   :  { %25 = vsyncpa [#allocation7], 0 }
   0x8   :  { %26 = vsyncpa [#allocation5], 0 }
   0x9   :  { %28 = vsyncpa [#allocation5 + $0x1], 0  ;;  %s7625_s20 = smov 0   ;;  %s7627_s21 = smov 0  }
   0xa   :  { %s7629_s22 = smov 0   ;;  %s7631_s23 = smov 0  }
   0xb LB: > { %14637 = sst [smem:[#allocation13_spill]] %s7512_s20  ;;  %s7646_s14 = sadd.s32 4294967295, %s7524_s23   ;;  %s7524_s23 = sphi %s7631_s23, %s15048_s23   ;;  %s7520_s22 = sphi %s7629_s22, %s15047_s22   ;;  %s7516_s21 = sphi %s7627_s21, %s15046_s21   ;;  %s7512_s20 = sphi %s7625_s20, %s15045_s20  }
   0xc   : > { %s6738_s24 = sadd.s32 4294967294, %s7524_s23   ;;  %p54_p0 = scmp.ne.s32.totalorder %s7516_s21, %s7512_s20 }
   0xd   : > { %p14363_p1 = scmp.eq.s32.totalorder %s7646_s14, 0  ;;  %p378_p3 = scmp.eq.s32.totalorder %s6738_s24, 1 }
   0xe   : > { %p6739_p5 = scmp.ge.s32.totalorder %s7524_s23, 1  ;;  %p385_p7 = scmp.lt.s32.totalorder %s7524_s23, 3 }
   0xf   : > { %p7655_p4 = por %p14363_p1, %p54_p0  ;;  %p7660_p6 = por %p378_p3, %p54_p0 }
  0x10   : > { %p7665_p8 = pnand %p6739_p5, %p385_p7  ;;  %s7526_s28 = smov [#allocation6]  }
  0x11   : > { %s14638_s25 = scalar_select %p7655_p4, 1, 0 }
  0x12   : > { %s14639_s26 = scalar_select %p7660_p6, 1, 0 }
  0x13   : > { %s397_s29 = sshll.u32 %s7526_s28, 4  ;;  %p7079_p9 = pneg %p7665_p8  ;;  %s7669_s29 = int_to_ptr.vmem [resolvable:$true] %s397_s29 }
  0x14   : > { %14640 = sst [smem:[#allocation14_spill]] %s14639_s26  ;;  %s7527_s16 = smov [#allocation8]  }
  0x15   : > { %p7676_p11 = pnand %p7079_p9, %p14363_p1  ;;  %s416_s17 = sshll.u32 %s7527_s16, 4  ;;  %s7680_s17 = int_to_ptr.vmem [resolvable:$true] %s416_s17 }
  0x16   : > { %s7368_s24 = scalar_lea.hbm %s14345_s1, 2560 }
  0x17   : > { %p7369_p12 = scmp.ne.s32.totalorder %s14345_s1, %s7368_s24  ;;  %p7370_p13 = pneg %p7676_p11 }
  0x18   : > { %p7375_p5 = scmp.lt.u32.totalorder %s7368_s24, %s14345_s1 }
  0x19   : > { %p7371_p0 = pnand %p7370_p13, %p7369_p12 }
  0x1b   : > { %p7372_p3 = pneg %p7371_p0 }
  0x1d   : > { %p7377_p7 = pnand %p7375_p5, %p7372_p3 }
  0x1f   : > { %7380 = shalt.err (!%p7377_p7)
}
  0x20   : > { %s7381_s16 = scalar_lea.vmem %s7669_s29, 2560  ;;  %p7389_p2 = scmp.lt.s32.totalorder %s7669_s29, %s7669_s29 }
  0x21   : > { %p7382_p9 = scmp.ne.s32.totalorder %s7669_s29, %s7381_s16  ;;  %p7390_p12 = scmp.lt.s32.totalorder %s7381_s16, %s7381_s16 }
  0x23   : > { %p7384_p10 = pnand %p7382_p9, %p7370_p13  ;;  %p7391_p0 = por %p7390_p12, %p7389_p2 }
  0x25   : > { %p7385_p1 = pneg %p7384_p10 }
  0x27   : > { %p7392_p6 = pnand %p7391_p0, %p7385_p1 }
  0x29   : > { %7395 = shalt.err (!%p7392_p6)
}
  0x2a   : > { %s7528_s15 = smov 320   ;;  %s7529_s20 = smov 20  }
  0x2b   : > { %7082 = dma.hbm_to_vmem [thread:$0]  (!%p7676_p11), %s14345_s1, 2560, %s7669_s29, [#allocation7], %s7528_s15, %s7528_s15, %s7529_s20  }
  0x2c   : > { %s7396_s28 = scalar_lea.hbm %s14348_s4, 2560 }
  0x2d   : > { %p7397_p2 = scmp.ne.s32.totalorder %s14348_s4, %s7396_s28  ;;  %p7403_p10 = scmp.lt.u32.totalorder %s7396_s28, %s14348_s4 }
  0x2f   : > { %p7399_p1 = pnand %p7397_p2, %p7370_p13 }
  0x31   : > { %p7400_p6 = pneg %p7399_p1 }
  0x33   : > { %p7405_p3 = pnand %p7403_p10, %p7400_p6 }
  0x35   : > { %7408 = shalt.err (!%p7405_p3)
}
  0x36   : > { %s7409_s29 = scalar_lea.vmem %s7680_s17, 2560  ;;  %p7417_p12 = scmp.lt.s32.totalorder %s7680_s17, %s7680_s17 }
  0x37   : > { %p7410_p5 = scmp.ne.s32.totalorder %s7680_s17, %s7409_s29  ;;  %p7418_p0 = scmp.lt.s32.totalorder %s7409_s29, %s7409_s29 }
  0x39   : > { %p7412_p7 = pnand %p7410_p5, %p7370_p13  ;;  %p7419_p2 = por %p7418_p0, %p7417_p12 }
  0x3b   : > { %p7413_p9 = pneg %p7412_p7 }
  0x3d   : > { %p7420_p1 = pnand %p7419_p2, %p7413_p9 }
  0x3f   : > { %7423 = shalt.err (!%p7420_p1)
}
  0x40   : > { %7085 = dma.hbm_to_vmem [thread:$0]  (!%p7676_p11), %s14348_s4, 2560, %s7680_s17, [#allocation7], %s7528_s15, %s7528_s15, %s7529_s20  }
  0x41   : > { %s7735_s13 = sadd.s32 1, %s7524_s23   ;;  %s41_s30 = sadd.s32 1, %s7520_s22 }
  0x42   : > { %s38_s26 = ssub.s32 %s7524_s23, %s7735_s13  ;;  %p48_p13 = scmp.ne.s32.totalorder %s7520_s22, %s7516_s21 }
  0x43   : > { %p39_p6 = scmp.eq.s32.totalorder %s38_s26, 0  ;;  %p49_p10 = scmp.eq.s32.totalorder %s7524_s23, 0 }
  0x44   : > { %p14643_p3 = scmp.eq.s32.totalorder %s7646_s14, 1  ;;  %p7096_p7 = scmp.lt.s32.totalorder %s7524_s23, 2 }
  0x45   : > { %s7751_s19 = scalar_select %p39_p6, %s7520_s22, %s41_s30  }
  0x46   : > { %p7745_p5 = por %p14643_p3, %p48_p13  ;;  %p50_p9 = por %p49_p10, %p48_p13 }
  0x47   : > { %s460_s24 = sand.u32 1, %s7520_s22   ;;  %s6840_s17 = sshll.u32 %s7524_s23, 11 }
  0x48   : > { %s14644_s18 = scalar_select %p7745_p5, 1, 0 }
  0x49   : > { %s6743_s28 = sshll.u32 %s460_s24, 7  ;;  %s7758_s16 = scalar_lea.hbm %s14344_s0, %s6840_s17 }
  0x4a   : > { %s464_s29 = scalar_lea.vmem [#allocation3], %s6743_s28  ;;  %p7762_p11 = pnand %p7096_p7, %p50_p9 }
  0x4b   : > { %s471_s11 = sshll.u32 %s464_s29, 4  ;;  %s7766_s30 = scalar_lea.sflag [#allocation4], %s460_s24  ;;  %s7760_s11 = int_to_ptr.vmem [resolvable:$true] %s471_s11 }
  0x4c   : > { %s7424_s26 = scalar_lea.hbm %s7758_s16, 2048  ;;  %p7426_p0 = pneg %p7762_p11 }
  0x4d   : > { %p7425_p12 = scmp.ne.s32.totalorder %s7758_s16, %s7424_s26  ;;  %s7429_s15 = scalar_lea.hbm %s14344_s0, 4096 }
  0x4e   : > { %p7430_p13 = scmp.lt.u32.totalorder %s7758_s16, %s14344_s0  ;;  %p7431_p6 = scmp.lt.u32.totalorder %s7429_s15, %s7424_s26 }
  0x4f   : > { %p7427_p2 = pnand %p7426_p0, %p7425_p12  ;;  %p7433_p3 = scmp.lt.u32.totalorder %s7424_s26, %s7758_s16 }
  0x50   : > { %p7432_p10 = por %p7431_p6, %p7430_p13 }
  0x51   : > { %p7428_p1 = pneg %p7427_p2 }
  0x52   : > { %p7434_p7 = por %p7433_p3, %p7432_p10 }
  0x54   : > { %p7435_p9 = pnand %p7434_p7, %p7428_p1 }
  0x56   : > { %7438 = shalt.err (!%p7435_p9)
}
  0x57   : > { %s7439_s24 = scalar_lea.vmem %s7760_s11, 2048  ;;  %s7530_s28 = smov [#allocation3]  }
  0x58   : > { %p7440_p12 = scmp.ne.s32.totalorder %s7760_s11, %s7439_s24  ;;  %s7444_s17 = sshll.u32 %s7530_s28, 4  ;;  %s7445_s17 = int_to_ptr.vmem [resolvable:$false] %s7444_s17 }
  0x59   : > { %s7446_s20 = scalar_lea.vmem %s7445_s17, 4096  ;;  %p7447_p4 = scmp.lt.s32.totalorder %s7760_s11, %s7445_s17 }
  0x5a   : > { %p7442_p2 = pnand %p7440_p12, %p7426_p0  ;;  %p7448_p13 = scmp.lt.s32.totalorder %s7446_s20, %s7439_s24 }
  0x5c   : > { %p7443_p5 = pneg %p7442_p2  ;;  %p7449_p6 = por %p7448_p13, %p7447_p4 }
  0x5e   : > { %p7450_p10 = pnand %p7449_p6, %p7443_p5 }
  0x60   : > { %7453 = shalt.err (!%p7450_p10)
}
  0x61   : > { %s7531_s26 = smov 256   ;;  %s7532_s15 = smov 16  }
  0x62   : > { %7089 = dma.hbm_to_vmem [thread:$0]  (!%p7762_p11), %s7758_s16, 2048, %s7760_s11, %s7766_s30, %s7531_s26, %s7531_s26, %s7532_s15  }
  0x63   : > { %483 = sbr.rel (%p7665_p8) target bundleno = 5175 (0x1437), region = 80 }
  0x6a   : > { %s7797_s29 = sand.u32 1, %s7516_s21   ;;  %p14646_p4 = scmp.ne.s32.totalorder %s14638_s25, 0 }
  0x6b   : > { %s6747_s24 = sshll.u32 %s7797_s29, 7  ;;  %s486_s28 = scalar_lea.sflag [#allocation4], %s7797_s29 }
  0x6c   : > { %s7803_s17 = scalar_lea.vmem [#allocation3], %s6747_s24 }
  0x6d   : > { %7499 = dma.done.wait (%p14646_p4), %s486_s28, 2048  }
  0x6e   : > { %7501 = vsyncadd (%p14646_p4), %s486_s28, 4294965248  ;;  %p14647_p5 = scmp.eq.s32.totalorder %s7646_s14, 0 }
  0x70   : > { %7503 = dma.done.wait (%p14647_p5), [#allocation7], 5120   ;;  %p14648_p8 = pmov %p14647_p5 }
  0x71   : > { %v7814_v1 = vld [vmem:[%s7803_s17 + $0x8] sm:$0xff]  ;;  %v7817_v2 = vld [vmem:[%s7803_s17] sm:$0xff]  ;;  %s7533_s25 = smov 1   ;;  %v7824_v3 = vld [vmem:[%s7803_s17 + $0x18] sm:$0xff]  ;;  %s7534_s27 = smov 127   ;;  %v14366_v17 = vlaneseq  ;;  %v14367_v22 = vmov 0.0  }
  0x72   : > { %7505 = vsyncadd (%p14648_p8), [#allocation7], 4294962176  ;;  %630 = vrot.lane.b32.xlu1 %v7814_v1, %s7533_s25  ;;  %614 = vrot.lane.b32.xlu0 %v7817_v2, %s7533_s25  ;;  %v7827_v4 = vld [vmem:[%s7803_s17 + $0x10] sm:$0xff]  ;;  %v7837_v6 = vld [vmem:[%s7803_s17 + $0x20] sm:$0xff]  ;;  %s7535_s16 = smov 16   ;;  %s7537_s11 = smov 112  }
  0x73   : > { %v7834_v5 = vld [vmem:[%s7803_s17 + $0x30] sm:$0xff]  ;;  %v7840_v7 = vld [vmem:[%s7803_s17 + $0x38] sm:$0xff]  ;;  %v7843_v8 = vld [vmem:[%s7803_s17 + $0x28] sm:$0xff]  ;;  %v7958_v18 = vand.u32 127, %v14366_v17  ;;  %vm1326_vm10 = vcmask 523264   ;;  %vm7539_vm11 = vmmov 0  }
  0x74   : > { %v7850_v9 = vld [vmem:[%s7803_s17 + $0x50] sm:$0xff]  ;;  %v7853_v10 = vld [vmem:[%s7803_s17 + $0x40] sm:$0xff]  ;;  %v7860_v11 = vld [vmem:[%s7803_s17 + $0x58] sm:$0xff]  ;;  %vm6293_vm12 = vcmask 64512   ;;  %vm6306_vm13 = vcmask 1043456   ;;  %s15035_s15 = sld [smem:[#allocation98_spill]] }
  0x75   : > { %14649 = vst [vmem:[#allocation15_spill] sm:$0xff] %v7860_v11  ;;  %v7863_v12 = vld [vmem:[%s7803_s17 + $0x48] sm:$0xff]  ;;  %v7870_v13 = vld [vmem:[%s7803_s17 + $0x70] sm:$0xff]  ;;  %v7873_v14 = vld [vmem:[%s7803_s17 + $0x60] sm:$0xff]  ;;  %v564_v19 = vand.u32 15, %v7958_v18  ;;  %v7962_v20 = vadd.s32 128, %v7958_v18 }
  0x76   : > { %632 = vrot.lane.b32.xlu1 %v7824_v3, %s7533_s25  ;;  %616 = vrot.lane.b32.xlu0 %v7827_v4, %s7533_s25  ;;  %14650 = vst [vmem:[#allocation16_spill] sm:$0xff] %v7863_v12  ;;  %v7884_v15 = vld [vmem:[%s7803_s17 + $0x78] sm:$0xff]  ;;  %v7887_v16 = vld [vmem:[%s7803_s17 + $0x68] sm:$0xff]  ;;  %vm646_vm1 = vcmp.lt.s32.totalorder %v7958_v18, 1  ;;  %vm711_vm4 = vcmp.lt.s32.totalorder %v7958_v18, 127  ;;  %vm574_vm6 = vcmp.ge.s32.totalorder %v7958_v18, 16 }
  0x77   : > { %14651 = vst [vmem:[#allocation17_spill] sm:$0xff] %v7962_v20  ;;  %vm566_vm0 = vcmp.ge.s32.totalorder %v564_v19, 1  ;;  %v565_v21 = vand.u32 15, %v7962_v20  ;;  %vm570_vm3 = vcmp.le.s32.totalorder %v564_v19, 14  ;;  %vm776_vm7 = vcmp.lt.s32.totalorder %v7958_v18, 16  ;;  %s15036_s30 = sld [smem:[#allocation99_spill]] }
  0x78   : > { %v7969_v23 = vsel %vm566_vm0, 1.0, %v14367_v22  ;;  %vm1017_vm8 = vcmp.lt.s32.totalorder %v7958_v18, 112  ;;  %v7350_v18 = vld [vmem:[#allocation8 + $0x60] ss:$20 sps:$4 sm:$0xff]   ;;  %s15039_s12 = sld [smem:[#allocation100_spill]]  ;;  %p15040_p0 = scmp.ne.s32.totalorder %s14644_s18, 0 }
  0x79   : > { %14652 = vst [vmem:[#allocation18_spill] sm:$0xff] %v7969_v23  ;;  %vm567_vm2 = vcmp.ge.s32.totalorder %v565_v21, 1  ;;  %vm571_vm5 = vcmp.le.s32.totalorder %v565_v21, 14  ;;  %s7540_s20 = smov [#allocation9]  }
  0x7a   : > { %620 = vrot.lane.b32.xlu1 %v7834_v5, %s7533_s25  ;;  %618 = vrot.lane.b32.xlu0 %v7837_v6, %s7533_s25  ;;  %v7981_v29 = vsel %vm567_vm2, 1.0, %v14367_v22  ;;  %v8117_v21 = vsel %vm571_vm5, 1.0, %v14367_v22  ;;  %s7458_s26 = sshll.u32 %s7540_s20, 4  ;;  %s7459_s26 = int_to_ptr.vmem [resolvable:$false] %s7458_s26 }
  0x7b   : > { %14653 = vst [vmem:[#allocation19_spill] sm:$0xff] %v7981_v29  ;;  %14659 = vst [vmem:[#allocation25_spill] sm:$0xff] %v8117_v21 }
  0x7e   : > { %636 = vrot.lane.b32.xlu1 %v7840_v7, %s7533_s25  ;;  %634 = vrot.lane.b32.xlu0 %v7843_v8, %s7533_s25 }
  0x82   : > { %624 = vrot.lane.b32.xlu1 %v7850_v9, %s7533_s25  ;;  %622 = vrot.lane.b32.xlu0 %v7853_v10, %s7533_s25 }
  0x86   : > { %640 = vrot.lane.b32.xlu1 %v7860_v11, %s7533_s25  ;;  %638 = vrot.lane.b32.xlu0 %v7863_v12, %s7533_s25 }
  0x8a   : > { %628 = vrot.lane.b32.xlu1 %v7870_v13, %s7533_s25  ;;  %626 = vrot.lane.b32.xlu0 %v7873_v14, %s7533_s25 }
  0x8e   : > { %644 = vrot.lane.b32.xlu1 %v7884_v15, %s7533_s25  ;;  %642 = vrot.lane.b32.xlu0 %v7887_v16, %s7533_s25 }
  0x92   : > { %681 = vrot.lane.b32.xlu1 %v7827_v4, %s7534_s27  ;;  %679 = vrot.lane.b32.xlu0 %v7817_v2, %s7534_s27 }
  0x96   : > { %697 = vrot.lane.b32.xlu1 %v7824_v3, %s7534_s27  ;;  %695 = vrot.lane.b32.xlu0 %v7814_v1, %s7534_s27 }
  0x9a   : > { %685 = vrot.lane.b32.xlu1 %v7834_v5, %s7534_s27  ;;  %683 = vrot.lane.b32.xlu0 %v7837_v6, %s7534_s27 }
  0x9e   : > { %701 = vrot.lane.b32.xlu1 %v7840_v7, %s7534_s27  ;;  %699 = vrot.lane.b32.xlu0 %v7843_v8, %s7534_s27 }
  0xa2   : > { %689 = vrot.lane.b32.xlu1 %v7850_v9, %s7534_s27  ;;  %687 = vrot.lane.b32.xlu0 %v7853_v10, %s7534_s27 }
  0xa6   : > { %705 = vrot.lane.b32.xlu1 %v7860_v11, %s7534_s27  ;;  %703 = vrot.lane.b32.xlu0 %v7863_v12, %s7534_s27 }
  0xaa   : > { %693 = vrot.lane.b32.xlu1 %v7870_v13, %s7534_s27  ;;  %691 = vrot.lane.b32.xlu0 %v7873_v14, %s7534_s27 }
  0xae   : > { %709 = vrot.lane.b32.xlu1 %v7884_v15, %s7534_s27  ;;  %707 = vrot.lane.b32.xlu0 %v7887_v16, %s7534_s27 }
  0xb2   : > { %819 = vrot.lane.b32.xlu1 %v7827_v4, %s7535_s16  ;;  %817 = vrot.lane.b32.xlu0 %v7817_v2, %s7535_s16 }
  0xb6   : > { %835 = vrot.lane.b32.xlu1 %v7824_v3, %s7535_s16  ;;  %833 = vrot.lane.b32.xlu0 %v7814_v1, %s7535_s16 }
  0xba   : > { %823 = vrot.lane.b32.xlu1 %v7834_v5, %s7535_s16  ;;  %821 = vrot.lane.b32.xlu0 %v7837_v6, %s7535_s16 }
  0xbe   : > { %839 = vrot.lane.b32.xlu1 %v7840_v7, %s7535_s16  ;;  %837 = vrot.lane.b32.xlu0 %v7843_v8, %s7535_s16 }
  0xc2   : > { %827 = vrot.lane.b32.xlu1 %v7850_v9, %s7535_s16  ;;  %825 = vrot.lane.b32.xlu0 %v7853_v10, %s7535_s16 }
  0xc6   : > { %843 = vrot.lane.b32.xlu1 %v7860_v11, %s7535_s16  ;;  %841 = vrot.lane.b32.xlu0 %v7863_v12, %s7535_s16 }
  0xca   : > { %831 = vrot.lane.b32.xlu1 %v7870_v13, %s7535_s16  ;;  %829 = vrot.lane.b32.xlu0 %v7873_v14, %s7535_s16 }
  0xce   : > { %847 = vrot.lane.b32.xlu1 %v7884_v15, %s7535_s16  ;;  %845 = vrot.lane.b32.xlu0 %v7887_v16, %s7535_s16 }
  0xe4   : > { %v631_v24 = vpop.permute.xlu1 %630  ;;  %v615_v25 = vpop.permute.xlu0 %614 }
  0xe5   : > { %v655_v26 = vsel %vm646_vm1, %v631_v24, %v615_v25  ;;  %v647_v28 = vsel %vm646_vm1, %v615_v25, %v631_v24 }
  0xe6   : > { %v7976_v27 = vmul.f32 %v655_v26, %v7969_v23  ;;  %v7988_v33 = vmul.f32 %v647_v28, %v7981_v29 }
  0xe8   : > { %v633_v30 = vpop.permute.xlu1 %632  ;;  %744 = vrot.lane.b32.xlu0 %v7976_v27, %s7535_s16  ;;  %v617_v31 = vpop.permute.xlu0 %616 }
  0xe9   : > { %v656_v32 = vsel %vm646_vm1, %v633_v30, %v617_v31  ;;  %v648_v35 = vsel %vm646_vm1, %v617_v31, %v633_v30 }
  0xea   : > { %v7991_v34 = vmul.f32 %v656_v32, %v7969_v23  ;;  %v8000_v38 = vmul.f32 %v648_v35, %v7981_v29 }
  0xec   : > { %v621_v36 = vpop.permute.xlu1 %620  ;;  %760 = vrot.lane.b32.xlu0 %v7988_v33, %s7535_s16  ;;  %746 = vrot.lane.b32.xlu1 %v7991_v34, %s7535_s16  ;;  %v619_v37 = vpop.permute.xlu0 %618 }
  0xf0   : > { %v637_v39 = vpop.permute.xlu1 %636  ;;  %762 = vrot.lane.b32.xlu1 %v8000_v38, %s7535_s16  ;;  %v635_v40 = vpop.permute.xlu0 %634 }
  0xf1   : > { %v658_v41 = vsel %vm646_vm1, %v637_v39, %v621_v36  ;;  %v657_v42 = vsel %vm646_vm1, %v635_v40, %v619_v37  ;;  %v650_v45 = vsel %vm646_vm1, %v621_v36, %v637_v39  ;;  %v649_v46 = vsel %vm646_vm1, %v619_v37, %v635_v40 }
  0xf2   : > { %v8009_v43 = vmul.f32 %v658_v41, %v7969_v23  ;;  %v8012_v44 = vmul.f32 %v657_v42, %v7969_v23  ;;  %v8025_v50 = vmul.f32 %v650_v45, %v7981_v29  ;;  %v8028_v51 = vmul.f32 %v649_v46, %v7981_v29 }
  0xf3   : > { %v8094_v42 = vsel %vm570_vm3, 1.0, %v14367_v22 }
  0xf4   : > { %v625_v47 = vpop.permute.xlu1 %624  ;;  %750 = vrot.lane.b32.xlu1 %v8009_v43, %s7535_s16  ;;  %748 = vrot.lane.b32.xlu0 %v8012_v44, %s7535_s16  ;;  %v623_v48 = vpop.permute.xlu0 %622  ;;  %14658 = vst [vmem:[#allocation24_spill] sm:$0xff] %v8094_v42 }
  0xf8   : > { %v641_v52 = vpop.permute.xlu1 %640  ;;  %766 = vrot.lane.b32.xlu1 %v8025_v50, %s7535_s16  ;;  %764 = vrot.lane.b32.xlu0 %v8028_v51, %s7535_s16  ;;  %v639_v53 = vpop.permute.xlu0 %638 }
  0xf9   : > { %v660_v54 = vsel %vm646_vm1, %v641_v52, %v625_v47  ;;  %v659_v55 = vsel %vm646_vm1, %v639_v53, %v623_v48  ;;  %v652_v58 = vsel %vm646_vm1, %v625_v47, %v641_v52  ;;  %v651_v59 = vsel %vm646_vm1, %v623_v48, %v639_v53 }
  0xfa   : > { %v8039_v56 = vmul.f32 %v660_v54, %v7969_v23  ;;  %v8042_v57 = vmul.f32 %v659_v55, %v7969_v23  ;;  %v8055_v63 = vmul.f32 %v652_v58, %v7981_v29  ;;  %v8058_v0 = vmul.f32 %v651_v59, %v7981_v29 }
  0xfc   : > { %14654 = vst [vmem:[#allocation20_spill] sm:$0xff] %v8039_v56  ;;  %14655 = vst [vmem:[#allocation21_spill] sm:$0xff] %v8042_v57  ;;  %v629_v60 = vpop.permute.xlu1 %628  ;;  %754 = vrot.lane.b32.xlu1 %v8039_v56, %s7535_s16  ;;  %752 = vrot.lane.b32.xlu0 %v8042_v57, %s7535_s16  ;;  %v627_v61 = vpop.permute.xlu0 %626 }
 0x100   : > { %v645_v24 = vpop.permute.xlu1 %644  ;;  %770 = vrot.lane.b32.xlu1 %v8055_v63, %s7535_s16  ;;  %768 = vrot.lane.b32.xlu0 %v8058_v0, %s7535_s16  ;;  %v643_v25 = vpop.permute.xlu0 %642 }
 0x101   : > { %v662_v26 = vsel %vm646_vm1, %v645_v24, %v629_v60  ;;  %v661_v28 = vsel %vm646_vm1, %v643_v25, %v627_v61  ;;  %v654_v32 = vsel %vm646_vm1, %v629_v60, %v645_v24  ;;  %v653_v35 = vsel %vm646_vm1, %v627_v61, %v643_v25 }
 0x102   : > { %v8069_v30 = vmul.f32 %v662_v26, %v7969_v23  ;;  %v8072_v31 = vmul.f32 %v661_v28, %v7969_v23  ;;  %v8088_v40 = vmul.f32 %v654_v32, %v7981_v29  ;;  %v8091_v41 = vmul.f32 %v653_v35, %v7981_v29 }
 0x104   : > { %14656 = vst [vmem:[#allocation22_spill] sm:$0xff] %v8069_v30  ;;  %14657 = vst [vmem:[#allocation23_spill] sm:$0xff] %v8072_v31  ;;  %v682_v36 = vpop.permute.xlu1 %681  ;;  %758 = vrot.lane.b32.xlu1 %v8069_v30, %s7535_s16  ;;  %756 = vrot.lane.b32.xlu0 %v8072_v31, %s7535_s16  ;;  %v680_v37 = vpop.permute.xlu0 %679 }
 0x108   : > { %v698_v45 = vpop.permute.xlu1 %697  ;;  %774 = vrot.lane.b32.xlu1 %v8088_v40, %s7535_s16  ;;  %772 = vrot.lane.b32.xlu0 %v8091_v41, %s7535_s16  ;;  %v696_v19 = vpop.permute.xlu0 %695 }
 0x109   : > { %v713_v46 = vsel %vm711_vm4, %v682_v36, %v698_v45  ;;  %v712_v47 = vsel %vm711_vm4, %v680_v37, %v696_v19  ;;  %v721_v53 = vsel %vm711_vm4, %v698_v45, %v682_v36  ;;  %v720_v54 = vsel %vm711_vm4, %v696_v19, %v680_v37 }
 0x10a   : > { %v8107_v48 = vmul.f32 %v713_v46, %v8094_v42  ;;  %v8110_v52 = vmul.f32 %v712_v47, %v8094_v42  ;;  %v8124_v59 = vmul.f32 %v721_v53, %v8117_v21  ;;  %v8127_v60 = vmul.f32 %v720_v54, %v8117_v21 }
 0x10c   : > { %v686_v55 = vpop.permute.xlu1 %685  ;;  %891 = vrot.lane.b32.xlu1 %v8107_v48, %s7535_s16  ;;  %889 = vrot.lane.b32.xlu0 %v8110_v52, %s7535_s16  ;;  %v684_v58 = vpop.permute.xlu0 %683 }
 0x110   : > { %v702_v61 = vpop.permute.xlu1 %701  ;;  %907 = vrot.lane.b32.xlu1 %v8124_v59, %s7535_s16  ;;  %905 = vrot.lane.b32.xlu0 %v8127_v60, %s7535_s16  ;;  %v700_v24 = vpop.permute.xlu0 %699 }
 0x111   : > { %v715_v25 = vsel %vm711_vm4, %v686_v55, %v702_v61  ;;  %v714_v26 = vsel %vm711_vm4, %v684_v58, %v700_v24  ;;  %v723_v35 = vsel %vm711_vm4, %v702_v61, %v686_v55  ;;  %v722_v36 = vsel %vm711_vm4, %v700_v24, %v684_v58 }
 0x112   : > { %v8138_v28 = vmul.f32 %v715_v25, %v8094_v42  ;;  %v8141_v32 = vmul.f32 %v714_v26, %v8094_v42  ;;  %v8152_v19 = vmul.f32 %v723_v35, %v8117_v21  ;;  %v8155_v46 = vmul.f32 %v722_v36, %v8117_v21 }
 0x114   : > { %v690_v37 = vpop.permute.xlu1 %689  ;;  %895 = vrot.lane.b32.xlu1 %v8138_v28, %s7535_s16  ;;  %893 = vrot.lane.b32.xlu0 %v8141_v32, %s7535_s16  ;;  %v688_v45 = vpop.permute.xlu0 %687 }
 0x118   : > { %v706_v47 = vpop.permute.xlu1 %705  ;;  %911 = vrot.lane.b32.xlu1 %v8152_v19, %s7535_s16  ;;  %909 = vrot.lane.b32.xlu0 %v8155_v46, %s7535_s16  ;;  %v704_v53 = vpop.permute.xlu0 %703 }
 0x119   : > { %v717_v54 = vsel %vm711_vm4, %v690_v37, %v706_v47  ;;  %v716_v55 = vsel %vm711_vm4, %v688_v45, %v704_v53  ;;  %v725_v24 = vsel %vm711_vm4, %v706_v47, %v690_v37  ;;  %v724_v25 = vsel %vm711_vm4, %v704_v53, %v688_v45 }
 0x11a   : > { %v8166_v58 = vmul.f32 %v717_v54, %v8094_v42  ;;  %v8169_v61 = vmul.f32 %v716_v55, %v8094_v42  ;;  %v8180_v36 = vmul.f32 %v725_v24, %v8117_v21  ;;  %v8183_v54 = vmul.f32 %v724_v25, %v8117_v21 }
 0x11c   : > { %v694_v26 = vpop.permute.xlu1 %693  ;;  %899 = vrot.lane.b32.xlu1 %v8166_v58, %s7535_s16  ;;  %897 = vrot.lane.b32.xlu0 %v8169_v61, %s7535_s16  ;;  %v692_v35 = vpop.permute.xlu0 %691 }
 0x120   : > { %v710_v55 = vpop.permute.xlu1 %709  ;;  %915 = vrot.lane.b32.xlu1 %v8180_v36, %s7535_s16  ;;  %913 = vrot.lane.b32.xlu0 %v8183_v54, %s7535_s16  ;;  %v708_v37 = vpop.permute.xlu0 %707 }
 0x121   : > { %v719_v45 = vsel %vm711_vm4, %v694_v26, %v710_v55  ;;  %v718_v47 = vsel %vm711_vm4, %v692_v35, %v708_v37  ;;  %v727_v25 = vsel %vm711_vm4, %v710_v55, %v694_v26  ;;  %v726_v17 = vsel %vm711_vm4, %v708_v37, %v692_v35  ;;  %v8231_v55 = vld [vmem:[#allocation6 + $0x4] ss:$20 sps:$4 sm:$0xff]  }
 0x122   : > { %v8194_v53 = vmul.f32 %v719_v45, %v8094_v42  ;;  %v8197_v24 = vmul.f32 %v718_v47, %v8094_v42  ;;  %v8208_v39 = vmul.f32 %v727_v25, %v8117_v21  ;;  %v8211_v45 = vmul.f32 %v726_v17, %v8117_v21  ;;  %14660 = vst [vmem:[#allocation26_spill] sm:$0xff] %v8231_v55 }
 0x123   : > { %1371 = vmatprep.mubr.bf16.mxu0 %v8231_v55 }
 0x124   : > { %903 = vrot.lane.b32.xlu1 %v8194_v53, %s7535_s16  ;;  %901 = vrot.lane.b32.xlu0 %v8197_v24, %s7535_s16  ;;  %v8217_v26 = vpop.permute.xlu0 %817  ;;  %v8227_v17 = vpop.permute.xlu1 %819 }
 0x128   : > { %919 = vrot.lane.b32.xlu1 %v8208_v39, %s7535_s16  ;;  %917 = vrot.lane.b32.xlu0 %v8211_v45, %s7535_s16  ;;  %v8229_v35 = vpop.permute.xlu0 %833  ;;  %v8238_v37 = vpop.permute.xlu1 %835 }
 0x12c   : > { %987 = vrot.lane.b32.xlu1 %v7991_v34, %s7537_s11  ;;  %985 = vrot.lane.b32.xlu0 %v7976_v27, %s7537_s11  ;;  %v8240_v47 = vpop.permute.xlu0 %821  ;;  %v8250_v25 = vpop.permute.xlu1 %823 }
 0x130   : > { %1003 = vrot.lane.b32.xlu1 %v8000_v38, %s7537_s11  ;;  %1001 = vrot.lane.b32.xlu0 %v7988_v33, %s7537_s11  ;;  %v8252_v62 = vpop.permute.xlu0 %837  ;;  %v8258_v49 = vpop.permute.xlu1 %839 }
 0x134   : > { %991 = vrot.lane.b32.xlu1 %v8009_v43, %s7537_s11  ;;  %989 = vrot.lane.b32.xlu0 %v8012_v44, %s7537_s11  ;;  %v8260_v22 = vpop.permute.xlu0 %825  ;;  %v8270_v21 = vpop.permute.xlu1 %827 }
 0x138   : > { %1007 = vrot.lane.b32.xlu1 %v8025_v50, %s7537_s11  ;;  %1005 = vrot.lane.b32.xlu0 %v8028_v51, %s7537_s11  ;;  %v8272_v42 = vpop.permute.xlu0 %841  ;;  %v8278_v29 = vpop.permute.xlu1 %843 }
 0x13c   : > { %995 = vrot.lane.b32.xlu1 %v8039_v56, %s7537_s11  ;;  %993 = vrot.lane.b32.xlu0 %v8042_v57, %s7537_s11  ;;  %v8280_v23 = vpop.permute.xlu0 %829  ;;  %v8286_v55 = vpop.permute.xlu1 %831 }
 0x140   : > { %1011 = vrot.lane.b32.xlu1 %v8055_v63, %s7537_s11  ;;  %1009 = vrot.lane.b32.xlu0 %v8058_v0, %s7537_s11 }
 0x144   : > { %999 = vrot.lane.b32.xlu1 %v8069_v30, %s7537_s11  ;;  %997 = vrot.lane.b32.xlu0 %v8072_v31, %s7537_s11 }
 0x148   : > { %1015 = vrot.lane.b32.xlu1 %v8088_v40, %s7537_s11  ;;  %1013 = vrot.lane.b32.xlu0 %v8091_v41, %s7537_s11 }
 0x14c   : > { %1060 = vrot.lane.b32.xlu1 %v7827_v4, %s7537_s11  ;;  %1058 = vrot.lane.b32.xlu0 %v7817_v2, %s7537_s11  ;;  %v8292_v4 = vpop.permute.xlu0 %845  ;;  %v8298_v2 = vpop.permute.xlu1 %847 }
 0x150   : > { %1076 = vrot.lane.b32.xlu1 %v7824_v3, %s7537_s11  ;;  %1074 = vrot.lane.b32.xlu0 %v7814_v1, %s7537_s11 }
 0x154   : > { %1064 = vrot.lane.b32.xlu1 %v7834_v5, %s7537_s11  ;;  %1062 = vrot.lane.b32.xlu0 %v7837_v6, %s7537_s11 }
 0x158   : > { %1080 = vrot.lane.b32.xlu1 %v7840_v7, %s7537_s11  ;;  %1078 = vrot.lane.b32.xlu0 %v7843_v8, %s7537_s11  ;;  %v14661_v8 = vmov 0.0  }
 0x15a   : > { %v745_v3 = vpop.permute.xlu0 %744 }
 0x15c   : > { %1068 = vrot.lane.b32.xlu1 %v7850_v9, %s7537_s11  ;;  %1066 = vrot.lane.b32.xlu0 %v7853_v10, %s7537_s11  ;;  %v8313_v9 = vsel %vm574_vm6, 1.0, %v14661_v8 }
 0x15e   : > { %v747_v1 = vpop.permute.xlu1 %746  ;;  %v761_v5 = vpop.permute.xlu0 %760 }
 0x15f   : > { %v785_v6 = vsel %vm776_vm7, %v761_v5, %v745_v3  ;;  %v777_v20 = vsel %vm776_vm7, %v745_v3, %v761_v5 }
 0x160   : > { %1084 = vrot.lane.b32.xlu1 %v7860_v11, %s7537_s11  ;;  %1082 = vrot.lane.b32.xlu0 %v7863_v12, %s7537_s11  ;;  %v793_v12 = vmul.f32 %v785_v6, %v8313_v9 }
 0x162   : > { %v763_v7 = vpop.permute.xlu1 %762 }
 0x163   : > { %v786_v10 = vsel %vm776_vm7, %v763_v7, %v747_v1  ;;  %v778_v31 = vsel %vm776_vm7, %v747_v1, %v763_v7 }
 0x164   : > { %1072 = vrot.lane.b32.xlu1 %v7870_v13, %s7537_s11  ;;  %1070 = vrot.lane.b32.xlu0 %v7873_v14, %s7537_s11  ;;  %v810_v11 = vpack.c.bf16 %v778_v31, %v777_v20  ;;  %v795_v8 = vmul.f32 %v786_v10, %v8313_v9 }
 0x166   : > { %v751_v30 = vpop.permute.xlu1 %750  ;;  %1339 = vmatprep.subr.bf16.mxu0 %v810_v11  ;;  %v749_v57 = vpop.permute.xlu0 %748  ;;  %v809_v56 = vpack.c.bf16 %v795_v8, %v793_v12 }
 0x168   : > { %1088 = vrot.lane.b32.xlu1 %v7884_v15, %s7537_s11  ;;  %1086 = vrot.lane.b32.xlu0 %v7887_v16, %s7537_s11 }
 0x169   : > { %1340 = vmatpush1.bf16.msra.mxu0 %v809_v56 }
 0x16a   : > { %v767_v3 = vpop.permute.xlu1 %766  ;;  %v765_v1 = vpop.permute.xlu0 %764 }
 0x16b   : > { %v780_v20 = vsel %vm776_vm7, %v751_v30, %v767_v3  ;;  %v788_v31 = vsel %vm776_vm7, %v767_v3, %v751_v30  ;;  %v779_v11 = vsel %vm776_vm7, %v749_v57, %v765_v1  ;;  %v787_v12 = vsel %vm776_vm7, %v765_v1, %v749_v57 }
 0x16c   : > { %v799_v5 = vmul.f32 %v788_v31, %v8313_v9  ;;  %v797_v6 = vmul.f32 %v787_v12, %v8313_v9  ;;  %1132 = vrot.lane.b32.xlu1 %v8107_v48, %s7537_s11  ;;  %1130 = vrot.lane.b32.xlu0 %v8110_v52, %s7537_s11  ;;  %v812_v56 = vpack.c.bf16 %v780_v20, %v779_v11 }
 0x16e   : > { %v755_v7 = vpop.permute.xlu1 %754  ;;  %1341 = vmatprep.subr.bf16.mxu0 %v812_v56  ;;  %v753_v30 = vpop.permute.xlu0 %752  ;;  %v811_v8 = vpack.c.bf16 %v799_v5, %v797_v6 }
 0x170   : > { %1148 = vrot.lane.b32.xlu1 %v8124_v59, %s7537_s11  ;;  %1146 = vrot.lane.b32.xlu0 %v8127_v60, %s7537_s11 }
 0x171   : > { %1342 = vmatpush1.bf16.msra.mxu0 %v811_v8  ;;  %v857_v8 = vsel %vm776_vm7, %v8229_v35, %v8217_v26 }
 0x172   : > { %v771_v57 = vpop.permute.xlu1 %770  ;;  %v769_v10 = vpop.permute.xlu0 %768 }
 0x173   : > { %v782_v3 = vsel %vm776_vm7, %v755_v7, %v771_v57  ;;  %v790_v1 = vsel %vm776_vm7, %v771_v57, %v755_v7  ;;  %v781_v20 = vsel %vm776_vm7, %v753_v30, %v769_v10  ;;  %v789_v31 = vsel %vm776_vm7, %v769_v10, %v753_v30 }
 0x174   : > { %v803_v11 = vmul.f32 %v790_v1, %v8313_v9  ;;  %v801_v12 = vmul.f32 %v789_v31, %v8313_v9  ;;  %1136 = vrot.lane.b32.xlu1 %v8138_v28, %s7537_s11  ;;  %1134 = vrot.lane.b32.xlu0 %v8141_v32, %s7537_s11  ;;  %v814_v5 = vpack.c.bf16 %v782_v3, %v781_v20 }
 0x175   : > { %v858_v30 = vsel %vm776_vm7, %v8238_v37, %v8227_v17 }
 0x176   : > { %v759_v6 = vpop.permute.xlu1 %758  ;;  %1343 = vmatprep.subr.bf16.mxu0 %v814_v5  ;;  %v757_v56 = vpop.permute.xlu0 %756  ;;  %v813_v7 = vpack.c.bf16 %v803_v11, %v801_v12 }
 0x178   : > { %1152 = vrot.lane.b32.xlu1 %v8152_v19, %s7537_s11  ;;  %1150 = vrot.lane.b32.xlu0 %v8155_v46, %s7537_s11 }
 0x179   : > { %1344 = vmatpush1.bf16.msra.mxu0 %v813_v7  ;;  %v867_v7 = vmul.f32 %v858_v30, %v8313_v9 }
 0x17a   : > { %v775_v57 = vpop.permute.xlu1 %774  ;;  %v773_v10 = vpop.permute.xlu0 %772 }
 0x17b   : > { %v784_v3 = vsel %vm776_vm7, %v759_v6, %v775_v57  ;;  %v792_v1 = vsel %vm776_vm7, %v775_v57, %v759_v6  ;;  %v783_v20 = vsel %vm776_vm7, %v757_v56, %v773_v10  ;;  %v791_v31 = vsel %vm776_vm7, %v773_v10, %v757_v56 }
 0x17c   : > { %v807_v11 = vmul.f32 %v792_v1, %v8313_v9  ;;  %v805_v12 = vmul.f32 %v791_v31, %v8313_v9  ;;  %1140 = vrot.lane.b32.xlu1 %v8166_v58, %s7537_s11  ;;  %1138 = vrot.lane.b32.xlu0 %v8169_v61, %s7537_s11  ;;  %v816_v5 = vpack.c.bf16 %v784_v3, %v783_v20 }
 0x17d   : > { %v850_v6 = vsel %vm776_vm7, %v8227_v17, %v8238_v37  ;;  %v849_v56 = vsel %vm776_vm7, %v8217_v26, %v8229_v35  ;;  %v865_v57 = vmul.f32 %v857_v8, %v8313_v9  ;;  %v860_v3 = vsel %vm776_vm7, %v8258_v49, %v8250_v25 }
 0x17e   : > { %v892_v10 = vpop.permute.xlu1 %891  ;;  %1345 = vmatprep.subr.bf16.mxu0 %v816_v5  ;;  %v890_v1 = vpop.permute.xlu0 %889  ;;  %v815_v31 = vpack.c.bf16 %v807_v11, %v805_v12  ;;  %v859_v17 = vsel %vm776_vm7, %v8252_v62, %v8240_v47  ;;  %v882_v26 = vpack.c.bf16 %v850_v6, %v849_v56  ;;  %v852_v35 = vsel %vm776_vm7, %v8250_v25, %v8258_v49 }
 0x17f   : > { %v851_v37 = vsel %vm776_vm7, %v8240_v47, %v8252_v62  ;;  %v881_v20 = vpack.c.bf16 %v867_v7, %v865_v57  ;;  %v871_v11 = vmul.f32 %v860_v3, %v8313_v9  ;;  %v869_v12 = vmul.f32 %v859_v17, %v8313_v9 }
 0x180   : > { %1156 = vrot.lane.b32.xlu1 %v8180_v36, %s7537_s11  ;;  %1154 = vrot.lane.b32.xlu0 %v8183_v54, %s7537_s11  ;;  %v862_v5 = vsel %vm776_vm7, %v8278_v29, %v8270_v21  ;;  %v861_v49 = vsel %vm776_vm7, %v8272_v42, %v8260_v22  ;;  %v884_v62 = vpack.c.bf16 %v852_v35, %v851_v37 }
 0x181   : > { %1346 = vmatpush1.bf16.msra.mxu0 %v815_v31  ;;  %v854_v47 = vsel %vm776_vm7, %v8270_v21, %v8278_v29  ;;  %v853_v25 = vsel %vm776_vm7, %v8260_v22, %v8272_v42  ;;  %v875_v6 = vmul.f32 %v862_v5, %v8313_v9  ;;  %v873_v56 = vmul.f32 %v861_v49, %v8313_v9 }
 0x182   : > { %1347 = vmatprep.subr.bf16.mxu0 %v882_v26  ;;  %v908_v30 = vpop.permute.xlu1 %907  ;;  %v906_v8 = vpop.permute.xlu0 %905  ;;  %v883_v31 = vpack.c.bf16 %v871_v11, %v869_v12  ;;  %v864_v3 = vsel %vm776_vm7, %v8298_v2, %v8286_v55  ;;  %v863_v29 = vsel %vm776_vm7, %v8292_v4, %v8280_v23  ;;  %v886_v22 = vpack.c.bf16 %v854_v47, %v853_v25 }
 0x183   : > { %v856_v42 = vsel %vm776_vm7, %v8286_v55, %v8298_v2  ;;  %v855_v21 = vsel %vm776_vm7, %v8280_v23, %v8292_v4  ;;  %v885_v35 = vpack.c.bf16 %v875_v6, %v873_v56  ;;  %v879_v37 = vmul.f32 %v864_v3, %v8313_v9 }
 0x184   : > { %1144 = vrot.lane.b32.xlu1 %v8194_v53, %s7537_s11  ;;  %1142 = vrot.lane.b32.xlu0 %v8197_v24, %s7537_s11  ;;  %v930_v11 = vsel %vm776_vm7, %v908_v30, %v892_v10  ;;  %v929_v55 = vsel %vm776_vm7, %v906_v8, %v890_v1  ;;  %v888_v2 = vpack.c.bf16 %v856_v42, %v855_v21  ;;  %v14385_v4 = vmov 0  }
 0x185   : > { %1348 = vmatpush1.bf16.msra.mxu0 %v881_v20  ;;  %v877_v20 = vmul.f32 %v863_v29, %v8313_v9  ;;  %v922_v12 = vsel %vm776_vm7, %v892_v10, %v908_v30  ;;  %v921_v23 = vsel %vm776_vm7, %v890_v1, %v906_v8  ;;  %7147 = vset.pattern.permute.xlu1 %v14385_v4 }
 0x186   : > { %1349 = vmatprep.subr.bf16.mxu0 %v884_v62  ;;  %v896_v7 = vpop.permute.xlu1 %895  ;;  %v894_v57 = vpop.permute.xlu0 %893  ;;  %v939_v5 = vmul.f32 %v930_v11, %v8313_v9  ;;  %v937_v49 = vmul.f32 %v929_v55, %v8313_v9  ;;  %7146 = vset.pattern.permute.xlu0 %v14385_v4  ;;  %v954_v30 = vpack.c.bf16 %v922_v12, %v921_v23 }
 0x187   : > { %v887_v25 = vpack.c.bf16 %v879_v37, %v877_v20 }
 0x188   : > { %1160 = vrot.lane.b32.xlu1 %v8208_v39, %s7537_s11  ;;  %1158 = vrot.lane.b32.xlu0 %v8211_v45, %s7537_s11  ;;  %v953_v3 = vpack.c.bf16 %v939_v5, %v937_v49 }
 0x189   : > { %1350 = vmatpush1.bf16.msra.mxu0 %v883_v31 }
 0x18a   : > { %1351 = vmatprep.subr.bf16.mxu0 %v886_v22  ;;  %v912_v17 = vpop.permute.xlu1 %911  ;;  %v910_v26 = vpop.permute.xlu0 %909 }
 0x18b   : > { %v932_v10 = vsel %vm776_vm7, %v912_v17, %v896_v7  ;;  %v931_v1 = vsel %vm776_vm7, %v910_v26, %v894_v57  ;;  %v924_v8 = vsel %vm776_vm7, %v896_v7, %v912_v17  ;;  %v923_v6 = vsel %vm776_vm7, %v894_v57, %v910_v26 }
 0x18c   : > { %v943_v29 = vmul.f32 %v932_v10, %v8313_v9  ;;  %v941_v22 = vmul.f32 %v931_v1, %v8313_v9 }
 0x18d   : > { %1352 = vmatpush1.bf16.msra.mxu0 %v885_v35  ;;  %v956_v35 = vpack.c.bf16 %v924_v8, %v923_v6 }
 0x18e   : > { %1353 = vmatprep.subr.bf16.mxu0 %v888_v2  ;;  %v900_v62 = vpop.permute.xlu1 %899  ;;  %v898_v47 = vpop.permute.xlu0 %897  ;;  %v955_v11 = vpack.c.bf16 %v943_v29, %v941_v22  ;;  %v961_v29 = vpack.c.bf16 %v7991_v34, %v7976_v27  ;;  %v964_v22 = vpack.c.bf16 %v8025_v50, %v8028_v51  ;;  %v968_v50 = vpack.c.bf16 %v8088_v40, %v8091_v41  ;;  %v583_v51 = vld [vmem:[%s14346_s2 + $0x8] sm:$0xff]  ;;  %v7249_v41 = vld [vmem:[%s7803_s17 + $0x18] sm:$0xff] }
 0x18f   : > { %1565 = vperm.xlu1 %7147, %v583_v51   ;;  %v7248_v40 = vld [vmem:[%s7803_s17 + $0x8] sm:$0xff]  ;;  %v14670_v51 = vld [vmem:[#allocation15_spill] sm:$0xff] }
 0x191   : > { %1354 = vmatpush1.bf16.msra.mxu0 %v887_v25 }
 0x192   : > { %1355 = vmatprep.subr.bf16.mxu0 %v954_v30  ;;  %v916_v56 = vpop.permute.xlu1 %915  ;;  %v914_v31 = vpop.permute.xlu0 %913 }
 0x193   : > { %v934_v42 = vsel %vm776_vm7, %v916_v56, %v900_v62  ;;  %v933_v21 = vsel %vm776_vm7, %v914_v31, %v898_v47  ;;  %v926_v7 = vsel %vm776_vm7, %v900_v62, %v916_v56  ;;  %v925_v57 = vsel %vm776_vm7, %v898_v47, %v914_v31 }
 0x194   : > { %v947_v17 = vmul.f32 %v934_v42, %v8313_v9  ;;  %v945_v26 = vmul.f32 %v933_v21, %v8313_v9  ;;  %v958_v55 = vpack.c.bf16 %v926_v7, %v925_v57  ;;  %v962_v56 = vpack.c.bf16 %v8000_v38, %v7988_v33 }
 0x195   : > { %1356 = vmatpush1.bf16.msra.mxu0 %v953_v3  ;;  %v966_v33 = vpack.c.bf16 %v8055_v63, %v8058_v0  ;;  %v14662_v38 = vpack.c.bf16 %v8009_v43, %v8012_v44  ;;  %v582_v63 = vld [vmem:[%s14346_s2] sm:$0xff]  ;;  %v14663_v43 = vld [vmem:[#allocation20_spill] sm:$0xff]  ;;  %v14664_v44 = vld [vmem:[#allocation21_spill] sm:$0xff]  ;;  %v970_v57 = vpack.c.bf16 %v7249_v41, %v7248_v40 }
 0x196   : > { %1357 = vmatprep.subr.bf16.mxu0 %v956_v35  ;;  %v904_v37 = vpop.permute.xlu1 %903  ;;  %v902_v20 = vpop.permute.xlu0 %901  ;;  %v957_v23 = vpack.c.bf16 %v947_v17, %v945_v26  ;;  %v14665_v0 = vpack.c.bf16 %v14663_v43, %v14664_v44  ;;  %1560 = vperm.xlu0 %7146, %v582_v63   ;;  %v590_v17 = vld [vmem:[%s14347_s3] sm:$0xff]  ;;  %v591_v26 = vld [vmem:[%s14347_s3 + $0x8] sm:$0xff]  ;;  %v592_v43 = vld [vmem:[%s14347_s3 + $0x10] sm:$0xff] }
 0x197   : > { %1616 = vperm.xlu1 %7147, %v590_v17   ;;  %v7153_v44 = vld [vmem:[#allocation6 + $0x28] ss:$20 sps:$4 sm:$0xff]   ;;  %v7256_v40 = vld [vmem:[%s7803_s17 + $0x50] sm:$0xff]  ;;  %v7257_v41 = vld [vmem:[%s7803_s17 + $0x40] sm:$0xff] }
 0x198   : > { %v7154_v17 = vld [vmem:[#allocation6 + $0x54] ss:$20 sps:$4 sm:$0xff]  }
 0x199   : > { %1358 = vmatpush1.bf16.msra.mxu0 %v955_v11  ;;  %v14667_v11 = vld [vmem:[#allocation23_spill] sm:$0xff] }
 0x19a   : > { %1359 = vmatprep.subr.bf16.mxu0 %v958_v55  ;;  %v920_v2 = vpop.permute.xlu1 %919  ;;  %v918_v12 = vpop.permute.xlu0 %917  ;;  %1621 = vperm.xlu0 %7146, %v591_v26  }
 0x19b   : > { %v928_v5 = vsel %vm776_vm7, %v904_v37, %v920_v2  ;;  %v936_v49 = vsel %vm776_vm7, %v920_v2, %v904_v37  ;;  %v927_v62 = vsel %vm776_vm7, %v902_v20, %v918_v12  ;;  %v935_v47 = vsel %vm776_vm7, %v918_v12, %v902_v20  ;;  %v7150_v37 = vld [vmem:[#allocation6] ss:$20 sps:$4 sm:$0xff]   ;;  %v14666_v20 = vld [vmem:[#allocation22_spill] sm:$0xff] }
 0x19c   : > { %v951_v25 = vmul.f32 %v936_v49, %v8313_v9  ;;  %v949_v10 = vmul.f32 %v935_v47, %v8313_v9  ;;  %v960_v1 = vpack.c.bf16 %v928_v5, %v927_v62  ;;  %v14668_v55 = vpack.c.bf16 %v14666_v20, %v14667_v11  ;;  %v7250_v2 = vld [vmem:[%s7803_s17] sm:$0xff]  ;;  %v7251_v12 = vld [vmem:[%s7803_s17 + $0x10] sm:$0xff]  ;;  %v7252_v47 = vld [vmem:[%s7803_s17 + $0x38] sm:$0xff] }
 0x19d   : > { %1360 = vmatpush1.bf16.msra.mxu0 %v957_v23  ;;  %v969_v23 = vpack.c.bf16 %v7251_v12, %v7250_v2  ;;  %v7151_v5 = vld [vmem:[#allocation6 + $0x2c] ss:$20 sps:$4 sm:$0xff]   ;;  %v976_v20 = vpack.c.bf16 %v7884_v15, %v7887_v16  ;;  %v975_v2 = vpack.c.bf16 %v7870_v13, %v7873_v14  ;;  %v978_v16 = vpack.c.bf16 %v8124_v59, %v8127_v60  ;;  %v7157_v14 = vld [vmem:[#allocation6 + $0x7c] ss:$20 sps:$4 sm:$0xff]  }
 0x19e   : > { %v8507_v30 = vpop.permute.xlu1 %987  ;;  %1361 = vmatprep.subr.bf16.mxu0 %v960_v1  ;;  %v8509_v8 = vpop.permute.xlu0 %985  ;;  %v959_v6 = vpack.c.bf16 %v951_v25, %v949_v10  ;;  %v7253_v25 = vld [vmem:[%s7803_s17 + $0x28] sm:$0xff]  ;;  %v586_v11 = vld [vmem:[%s14346_s2 + $0x20] sm:$0xff]  ;;  %v980_v60 = vpack.c.bf16 %v8152_v19, %v8155_v46  ;;  %v979_v19 = vpack.c.bf16 %v8138_v28, %v8141_v32 }
 0x19f   : > { %v972_v10 = vpack.c.bf16 %v7252_v47, %v7253_v25  ;;  %v584_v1 = vld [vmem:[%s14346_s2 + $0x10] sm:$0xff]  ;;  %v594_v15 = vld [vmem:[%s14347_s3 + $0x20] sm:$0xff]  ;;  %v595_v13 = vld [vmem:[%s14347_s3 + $0x28] sm:$0xff] }
 0x1a0   : > { %1570 = vperm.xlu1 %7147, %v584_v1   ;;  %v588_v59 = vld [vmem:[%s14346_s2 + $0x30] sm:$0xff]  ;;  %v589_v1 = vld [vmem:[%s14346_s2 + $0x38] sm:$0xff] }
 0x1a1   : > { %1362 = vmatpush1.bf16.msra.mxu0 %v959_v6  ;;  %v585_v6 = vld [vmem:[%s14346_s2 + $0x18] sm:$0xff]  ;;  %v596_v46 = vld [vmem:[%s14347_s3 + $0x30] sm:$0xff] }
 0x1a2   : > { %1363 = vmatprep.subr.bf16.mxu0 %v962_v56  ;;  %v8513_v31 = vpop.permute.xlu1 %1003  ;;  %v8515_v3 = vpop.permute.xlu0 %1001  ;;  %v7254_v56 = vld [vmem:[%s7803_s17 + $0x30] sm:$0xff]  ;;  %1575 = vperm.xlu0 %7146, %v585_v6  }
 0x1a3   : > { %v14671_v6 = vld [vmem:[#allocation17_spill] sm:$0xff]  ;;  %v1027_v28 = vsel %vm1017_vm8, %v8513_v31, %v8507_v30  ;;  %v1026_v32 = vsel %vm1017_vm8, %v8515_v3, %v8509_v8 }
 0x1a4   : > { %1626 = vperm.xlu1 %7147, %v592_v43   ;;  %vm579_vm9 = vcmp.lt.s32.totalorder %v14671_v6, 240  ;;  %v981_v43 = vpack.c.bf16 %v8166_v58, %v8169_v61 }
 0x1a5   : > { %1364 = vmatpush1.bf16.msra.mxu0 %v961_v29  ;;  %v7255_v29 = vld [vmem:[%s7803_s17 + $0x20] sm:$0xff] }
 0x1a6   : > { %1365 = vmatprep.subr.bf16.mxu0 %v964_v22  ;;  %v8521_v42 = vpop.permute.xlu1 %991  ;;  %v8523_v21 = vpop.permute.xlu0 %989  ;;  %v971_v22 = vpack.c.bf16 %v7254_v56, %v7255_v29  ;;  %v982_v56 = vpack.c.bf16 %v8180_v36, %v8183_v54  ;;  %v7159_v29 = vld [vmem:[#allocation6 + $0x78] ss:$20 sps:$4 sm:$0xff]  }
 0x1a7   : > { %v7162_v36 = vld [vmem:[#allocation6 + $0xc] ss:$20 sps:$4 sm:$0xff]  }
 0x1a8   : > { %1580 = vperm.xlu1 %7147, %v586_v11  }
 0x1a9   : > { %1366 = vmatpush1.bf16.msra.mxu0 %v14662_v38 }
 0x1aa   : > { %1367 = vmatprep.subr.bf16.mxu0 %v966_v33  ;;  %v8530_v27 = vpop.permute.xlu1 %1007  ;;  %v8532_v34 = vpop.permute.xlu0 %1005 }
 0x1ac   : > { %1636 = vperm.xlu1 %7147, %v594_v15  }
 0x1ad   : > { %1368 = vmatpush1.bf16.msra.mxu0 %v14665_v0  ;;  %v593_v0 = vld [vmem:[%s14347_s3 + $0x18] sm:$0xff] }
 0x1ae   : > { %1369 = vmatprep.subr.bf16.mxu0 %v968_v50  ;;  %v8545_v35 = vpop.permute.xlu1 %995  ;;  %v8547_v7 = vpop.permute.xlu0 %993  ;;  %v14669_v50 = vld [vmem:[#allocation16_spill] sm:$0xff]  ;;  %1631 = vperm.xlu0 %7146, %v593_v0  }
 0x1af   : > { %v974_v63 = vpack.c.bf16 %v14670_v51, %v14669_v50  ;;  %v14672_v50 = vmov 0.0  }
 0x1b0   : > { %1590 = vperm.xlu1 %7147, %v588_v59   ;;  %v8647_v51 = vsel %vm579_vm9, 1.0, %v14672_v50 }
 0x1b1   : > { %1370 = vmatpush1.bf16.msra.mxu0 %v14668_v55  ;;  %v587_v55 = vld [vmem:[%s14346_s2 + $0x28] sm:$0xff]  ;;  %14673 = vst [vmem:[#allocation20_spill] sm:$0xff] %v8647_v51  ;;  %v1035_v0 = vmul.f32 %v1026_v32, %v8647_v51 }
 0x1b2   : > { %v8562_v49 = vpop.permute.xlu1 %1011  ;;  %v8564_v62 = vpop.permute.xlu0 %1009  ;;  %1412 = vmatprep.subr.bf16.mxu0 %v970_v57  ;;  %v973_v57 = vpack.c.bf16 %v7256_v40, %v7257_v41  ;;  %1585 = vperm.xlu0 %7146, %v587_v55   ;;  %v984_v40 = vpack.c.bf16 %v8208_v39, %v8211_v45  ;;  %v1029_v41 = vsel %vm1017_vm8, %v8530_v27, %v8521_v42 }
 0x1b3   : > { %v1019_v39 = vsel %vm1017_vm8, %v8507_v30, %v8513_v31  ;;  %v983_v45 = vpack.c.bf16 %v8194_v53, %v8197_v24  ;;  %v1030_v53 = vsel %vm1017_vm8, %v8564_v62, %v8547_v7  ;;  %v1021_v31 = vsel %vm1017_vm8, %v8521_v42, %v8530_v27 }
 0x1b4   : > { %1372 = vmatmul.mubr.bf16.vlgmr.msra.gmra.mrb[0].mxu0 %v7150_v37  ;;  %1646 = vperm.xlu1 %7147, %v596_v46  }
 0x1b5   : > { %1413 = vmatpush1.bf16.msra.mxu0 %v969_v23  ;;  %1381 = vmatprep.mubr.bf16.mxu0 %v7151_v5  ;;  %v7156_v5 = vld [vmem:[#allocation6 + $0x50] ss:$20 sps:$4 sm:$0xff]  }
 0x1b6   : > { %v8576_v33 = vpop.permute.xlu1 %999  ;;  %v8578_v38 = vpop.permute.xlu0 %997  ;;  %1414 = vmatprep.subr.bf16.mxu0 %v972_v10  ;;  %v977_v10 = vpack.c.bf16 %v8107_v48, %v8110_v52  ;;  %1641 = vperm.xlu0 %7146, %v595_v13  }
 0x1b9   : > { %1415 = vmatpush1.bf16.msra.mxu0 %v971_v22  ;;  %v597_v22 = vld [vmem:[%s14347_s3 + $0x38] sm:$0xff] }
 0x1ba   : > { %v8590_v26 = vpop.permute.xlu1 %1015  ;;  %v8592_v37 = vpop.permute.xlu0 %1013  ;;  %1416 = vmatprep.subr.bf16.mxu0 %v974_v63  ;;  %1595 = vperm.xlu0 %7146, %v589_v1  }
 0x1bb   : > { %v1033_v13 = vsel %vm1017_vm8, %v8590_v26, %v8576_v33  ;;  %v1032_v42 = vsel %vm1017_vm8, %v8592_v37, %v8578_v38  ;;  %v1024_v46 = vsel %vm1017_vm8, %v8578_v38, %v8592_v37 }
 0x1bc   : > { %1382 = vmatmul.mubr.bf16.gmra.mrb[4].mxu0 %v7153_v44  ;;  %v1037_v44 = vmul.f32 %v1027_v28, %v8647_v51  ;;  %v1049_v59 = vmul.f32 %v1033_v13, %v8647_v51 }
 0x1bd   : > { %1417 = vmatpush1.bf16.msra.mxu0 %v973_v57  ;;  %1391 = vmatprep.mubr.bf16.mxu0 %v7154_v17  ;;  %v1028_v57 = vsel %vm1017_vm8, %v8532_v34, %v8523_v21  ;;  %v1018_v17 = vsel %vm1017_vm8, %v8509_v8, %v8515_v3  ;;  %v1020_v3 = vsel %vm1017_vm8, %v8523_v21, %v8532_v34 }
 0x1be   : > { %v8604_v12 = vpop.permute.xlu1 %1060  ;;  %v8606_v23 = vpop.permute.xlu0 %1058  ;;  %1418 = vmatprep.subr.bf16.mxu0 %v976_v20  ;;  %1651 = vperm.xlu0 %7146, %v597_v22   ;;  %v1041_v20 = vmul.f32 %v1029_v41, %v8647_v51  ;;  %v1039_v11 = vmul.f32 %v1028_v57, %v8647_v51  ;;  %v1051_v55 = vpack.c.bf16 %v1037_v44, %v1035_v0 }
 0x1bf   : > { %v1050_v8 = vpack.c.bf16 %v1019_v39, %v1018_v17  ;;  %v1052_v34 = vpack.c.bf16 %v1021_v31, %v1020_v3 }
 0x1c1   : > { %1419 = vmatpush1.bf16.msra.mxu0 %v975_v2  ;;  %v1031_v2 = vsel %vm1017_vm8, %v8562_v49, %v8545_v35 }
 0x1c2   : > { %1420 = vmatprep.subr.bf16.mxu0 %v978_v16  ;;  %v8616_v47 = vpop.permute.xlu1 %1076  ;;  %v8618_v25 = vpop.permute.xlu0 %1074  ;;  %v1045_v15 = vmul.f32 %v1031_v2, %v8647_v51  ;;  %v1043_v16 = vmul.f32 %v1030_v53, %v8647_v51 }
 0x1c3   : > { %v1099_v6 = vsel %vm1017_vm8, %v8616_v47, %v8604_v12  ;;  %v1091_v37 = vsel %vm1017_vm8, %v8604_v12, %v8616_v47 }
 0x1c4   : > { %1392 = vmatmul.mubr.bf16.gmra.mrb[8].mxu0 %v7156_v5  ;;  %v1053_v5 = vpack.c.bf16 %v1041_v20, %v1039_v11  ;;  %v1055_v1 = vpack.c.bf16 %v1045_v15, %v1043_v16 }
 0x1c5   : > { %1421 = vmatpush1.bf16.msra.mxu0 %v977_v10  ;;  %1401 = vmatprep.mubr.bf16.mxu0 %v7157_v14  ;;  %v1023_v14 = vsel %vm1017_vm8, %v8545_v35, %v8562_v49  ;;  %v1022_v10 = vsel %vm1017_vm8, %v8547_v7, %v8564_v62  ;;  %v1098_v35 = vsel %vm1017_vm8, %v8618_v25, %v8606_v23 }
 0x1c6   : > { %1422 = vmatprep.subr.bf16.mxu0 %v980_v60  ;;  %v8632_v48 = vpop.permute.xlu1 %1064  ;;  %v8634_v52 = vpop.permute.xlu0 %1062  ;;  %v1047_v60 = vmul.f32 %v1032_v42, %v8647_v51  ;;  %v1054_v7 = vpack.c.bf16 %v1023_v14, %v1022_v10  ;;  %v1025_v62 = vsel %vm1017_vm8, %v8576_v33, %v8590_v26 }
 0x1c7   : > { %v1056_v38 = vpack.c.bf16 %v1025_v62, %v1024_v46 }
 0x1c8   : > { %v1057_v22 = vpack.c.bf16 %v1049_v59, %v1047_v60 }
 0x1c9   : > { %1423 = vmatpush1.bf16.msra.mxu0 %v979_v19 }
 0x1ca   : > { %1424 = vmatprep.subr.bf16.mxu0 %v982_v56  ;;  %v8657_v54 = vpop.permute.xlu1 %1080  ;;  %v8659_v63 = vpop.permute.xlu0 %1078  ;;  %v1109_v56 = vmul.f32 %v1099_v6, %v8647_v51 }
 0x1cb   : > { %v1101_v28 = vsel %vm1017_vm8, %v8657_v54, %v8632_v48  ;;  %v1100_v33 = vsel %vm1017_vm8, %v8659_v63, %v8634_v52  ;;  %v1092_v57 = vsel %vm1017_vm8, %v8634_v52, %v8659_v63 }
 0x1cc   : > { %1402 = vmatmul.mubr.bf16.gmra.mrb[12].mxu0 %v7159_v29  ;;  %v1107_v29 = vmul.f32 %v1098_v35, %v8647_v51  ;;  %v1111_v44 = vmul.f32 %v1100_v33, %v8647_v51  ;;  %v7160_v35 = vld [vmem:[#allocation6 + $0x8] ss:$20 sps:$4 sm:$0xff]  }
 0x1cd   : > { %1425 = vmatpush1.bf16.msra.mxu0 %v981_v43  ;;  %1444 = vmatprep.mubr.bf16.mxu0 %v7162_v36  ;;  %v1090_v36 = vsel %vm1017_vm8, %v8606_v23, %v8618_v25  ;;  %v1113_v43 = vmul.f32 %v1101_v28, %v8647_v51  ;;  %v1093_v25 = vsel %vm1017_vm8, %v8632_v48, %v8657_v54 }
 0x1ce   : > { %1426 = vmatprep.subr.bf16.mxu0 %v984_v40  ;;  %v8675_v58 = vpop.permute.xlu1 %1068  ;;  %v8677_v61 = vpop.permute.xlu0 %1066  ;;  %v1123_v0 = vpack.c.bf16 %v1109_v56, %v1107_v29  ;;  %v1122_v23 = vpack.c.bf16 %v1091_v37, %v1090_v36 }
 0x1cf   : > { %v1125_v17 = vpack.c.bf16 %v1113_v43, %v1111_v44 }
 0x1d1   : > { %1427 = vmatpush1.bf16.msra.mxu0 %v983_v45 }
 0x1d2   : > { %1428 = vmatprep.subr.bf16.mxu0 %v1051_v55  ;;  %v8699_v24 = vpop.permute.xlu1 %1084  ;;  %v8701_v30 = vpop.permute.xlu0 %1082  ;;  %v1124_v55 = vpack.c.bf16 %v1093_v25, %v1092_v57 }
 0x1d3   : > { %v1103_v40 = vsel %vm1017_vm8, %v8699_v24, %v8675_v58  ;;  %v1102_v12 = vsel %vm1017_vm8, %v8701_v30, %v8677_v61  ;;  %v1095_v52 = vsel %vm1017_vm8, %v8675_v58, %v8699_v24  ;;  %v1094_v63 = vsel %vm1017_vm8, %v8677_v61, %v8701_v30 }
 0x1d4   : > { %v1117_v39 = vmul.f32 %v1103_v40, %v8647_v51  ;;  %v1115_v45 = vmul.f32 %v1102_v12, %v8647_v51  ;;  %v1126_v24 = vpack.c.bf16 %v1095_v52, %v1094_v63  ;;  %v7166_v40 = vld [vmem:[#allocation6 + $0x5c] ss:$20 sps:$4 sm:$0xff]   ;;  %v7173_v63 = vld [vmem:[#allocation6 + $0x38] ss:$20 sps:$4 sm:$0xff]  }
 0x1d5   : > { %1429 = vmatpush1.bf16.msra.mxu0 %v1050_v8  ;;  %v7172_v52 = vld [vmem:[#allocation6 + $0x10] ss:$20 sps:$4 sm:$0xff]  }
 0x1d6   : > { %1430 = vmatprep.subr.bf16.mxu0 %v1053_v5  ;;  %v8721_v27 = vpop.permute.xlu1 %1072  ;;  %v8723_v21 = vpop.permute.xlu0 %1070  ;;  %v1127_v8 = vpack.c.bf16 %v1117_v39, %v1115_v45 }
 0x1d9   : > { %1431 = vmatpush1.bf16.msra.mxu0 %v1052_v34 }
 0x1da   : > { %1432 = vmatprep.subr.bf16.mxu0 %v1055_v1  ;;  %v1089_v49 = vpop.permute.xlu1 %1088  ;;  %v1087_v19 = vpop.permute.xlu0 %1086 }
 0x1db   : > { %v1105_v20 = vsel %vm1017_vm8, %v1089_v49, %v8721_v27  ;;  %v1104_v11 = vsel %vm1017_vm8, %v1087_v19, %v8723_v21  ;;  %v1097_v61 = vsel %vm1017_vm8, %v8721_v27, %v1089_v49  ;;  %v1096_v30 = vsel %vm1017_vm8, %v8723_v21, %v1087_v19  ;;  %v7163_v49 = vld [vmem:[#allocation6 + $0x34] ss:$20 sps:$4 sm:$0xff]  }
 0x1dc   : > { %v1121_v2 = vmul.f32 %v1105_v20, %v8647_v51  ;;  %v1119_v53 = vmul.f32 %v1104_v11, %v8647_v51  ;;  %v1128_v27 = vpack.c.bf16 %v1097_v61, %v1096_v30 }
 0x1dd   : > { %1433 = vmatpush1.bf16.msra.mxu0 %v1054_v7 }
 0x1de   : > { %1434 = vmatprep.subr.bf16.mxu0 %v1057_v22  ;;  %v1133_v26 = vpop.permute.xlu1 %1132  ;;  %v1131_v32 = vpop.permute.xlu0 %1130  ;;  %v1129_v13 = vpack.c.bf16 %v1121_v2, %v1119_v53  ;;  %v7174_v2 = vld [vmem:[#allocation6 + $0x60] ss:$20 sps:$4 sm:$0xff]   ;;  %v7175_v53 = vld [vmem:[#allocation6 + $0x88] ss:$20 sps:$4 sm:$0xff]  }
 0x1e1   : > { %1435 = vmatpush1.bf16.msra.mxu0 %v1056_v38 }
 0x1e2   : > { %1436 = vmatprep.subr.bf16.mxu0 %v1123_v0  ;;  %v1149_v47 = vpop.permute.xlu1 %1148  ;;  %v1147_v41 = vpop.permute.xlu0 %1146  ;;  %v7165_v0 = vld [vmem:[#allocation6 + $0x30] ss:$20 sps:$4 sm:$0xff]  }
 0x1e3   : > { %v1171_v31 = vsel %vm1017_vm8, %v1149_v47, %v1133_v26  ;;  %v1170_v3 = vsel %vm1017_vm8, %v1147_v41, %v1131_v32  ;;  %v1163_v59 = vsel %vm1017_vm8, %v1133_v26, %v1149_v47  ;;  %v1162_v21 = vsel %vm1017_vm8, %v1131_v32, %v1147_v41 }
 0x1e4   : > { %v1181_v16 = vmul.f32 %v1171_v31, %v8647_v51  ;;  %v1179_v5 = vmul.f32 %v1170_v3, %v8647_v51  ;;  %v1194_v62 = vpack.c.bf16 %v1163_v59, %v1162_v21 }
 0x1e5   : > { %1437 = vmatpush1.bf16.msra.mxu0 %v1122_v23 }
 0x1e6   : > { %1438 = vmatprep.subr.bf16.mxu0 %v1125_v17  ;;  %v1137_v48 = vpop.permute.xlu1 %1136  ;;  %v1135_v54 = vpop.permute.xlu0 %1134  ;;  %v1195_v6 = vpack.c.bf16 %v1181_v16, %v1179_v5 }
 0x1e9   : > { %1439 = vmatpush1.bf16.msra.mxu0 %v1124_v55  ;;  %v7171_v55 = vld [vmem:[#allocation6 + $0x80] ss:$20 sps:$4 sm:$0xff]  }
 0x1ea   : > { %1440 = vmatprep.subr.bf16.mxu0 %v1127_v8  ;;  %v1153_v15 = vpop.permute.xlu1 %1152  ;;  %v1151_v58 = vpop.permute.xlu0 %1150  ;;  %v14674_v8 = vld [vmem:[#allocation26_spill] sm:$0xff] }
 0x1eb   : > { %v1173_v42 = vsel %vm1017_vm8, %v1153_v15, %v1137_v48  ;;  %v1172_v34 = vsel %vm1017_vm8, %v1151_v58, %v1135_v54  ;;  %v1165_v46 = vsel %vm1017_vm8, %v1137_v48, %v1153_v15  ;;  %v1164_v22 = vsel %vm1017_vm8, %v1135_v54, %v1151_v58  ;;  %v7168_v48 = vld [vmem:[#allocation6 + $0x58] ss:$20 sps:$4 sm:$0xff]  }
 0x1ec   : > { %v1185_v60 = vmul.f32 %v1173_v42, %v8647_v51  ;;  %v1183_v1 = vmul.f32 %v1172_v34, %v8647_v51  ;;  %v1196_v36 = vpack.c.bf16 %v1165_v46, %v1164_v22  ;;  %v7169_v54 = vld [vmem:[#allocation6 + $0x84] ss:$20 sps:$4 sm:$0xff]  }
 0x1ed   : > { %1441 = vmatpush1.bf16.msra.mxu0 %v1126_v24 }
 0x1ee   : > { %1442 = vmatprep.subr.bf16.mxu0 %v1129_v13  ;;  %v1141_v14 = vpop.permute.xlu1 %1140  ;;  %v1139_v10 = vpop.permute.xlu0 %1138  ;;  %v1197_v26 = vpack.c.bf16 %v1185_v60, %v1183_v1 }
 0x1f1   : > { %1443 = vmatpush1.bf16.msra.mxu0 %v1128_v27 }
 0x1f2   : > { %1485 = vmatprep.subr.bf16.mxu0 %v1195_v6  ;;  %v1157_v19 = vpop.permute.xlu1 %1156  ;;  %v1155_v7 = vpop.permute.xlu0 %1154 }
 0x1f3   : > { %v1175_v56 = vsel %vm1017_vm8, %v1157_v19, %v1141_v14  ;;  %v1174_v29 = vsel %vm1017_vm8, %v1155_v7, %v1139_v10  ;;  %v1167_v43 = vsel %vm1017_vm8, %v1141_v14, %v1157_v19  ;;  %v1166_v44 = vsel %vm1017_vm8, %v1139_v10, %v1155_v7 }
 0x1f4   : > { %v1189_v28 = vmul.f32 %v1175_v56, %v8647_v51  ;;  %v1187_v33 = vmul.f32 %v1174_v29, %v8647_v51  ;;  %1445 = vmatmul.mubr.bf16.vlgmr.msra.gmra.mrb[0].mxu0 %v7160_v35  ;;  %v1198_v41 = vpack.c.bf16 %v1167_v43, %v1166_v44 }
 0x1f5   : > { %1486 = vmatpush1.bf16.msra.mxu0 %v1194_v62  ;;  %1454 = vmatprep.mubr.bf16.mxu0 %v7163_v49 }
 0x1f6   : > { %1487 = vmatprep.subr.bf16.mxu0 %v1197_v26  ;;  %v1145_v32 = vpop.permute.xlu1 %1144  ;;  %v1143_v38 = vpop.permute.xlu0 %1142  ;;  %v1199_v37 = vpack.c.bf16 %v1189_v28, %v1187_v33 }
 0x1f9   : > { %1488 = vmatpush1.bf16.msra.mxu0 %v1196_v36 }
 0x1fa   : > { %1489 = vmatprep.subr.bf16.mxu0 %v1199_v37  ;;  %v1161_v12 = vpop.permute.xlu1 %1160  ;;  %v1159_v47 = vpop.permute.xlu0 %1158 }
 0x1fb   : > { %v1177_v23 = vsel %vm1017_vm8, %v1161_v12, %v1145_v32  ;;  %v1176_v25 = vsel %vm1017_vm8, %v1159_v47, %v1143_v38  ;;  %v1169_v57 = vsel %vm1017_vm8, %v1145_v32, %v1161_v12  ;;  %v1168_v45 = vsel %vm1017_vm8, %v1143_v38, %v1159_v47 }
 0x1fc   : > { %v1193_v39 = vmul.f32 %v1177_v23, %v8647_v51  ;;  %v1191_v17 = vmul.f32 %v1176_v25, %v8647_v51  ;;  %1455 = vmatmul.mubr.bf16.gmra.mrb[4].mxu0 %v7165_v0  ;;  %v1200_v11 = vpack.c.bf16 %v1169_v57, %v1168_v45 }
 0x1fd   : > { %1490 = vmatpush1.bf16.msra.mxu0 %v1198_v41  ;;  %1464 = vmatprep.mubr.bf16.mxu0 %v7166_v40 }
 0x1fe   : > { %v1201_v20 = vpack.c.bf16 %v1193_v39, %v1191_v17 }
 0x200   : > { %1491 = vmatprep.subr.bf16.mxu0 %v1201_v20 }
 0x201   : > { %1492 = vmatpush1.bf16.msra.mxu0 %v1200_v11 }
 0x204   : > { %1465 = vmatmul.mubr.bf16.gmra.mrb[8].mxu0 %v7168_v48 }
 0x205   : > { %1474 = vmatprep.mubr.bf16.mxu0 %v7169_v54 }
 0x20c   : > { %1475 = vmatmul.mubr.bf16.gmra.mrb[12].mxu0 %v7171_v55 }
 0x20d   : > { %1517 = vmatprep.mubr.bf16.mxu0 %v14385_v4 }
 0x20e   : > { %v8860_v31 = vpop.permute.xlu1 %1565 }
 0x20f   : > { %14675 = vst [vmem:[#allocation21_spill] sm:$0xff] %v8860_v31 }
 0x214   : > { %6771 = vmatmul.mubr.msk.bf16.vlgmr.msra.gmra.mrb[0].mxu0 %vm1326_vm10, %v7172_v52 }
 0x215   : > { %1527 = vmatprep.mubr.bf16.mxu0 %v14385_v4  ;;  %v8862_v3 = vpop.permute.xlu0 %1560 }
 0x216   : > { %14676 = vst [vmem:[#allocation22_spill] sm:$0xff] %v8862_v3  ;;  %v8865_v61 = vpop.permute.xlu1 %1616 }
 0x217   : > { %14677 = vst [vmem:[#allocation23_spill] sm:$0xff] %v8865_v61 }
 0x219   : > { %v8869_v42 = vpop.permute.xlu0 %1621 }
 0x21a   : > { %14678 = vst [vmem:[#allocation16_spill] sm:$0xff] %v8869_v42 }
 0x21c   : > { %6772 = vmatmul.mubr.msk.bf16.gmra.mrb[4].mxu0 %vm1326_vm10, %v7173_v63 }
 0x21d   : > { %1537 = vmatprep.mubr.bf16.mxu0 %v14385_v4 }
 0x21f   : > { %v8887_v49 = vpop.permute.xlu1 %1570 }
 0x220   : > { %14681 = vst [vmem:[#allocation26_spill] sm:$0xff] %v8887_v49 }
 0x221   : > { %v8892_v7 = vpop.permute.xlu0 %1575 }
 0x222   : > { %14682 = vst [vmem:[#allocation27_spill] sm:$0xff] %v8892_v7 }
 0x223   : > { %v8904_v32 = vpop.permute.xlu1 %1626 }
 0x224   : > { %6773 = vmatmul.mubr.msk.bf16.gmra.mrb[8].mxu0 %vm1326_vm10, %v7174_v2  ;;  %14684 = vst [vmem:[#allocation29_spill] sm:$0xff] %v8904_v32 }
 0x225   : > { %1547 = vmatprep.mubr.bf16.mxu0 %v14385_v4 }
 0x227   : > { %v8927_v57 = vpop.permute.xlu1 %1580 }
 0x228   : > { %14686 = vst [vmem:[#allocation31_spill] sm:$0xff] %v8927_v57 }
 0x22b   : > { %v8944_v54 = vpop.permute.xlu1 %1636 }
 0x22c   : > { %6774 = vmatmul.mubr.msk.bf16.gmra.mrb[12].mxu0 %vm1326_vm10, %v7175_v53  ;;  %14688 = vst [vmem:[#allocation33_spill] sm:$0xff] %v8944_v54 }
 0x22d   : > { %3369 = vmatprep.mubr.bf16.mxu0 %v14674_v8  ;;  %v8909_v37 = vpop.permute.xlu0 %1631 }
 0x22e   : > { %14685 = vst [vmem:[#allocation30_spill] sm:$0xff] %v8909_v37 }
 0x231   : > { %v8932_v45 = vpop.permute.xlu0 %1585 }
 0x232   : > { %14687 = vst [vmem:[#allocation32_spill] sm:$0xff] %v8932_v45 }
 0x235   : > { %v8949_v52 = vpop.permute.xlu0 %1641 }
 0x236   : > { %14689 = vst [vmem:[#allocation34_spill] sm:$0xff] %v8949_v52 }
 0x2e7   : > { %v1519_v15 = vpop.f32.mrb[0].mxu0 }
 0x2e8   : > { %v1598_v58 = vmul.f32 %v8862_v3, %v1519_v15  ;;  %v1521_v24 = vpop.f32.mrb[1].mxu0 }
 0x2e9   : > { %v1523_v30 = vpop.f32.mrb[2].mxu0  ;;  %v1599_v59 = vmul.f32 %v8862_v3, %v1521_v24  ;;  %v8967_v24 = vpop.permute.xlu1 %1590 }
 0x2ea   : > { %v1654_v16 = vadd.f32 %v8865_v61, %v1598_v58  ;;  %v1600_v5 = vmul.f32 %v8860_v31, %v1523_v30  ;;  %v1525_v13 = vpop.f32.mrb[3].mxu0  ;;  %14690 = vst [vmem:[#allocation35_spill] sm:$0xff] %v8967_v24 }
 0x2eb   : > { %v1601_v1 = vmul.f32 %v8860_v31, %v1525_v13  ;;  %v1655_v35 = vadd.f32 %v8865_v61, %v1599_v59  ;;  %v14704_v31 = vld [vmem:[#allocation25_spill] sm:$0xff] }
 0x2ec   : > { %v8871_v34 = vmax.f32 %v1654_v16, 0.0  ;;  %v1656_v14 = vadd.f32 %v8869_v42, %v1600_v5  ;;  %v8972_v16 = vpop.permute.xlu0 %1595 }
 0x2ed   : > { %v1657_v19 = vadd.f32 %v8869_v42, %v1601_v1  ;;  %v8894_v46 = vmax.f32 %v1655_v35, 0.0  ;;  %14691 = vst [vmem:[#allocation36_spill] sm:$0xff] %v8972_v16  ;;  %v8984_v59 = vpop.permute.xlu1 %1646 }
 0x2ee   : > { %14679 = vst [vmem:[#allocation15_spill] sm:$0xff] %v8871_v34  ;;  %v8874_v10 = vmax.f32 %v1656_v14, 0.0  ;;  %1686 = vrot.lane.b32.xlu1 %v8871_v34, %s7533_s25  ;;  %14692 = vst [vmem:[#allocation37_spill] sm:$0xff] %v8984_v59 }
 0x2ef   : > { %v1529_v27 = vpop.f32.mrb[4].mxu0  ;;  %v8899_v28 = vmax.f32 %v1657_v19, 0.0 }
 0x2f0   : > { %14680 = vst [vmem:[#allocation17_spill] sm:$0xff] %v8874_v10  ;;  %1688 = vrot.lane.b32.xlu0 %v8874_v10, %s7533_s25  ;;  %v1531_v21 = vpop.f32.mrb[5].mxu0  ;;  %v1602_v56 = vmul.f32 %v8887_v49, %v1529_v27 }
 0x2f1   : > { %v1533_v60 = vpop.f32.mrb[6].mxu0  ;;  %14683 = vst [vmem:[#allocation28_spill] sm:$0xff] %v8899_v28  ;;  %v1603_v0 = vmul.f32 %v8887_v49, %v1531_v21 }
 0x2f2   : > { %1750 = vrot.lane.b32.xlu1 %v8871_v34, %s7534_s27  ;;  %v1535_v6 = vpop.f32.mrb[7].mxu0  ;;  %v1604_v33 = vmul.f32 %v8892_v7, %v1533_v60  ;;  %v1658_v38 = vadd.f32 %v8904_v32, %v1602_v56  ;;  %v8989_v60 = vpop.permute.xlu0 %1651 }
 0x2f3   : > { %v1605_v41 = vmul.f32 %v8892_v7, %v1535_v6  ;;  %v1659_v25 = vadd.f32 %v8904_v32, %v1603_v0  ;;  %14693 = vst [vmem:[#allocation38_spill] sm:$0xff] %v8989_v60 }
 0x2f4   : > { %1752 = vrot.lane.b32.xlu0 %v8874_v10, %s7534_s27  ;;  %v1660_v36 = vadd.f32 %v8909_v37, %v1604_v33  ;;  %v8914_v44 = vmax.f32 %v1658_v38, 0.0 }
 0x2f5   : > { %v1661_v39 = vadd.f32 %v8909_v37, %v1605_v41  ;;  %v8934_v17 = vmax.f32 %v1659_v25, 0.0 }
 0x2f6   : > { %1886 = vrot.lane.b32.xlu1 %v8871_v34, %s7535_s16  ;;  %v8919_v47 = vmax.f32 %v1660_v36, 0.0 }
 0x2f7   : > { %v1539_v62 = vpop.f32.mrb[8].mxu0  ;;  %v8939_v11 = vmax.f32 %v1661_v39, 0.0 }
 0x2f8   : > { %1888 = vrot.lane.b32.xlu0 %v8874_v10, %s7535_s16  ;;  %v1541_v29 = vpop.f32.mrb[9].mxu0  ;;  %v1606_v20 = vmul.f32 %v8927_v57, %v1539_v62 }
 0x2f9   : > { %v1543_v22 = vpop.f32.mrb[10].mxu0  ;;  %v1607_v53 = vmul.f32 %v8927_v57, %v1541_v29 }
 0x2fa   : > { %1702 = vrot.lane.b32.xlu1 %v8894_v46, %s7533_s25  ;;  %v1545_v26 = vpop.f32.mrb[11].mxu0  ;;  %v1608_v48 = vmul.f32 %v8932_v45, %v1543_v22  ;;  %v1662_v55 = vadd.f32 %v8944_v54, %v1606_v20 }
 0x2fb   : > { %v1609_v15 = vmul.f32 %v8932_v45, %v1545_v26  ;;  %v1663_v58 = vadd.f32 %v8944_v54, %v1607_v53 }
 0x2fc   : > { %1704 = vrot.lane.b32.xlu0 %v8899_v28, %s7533_s25  ;;  %v1664_v63 = vadd.f32 %v8949_v52, %v1608_v48  ;;  %v8954_v2 = vmax.f32 %v1662_v55, 0.0 }
 0x2fd   : > { %v1665_v30 = vadd.f32 %v8949_v52, %v1609_v15  ;;  %v8974_v5 = vmax.f32 %v1663_v58, 0.0  ;;  %v14695_v15 = vld [vmem:[#allocation19_spill] sm:$0xff] }
 0x2fe   : > { %1766 = vrot.lane.b32.xlu1 %v8894_v46, %s7534_s27  ;;  %v8959_v8 = vmax.f32 %v1664_v63, 0.0 }
 0x2ff   : > { %v1549_v43 = vpop.f32.mrb[12].mxu0  ;;  %v8979_v14 = vmax.f32 %v1665_v30, 0.0 }
 0x300   : > { %1768 = vrot.lane.b32.xlu0 %v8899_v28, %s7534_s27  ;;  %v1551_v40 = vpop.f32.mrb[13].mxu0  ;;  %v1610_v13 = vmul.f32 %v8967_v24, %v1549_v43 }
 0x301   : > { %v1553_v12 = vpop.f32.mrb[14].mxu0  ;;  %v1611_v35 = vmul.f32 %v8967_v24, %v1551_v40 }
 0x302   : > { %1690 = vrot.lane.b32.xlu1 %v8914_v44, %s7533_s25  ;;  %v1555_v23 = vpop.f32.mrb[15].mxu0  ;;  %v1612_v27 = vmul.f32 %v8972_v16, %v1553_v12  ;;  %v1666_v21 = vadd.f32 %v8984_v59, %v1610_v13 }
 0x303   : > { %v1613_v62 = vmul.f32 %v8972_v16, %v1555_v23  ;;  %v1667_v56 = vadd.f32 %v8984_v59, %v1611_v35  ;;  %v14694_v23 = vld [vmem:[#allocation18_spill] sm:$0xff] }
 0x304   : > { %1692 = vrot.lane.b32.xlu0 %v8919_v47, %s7533_s25  ;;  %v1668_v1 = vadd.f32 %v8989_v60, %v1612_v27  ;;  %v8994_v6 = vmax.f32 %v1666_v21, 0.0 }
 0x305   : > { %v1669_v29 = vadd.f32 %v8989_v60, %v1613_v62  ;;  %v9010_v22 = vmax.f32 %v1667_v56, 0.0 }
 0x306   : > { %1754 = vrot.lane.b32.xlu1 %v8914_v44, %s7534_s27  ;;  %v8999_v19 = vmax.f32 %v1668_v1, 0.0 }
 0x307   : > { %v9014_v33 = vmax.f32 %v1669_v29, 0.0 }
 0x308   : > { %1756 = vrot.lane.b32.xlu0 %v8919_v47, %s7534_s27 }
 0x30a   : > { %1706 = vrot.lane.b32.xlu1 %v8934_v17, %s7533_s25 }
 0x30c   : > { %1708 = vrot.lane.b32.xlu0 %v8939_v11, %s7533_s25 }
 0x30e   : > { %1770 = vrot.lane.b32.xlu1 %v8934_v17, %s7534_s27 }
 0x310   : > { %1772 = vrot.lane.b32.xlu0 %v8939_v11, %s7534_s27 }
 0x312   : > { %1694 = vrot.lane.b32.xlu1 %v8954_v2, %s7533_s25 }
 0x314   : > { %1696 = vrot.lane.b32.xlu0 %v8959_v8, %s7533_s25 }
 0x316   : > { %1758 = vrot.lane.b32.xlu1 %v8954_v2, %s7534_s27 }
 0x318   : > { %1760 = vrot.lane.b32.xlu0 %v8959_v8, %s7534_s27 }
 0x31a   : > { %1710 = vrot.lane.b32.xlu1 %v8974_v5, %s7533_s25 }
 0x31c   : > { %1712 = vrot.lane.b32.xlu0 %v8979_v14, %s7533_s25 }
 0x31e   : > { %1774 = vrot.lane.b32.xlu1 %v8974_v5, %s7534_s27 }
 0x320   : > { %1776 = vrot.lane.b32.xlu0 %v8979_v14, %s7534_s27 }
 0x322   : > { %1698 = vrot.lane.b32.xlu1 %v8994_v6, %s7533_s25 }
 0x324   : > { %1700 = vrot.lane.b32.xlu0 %v8999_v19, %s7533_s25 }
 0x326   : > { %1762 = vrot.lane.b32.xlu1 %v8994_v6, %s7534_s27 }
 0x328   : > { %1764 = vrot.lane.b32.xlu0 %v8999_v19, %s7534_s27 }
 0x32a   : > { %1714 = vrot.lane.b32.xlu1 %v9010_v22, %s7533_s25 }
 0x32c   : > { %1716 = vrot.lane.b32.xlu0 %v9014_v33, %s7533_s25 }
 0x32e   : > { %1902 = vrot.lane.b32.xlu1 %v8894_v46, %s7535_s16 }
 0x330   : > { %1904 = vrot.lane.b32.xlu0 %v8899_v28, %s7535_s16 }
 0x332   : > { %1778 = vrot.lane.b32.xlu1 %v9010_v22, %s7534_s27 }
 0x334   : > { %1892 = vrot.lane.b32.xlu0 %v8919_v47, %s7535_s16 }
 0x336   : > { %1890 = vrot.lane.b32.xlu1 %v8914_v44, %s7535_s16 }
 0x338   : > { %1908 = vrot.lane.b32.xlu0 %v8939_v11, %s7535_s16 }
 0x33a   : > { %1906 = vrot.lane.b32.xlu1 %v8934_v17, %s7535_s16 }
 0x33c   : > { %1896 = vrot.lane.b32.xlu0 %v8959_v8, %s7535_s16 }
 0x33e   : > { %1894 = vrot.lane.b32.xlu1 %v8954_v2, %s7535_s16 }
 0x340   : > { %1912 = vrot.lane.b32.xlu0 %v8979_v14, %s7535_s16 }
 0x342   : > { %1910 = vrot.lane.b32.xlu1 %v8974_v5, %s7535_s16 }
 0x344   : > { %1900 = vrot.lane.b32.xlu0 %v8999_v19, %s7535_s16 }
 0x346   : > { %1898 = vrot.lane.b32.xlu1 %v8994_v6, %s7535_s16 }
 0x348   : > { %1780 = vrot.lane.b32.xlu0 %v9014_v33, %s7534_s27 }
 0x34a   : > { %1914 = vrot.lane.b32.xlu1 %v9010_v22, %s7535_s16 }
 0x34c   : > { %1916 = vrot.lane.b32.xlu0 %v9014_v33, %s7535_s16 }
 0x360   : > { %v1687_v26 = vpop.permute.xlu1 %1686 }
 0x362   : > { %v1689_v38 = vpop.permute.xlu0 %1688 }
 0x364   : > { %v9052_v36 = vpop.permute.xlu1 %1750 }
 0x366   : > { %v9054_v43 = vpop.permute.xlu0 %1752 }
 0x368   : > { %v9056_v0 = vpop.permute.xlu1 %1886 }
 0x36a   : > { %v9058_v40 = vpop.permute.xlu0 %1888 }
 0x36c   : > { %v1703_v12 = vpop.permute.xlu1 %1702 }
 0x36d   : > { %v1726_v41 = vsel %vm646_vm1, %v1703_v12, %v1687_v26  ;;  %v1718_v20 = vsel %vm646_vm1, %v1687_v26, %v1703_v12 }
 0x36e   : > { %v9063_v25 = vmul.f32 %v1726_v41, %v14694_v23  ;;  %v1705_v39 = vpop.permute.xlu0 %1704  ;;  %v9079_v58 = vmul.f32 %v1718_v20, %v14695_v15 }
 0x36f   : > { %v1727_v48 = vsel %vm646_vm1, %v1705_v39, %v1689_v38  ;;  %v1719_v53 = vsel %vm646_vm1, %v1689_v38, %v1705_v39 }
 0x370   : > { %v9070_v55 = vmul.f32 %v1727_v48, %v14694_v23  ;;  %v9072_v63 = vpop.permute.xlu1 %1766  ;;  %1814 = vrot.lane.b32.xlu1 %v9063_v25, %s7535_s16  ;;  %v9086_v13 = vmul.f32 %v1719_v53, %v14695_v15 }
 0x372   : > { %v9081_v30 = vpop.permute.xlu0 %1768  ;;  %1816 = vrot.lane.b32.xlu0 %v9070_v55, %s7535_s16 }
 0x374   : > { %v1691_v27 = vpop.permute.xlu1 %1690  ;;  %1830 = vrot.lane.b32.xlu1 %v9079_v58, %s7535_s16 }
 0x376   : > { %v1693_v21 = vpop.permute.xlu0 %1692  ;;  %1832 = vrot.lane.b32.xlu0 %v9086_v13, %s7535_s16 }
 0x378   : > { %v9092_v1 = vpop.permute.xlu1 %1754 }
 0x37a   : > { %v9094_v35 = vpop.permute.xlu0 %1756 }
 0x37c   : > { %v1707_v62 = vpop.permute.xlu1 %1706 }
 0x37d   : > { %v1728_v56 = vsel %vm646_vm1, %v1707_v62, %v1691_v27  ;;  %v1720_v38 = vsel %vm646_vm1, %v1691_v27, %v1707_v62 }
 0x37e   : > { %v9099_v29 = vmul.f32 %v1728_v56, %v14694_v23  ;;  %v1709_v26 = vpop.permute.xlu0 %1708  ;;  %v9115_v48 = vmul.f32 %v1720_v38, %v14695_v15 }
 0x37f   : > { %v1729_v12 = vsel %vm646_vm1, %v1709_v26, %v1693_v21  ;;  %v1721_v20 = vsel %vm646_vm1, %v1693_v21, %v1709_v26 }
 0x380   : > { %v9106_v41 = vmul.f32 %v1729_v12, %v14694_v23  ;;  %v9108_v39 = vpop.permute.xlu1 %1770  ;;  %1818 = vrot.lane.b32.xlu1 %v9099_v29, %s7535_s16  ;;  %v9122_v27 = vmul.f32 %v1721_v20, %v14695_v15 }
 0x382   : > { %14696 = vst [vmem:[#allocation39_spill] sm:$0xff] %v9106_v41  ;;  %v9117_v53 = vpop.permute.xlu0 %1772  ;;  %1820 = vrot.lane.b32.xlu0 %v9106_v41, %s7535_s16 }
 0x384   : > { %v1695_v62 = vpop.permute.xlu1 %1694  ;;  %1834 = vrot.lane.b32.xlu1 %v9115_v48, %s7535_s16 }
 0x386   : > { %v1697_v56 = vpop.permute.xlu0 %1696  ;;  %1836 = vrot.lane.b32.xlu0 %v9122_v27, %s7535_s16 }
 0x388   : > { %v9128_v21 = vpop.permute.xlu1 %1758 }
 0x38a   : > { %v9130_v26 = vpop.permute.xlu0 %1760 }
 0x38c   : > { %v1711_v38 = vpop.permute.xlu1 %1710 }
 0x38d   : > { %v1730_v12 = vsel %vm646_vm1, %v1711_v38, %v1695_v62  ;;  %v1722_v50 = vsel %vm646_vm1, %v1695_v62, %v1711_v38 }
 0x38e   : > { %v9135_v4 = vmul.f32 %v1730_v12, %v14694_v23  ;;  %v1713_v20 = vpop.permute.xlu0 %1712  ;;  %v9149_v12 = vmul.f32 %v1722_v50, %v14695_v15 }
 0x38f   : > { %v1731_v60 = vsel %vm646_vm1, %v1713_v20, %v1697_v56  ;;  %v1723_v24 = vsel %vm646_vm1, %v1697_v56, %v1713_v20 }
 0x390   : > { %14697 = vst [vmem:[#allocation40_spill] sm:$0xff] %v9135_v4  ;;  %v9142_v59 = vmul.f32 %v1731_v60, %v14694_v23  ;;  %v1775_v16 = vpop.permute.xlu1 %1774  ;;  %1822 = vrot.lane.b32.xlu1 %v9135_v4, %s7535_s16  ;;  %14699 = vst [vmem:[#allocation42_spill] sm:$0xff] %v9149_v12  ;;  %v9154_v62 = vmul.f32 %v1723_v24, %v14695_v15 }
 0x392   : > { %14698 = vst [vmem:[#allocation41_spill] sm:$0xff] %v9142_v59  ;;  %v1777_v52 = vpop.permute.xlu0 %1776  ;;  %1824 = vrot.lane.b32.xlu0 %v9142_v59, %s7535_s16  ;;  %14700 = vst [vmem:[#allocation43_spill] sm:$0xff] %v9154_v62 }
 0x394   : > { %v1699_v38 = vpop.permute.xlu1 %1698  ;;  %1838 = vrot.lane.b32.xlu1 %v9149_v12, %s7535_s16 }
 0x396   : > { %v1701_v60 = vpop.permute.xlu0 %1700  ;;  %1840 = vrot.lane.b32.xlu0 %v9154_v62, %s7535_s16 }
 0x398   : > { %v9160_v54 = vpop.permute.xlu1 %1762 }
 0x39a   : > { %v9162_v56 = vpop.permute.xlu0 %1764 }
 0x39c   : > { %v1715_v50 = vpop.permute.xlu1 %1714 }
 0x39d   : > { %v1732_v20 = vsel %vm646_vm1, %v1715_v50, %v1699_v38  ;;  %v1724_v57 = vsel %vm646_vm1, %v1699_v38, %v1715_v50 }
 0x39e   : > { %v9167_v45 = vmul.f32 %v1732_v20, %v14694_v23  ;;  %v1717_v24 = vpop.permute.xlu0 %1716  ;;  %v9181_v49 = vmul.f32 %v1724_v57, %v14695_v15  ;;  %v1783_v57 = vsel %vm711_vm4, %v9054_v43, %v9081_v30 }
 0x39f   : > { %v1733_v37 = vsel %vm646_vm1, %v1717_v24, %v1701_v60  ;;  %v1725_v7 = vsel %vm646_vm1, %v1701_v60, %v1717_v24  ;;  %v14703_v60 = vld [vmem:[#allocation24_spill] sm:$0xff] }
 0x3a0   : > { %14701 = vst [vmem:[#allocation44_spill] sm:$0xff] %v9167_v45  ;;  %v9174_v32 = vmul.f32 %v1733_v37, %v14694_v23  ;;  %1826 = vrot.lane.b32.xlu1 %v9167_v45, %s7535_s16  ;;  %14702 = vst [vmem:[#allocation45_spill] sm:$0xff] %v9181_v49  ;;  %v1782_v37 = vsel %vm711_vm4, %v9052_v36, %v9072_v63  ;;  %v9192_v38 = vmul.f32 %v1725_v7, %v14695_v15  ;;  %v9263_v23 = vpop.permute.xlu1 %1902 }
 0x3a1   : > { %v9201_v50 = vmul.f32 %v1782_v37, %v14703_v60  ;;  %v1790_v7 = vsel %vm711_vm4, %v9072_v63, %v9052_v36  ;;  %v9212_v42 = vmul.f32 %v1783_v57, %v14703_v60  ;;  %v1791_v37 = vsel %vm711_vm4, %v9081_v30, %v9054_v43 }
 0x3a2   : > { %1828 = vrot.lane.b32.xlu0 %v9174_v32, %s7535_s16  ;;  %v9185_v20 = vpop.permute.xlu0 %1904  ;;  %v9221_v61 = vmul.f32 %v1790_v7, %v14704_v31  ;;  %v1784_v36 = vsel %vm711_vm4, %v9092_v1, %v9108_v39  ;;  %v9232_v63 = vmul.f32 %v1791_v37, %v14704_v31  ;;  %v1785_v43 = vsel %vm711_vm4, %v9094_v35, %v9117_v53 }
 0x3a3   : > { %v9241_v30 = vmul.f32 %v1784_v36, %v14703_v60  ;;  %v1792_v7 = vsel %vm711_vm4, %v9108_v39, %v9092_v1  ;;  %v9252_v37 = vmul.f32 %v1785_v43, %v14703_v60  ;;  %v1793_v36 = vsel %vm711_vm4, %v9117_v53, %v9094_v35 }
 0x3a4   : > { %1842 = vrot.lane.b32.xlu1 %v9181_v49, %s7535_s16  ;;  %v9261_v15 = vmul.f32 %v1792_v7, %v14704_v31  ;;  %v1786_v39 = vsel %vm711_vm4, %v9128_v21, %v1775_v16  ;;  %v9273_v43 = vmul.f32 %v1793_v36, %v14704_v31  ;;  %v1787_v35 = vsel %vm711_vm4, %v9130_v26, %v1777_v52 }
 0x3a5   : > { %v9281_v53 = vmul.f32 %v1786_v39, %v14703_v60  ;;  %v1794_v36 = vsel %vm711_vm4, %v1775_v16, %v9128_v21  ;;  %v9291_v51 = vmul.f32 %v1787_v35, %v14703_v60  ;;  %v1795_v39 = vsel %vm711_vm4, %v1777_v52, %v9130_v26 }
 0x3a6   : > { %1844 = vrot.lane.b32.xlu0 %v9192_v38, %s7535_s16  ;;  %v9205_v24 = vpop.permute.xlu0 %1892  ;;  %v9307_v21 = vmul.f32 %v1795_v39, %v14704_v31 }
 0x3a7   : > { %14708 = vst [vmem:[#allocation49_spill] sm:$0xff] %v9281_v53 }
 0x3a8   : > { %1958 = vrot.lane.b32.xlu1 %v9201_v50, %s7535_s16 }
 0x3aa   : > { %1960 = vrot.lane.b32.xlu0 %v9212_v42, %s7535_s16  ;;  %v9225_v3 = vpop.permute.xlu0 %1908 }
 0x3ab   : > { %14705 = vst [vmem:[#allocation46_spill] sm:$0xff] %v9225_v3 }
 0x3ac   : > { %1974 = vrot.lane.b32.xlu1 %v9221_v61, %s7535_s16 }
 0x3ae   : > { %1976 = vrot.lane.b32.xlu0 %v9232_v63, %s7535_s16  ;;  %v9245_v57 = vpop.permute.xlu0 %1896 }
 0x3af   : > { %14706 = vst [vmem:[#allocation47_spill] sm:$0xff] %v9245_v57  ;;  %v9299_v57 = vmul.f32 %v1794_v36, %v14704_v31 }
 0x3b0   : > { %1962 = vrot.lane.b32.xlu1 %v9241_v30, %s7535_s16 }
 0x3b2   : > { %1964 = vrot.lane.b32.xlu0 %v9252_v37, %s7535_s16  ;;  %v9267_v1 = vpop.permute.xlu0 %1912 }
 0x3b3   : > { %14707 = vst [vmem:[#allocation48_spill] sm:$0xff] %v9267_v1  ;;  %v1779_v1 = vpop.permute.xlu1 %1778 }
 0x3b4   : > { %1978 = vrot.lane.b32.xlu1 %v9261_v15, %s7535_s16  ;;  %v1788_v16 = vsel %vm711_vm4, %v9160_v54, %v1779_v1  ;;  %v1796_v35 = vsel %vm711_vm4, %v1779_v1, %v9160_v54 }
 0x3b5   : > { %v9315_v26 = vmul.f32 %v1788_v16, %v14703_v60  ;;  %v9333_v3 = vmul.f32 %v1796_v35, %v14704_v31 }
 0x3b6   : > { %1980 = vrot.lane.b32.xlu0 %v9273_v43, %s7535_s16  ;;  %v9285_v7 = vpop.permute.xlu0 %1900 }
 0x3b7   : > { %14709 = vst [vmem:[#allocation50_spill] sm:$0xff] %v9285_v7  ;;  %v9322_v36 = vpop.permute.xlu1 %1890 }
 0x3b8   : > { %1966 = vrot.lane.b32.xlu1 %v9281_v53, %s7535_s16 }
 0x3ba   : > { %1968 = vrot.lane.b32.xlu0 %v9291_v51, %s7535_s16  ;;  %v1781_v7 = vpop.permute.xlu0 %1780 }
 0x3bb   : > { %v1789_v52 = vsel %vm711_vm4, %v9162_v56, %v1781_v7  ;;  %v1797_v16 = vsel %vm711_vm4, %v1781_v7, %v9162_v56  ;;  %v9342_v1 = vpop.permute.xlu1 %1906  ;;  %v9356_v7 = vld [vmem:[#allocation8 + $0x4] ss:$20 sps:$4 sm:$0xff]  }
 0x3bc   : > { %1982 = vrot.lane.b32.xlu1 %v9299_v57, %s7535_s16  ;;  %v9325_v39 = vmul.f32 %v1789_v52, %v14703_v60  ;;  %v9338_v54 = vmul.f32 %v1797_v16, %v14704_v31  ;;  %14711 = vst [vmem:[#allocation52_spill] sm:$0xff] %v9356_v7  ;;  %2438 = vmatprep.mubr.bf16.mxu1 %v9356_v7 }
 0x3be   : > { %1984 = vrot.lane.b32.xlu0 %v9307_v21, %s7535_s16  ;;  %14710 = vst [vmem:[#allocation51_spill] sm:$0xff] %v9325_v39  ;;  %v9381_v31 = vpop.permute.xlu0 %1916 }
 0x3bf   : > { %v9350_v56 = vpop.permute.xlu1 %1894 }
 0x3c0   : > { %1970 = vrot.lane.b32.xlu1 %v9315_v26, %s7535_s16 }
 0x3c2   : > { %1972 = vrot.lane.b32.xlu0 %v9325_v39, %s7535_s16 }
 0x3c3   : > { %v9361_v52 = vpop.permute.xlu1 %1910 }
 0x3c4   : > { %1986 = vrot.lane.b32.xlu1 %v9333_v3, %s7535_s16 }
 0x3c6   : > { %1988 = vrot.lane.b32.xlu0 %v9338_v54, %s7535_s16 }
 0x3c7   : > { %v9369_v35 = vpop.permute.xlu1 %1898 }
 0x3c8   : > { %2054 = vrot.lane.b32.xlu1 %v9063_v25, %s7537_s11 }
 0x3ca   : > { %2056 = vrot.lane.b32.xlu0 %v9070_v55, %s7537_s11 }
 0x3cb   : > { %v9377_v16 = vpop.permute.xlu1 %1914 }
 0x3cc   : > { %2070 = vrot.lane.b32.xlu1 %v9079_v58, %s7537_s11 }
 0x3ce   : > { %2072 = vrot.lane.b32.xlu0 %v9086_v13, %s7537_s11 }
 0x3d0   : > { %2058 = vrot.lane.b32.xlu1 %v9099_v29, %s7537_s11 }
 0x3d2   : > { %2060 = vrot.lane.b32.xlu0 %v9106_v41, %s7537_s11 }
 0x3d4   : > { %2074 = vrot.lane.b32.xlu1 %v9115_v48, %s7537_s11 }
 0x3d6   : > { %2076 = vrot.lane.b32.xlu0 %v9122_v27, %s7537_s11 }
 0x3d8   : > { %2062 = vrot.lane.b32.xlu1 %v9135_v4, %s7537_s11 }
 0x3da   : > { %2064 = vrot.lane.b32.xlu0 %v9142_v59, %s7537_s11 }
 0x3dc   : > { %2078 = vrot.lane.b32.xlu1 %v9149_v12, %s7537_s11 }
 0x3de   : > { %2080 = vrot.lane.b32.xlu0 %v9154_v62, %s7537_s11 }
 0x3e0   : > { %2066 = vrot.lane.b32.xlu1 %v9167_v45, %s7537_s11 }
 0x3e2   : > { %v1815_v60 = vpop.permute.xlu1 %1814  ;;  %2128 = vrot.lane.b32.xlu0 %v8874_v10, %s7537_s11 }
 0x3e4   : > { %2082 = vrot.lane.b32.xlu1 %v9181_v49, %s7537_s11  ;;  %v1817_v7 = vpop.permute.xlu0 %1816 }
 0x3e6   : > { %v1831_v59 = vpop.permute.xlu1 %1830  ;;  %2144 = vrot.lane.b32.xlu0 %v8899_v28, %s7537_s11 }
 0x3e7   : > { %v1854_v4 = vsel %vm776_vm7, %v1831_v59, %v1815_v60  ;;  %v1846_v10 = vsel %vm776_vm7, %v1815_v60, %v1831_v59 }
 0x3e8   : > { %2126 = vrot.lane.b32.xlu1 %v8871_v34, %s7537_s11  ;;  %v1833_v62 = vpop.permute.xlu0 %1832  ;;  %v1862_v12 = vmul.f32 %v1854_v4, %v8313_v9 }
 0x3e9   : > { %v1855_v45 = vsel %vm776_vm7, %v1833_v62, %v1817_v7  ;;  %v1847_v49 = vsel %vm776_vm7, %v1817_v7, %v1833_v62 }
 0x3ea   : > { %2132 = vrot.lane.b32.xlu0 %v8919_v47, %s7537_s11  ;;  %v1879_v28 = vpack.c.bf16 %v1847_v49, %v1846_v10  ;;  %v1864_v41 = vmul.f32 %v1855_v45, %v8313_v9 }
 0x3ec   : > { %2142 = vrot.lane.b32.xlu1 %v8894_v46, %s7537_s11  ;;  %2406 = vmatprep.subr.bf16.mxu1 %v1879_v28  ;;  %v1878_v34 = vpack.c.bf16 %v1864_v41, %v1862_v12 }
 0x3ee   : > { %2148 = vrot.lane.b32.xlu0 %v8939_v11, %s7537_s11  ;;  %2407 = vmatpush1.bf16.msra.mxu1 %v1878_v34 }
 0x3f0   : > { %2130 = vrot.lane.b32.xlu1 %v8914_v44, %s7537_s11 }
 0x3f2   : > { %v1819_v59 = vpop.permute.xlu1 %1818  ;;  %2068 = vrot.lane.b32.xlu0 %v9174_v32, %s7537_s11 }
 0x3f4   : > { %2146 = vrot.lane.b32.xlu1 %v8934_v17, %s7537_s11  ;;  %v1821_v4 = vpop.permute.xlu0 %1820 }
 0x3f6   : > { %v1835_v10 = vpop.permute.xlu1 %1834  ;;  %2084 = vrot.lane.b32.xlu0 %v9192_v38, %s7537_s11 }
 0x3f7   : > { %v1856_v49 = vsel %vm776_vm7, %v1835_v10, %v1819_v59  ;;  %v1848_v28 = vsel %vm776_vm7, %v1819_v59, %v1835_v10 }
 0x3f8   : > { %2134 = vrot.lane.b32.xlu1 %v8954_v2, %s7537_s11  ;;  %v1837_v34 = vpop.permute.xlu0 %1836  ;;  %v1866_v12 = vmul.f32 %v1856_v49, %v8313_v9 }
 0x3f9   : > { %v1849_v45 = vsel %vm776_vm7, %v1821_v4, %v1837_v34  ;;  %v1857_v41 = vsel %vm776_vm7, %v1837_v34, %v1821_v4 }
 0x3fa   : > { %v1868_v62 = vmul.f32 %v1857_v41, %v8313_v9  ;;  %2136 = vrot.lane.b32.xlu0 %v8959_v8, %s7537_s11  ;;  %v1881_v60 = vpack.c.bf16 %v1849_v45, %v1848_v28 }
 0x3fc   : > { %2150 = vrot.lane.b32.xlu1 %v8974_v5, %s7537_s11  ;;  %2408 = vmatprep.subr.bf16.mxu1 %v1881_v60  ;;  %v1880_v7 = vpack.c.bf16 %v1868_v62, %v1866_v12 }
 0x3fe   : > { %2152 = vrot.lane.b32.xlu0 %v8979_v14, %s7537_s11  ;;  %2409 = vmatpush1.bf16.msra.mxu1 %v1880_v7 }
 0x400   : > { %2138 = vrot.lane.b32.xlu1 %v8994_v6, %s7537_s11 }
 0x402   : > { %v1823_v59 = vpop.permute.xlu1 %1822  ;;  %2140 = vrot.lane.b32.xlu0 %v8999_v19, %s7537_s11 }
 0x404   : > { %2154 = vrot.lane.b32.xlu1 %v9010_v22, %s7537_s11  ;;  %v1825_v4 = vpop.permute.xlu0 %1824 }
 0x406   : > { %v1839_v10 = vpop.permute.xlu1 %1838  ;;  %2156 = vrot.lane.b32.xlu0 %v9014_v33, %s7537_s11 }
 0x407   : > { %v1858_v49 = vsel %vm776_vm7, %v1839_v10, %v1823_v59  ;;  %v1850_v28 = vsel %vm776_vm7, %v1823_v59, %v1839_v10 }
 0x408   : > { %2198 = vrot.lane.b32.xlu1 %v9201_v50, %s7537_s11  ;;  %v1841_v34 = vpop.permute.xlu0 %1840  ;;  %v1870_v12 = vmul.f32 %v1858_v49, %v8313_v9 }
 0x409   : > { %v1851_v45 = vsel %vm776_vm7, %v1825_v4, %v1841_v34  ;;  %v1859_v41 = vsel %vm776_vm7, %v1841_v34, %v1825_v4 }
 0x40a   : > { %v1872_v62 = vmul.f32 %v1859_v41, %v8313_v9  ;;  %2200 = vrot.lane.b32.xlu0 %v9212_v42, %s7537_s11  ;;  %v1883_v60 = vpack.c.bf16 %v1851_v45, %v1850_v28  ;;  %v1927_v28 = vsel %vm776_vm7, %v9185_v20, %v9058_v40 }
 0x40c   : > { %2214 = vrot.lane.b32.xlu1 %v9221_v61, %s7537_s11  ;;  %2410 = vmatprep.subr.bf16.mxu1 %v1883_v60  ;;  %v1882_v7 = vpack.c.bf16 %v1872_v62, %v1870_v12  ;;  %v1919_v62 = vsel %vm776_vm7, %v9058_v40, %v9185_v20  ;;  %v1918_v40 = vsel %vm776_vm7, %v9056_v0, %v9263_v23 }
 0x40d   : > { %v1936_v20 = vmul.f32 %v1927_v28, %v8313_v9  ;;  %v14712_v28 = vld [vmem:[#allocation46_spill] sm:$0xff] }
 0x40e   : > { %2216 = vrot.lane.b32.xlu0 %v9232_v63, %s7537_s11  ;;  %2411 = vmatpush1.bf16.msra.mxu1 %v1882_v7 }
 0x410   : > { %2202 = vrot.lane.b32.xlu1 %v9241_v30, %s7537_s11 }
 0x412   : > { %v1827_v59 = vpop.permute.xlu1 %1826  ;;  %2204 = vrot.lane.b32.xlu0 %v9252_v37, %s7537_s11 }
 0x414   : > { %2218 = vrot.lane.b32.xlu1 %v9261_v15, %s7537_s11  ;;  %v1829_v4 = vpop.permute.xlu0 %1828 }
 0x416   : > { %v1843_v10 = vpop.permute.xlu1 %1842  ;;  %2220 = vrot.lane.b32.xlu0 %v9273_v43, %s7537_s11 }
 0x417   : > { %v1860_v49 = vsel %vm776_vm7, %v1843_v10, %v1827_v59  ;;  %v1852_v45 = vsel %vm776_vm7, %v1827_v59, %v1843_v10 }
 0x418   : > { %2206 = vrot.lane.b32.xlu1 %v9281_v53, %s7537_s11  ;;  %v1845_v34 = vpop.permute.xlu0 %1844  ;;  %v1874_v60 = vmul.f32 %v1860_v49, %v8313_v9 }
 0x419   : > { %v1853_v41 = vsel %vm776_vm7, %v1829_v4, %v1845_v34  ;;  %v1861_v12 = vsel %vm776_vm7, %v1845_v34, %v1829_v4  ;;  %v1926_v4 = vsel %vm776_vm7, %v9263_v23, %v9056_v0  ;;  %v1928_v34 = vsel %vm776_vm7, %v9342_v1, %v9322_v36 }
 0x41a   : > { %v1876_v7 = vmul.f32 %v1861_v12, %v8313_v9  ;;  %v9489_v53 = vpop.permute.xlu1 %1958  ;;  %2208 = vrot.lane.b32.xlu0 %v9291_v51, %s7537_s11  ;;  %v1885_v59 = vpack.c.bf16 %v1853_v41, %v1852_v45  ;;  %v1951_v45 = vpack.c.bf16 %v1919_v62, %v1918_v40  ;;  %v1934_v41 = vmul.f32 %v1926_v4, %v8313_v9 }
 0x41b   : > { %v1920_v0 = vsel %vm776_vm7, %v9322_v36, %v9342_v1  ;;  %v1929_v12 = vsel %vm776_vm7, %v14712_v28, %v9205_v24  ;;  %v1921_v62 = vsel %vm776_vm7, %v9205_v24, %v14712_v28  ;;  %v1922_v24 = vsel %vm776_vm7, %v9350_v56, %v9361_v52 }
 0x41c   : > { %2222 = vrot.lane.b32.xlu1 %v9299_v57, %s7537_s11  ;;  %2412 = vmatprep.subr.bf16.mxu1 %v1885_v59  ;;  %v1961_v10 = vpop.permute.xlu0 %1960  ;;  %v1884_v49 = vpack.c.bf16 %v1876_v7, %v1874_v60  ;;  %v1938_v60 = vmul.f32 %v1928_v34, %v8313_v9  ;;  %v1950_v1 = vpack.c.bf16 %v1936_v20, %v1934_v41  ;;  %v14714_v20 = vld [vmem:[#allocation48_spill] sm:$0xff] }
 0x41d   : > { %v1930_v7 = vsel %vm776_vm7, %v9361_v52, %v9350_v56  ;;  %v1953_v59 = vpack.c.bf16 %v1921_v62, %v1920_v0  ;;  %v1940_v4 = vmul.f32 %v1929_v12, %v8313_v9  ;;  %v14715_v0 = vld [vmem:[#allocation50_spill] sm:$0xff] }
 0x41e   : > { %v1975_v23 = vpop.permute.xlu1 %1974  ;;  %2224 = vrot.lane.b32.xlu0 %v9307_v21, %s7537_s11  ;;  %2413 = vmatpush1.bf16.msra.mxu1 %v1884_v49  ;;  %v14713_v49 = vld [vmem:[#allocation47_spill] sm:$0xff]  ;;  %v1942_v41 = vmul.f32 %v1930_v7, %v8313_v9  ;;  %v1933_v28 = vsel %vm776_vm7, %v9381_v31, %v14715_v0  ;;  %v1925_v7 = vsel %vm776_vm7, %v14715_v0, %v9381_v31 }
 0x41f   : > { %2414 = vmatprep.subr.bf16.mxu1 %v1951_v45  ;;  %v1931_v34 = vsel %vm776_vm7, %v14714_v20, %v14713_v49  ;;  %v1923_v45 = vsel %vm776_vm7, %v14713_v49, %v14714_v20  ;;  %v1952_v52 = vpack.c.bf16 %v1940_v4, %v1938_v60  ;;  %v598_v62 = vld [vmem:[%s14349_s5] sm:$0xff]  ;;  %v1932_v60 = vsel %vm776_vm7, %v9377_v16, %v9369_v35  ;;  %v599_v4 = vld [vmem:[%s14349_s5 + $0x8] sm:$0xff] }
 0x420   : > { %2210 = vrot.lane.b32.xlu1 %v9315_v26, %s7537_s11  ;;  %v1977_v36 = vpop.permute.xlu0 %1976  ;;  %v1955_v12 = vpack.c.bf16 %v1923_v45, %v1922_v24  ;;  %v1924_v31 = vsel %vm776_vm7, %v9369_v35, %v9377_v16  ;;  %v1948_v24 = vmul.f32 %v1933_v28, %v8313_v9  ;;  %v1946_v0 = vmul.f32 %v1932_v60, %v8313_v9  ;;  %v607_v16 = vld [vmem:[%s14350_s6 + $0x8] sm:$0xff] }
 0x421   : > { %v1957_v45 = vpack.c.bf16 %v1925_v7, %v1924_v31  ;;  %v1998_v35 = vsel %vm776_vm7, %v1975_v23, %v9489_v53  ;;  %v600_v7 = vld [vmem:[%s14349_s5 + $0x10] sm:$0xff] }
 0x422   : > { %v1963_v40 = vpop.permute.xlu1 %1962  ;;  %2212 = vrot.lane.b32.xlu0 %v9325_v39, %s7537_s11  ;;  %2415 = vmatpush1.bf16.msra.mxu1 %v1950_v1  ;;  %v1944_v1 = vmul.f32 %v1931_v34, %v8313_v9  ;;  %v1999_v34 = vsel %vm776_vm7, %v1977_v36, %v1961_v10  ;;  %v2006_v60 = vmul.f32 %v1998_v35, %v8313_v9 }
 0x423   : > { %2416 = vmatprep.subr.bf16.mxu1 %v1953_v59  ;;  %v2008_v28 = vmul.f32 %v1999_v34, %v8313_v9 }
 0x424   : > { %2226 = vrot.lane.b32.xlu1 %v9333_v3, %s7537_s11  ;;  %v1965_v56 = vpop.permute.xlu0 %1964  ;;  %v1954_v20 = vpack.c.bf16 %v1944_v1, %v1942_v41  ;;  %v1990_v41 = vsel %vm776_vm7, %v9489_v53, %v1975_v23  ;;  %v601_v23 = vld [vmem:[%s14349_s5 + $0x18] sm:$0xff] }
 0x426   : > { %v1979_v59 = vpop.permute.xlu1 %1978  ;;  %2228 = vrot.lane.b32.xlu0 %v9338_v54, %s7537_s11  ;;  %2417 = vmatpush1.bf16.msra.mxu1 %v1952_v52  ;;  %v606_v52 = vld [vmem:[%s14350_s6] sm:$0xff] }
 0x427   : > { %2418 = vmatprep.subr.bf16.mxu1 %v1955_v12  ;;  %v1991_v12 = vsel %vm776_vm7, %v1961_v10, %v1977_v36  ;;  %v1956_v36 = vpack.c.bf16 %v1948_v24, %v1946_v0  ;;  %v2000_v53 = vsel %vm776_vm7, %v1979_v59, %v1963_v40  ;;  %v1992_v24 = vsel %vm776_vm7, %v1963_v40, %v1979_v59  ;;  %v609_v59 = vld [vmem:[%s14350_s6 + $0x18] sm:$0xff] }
 0x428   : > { %2627 = vperm.xlu1 %7147, %v598_v62   ;;  %v1981_v49 = vpop.permute.xlu0 %1980  ;;  %v2023_v1 = vpack.c.bf16 %v1991_v12, %v1990_v41  ;;  %v2010_v0 = vmul.f32 %v2000_v53, %v8313_v9 }
 0x429   : > { %v2001_v62 = vsel %vm776_vm7, %v1981_v49, %v1965_v56 }
 0x42a   : > { %v1967_v39 = vpop.permute.xlu1 %1966  ;;  %2632 = vperm.xlu0 %7146, %v599_v4   ;;  %2419 = vmatpush1.bf16.msra.mxu1 %v1954_v20  ;;  %v1993_v4 = vsel %vm776_vm7, %v1965_v56, %v1981_v49  ;;  %v2012_v20 = vmul.f32 %v2001_v62, %v8313_v9  ;;  %v602_v62 = vld [vmem:[%s14349_s5 + $0x20] sm:$0xff] }
 0x42b   : > { %2420 = vmatprep.subr.bf16.mxu1 %v1957_v45  ;;  %v2022_v45 = vpack.c.bf16 %v2008_v28, %v2006_v60  ;;  %v2025_v49 = vpack.c.bf16 %v1993_v4, %v1992_v24 }
 0x42c   : > { %2683 = vperm.xlu1 %7147, %v606_v52   ;;  %v1969_v10 = vpop.permute.xlu0 %1968  ;;  %v608_v52 = vld [vmem:[%s14350_s6 + $0x10] sm:$0xff] }
 0x42e   : > { %v1983_v31 = vpop.permute.xlu1 %1982  ;;  %2688 = vperm.xlu0 %7146, %v607_v16   ;;  %2421 = vmatpush1.bf16.msra.mxu1 %v1956_v36  ;;  %v2024_v36 = vpack.c.bf16 %v2012_v20, %v2010_v0  ;;  %v610_v20 = vld [vmem:[%s14350_s6 + $0x20] sm:$0xff] }
 0x42f   : > { %2422 = vmatprep.subr.bf16.mxu1 %v2023_v1  ;;  %v2002_v40 = vsel %vm776_vm7, %v1983_v31, %v1967_v39  ;;  %v1994_v16 = vsel %vm776_vm7, %v1967_v39, %v1983_v31  ;;  %v603_v39 = vld [vmem:[%s14349_s5 + $0x28] sm:$0xff] }
 0x430   : > { %2637 = vperm.xlu1 %7147, %v600_v7   ;;  %v1985_v34 = vpop.permute.xlu0 %1984  ;;  %v2014_v1 = vmul.f32 %v2002_v40, %v8313_v9  ;;  %v604_v40 = vld [vmem:[%s14349_s5 + $0x30] sm:$0xff] }
 0x431   : > { %v2003_v56 = vsel %vm776_vm7, %v1985_v34, %v1969_v10  ;;  %v1995_v12 = vsel %vm776_vm7, %v1969_v10, %v1985_v34 }
 0x432   : > { %v1971_v35 = vpop.permute.xlu1 %1970  ;;  %2642 = vperm.xlu0 %7146, %v601_v23   ;;  %2423 = vmatpush1.bf16.msra.mxu1 %v2022_v45  ;;  %v2016_v41 = vmul.f32 %v2003_v56, %v8313_v9  ;;  %v2027_v10 = vpack.c.bf16 %v1995_v12, %v1994_v16  ;;  %v605_v16 = vld [vmem:[%s14349_s5 + $0x38] sm:$0xff] }
 0x433   : > { %2424 = vmatprep.subr.bf16.mxu1 %v2025_v49 }
 0x434   : > { %2693 = vperm.xlu1 %7147, %v608_v52   ;;  %v1973_v28 = vpop.permute.xlu0 %1972  ;;  %v2026_v31 = vpack.c.bf16 %v2016_v41, %v2014_v1  ;;  %v611_v52 = vld [vmem:[%s14350_s6 + $0x28] sm:$0xff] }
 0x436   : > { %v1987_v7 = vpop.permute.xlu1 %1986  ;;  %2698 = vperm.xlu0 %7146, %v609_v59   ;;  %2425 = vmatpush1.bf16.msra.mxu1 %v2024_v36 }
 0x437   : > { %v2004_v60 = vsel %vm776_vm7, %v1987_v7, %v1971_v35  ;;  %2426 = vmatprep.subr.bf16.mxu1 %v2027_v10  ;;  %v1996_v53 = vsel %vm776_vm7, %v1971_v35, %v1987_v7  ;;  %v2031_v35 = vpack.c.bf16 %v9086_v13, %v9079_v58  ;;  %v2033_v58 = vpack.c.bf16 %v9122_v27, %v9115_v48  ;;  %v612_v13 = vld [vmem:[%s14350_s6 + $0x30] sm:$0xff]  ;;  %v613_v10 = vld [vmem:[%s14350_s6 + $0x38] sm:$0xff]  ;;  %v14718_v27 = vld [vmem:[#allocation43_spill] sm:$0xff] }
 0x438   : > { %2647 = vperm.xlu1 %7147, %v602_v62   ;;  %v1989_v4 = vpop.permute.xlu0 %1988  ;;  %v2018_v34 = vmul.f32 %v2004_v60, %v8313_v9  ;;  %v14717_v48 = vld [vmem:[#allocation42_spill] sm:$0xff] }
 0x439   : > { %v1997_v23 = vsel %vm776_vm7, %v1973_v28, %v1989_v4  ;;  %v2005_v24 = vsel %vm776_vm7, %v1989_v4, %v1973_v28  ;;  %v2030_v28 = vpack.c.bf16 %v9070_v55, %v9063_v25  ;;  %v14716_v25 = vld [vmem:[#allocation39_spill] sm:$0xff]  ;;  %v2035_v1 = vpack.c.bf16 %v14718_v27, %v14717_v48  ;;  %v14720_v4 = vld [vmem:[#allocation41_spill] sm:$0xff] }
 0x43a   : > { %v2020_v45 = vmul.f32 %v2005_v24, %v8313_v9  ;;  %v9644_v56 = vpop.permute.xlu1 %2054  ;;  %2652 = vperm.xlu0 %7146, %v603_v39   ;;  %2427 = vmatpush1.bf16.msra.mxu1 %v2026_v31  ;;  %v2029_v49 = vpack.c.bf16 %v1997_v23, %v1996_v53  ;;  %v2032_v55 = vpack.c.bf16 %v14716_v25, %v9099_v29  ;;  %v14719_v39 = vld [vmem:[#allocation40_spill] sm:$0xff]  ;;  %v14721_v53 = vld [vmem:[#allocation45_spill] sm:$0xff] }
 0x43b   : > { %v2034_v31 = vpack.c.bf16 %v14720_v4, %v14719_v39  ;;  %v2037_v23 = vpack.c.bf16 %v9192_v38, %v14721_v53  ;;  %v14724_v38 = vld [vmem:[#allocation15_spill] sm:$0xff]  ;;  %v7181_v25 = vld [vmem:[#allocation8 + $0x28] ss:$20 sps:$4 sm:$0xff]   ;;  %v2045_v27 = vpack.c.bf16 %v9014_v33, %v9010_v22  ;;  %v2046_v22 = vpack.c.bf16 %v9212_v42, %v9201_v50 }
 0x43c   : > { %2703 = vperm.xlu1 %7147, %v610_v20   ;;  %2428 = vmatprep.subr.bf16.mxu1 %v2029_v49  ;;  %v9649_v0 = vpop.permute.xlu0 %2056  ;;  %v2028_v12 = vpack.c.bf16 %v2020_v45, %v2018_v34  ;;  %v14722_v20 = vld [vmem:[#allocation44_spill] sm:$0xff]  ;;  %v2049_v33 = vpack.c.bf16 %v9273_v43, %v9261_v15  ;;  %v2053_v53 = vpack.c.bf16 %v9338_v54, %v9333_v3  ;;  %v14728_v3 = vld [vmem:[#allocation51_spill] sm:$0xff] }
 0x43d   : > { %v2036_v34 = vpack.c.bf16 %v9174_v32, %v14722_v20  ;;  %v14723_v45 = vld [vmem:[#allocation28_spill] sm:$0xff]  ;;  %v2040_v32 = vpack.c.bf16 %v8919_v47, %v8914_v44  ;;  %v2044_v47 = vpack.c.bf16 %v8999_v19, %v8994_v6  ;;  %v2048_v6 = vpack.c.bf16 %v9252_v37, %v9241_v30  ;;  %v14726_v37 = vld [vmem:[#allocation49_spill] sm:$0xff] }
 0x43e   : > { %v9656_v59 = vpop.permute.xlu1 %2070  ;;  %2708 = vperm.xlu0 %7146, %v611_v52   ;;  %2429 = vmatpush1.bf16.msra.mxu1 %v2028_v12  ;;  %v2039_v49 = vpack.c.bf16 %v14723_v45, %v8894_v46  ;;  %v7178_v52 = vld [vmem:[#allocation8] ss:$20 sps:$4 sm:$0xff]   ;;  %v2051_v19 = vpack.c.bf16 %v9307_v21, %v9299_v57  ;;  %v2050_v57 = vpack.c.bf16 %v9291_v51, %v14726_v37  ;;  %v14727_v21 = vld [vmem:[#allocation20_spill] sm:$0xff] }
 0x43f   : > { %2430 = vmatprep.subr.bf16.mxu1 %v2031_v35  ;;  %v7179_v35 = vld [vmem:[#allocation8 + $0x2c] ss:$20 sps:$4 sm:$0xff]   ;;  %v7182_v48 = vld [vmem:[#allocation8 + $0x54] ss:$20 sps:$4 sm:$0xff]   ;;  %v2094_v43 = vsel %vm1017_vm8, %v9656_v59, %v9644_v56  ;;  %v2052_v54 = vpack.c.bf16 %v14728_v3, %v9315_v26  ;;  %v2086_v26 = vsel %vm1017_vm8, %v9644_v56, %v9656_v59 }
 0x440   : > { %2657 = vperm.xlu1 %7147, %v604_v40   ;;  %v9661_v41 = vpop.permute.xlu0 %2072  ;;  %v7190_v50 = vld [vmem:[#allocation8 + $0xc] ss:$20 sps:$4 sm:$0xff]  }
 0x441   : > { %v2095_v42 = vsel %vm1017_vm8, %v9661_v41, %v9649_v0 }
 0x442   : > { %v9670_v36 = vpop.permute.xlu1 %2058  ;;  %2662 = vperm.xlu0 %7146, %v605_v16   ;;  %2431 = vmatpush1.bf16.msra.mxu1 %v2030_v28  ;;  %v14725_v16 = vld [vmem:[#allocation17_spill] sm:$0xff] }
 0x443   : > { %2432 = vmatprep.subr.bf16.mxu1 %v2033_v58  ;;  %v2038_v28 = vpack.c.bf16 %v14725_v16, %v14724_v38  ;;  %v2041_v58 = vpack.c.bf16 %v8939_v11, %v8934_v17  ;;  %v2042_v11 = vpack.c.bf16 %v8959_v8, %v8954_v2  ;;  %v7185_v2 = vld [vmem:[#allocation8 + $0x7c] ss:$20 sps:$4 sm:$0xff]  }
 0x444   : > { %2713 = vperm.xlu1 %7147, %v612_v13   ;;  %v9675_v62 = vpop.permute.xlu0 %2060 }
 0x446   : > { %v9681_v7 = vpop.permute.xlu1 %2074  ;;  %2718 = vperm.xlu0 %7146, %v613_v10   ;;  %2433 = vmatpush1.bf16.msra.mxu1 %v2032_v55  ;;  %v2043_v10 = vpack.c.bf16 %v8979_v14, %v8974_v5  ;;  %v2047_v5 = vpack.c.bf16 %v9232_v63, %v9221_v61  ;;  %v7184_v14 = vld [vmem:[#allocation8 + $0x50] ss:$20 sps:$4 sm:$0xff]   ;;  %v7187_v63 = vld [vmem:[#allocation8 + $0x78] ss:$20 sps:$4 sm:$0xff]  }
 0x447   : > { %2434 = vmatprep.subr.bf16.mxu1 %v2035_v1  ;;  %v2096_v51 = vsel %vm1017_vm8, %v9681_v7, %v9670_v36 }
 0x448   : > { %v9683_v60 = vpop.permute.xlu0 %2076 }
 0x44a   : > { %v9689_v24 = vpop.permute.xlu1 %2062  ;;  %2435 = vmatpush1.bf16.msra.mxu1 %v2034_v31  ;;  %v2105_v31 = vmul.f32 %v2095_v42, %v14727_v21 }
 0x44b   : > { %2436 = vmatprep.subr.bf16.mxu1 %v2037_v23  ;;  %v2097_v23 = vsel %vm1017_vm8, %v9683_v60, %v9675_v62 }
 0x44c   : > { %v9691_v29 = vpop.permute.xlu0 %2064 }
 0x44e   : > { %v9697_v12 = vpop.permute.xlu1 %2078  ;;  %2437 = vmatpush1.bf16.msra.mxu1 %v2036_v34  ;;  %v2103_v34 = vmul.f32 %v2094_v43, %v14727_v21 }
 0x44f   : > { %2479 = vmatprep.subr.bf16.mxu1 %v2039_v49  ;;  %v2087_v49 = vsel %vm1017_vm8, %v9649_v0, %v9661_v41  ;;  %v2098_v41 = vsel %vm1017_vm8, %v9697_v12, %v9689_v24 }
 0x450   : > { %v9699_v40 = vpop.permute.xlu0 %2080  ;;  %v2118_v0 = vpack.c.bf16 %v2087_v49, %v2086_v26 }
 0x451   : > { %2439 = vmatmul.mubr.bf16.vlgmr.msra.gmra.mrb[0].mxu1 %v7178_v52  ;;  %v2109_v52 = vmul.f32 %v2097_v23, %v14727_v21  ;;  %v2099_v38 = vsel %vm1017_vm8, %v9699_v40, %v9691_v29 }
 0x452   : > { %v9705_v13 = vpop.permute.xlu1 %2066  ;;  %2480 = vmatpush1.bf16.msra.mxu1 %v2038_v28  ;;  %2448 = vmatprep.mubr.bf16.mxu1 %v7179_v35  ;;  %v2119_v35 = vpack.c.bf16 %v2105_v31, %v2103_v34  ;;  %v2107_v28 = vmul.f32 %v2096_v51, %v14727_v21 }
 0x453   : > { %2481 = vmatprep.subr.bf16.mxu1 %v2041_v58 }
 0x454   : > { %v9707_v46 = vpop.permute.xlu0 %2128 }
 0x456   : > { %v9713_v55 = vpop.permute.xlu1 %2082  ;;  %2482 = vmatpush1.bf16.msra.mxu1 %v2040_v32  ;;  %v2089_v32 = vsel %vm1017_vm8, %v9675_v62, %v9683_v60 }
 0x457   : > { %2483 = vmatprep.subr.bf16.mxu1 %v2043_v10  ;;  %v2113_v10 = vmul.f32 %v2099_v38, %v14727_v21  ;;  %v2100_v62 = vsel %vm1017_vm8, %v9713_v55, %v9705_v13  ;;  %v2092_v42 = vsel %vm1017_vm8, %v9705_v13, %v9713_v55 }
 0x458   : > { %v9715_v17 = vpop.permute.xlu0 %2144 }
 0x459   : > { %2449 = vmatmul.mubr.bf16.gmra.mrb[4].mxu1 %v7181_v25  ;;  %v2121_v25 = vpack.c.bf16 %v2109_v52, %v2107_v28 }
 0x45a   : > { %v9721_v1 = vpop.permute.xlu1 %2126  ;;  %2484 = vmatpush1.bf16.msra.mxu1 %v2042_v11  ;;  %2458 = vmatprep.mubr.bf16.mxu1 %v7182_v48  ;;  %v2088_v48 = vsel %vm1017_vm8, %v9670_v36, %v9681_v7  ;;  %v2111_v11 = vmul.f32 %v2098_v41, %v14727_v21 }
 0x45b   : > { %2485 = vmatprep.subr.bf16.mxu1 %v2045_v27  ;;  %v2120_v27 = vpack.c.bf16 %v2089_v32, %v2088_v48 }
 0x45c   : > { %v9723_v44 = vpop.permute.xlu0 %2132 }
 0x45e   : > { %v9729_v39 = vpop.permute.xlu1 %2142  ;;  %2486 = vmatpush1.bf16.msra.mxu1 %v2044_v47  ;;  %v2091_v47 = vsel %vm1017_vm8, %v9691_v29, %v9699_v40  ;;  %v2167_v40 = vsel %vm1017_vm8, %v9715_v17, %v9707_v46 }
 0x45f   : > { %2487 = vmatprep.subr.bf16.mxu1 %v2047_v5  ;;  %v2166_v36 = vsel %vm1017_vm8, %v9729_v39, %v9721_v1  ;;  %v2158_v37 = vsel %vm1017_vm8, %v9721_v1, %v9729_v39 }
 0x460   : > { %v9731_v8 = vpop.permute.xlu0 %2148 }
 0x461   : > { %2459 = vmatmul.mubr.bf16.gmra.mrb[8].mxu1 %v7184_v14  ;;  %v2123_v14 = vpack.c.bf16 %v2113_v10, %v2111_v11  ;;  %v2161_v49 = vsel %vm1017_vm8, %v9723_v44, %v9731_v8 }
 0x462   : > { %v9737_v4 = vpop.permute.xlu1 %2130  ;;  %2488 = vmatpush1.bf16.msra.mxu1 %v2046_v22  ;;  %2468 = vmatprep.mubr.bf16.mxu1 %v7185_v2  ;;  %v2090_v2 = vsel %vm1017_vm8, %v9689_v24, %v9697_v12  ;;  %v2115_v22 = vmul.f32 %v2100_v62, %v14727_v21 }
 0x463   : > { %2489 = vmatprep.subr.bf16.mxu1 %v2049_v33  ;;  %v2122_v29 = vpack.c.bf16 %v2091_v47, %v2090_v2 }
 0x464   : > { %v2069_v61 = vpop.permute.xlu0 %2068 }
 0x466   : > { %v9747_v15 = vpop.permute.xlu1 %2146  ;;  %2490 = vmatpush1.bf16.msra.mxu1 %v2048_v6  ;;  %v2175_v6 = vmul.f32 %v2166_v36, %v14727_v21  ;;  %v7188_v36 = vld [vmem:[#allocation8 + $0x8] ss:$20 sps:$4 sm:$0xff]  }
 0x467   : > { %2491 = vmatprep.subr.bf16.mxu1 %v2051_v19  ;;  %v2168_v24 = vsel %vm1017_vm8, %v9747_v15, %v9737_v4  ;;  %v2160_v51 = vsel %vm1017_vm8, %v9737_v4, %v9747_v15 }
 0x468   : > { %v2085_v30 = vpop.permute.xlu0 %2084 }
 0x469   : > { %2469 = vmatmul.mubr.bf16.gmra.mrb[12].mxu1 %v7187_v63  ;;  %v2101_v56 = vsel %vm1017_vm8, %v2085_v30, %v2069_v61  ;;  %v2093_v19 = vsel %vm1017_vm8, %v2069_v61, %v2085_v30  ;;  %v2169_v61 = vsel %vm1017_vm8, %v9731_v8, %v9723_v44 }
 0x46a   : > { %v9762_v20 = vpop.permute.xlu1 %2134  ;;  %2492 = vmatpush1.bf16.msra.mxu1 %v2050_v57  ;;  %2511 = vmatprep.mubr.bf16.mxu1 %v7190_v50  ;;  %v2117_v5 = vmul.f32 %v2101_v56, %v14727_v21  ;;  %v2177_v50 = vmul.f32 %v2167_v40, %v14727_v21  ;;  %v2124_v43 = vpack.c.bf16 %v2093_v19, %v2092_v42 }
 0x46b   : > { %2493 = vmatprep.subr.bf16.mxu1 %v2053_v53  ;;  %v2179_v57 = vmul.f32 %v2168_v24, %v14727_v21  ;;  %v2159_v53 = vsel %vm1017_vm8, %v9707_v46, %v9715_v17  ;;  %v2181_v23 = vmul.f32 %v2169_v61, %v14727_v21 }
 0x46c   : > { %v9769_v45 = vpop.permute.xlu0 %2136  ;;  %v2125_v63 = vpack.c.bf16 %v2117_v5, %v2115_v22  ;;  %v2191_v31 = vpack.c.bf16 %v2177_v50, %v2175_v6  ;;  %v2190_v34 = vpack.c.bf16 %v2159_v53, %v2158_v37  ;;  %v7191_v22 = vld [vmem:[#allocation8 + $0x34] ss:$20 sps:$4 sm:$0xff]  }
 0x46e   : > { %v9782_v16 = vpop.permute.xlu1 %2150  ;;  %2494 = vmatpush1.bf16.msra.mxu1 %v2052_v54  ;;  %v2193_v54 = vpack.c.bf16 %v2181_v23, %v2179_v57  ;;  %v7193_v57 = vld [vmem:[#allocation8 + $0x30] ss:$20 sps:$4 sm:$0xff]  }
 0x46f   : > { %2495 = vmatprep.subr.bf16.mxu1 %v2119_v35  ;;  %v2170_v1 = vsel %vm1017_vm8, %v9782_v16, %v9762_v20  ;;  %v2192_v35 = vpack.c.bf16 %v2161_v49, %v2160_v51  ;;  %v7196_v49 = vld [vmem:[#allocation8 + $0x58] ss:$20 sps:$4 sm:$0xff]  }
 0x470   : > { %v2153_v58 = vpop.permute.xlu0 %2152  ;;  %v2183_v52 = vmul.f32 %v2170_v1, %v14727_v21 }
 0x471   : > { %v2171_v13 = vsel %vm1017_vm8, %v2153_v58, %v9769_v45  ;;  %v2163_v38 = vsel %vm1017_vm8, %v9769_v45, %v2153_v58 }
 0x472   : > { %v9800_v59 = vpop.permute.xlu1 %2138  ;;  %2496 = vmatpush1.bf16.msra.mxu1 %v2118_v0  ;;  %v2185_v3 = vmul.f32 %v2171_v13, %v14727_v21  ;;  %v2162_v0 = vsel %vm1017_vm8, %v9762_v20, %v9782_v16  ;;  %v7194_v13 = vld [vmem:[#allocation8 + $0x5c] ss:$20 sps:$4 sm:$0xff]  }
 0x473   : > { %2497 = vmatprep.subr.bf16.mxu1 %v2121_v25  ;;  %v2194_v32 = vpack.c.bf16 %v2163_v38, %v2162_v0  ;;  %v7201_v38 = vld [vmem:[#allocation8 + $0x38] ss:$20 sps:$4 sm:$0xff]  }
 0x474   : > { %v2141_v60 = vpop.permute.xlu0 %2140  ;;  %v2195_v28 = vpack.c.bf16 %v2185_v3, %v2183_v52  ;;  %v7197_v52 = vld [vmem:[#allocation8 + $0x84] ss:$20 sps:$4 sm:$0xff]  }
 0x476   : > { %v9820_v7 = vpop.permute.xlu1 %2154  ;;  %2498 = vmatpush1.bf16.msra.mxu1 %v2120_v27 }
 0x477   : > { %2499 = vmatprep.subr.bf16.mxu1 %v2123_v14  ;;  %v2172_v4 = vsel %vm1017_vm8, %v9820_v7, %v9800_v59  ;;  %v2164_v20 = vsel %vm1017_vm8, %v9800_v59, %v9820_v7 }
 0x478   : > { %v2157_v33 = vpop.permute.xlu0 %2156  ;;  %v2187_v41 = vmul.f32 %v2172_v4, %v14727_v21  ;;  %v14729_v4 = vmov 0  }
 0x479   : > { %v2173_v46 = vsel %vm1017_vm8, %v2157_v33, %v2141_v60  ;;  %v2165_v10 = vsel %vm1017_vm8, %v2141_v60, %v2157_v33 }
 0x47a   : > { %v9838_v12 = vpop.permute.xlu1 %2198  ;;  %2500 = vmatpush1.bf16.msra.mxu1 %v2122_v29  ;;  %v2189_v26 = vmul.f32 %v2173_v46, %v14727_v21  ;;  %v2196_v27 = vpack.c.bf16 %v2165_v10, %v2164_v20  ;;  %v7258_v20 = vld [vmem:[%s7803_s17] sm:$0xff] }
 0x47b   : > { %2501 = vmatprep.subr.bf16.mxu1 %v2125_v63 }
 0x47c   : > { %v2201_v30 = vpop.permute.xlu0 %2200  ;;  %v2197_v56 = vpack.c.bf16 %v2189_v26, %v2187_v41  ;;  %v7202_v26 = vld [vmem:[#allocation8 + $0x60] ss:$20 sps:$4 sm:$0xff]  }
 0x47e   : > { %v2215_v55 = vpop.permute.xlu1 %2214  ;;  %2502 = vmatpush1.bf16.msra.mxu1 %v2124_v43 }
 0x47f   : > { %2503 = vmatprep.subr.bf16.mxu1 %v2191_v31  ;;  %v2238_v45 = vsel %vm1017_vm8, %v2215_v55, %v9838_v12  ;;  %v2230_v59 = vsel %vm1017_vm8, %v9838_v12, %v2215_v55 }
 0x480   : > { %v2217_v39 = vpop.permute.xlu0 %2216  ;;  %v2247_v16 = vmul.f32 %v2238_v45, %v14727_v21 }
 0x481   : > { %v2239_v44 = vsel %vm1017_vm8, %v2217_v39, %v2201_v30  ;;  %v2231_v47 = vsel %vm1017_vm8, %v2201_v30, %v2217_v39 }
 0x482   : > { %v2203_v17 = vpop.permute.xlu1 %2202  ;;  %2504 = vmatpush1.bf16.msra.mxu1 %v2190_v34  ;;  %v2249_v25 = vmul.f32 %v2239_v44, %v14727_v21  ;;  %v2262_v40 = vpack.c.bf16 %v2231_v47, %v2230_v59  ;;  %v14730_v44 = vld [vmem:[#allocation52_spill] sm:$0xff] }
 0x483   : > { %2505 = vmatprep.subr.bf16.mxu1 %v2193_v54 }
 0x484   : > { %v2205_v15 = vpop.permute.xlu0 %2204  ;;  %v2263_v14 = vpack.c.bf16 %v2249_v25, %v2247_v16 }
 0x486   : > { %v2219_v8 = vpop.permute.xlu1 %2218  ;;  %2506 = vmatpush1.bf16.msra.mxu1 %v2192_v35  ;;  %v7199_v35 = vld [vmem:[#allocation8 + $0x80] ss:$20 sps:$4 sm:$0xff]  }
 0x487   : > { %2507 = vmatprep.subr.bf16.mxu1 %v2195_v28  ;;  %v2240_v62 = vsel %vm1017_vm8, %v2219_v8, %v2203_v17  ;;  %v2232_v50 = vsel %vm1017_vm8, %v2203_v17, %v2219_v8  ;;  %v7203_v28 = vld [vmem:[#allocation8 + $0x88] ss:$20 sps:$4 sm:$0xff]  }
 0x488   : > { %v2221_v58 = vpop.permute.xlu0 %2220  ;;  %v2251_v7 = vmul.f32 %v2240_v62, %v14727_v21  ;;  %v7259_v62 = vld [vmem:[%s7803_s17 + $0x10] sm:$0xff] }
 0x489   : > { %v2241_v48 = vsel %vm1017_vm8, %v2221_v58, %v2205_v15  ;;  %v2233_v6 = vsel %vm1017_vm8, %v2205_v15, %v2221_v58  ;;  %v7200_v15 = vld [vmem:[#allocation8 + $0x10] ss:$20 sps:$4 sm:$0xff]  }
 0x48a   : > { %v2207_v11 = vpop.permute.xlu1 %2206  ;;  %2508 = vmatpush1.bf16.msra.mxu1 %v2194_v32  ;;  %v2253_v5 = vmul.f32 %v2241_v48, %v14727_v21  ;;  %v2264_v61 = vpack.c.bf16 %v2233_v6, %v2232_v50  ;;  %v7260_v6 = vld [vmem:[%s7803_s17 + $0x8] sm:$0xff] }
 0x48b   : > { %2509 = vmatprep.subr.bf16.mxu1 %v2197_v56 }
 0x48c   : > { %v2209_v60 = vpop.permute.xlu0 %2208  ;;  %v2265_v63 = vpack.c.bf16 %v2253_v5, %v2251_v7 }
 0x48e   : > { %v2223_v2 = vpop.permute.xlu1 %2222  ;;  %2510 = vmatpush1.bf16.msra.mxu1 %v2196_v27 }
 0x48f   : > { %v2242_v29 = vsel %vm1017_vm8, %v2223_v2, %v2207_v11  ;;  %2552 = vmatprep.subr.bf16.mxu1 %v2263_v14  ;;  %v2234_v55 = vsel %vm1017_vm8, %v2207_v11, %v2223_v2 }
 0x490   : > { %v2225_v33 = vpop.permute.xlu0 %2224  ;;  %v2255_v24 = vmul.f32 %v2242_v29, %v14727_v21 }
 0x491   : > { %v2243_v19 = vsel %vm1017_vm8, %v2225_v33, %v2209_v60  ;;  %2512 = vmatmul.mubr.bf16.vlgmr.msra.gmra.mrb[0].mxu1 %v7188_v36  ;;  %v2235_v37 = vsel %vm1017_vm8, %v2209_v60, %v2225_v33 }
 0x492   : > { %v2257_v12 = vmul.f32 %v2243_v19, %v14727_v21  ;;  %v2211_v42 = vpop.permute.xlu1 %2210  ;;  %2553 = vmatpush1.bf16.msra.mxu1 %v2262_v40  ;;  %2521 = vmatprep.mubr.bf16.mxu1 %v7191_v22  ;;  %v2266_v23 = vpack.c.bf16 %v2235_v37, %v2234_v55  ;;  %v7262_v55 = vld [vmem:[%s7803_s17 + $0x20] sm:$0xff] }
 0x493   : > { %2554 = vmatprep.subr.bf16.mxu1 %v2265_v63 }
 0x494   : > { %v2213_v43 = vpop.permute.xlu0 %2212  ;;  %v2267_v30 = vpack.c.bf16 %v2257_v12, %v2255_v24 }
 0x496   : > { %v2227_v31 = vpop.permute.xlu1 %2226  ;;  %2555 = vmatpush1.bf16.msra.mxu1 %v2264_v61 }
 0x497   : > { %v2244_v53 = vsel %vm1017_vm8, %v2227_v31, %v2211_v42  ;;  %2556 = vmatprep.subr.bf16.mxu1 %v2267_v30  ;;  %v2236_v54 = vsel %vm1017_vm8, %v2211_v42, %v2227_v31  ;;  %v7261_v42 = vld [vmem:[%s7803_s17 + $0x18] sm:$0xff] }
 0x498   : > { %v2229_v34 = vpop.permute.xlu0 %2228  ;;  %v2259_v39 = vmul.f32 %v2244_v53, %v14727_v21 }
 0x499   : > { %v2245_v1 = vsel %vm1017_vm8, %v2229_v34, %v2213_v43  ;;  %2522 = vmatmul.mubr.bf16.gmra.mrb[4].mxu1 %v7193_v57  ;;  %v2237_v51 = vsel %vm1017_vm8, %v2213_v43, %v2229_v34 }
 0x49a   : > { %v2261_v3 = vmul.f32 %v2245_v1, %v14727_v21  ;;  %2557 = vmatpush1.bf16.msra.mxu1 %v2266_v23  ;;  %2531 = vmatprep.mubr.bf16.mxu1 %v7194_v13  ;;  %v2268_v17 = vpack.c.bf16 %v2237_v51, %v2236_v54 }
 0x49c   : > { %v2269_v46 = vpack.c.bf16 %v2261_v3, %v2259_v39  ;;  %v7263_v39 = vld [vmem:[%s7803_s17 + $0x30] sm:$0xff] }
 0x49e   : > { %2558 = vmatprep.subr.bf16.mxu1 %v2269_v46 }
 0x49f   : > { %2559 = vmatpush1.bf16.msra.mxu1 %v2268_v17 }
 0x4a1   : > { %2532 = vmatmul.mubr.bf16.gmra.mrb[8].mxu1 %v7196_v49 }
 0x4a2   : > { %2541 = vmatprep.mubr.bf16.mxu1 %v7197_v52 }
 0x4a7   : > { %v9948_v8 = vpop.permute.xlu1 %2627 }
 0x4a8   : > { %14731 = vst [vmem:[#allocation46_spill] sm:$0xff] %v9948_v8 }
 0x4a9   : > { %2542 = vmatmul.mubr.bf16.gmra.mrb[12].mxu1 %v7199_v35  ;;  %v9950_v0 = vpop.permute.xlu0 %2632  ;;  %v7264_v35 = vld [vmem:[%s7803_s17 + $0x28] sm:$0xff] }
 0x4aa   : > { %2584 = vmatprep.mubr.bf16.mxu1 %v14729_v4  ;;  %14732 = vst [vmem:[#allocation47_spill] sm:$0xff] %v9950_v0 }
 0x4ab   : > { %v9953_v58 = vpop.permute.xlu1 %2683 }
 0x4ac   : > { %14733 = vst [vmem:[#allocation48_spill] sm:$0xff] %v9953_v58 }
 0x4ad   : > { %v9957_v11 = vpop.permute.xlu0 %2688 }
 0x4ae   : > { %14734 = vst [vmem:[#allocation50_spill] sm:$0xff] %v9957_v11 }
 0x4af   : > { %v9977_v7 = vpop.permute.xlu1 %2637 }
 0x4b0   : > { %14737 = vst [vmem:[#allocation43_spill] sm:$0xff] %v9977_v7 }
 0x4b1   : > { %6795 = vmatmul.mubr.msk.bf16.vlgmr.msra.gmra.mrb[0].mxu1 %vm1326_vm10, %v7200_v15  ;;  %v9982_v40 = vpop.permute.xlu0 %2642 }
 0x4b2   : > { %2594 = vmatprep.mubr.bf16.mxu1 %v14729_v4  ;;  %14738 = vst [vmem:[#allocation40_spill] sm:$0xff] %v9982_v40 }
 0x4b3   : > { %v9996_v30 = vpop.permute.xlu1 %2693 }
 0x4b4   : > { %14741 = vst [vmem:[#allocation44_spill] sm:$0xff] %v9996_v30 }
 0x4b5   : > { %v10001_v57 = vpop.permute.xlu0 %2698 }
 0x4b6   : > { %14742 = vst [vmem:[#allocation28_spill] sm:$0xff] %v10001_v57 }
 0x4b7   : > { %v10021_v17 = vpop.permute.xlu1 %2647 }
 0x4b8   : > { %14745 = vst [vmem:[#allocation49_spill] sm:$0xff] %v10021_v17 }
 0x4b9   : > { %6796 = vmatmul.mubr.msk.bf16.gmra.mrb[4].mxu1 %vm1326_vm10, %v7201_v38  ;;  %v10026_v52 = vpop.permute.xlu0 %2652 }
 0x4ba   : > { %2604 = vmatprep.mubr.bf16.mxu1 %v14729_v4  ;;  %14746 = vst [vmem:[#allocation51_spill] sm:$0xff] %v10026_v52 }
 0x4c1   : > { %6797 = vmatmul.mubr.msk.bf16.gmra.mrb[8].mxu1 %vm1326_vm10, %v7202_v26  ;;  %v7265_v26 = vld [vmem:[%s7803_s17 + $0x38] sm:$0xff] }
 0x4c2   : > { %2614 = vmatprep.mubr.bf16.mxu1 %v14729_v4 }
 0x4c9   : > { %6798 = vmatmul.mubr.msk.bf16.gmra.mrb[12].mxu1 %vm1326_vm10, %v7203_v28 }
 0x4ca   : > { %4220 = vmatprep.mubr.bf16.mxu1 %v14730_v44 }
 0x584   : > { %v2586_v41 = vpop.f32.mrb[0].mxu1 }
 0x585   : > { %v2665_v32 = vmul.f32 %v9948_v8, %v2586_v41  ;;  %v2588_v45 = vpop.f32.mrb[1].mxu1  ;;  %v10040_v41 = vpop.permute.xlu1 %2703 }
 0x586   : > { %v2590_v10 = vpop.f32.mrb[2].mxu1  ;;  %v2666_v5 = vmul.f32 %v9948_v8, %v2588_v45  ;;  %14749 = vst [vmem:[#allocation54_spill] sm:$0xff] %v10040_v41  ;;  %v10045_v45 = vpop.permute.xlu0 %2708 }
 0x587   : > { %v2721_v25 = vadd.f32 %v9953_v58, %v2665_v32  ;;  %v2667_v56 = vmul.f32 %v9950_v0, %v2590_v10  ;;  %v2592_v48 = vpop.f32.mrb[3].mxu1  ;;  %14750 = vst [vmem:[#allocation55_spill] sm:$0xff] %v10045_v45 }
 0x588   : > { %v2668_v2 = vmul.f32 %v9950_v0, %v2592_v48  ;;  %v2722_v59 = vadd.f32 %v9953_v58, %v2666_v5  ;;  %v14774_v58 = vld [vmem:[#allocation25_spill] sm:$0xff] }
 0x589   : > { %v9960_v16 = vadd.f32 %v7258_v20, %v2721_v25  ;;  %v2723_v27 = vadd.f32 %v9957_v11, %v2667_v56  ;;  %v7266_v25 = vld [vmem:[%s7803_s17 + $0x40] sm:$0xff]  ;;  %v7267_v20 = vld [vmem:[%s7803_s17 + $0x50] sm:$0xff]  ;;  %v10065_v5 = vpop.permute.xlu1 %2657 }
 0x58a   : > { %v2724_v29 = vadd.f32 %v9957_v11, %v2668_v2  ;;  %v9985_v19 = vadd.f32 %v7260_v6, %v2722_v59  ;;  %14753 = vst [vmem:[#allocation58_spill] sm:$0xff] %v10065_v5  ;;  %v7268_v2 = vld [vmem:[%s7803_s17 + $0x48] sm:$0xff] }
 0x58b   : > { %14735 = vst [vmem:[#allocation39_spill] sm:$0xff] %v9960_v16  ;;  %v9964_v60 = vadd.f32 %v7259_v62, %v2723_v27  ;;  %2753 = vrot.lane.b32.xlu1 %v9960_v16, %s7533_s25 }
 0x58c   : > { %v2596_v47 = vpop.f32.mrb[4].mxu1  ;;  %14739 = vst [vmem:[#allocation41_spill] sm:$0xff] %v9985_v19  ;;  %v9991_v50 = vadd.f32 %v7261_v42, %v2724_v29  ;;  %v7269_v29 = vld [vmem:[%s7803_s17 + $0x58] sm:$0xff] }
 0x58d   : > { %14736 = vst [vmem:[#allocation42_spill] sm:$0xff] %v9964_v60  ;;  %2755 = vrot.lane.b32.xlu0 %v9964_v60, %s7533_s25  ;;  %v2598_v14 = vpop.f32.mrb[5].mxu1  ;;  %v2669_v63 = vmul.f32 %v9977_v7, %v2596_v47 }
 0x58e   : > { %v2600_v36 = vpop.f32.mrb[6].mxu1  ;;  %14740 = vst [vmem:[#allocation45_spill] sm:$0xff] %v9991_v50  ;;  %v2670_v23 = vmul.f32 %v9977_v7, %v2598_v14 }
 0x58f   : > { %2817 = vrot.lane.b32.xlu1 %v9960_v16, %s7534_s27  ;;  %v2602_v22 = vpop.f32.mrb[7].mxu1  ;;  %v2671_v61 = vmul.f32 %v9982_v40, %v2600_v36  ;;  %v2725_v37 = vadd.f32 %v9996_v30, %v2669_v63  ;;  %v10070_v36 = vpop.permute.xlu0 %2662 }
 0x590   : > { %v2672_v3 = vmul.f32 %v9982_v40, %v2602_v22  ;;  %v2726_v46 = vadd.f32 %v9996_v30, %v2670_v23  ;;  %14754 = vst [vmem:[#allocation59_spill] sm:$0xff] %v10070_v36  ;;  %v10084_v63 = vpop.permute.xlu1 %2713 }
 0x591   : > { %2819 = vrot.lane.b32.xlu0 %v9964_v60, %s7534_s27  ;;  %v2727_v31 = vadd.f32 %v10001_v57, %v2671_v61  ;;  %v10007_v53 = vadd.f32 %v7262_v55, %v2725_v37  ;;  %14757 = vst [vmem:[#allocation62_spill] sm:$0xff] %v10084_v63  ;;  %v7270_v61 = vld [vmem:[%s7803_s17 + $0x60] sm:$0xff] }
 0x592   : > { %v2728_v49 = vadd.f32 %v10001_v57, %v2672_v3  ;;  %v10029_v15 = vadd.f32 %v7264_v35, %v2726_v46  ;;  %v7273_v3 = vld [vmem:[%s7803_s17 + $0x78] sm:$0xff] }
 0x593   : > { %2953 = vrot.lane.b32.xlu1 %v9960_v16, %s7535_s16  ;;  %14743 = vst [vmem:[#allocation15_spill] sm:$0xff] %v10007_v53  ;;  %v10013_v51 = vadd.f32 %v7263_v39, %v2727_v31  ;;  %v7271_v31 = vld [vmem:[%s7803_s17 + $0x70] sm:$0xff] }
 0x594   : > { %v2606_v33 = vpop.f32.mrb[8].mxu1  ;;  %14747 = vst [vmem:[#allocation52_spill] sm:$0xff] %v10029_v15  ;;  %v10035_v28 = vadd.f32 %v7265_v26, %v2728_v49 }
 0x595   : > { %2955 = vrot.lane.b32.xlu0 %v9964_v60, %s7535_s16  ;;  %v2608_v24 = vpop.f32.mrb[9].mxu1  ;;  %14744 = vst [vmem:[#allocation17_spill] sm:$0xff] %v10013_v51  ;;  %v2673_v38 = vmul.f32 %v10021_v17, %v2606_v33 }
 0x596   : > { %v2610_v12 = vpop.f32.mrb[10].mxu1  ;;  %14748 = vst [vmem:[#allocation53_spill] sm:$0xff] %v10035_v28  ;;  %v2674_v48 = vmul.f32 %v10021_v17, %v2608_v24 }
 0x597   : > { %2769 = vrot.lane.b32.xlu1 %v9985_v19, %s7533_s25  ;;  %v2612_v43 = vpop.f32.mrb[11].mxu1  ;;  %v2675_v44 = vmul.f32 %v10026_v52, %v2610_v12  ;;  %v2729_v32 = vadd.f32 %v10040_v41, %v2673_v38  ;;  %v10089_v12 = vpop.permute.xlu0 %2718 }
 0x598   : > { %v2676_v62 = vmul.f32 %v10026_v52, %v2612_v43  ;;  %v2730_v47 = vadd.f32 %v10040_v41, %v2674_v48  ;;  %14758 = vst [vmem:[#allocation63_spill] sm:$0xff] %v10089_v12 }
 0x599   : > { %2771 = vrot.lane.b32.xlu0 %v9991_v50, %s7533_s25  ;;  %v2731_v10 = vadd.f32 %v10045_v45, %v2675_v44  ;;  %v10051_v56 = vadd.f32 %v7266_v25, %v2729_v32  ;;  %v14763_v25 = vld [vmem:[#allocation18_spill] sm:$0xff] }
 0x59a   : > { %v2732_v14 = vadd.f32 %v10045_v45, %v2676_v62  ;;  %v10073_v22 = vadd.f32 %v7268_v2, %v2730_v47 }
 0x59b   : > { %2833 = vrot.lane.b32.xlu1 %v9985_v19, %s7534_s27  ;;  %14751 = vst [vmem:[#allocation56_spill] sm:$0xff] %v10051_v56  ;;  %v10057_v27 = vadd.f32 %v7267_v20, %v2731_v10 }
 0x59c   : > { %v2616_v13 = vpop.f32.mrb[12].mxu1  ;;  %14755 = vst [vmem:[#allocation60_spill] sm:$0xff] %v10073_v22  ;;  %v10079_v33 = vadd.f32 %v7269_v29, %v2732_v14  ;;  %v14764_v29 = vld [vmem:[#allocation19_spill] sm:$0xff] }
 0x59d   : > { %2835 = vrot.lane.b32.xlu0 %v9991_v50, %s7534_s27  ;;  %v2618_v34 = vpop.f32.mrb[13].mxu1  ;;  %14752 = vst [vmem:[#allocation57_spill] sm:$0xff] %v10057_v27  ;;  %v2677_v59 = vmul.f32 %v10065_v5, %v2616_v13 }
 0x59e   : > { %v2620_v1 = vpop.f32.mrb[14].mxu1  ;;  %14756 = vst [vmem:[#allocation61_spill] sm:$0xff] %v10079_v33  ;;  %v2678_v37 = vmul.f32 %v10065_v5, %v2618_v34  ;;  %v7272_v34 = vld [vmem:[%s7803_s17 + $0x68] sm:$0xff] }
 0x59f   : > { %2757 = vrot.lane.b32.xlu1 %v10007_v53, %s7533_s25  ;;  %v2622_v54 = vpop.f32.mrb[15].mxu1  ;;  %v2679_v6 = vmul.f32 %v10070_v36, %v2620_v1  ;;  %v2733_v24 = vadd.f32 %v10084_v63, %v2677_v59 }
 0x5a0   : > { %v2680_v55 = vmul.f32 %v10070_v36, %v2622_v54  ;;  %v2734_v23 = vadd.f32 %v10084_v63, %v2678_v37 }
 0x5a1   : > { %2759 = vrot.lane.b32.xlu0 %v10013_v51, %s7533_s25  ;;  %v2735_v42 = vadd.f32 %v10089_v12, %v2679_v6  ;;  %v10095_v43 = vadd.f32 %v7270_v61, %v2733_v24 }
 0x5a2   : > { %v2736_v1 = vadd.f32 %v10089_v12, %v2680_v55  ;;  %v10113_v39 = vadd.f32 %v7272_v34, %v2734_v23 }
 0x5a3   : > { %2821 = vrot.lane.b32.xlu1 %v10007_v53, %s7534_s27  ;;  %14759 = vst [vmem:[#allocation64_spill] sm:$0xff] %v10095_v43  ;;  %v10101_v13 = vadd.f32 %v7271_v31, %v2735_v42 }
 0x5a4   : > { %14761 = vst [vmem:[#allocation66_spill] sm:$0xff] %v10113_v39  ;;  %v10118_v54 = vadd.f32 %v7273_v3, %v2736_v1 }
 0x5a5   : > { %2823 = vrot.lane.b32.xlu0 %v10013_v51, %s7534_s27  ;;  %14760 = vst [vmem:[#allocation65_spill] sm:$0xff] %v10101_v13 }
 0x5a6   : > { %14762 = vst [vmem:[#allocation67_spill] sm:$0xff] %v10118_v54 }
 0x5a7   : > { %2773 = vrot.lane.b32.xlu1 %v10029_v15, %s7533_s25 }
 0x5a9   : > { %2775 = vrot.lane.b32.xlu0 %v10035_v28, %s7533_s25 }
 0x5ab   : > { %2837 = vrot.lane.b32.xlu1 %v10029_v15, %s7534_s27 }
 0x5ad   : > { %2839 = vrot.lane.b32.xlu0 %v10035_v28, %s7534_s27 }
 0x5af   : > { %2761 = vrot.lane.b32.xlu1 %v10051_v56, %s7533_s25 }
 0x5b1   : > { %2763 = vrot.lane.b32.xlu0 %v10057_v27, %s7533_s25 }
 0x5b3   : > { %2825 = vrot.lane.b32.xlu1 %v10051_v56, %s7534_s27 }
 0x5b5   : > { %2827 = vrot.lane.b32.xlu0 %v10057_v27, %s7534_s27 }
 0x5b7   : > { %2777 = vrot.lane.b32.xlu1 %v10073_v22, %s7533_s25 }
 0x5b9   : > { %2779 = vrot.lane.b32.xlu0 %v10079_v33, %s7533_s25 }
 0x5bb   : > { %2841 = vrot.lane.b32.xlu1 %v10073_v22, %s7534_s27 }
 0x5bd   : > { %2843 = vrot.lane.b32.xlu0 %v10079_v33, %s7534_s27 }
 0x5bf   : > { %2765 = vrot.lane.b32.xlu1 %v10095_v43, %s7533_s25 }
 0x5c1   : > { %2767 = vrot.lane.b32.xlu0 %v10101_v13, %s7533_s25 }
 0x5c3   : > { %2829 = vrot.lane.b32.xlu1 %v10095_v43, %s7534_s27 }
 0x5c5   : > { %2831 = vrot.lane.b32.xlu0 %v10101_v13, %s7534_s27 }
 0x5c7   : > { %2781 = vrot.lane.b32.xlu1 %v10113_v39, %s7533_s25 }
 0x5c9   : > { %2783 = vrot.lane.b32.xlu0 %v10118_v54, %s7533_s25 }
 0x5cb   : > { %2969 = vrot.lane.b32.xlu1 %v9985_v19, %s7535_s16 }
 0x5cd   : > { %2971 = vrot.lane.b32.xlu0 %v9991_v50, %s7535_s16 }
 0x5cf   : > { %2845 = vrot.lane.b32.xlu1 %v10113_v39, %s7534_s27 }
 0x5d1   : > { %2959 = vrot.lane.b32.xlu0 %v10013_v51, %s7535_s16 }
 0x5d3   : > { %2957 = vrot.lane.b32.xlu1 %v10007_v53, %s7535_s16 }
 0x5d5   : > { %2975 = vrot.lane.b32.xlu0 %v10035_v28, %s7535_s16 }
 0x5d7   : > { %2973 = vrot.lane.b32.xlu1 %v10029_v15, %s7535_s16 }
 0x5d9   : > { %2963 = vrot.lane.b32.xlu0 %v10057_v27, %s7535_s16 }
 0x5db   : > { %2961 = vrot.lane.b32.xlu1 %v10051_v56, %s7535_s16 }
 0x5dd   : > { %2979 = vrot.lane.b32.xlu0 %v10079_v33, %s7535_s16 }
 0x5df   : > { %2977 = vrot.lane.b32.xlu1 %v10073_v22, %s7535_s16 }
 0x5e1   : > { %2967 = vrot.lane.b32.xlu0 %v10101_v13, %s7535_s16 }
 0x5e3   : > { %2965 = vrot.lane.b32.xlu1 %v10095_v43, %s7535_s16 }
 0x5e5   : > { %2847 = vrot.lane.b32.xlu0 %v10118_v54, %s7534_s27 }
 0x5e7   : > { %2981 = vrot.lane.b32.xlu1 %v10113_v39, %s7535_s16 }
 0x5e9   : > { %2983 = vrot.lane.b32.xlu0 %v10118_v54, %s7535_s16 }
 0x5fd   : > { %v2754_v46 = vpop.permute.xlu1 %2753 }
 0x5ff   : > { %v2756_v49 = vpop.permute.xlu0 %2755 }
 0x601   : > { %v10156_v35 = vpop.permute.xlu1 %2817 }
 0x603   : > { %v10158_v38 = vpop.permute.xlu0 %2819 }
 0x605   : > { %v10160_v26 = vpop.permute.xlu1 %2953 }
 0x607   : > { %v10162_v44 = vpop.permute.xlu0 %2955 }
 0x609   : > { %v2770_v32 = vpop.permute.xlu1 %2769 }
 0x60a   : > { %v2793_v10 = vsel %vm646_vm1, %v2770_v32, %v2754_v46  ;;  %v2785_v62 = vsel %vm646_vm1, %v2754_v46, %v2770_v32 }
 0x60b   : > { %v10167_v48 = vmul.f32 %v2793_v10, %v14763_v25  ;;  %v2772_v20 = vpop.permute.xlu0 %2771  ;;  %v10183_v6 = vmul.f32 %v2785_v62, %v14764_v29 }
 0x60c   : > { %v2794_v47 = vsel %vm646_vm1, %v2772_v20, %v2756_v49  ;;  %v2786_v59 = vsel %vm646_vm1, %v2756_v49, %v2772_v20 }
 0x60d   : > { %v10174_v14 = vmul.f32 %v2794_v47, %v14763_v25  ;;  %v10176_v2 = vpop.permute.xlu1 %2833  ;;  %2881 = vrot.lane.b32.xlu1 %v10167_v48, %s7535_s16  ;;  %v10190_v42 = vmul.f32 %v2786_v59, %v14764_v29 }
 0x60f   : > { %v10185_v24 = vpop.permute.xlu0 %2835  ;;  %2883 = vrot.lane.b32.xlu0 %v10174_v14, %s7535_s16 }
 0x611   : > { %v2758_v61 = vpop.permute.xlu1 %2757  ;;  %2897 = vrot.lane.b32.xlu1 %v10183_v6, %s7535_s16 }
 0x613   : > { %v2760_v37 = vpop.permute.xlu0 %2759  ;;  %2899 = vrot.lane.b32.xlu0 %v10190_v42, %s7535_s16 }
 0x615   : > { %v10196_v31 = vpop.permute.xlu1 %2821 }
 0x617   : > { %v10198_v55 = vpop.permute.xlu0 %2823 }
 0x619   : > { %v2774_v23 = vpop.permute.xlu1 %2773 }
 0x61a   : > { %v2795_v1 = vsel %vm646_vm1, %v2774_v23, %v2758_v61  ;;  %v2787_v46 = vsel %vm646_vm1, %v2758_v61, %v2774_v23 }
 0x61b   : > { %v10203_v34 = vmul.f32 %v2795_v1, %v14763_v25  ;;  %v2776_v3 = vpop.permute.xlu0 %2775  ;;  %v10219_v62 = vmul.f32 %v2787_v46, %v14764_v29 }
 0x61c   : > { %v2796_v49 = vsel %vm646_vm1, %v2776_v3, %v2760_v37  ;;  %v2788_v20 = vsel %vm646_vm1, %v2760_v37, %v2776_v3 }
 0x61d   : > { %14765 = vst [vmem:[#allocation68_spill] sm:$0xff] %v10203_v34  ;;  %v10210_v32 = vmul.f32 %v2796_v49, %v14763_v25  ;;  %v10212_v10 = vpop.permute.xlu1 %2837  ;;  %2885 = vrot.lane.b32.xlu1 %v10203_v34, %s7535_s16  ;;  %v10226_v59 = vmul.f32 %v2788_v20, %v14764_v29 }
 0x61f   : > { %14766 = vst [vmem:[#allocation69_spill] sm:$0xff] %v10210_v32  ;;  %v10221_v47 = vpop.permute.xlu0 %2839  ;;  %2887 = vrot.lane.b32.xlu0 %v10210_v32, %s7535_s16 }
 0x621   : > { %v2762_v61 = vpop.permute.xlu1 %2761  ;;  %2901 = vrot.lane.b32.xlu1 %v10219_v62, %s7535_s16 }
 0x623   : > { %v2764_v23 = vpop.permute.xlu0 %2763  ;;  %2903 = vrot.lane.b32.xlu0 %v10226_v59, %s7535_s16 }
 0x625   : > { %v10232_v37 = vpop.permute.xlu1 %2825 }
 0x627   : > { %v10234_v1 = vpop.permute.xlu0 %2827 }
 0x629   : > { %v2778_v3 = vpop.permute.xlu1 %2777 }
 0x62a   : > { %v2797_v46 = vsel %vm646_vm1, %v2778_v3, %v2762_v61  ;;  %v2789_v12 = vsel %vm646_vm1, %v2762_v61, %v2778_v3 }
 0x62b   : > { %v10239_v49 = vmul.f32 %v2797_v46, %v14763_v25  ;;  %v2780_v20 = vpop.permute.xlu0 %2779  ;;  %v10253_v46 = vmul.f32 %v2789_v12, %v14764_v29 }
 0x62c   : > { %v2798_v63 = vsel %vm646_vm1, %v2780_v20, %v2764_v23  ;;  %v2790_v45 = vsel %vm646_vm1, %v2764_v23, %v2780_v20 }
 0x62d   : > { %14767 = vst [vmem:[#allocation70_spill] sm:$0xff] %v10239_v49  ;;  %v10246_v36 = vmul.f32 %v2798_v63, %v14763_v25  ;;  %v2842_v5 = vpop.permute.xlu1 %2841  ;;  %2889 = vrot.lane.b32.xlu1 %v10239_v49, %s7535_s16  ;;  %14769 = vst [vmem:[#allocation72_spill] sm:$0xff] %v10253_v46  ;;  %v10258_v61 = vmul.f32 %v2790_v45, %v14764_v29 }
 0x62f   : > { %14768 = vst [vmem:[#allocation71_spill] sm:$0xff] %v10246_v36  ;;  %v2844_v41 = vpop.permute.xlu0 %2843  ;;  %2891 = vrot.lane.b32.xlu0 %v10246_v36, %s7535_s16  ;;  %14770 = vst [vmem:[#allocation73_spill] sm:$0xff] %v10258_v61 }
 0x631   : > { %v2766_v3 = vpop.permute.xlu1 %2765  ;;  %2905 = vrot.lane.b32.xlu1 %v10253_v46, %s7535_s16 }
 0x633   : > { %v2768_v63 = vpop.permute.xlu0 %2767  ;;  %2907 = vrot.lane.b32.xlu0 %v10258_v61, %s7535_s16 }
 0x635   : > { %v10264_v52 = vpop.permute.xlu1 %2829 }
 0x637   : > { %v10266_v23 = vpop.permute.xlu0 %2831 }
 0x639   : > { %v2782_v12 = vpop.permute.xlu1 %2781 }
 0x63a   : > { %v2799_v20 = vsel %vm646_vm1, %v2782_v12, %v2766_v3  ;;  %v2791_v57 = vsel %vm646_vm1, %v2766_v3, %v2782_v12 }
 0x63b   : > { %v10271_v17 = vmul.f32 %v2799_v20, %v14763_v25  ;;  %v2784_v45 = vpop.permute.xlu0 %2783  ;;  %v10285_v11 = vmul.f32 %v2791_v57, %v14764_v29  ;;  %v2850_v57 = vsel %vm711_vm4, %v10158_v38, %v10185_v24 }
 0x63c   : > { %v2800_v30 = vsel %vm646_vm1, %v2784_v45, %v2768_v63  ;;  %v2792_v7 = vsel %vm646_vm1, %v2768_v63, %v2784_v45  ;;  %v14773_v63 = vld [vmem:[#allocation24_spill] sm:$0xff] }
 0x63d   : > { %14771 = vst [vmem:[#allocation74_spill] sm:$0xff] %v10271_v17  ;;  %v10278_v40 = vmul.f32 %v2800_v30, %v14763_v25  ;;  %2893 = vrot.lane.b32.xlu1 %v10271_v17, %s7535_s16  ;;  %14772 = vst [vmem:[#allocation75_spill] sm:$0xff] %v10285_v11  ;;  %v2849_v30 = vsel %vm711_vm4, %v10156_v35, %v10176_v2  ;;  %v10296_v3 = vmul.f32 %v2792_v7, %v14764_v29  ;;  %v10367_v4 = vpop.permute.xlu1 %2969 }
 0x63e   : > { %v10305_v12 = vmul.f32 %v2849_v30, %v14773_v63  ;;  %v2857_v7 = vsel %vm711_vm4, %v10176_v2, %v10156_v35  ;;  %v10316_v0 = vmul.f32 %v2850_v57, %v14773_v63  ;;  %v2858_v30 = vsel %vm711_vm4, %v10185_v24, %v10158_v38 }
 0x63f   : > { %2895 = vrot.lane.b32.xlu0 %v10278_v40, %s7535_s16  ;;  %v10289_v20 = vpop.permute.xlu0 %2971  ;;  %v10325_v8 = vmul.f32 %v2857_v7, %v14774_v58  ;;  %v2851_v35 = vsel %vm711_vm4, %v10196_v31, %v10212_v10  ;;  %v10336_v2 = vmul.f32 %v2858_v30, %v14774_v58  ;;  %v2852_v38 = vsel %vm711_vm4, %v10198_v55, %v10221_v47 }
 0x640   : > { %v10345_v24 = vmul.f32 %v2851_v35, %v14773_v63  ;;  %v2859_v7 = vsel %vm711_vm4, %v10212_v10, %v10196_v31  ;;  %v10356_v30 = vmul.f32 %v2852_v38, %v14773_v63  ;;  %v2860_v35 = vsel %vm711_vm4, %v10221_v47, %v10198_v55 }
 0x641   : > { %2909 = vrot.lane.b32.xlu1 %v10285_v11, %s7535_s16  ;;  %v10365_v25 = vmul.f32 %v2859_v7, %v14774_v58  ;;  %v2853_v10 = vsel %vm711_vm4, %v10232_v37, %v2842_v5  ;;  %v10377_v38 = vmul.f32 %v2860_v35, %v14774_v58  ;;  %v2854_v55 = vsel %vm711_vm4, %v10234_v1, %v2844_v41 }
 0x642   : > { %v10385_v47 = vmul.f32 %v2853_v10, %v14773_v63  ;;  %v2861_v35 = vsel %vm711_vm4, %v2842_v5, %v10232_v37  ;;  %v10395_v21 = vmul.f32 %v2854_v55, %v14773_v63  ;;  %v2862_v10 = vsel %vm711_vm4, %v2844_v41, %v10234_v1 }
 0x643   : > { %2911 = vrot.lane.b32.xlu0 %v10296_v3, %s7535_s16  ;;  %v10309_v45 = vpop.permute.xlu0 %2959  ;;  %v10411_v37 = vmul.f32 %v2862_v10, %v14774_v58 }
 0x644   : > { %14778 = vst [vmem:[#allocation79_spill] sm:$0xff] %v10385_v47 }
 0x645   : > { %3025 = vrot.lane.b32.xlu1 %v10305_v12, %s7535_s16 }
 0x647   : > { %3027 = vrot.lane.b32.xlu0 %v10316_v0, %s7535_s16  ;;  %v10329_v29 = vpop.permute.xlu0 %2975 }
 0x648   : > { %14775 = vst [vmem:[#allocation76_spill] sm:$0xff] %v10329_v29 }
 0x649   : > { %3041 = vrot.lane.b32.xlu1 %v10325_v8, %s7535_s16 }
 0x64b   : > { %3043 = vrot.lane.b32.xlu0 %v10336_v2, %s7535_s16  ;;  %v10349_v57 = vpop.permute.xlu0 %2963 }
 0x64c   : > { %14776 = vst [vmem:[#allocation77_spill] sm:$0xff] %v10349_v57  ;;  %v10403_v57 = vmul.f32 %v2861_v35, %v14774_v58 }
 0x64d   : > { %3029 = vrot.lane.b32.xlu1 %v10345_v24, %s7535_s16 }
 0x64f   : > { %3031 = vrot.lane.b32.xlu0 %v10356_v30, %s7535_s16  ;;  %v10371_v31 = vpop.permute.xlu0 %2979 }
 0x650   : > { %14777 = vst [vmem:[#allocation78_spill] sm:$0xff] %v10371_v31  ;;  %v2846_v31 = vpop.permute.xlu1 %2845 }
 0x651   : > { %3045 = vrot.lane.b32.xlu1 %v10365_v25, %s7535_s16  ;;  %v2855_v5 = vsel %vm711_vm4, %v10264_v52, %v2846_v31  ;;  %v2863_v55 = vsel %vm711_vm4, %v2846_v31, %v10264_v52 }
 0x652   : > { %v10419_v1 = vmul.f32 %v2855_v5, %v14773_v63  ;;  %v10437_v29 = vmul.f32 %v2863_v55, %v14774_v58 }
 0x653   : > { %3047 = vrot.lane.b32.xlu0 %v10377_v38, %s7535_s16  ;;  %v10389_v7 = vpop.permute.xlu0 %2967 }
 0x654   : > { %14779 = vst [vmem:[#allocation80_spill] sm:$0xff] %v10389_v7  ;;  %v10426_v35 = vpop.permute.xlu1 %2957 }
 0x655   : > { %3033 = vrot.lane.b32.xlu1 %v10385_v47, %s7535_s16 }
 0x657   : > { %3035 = vrot.lane.b32.xlu0 %v10395_v21, %s7535_s16  ;;  %v2848_v7 = vpop.permute.xlu0 %2847 }
 0x658   : > { %v2856_v41 = vsel %vm711_vm4, %v10266_v23, %v2848_v7  ;;  %v2864_v5 = vsel %vm711_vm4, %v2848_v7, %v10266_v23  ;;  %v10446_v31 = vpop.permute.xlu1 %2973 }
 0x659   : > { %3049 = vrot.lane.b32.xlu1 %v10403_v57, %s7535_s16  ;;  %v10429_v10 = vmul.f32 %v2856_v41, %v14773_v63  ;;  %v10442_v52 = vmul.f32 %v2864_v5, %v14774_v58 }
 0x65b   : > { %3051 = vrot.lane.b32.xlu0 %v10411_v37, %s7535_s16  ;;  %v10482_v5 = vpop.permute.xlu0 %2983 }
 0x65c   : > { %v10454_v23 = vpop.permute.xlu1 %2961 }
 0x65d   : > { %3037 = vrot.lane.b32.xlu1 %v10419_v1, %s7535_s16 }
 0x65f   : > { %3039 = vrot.lane.b32.xlu0 %v10429_v10, %s7535_s16 }
 0x660   : > { %v10462_v7 = vpop.permute.xlu1 %2977 }
 0x661   : > { %3053 = vrot.lane.b32.xlu1 %v10437_v29, %s7535_s16 }
 0x663   : > { %3055 = vrot.lane.b32.xlu0 %v10442_v52, %s7535_s16 }
 0x664   : > { %v10470_v41 = vpop.permute.xlu1 %2965 }
 0x665   : > { %3121 = vrot.lane.b32.xlu1 %v10167_v48, %s7537_s11 }
 0x667   : > { %3123 = vrot.lane.b32.xlu0 %v10174_v14, %s7537_s11 }
 0x668   : > { %v10478_v55 = vpop.permute.xlu1 %2981 }
 0x669   : > { %3137 = vrot.lane.b32.xlu1 %v10183_v6, %s7537_s11 }
 0x66b   : > { %3139 = vrot.lane.b32.xlu0 %v10190_v42, %s7537_s11 }
 0x66d   : > { %3125 = vrot.lane.b32.xlu1 %v10203_v34, %s7537_s11 }
 0x66f   : > { %3127 = vrot.lane.b32.xlu0 %v10210_v32, %s7537_s11 }
 0x671   : > { %3141 = vrot.lane.b32.xlu1 %v10219_v62, %s7537_s11 }
 0x673   : > { %3143 = vrot.lane.b32.xlu0 %v10226_v59, %s7537_s11 }
 0x675   : > { %3129 = vrot.lane.b32.xlu1 %v10239_v49, %s7537_s11 }
 0x677   : > { %3131 = vrot.lane.b32.xlu0 %v10246_v36, %s7537_s11 }
 0x679   : > { %3145 = vrot.lane.b32.xlu1 %v10253_v46, %s7537_s11 }
 0x67b   : > { %3147 = vrot.lane.b32.xlu0 %v10258_v61, %s7537_s11 }
 0x67d   : > { %3133 = vrot.lane.b32.xlu1 %v10271_v17, %s7537_s11 }
 0x67f   : > { %v2882_v58 = vpop.permute.xlu1 %2881  ;;  %3195 = vrot.lane.b32.xlu0 %v9964_v60, %s7537_s11 }
 0x681   : > { %3149 = vrot.lane.b32.xlu1 %v10285_v11, %s7537_s11  ;;  %v2884_v63 = vpop.permute.xlu0 %2883 }
 0x683   : > { %v2898_v36 = vpop.permute.xlu1 %2897  ;;  %3211 = vrot.lane.b32.xlu0 %v9991_v50, %s7537_s11 }
 0x684   : > { %v2921_v49 = vsel %vm776_vm7, %v2898_v36, %v2882_v58  ;;  %v2913_v17 = vsel %vm776_vm7, %v2882_v58, %v2898_v36 }
 0x685   : > { %3193 = vrot.lane.b32.xlu1 %v9960_v16, %s7537_s11  ;;  %v2900_v61 = vpop.permute.xlu0 %2899  ;;  %v2929_v46 = vmul.f32 %v2921_v49, %v8313_v9 }
 0x686   : > { %v2914_v60 = vsel %vm776_vm7, %v2884_v63, %v2900_v61  ;;  %v2922_v11 = vsel %vm776_vm7, %v2900_v61, %v2884_v63 }
 0x687   : > { %v2931_v50 = vmul.f32 %v2922_v11, %v8313_v9  ;;  %3199 = vrot.lane.b32.xlu0 %v10013_v51, %s7537_s11  ;;  %v2946_v32 = vpack.c.bf16 %v2914_v60, %v2913_v17 }
 0x689   : > { %v2945_v34 = vpack.c.bf16 %v2931_v50, %v2929_v46  ;;  %3209 = vrot.lane.b32.xlu1 %v9985_v19, %s7537_s11  ;;  %3337 = vmatprep.subr.bf16.mxu0 %v2946_v32 }
 0x68b   : > { %3215 = vrot.lane.b32.xlu0 %v10035_v28, %s7537_s11  ;;  %3338 = vmatpush1.bf16.msra.mxu0 %v2945_v34 }
 0x68d   : > { %3197 = vrot.lane.b32.xlu1 %v10007_v53, %s7537_s11 }
 0x68f   : > { %v2886_v58 = vpop.permute.xlu1 %2885  ;;  %3135 = vrot.lane.b32.xlu0 %v10278_v40, %s7537_s11 }
 0x691   : > { %3213 = vrot.lane.b32.xlu1 %v10029_v15, %s7537_s11  ;;  %v2888_v11 = vpop.permute.xlu0 %2887 }
 0x693   : > { %v2902_v60 = vpop.permute.xlu1 %2901  ;;  %3151 = vrot.lane.b32.xlu0 %v10296_v3, %s7537_s11 }
 0x694   : > { %v2923_v50 = vsel %vm776_vm7, %v2902_v60, %v2886_v58  ;;  %v2915_v36 = vsel %vm776_vm7, %v2886_v58, %v2902_v60 }
 0x695   : > { %3201 = vrot.lane.b32.xlu1 %v10051_v56, %s7537_s11  ;;  %v2904_v17 = vpop.permute.xlu0 %2903  ;;  %v2933_v49 = vmul.f32 %v2923_v50, %v8313_v9 }
 0x696   : > { %v2916_v34 = vsel %vm776_vm7, %v2888_v11, %v2904_v17  ;;  %v2924_v32 = vsel %vm776_vm7, %v2904_v17, %v2888_v11 }
 0x697   : > { %v2935_v46 = vmul.f32 %v2924_v32, %v8313_v9  ;;  %3203 = vrot.lane.b32.xlu0 %v10057_v27, %s7537_s11  ;;  %v2948_v61 = vpack.c.bf16 %v2916_v34, %v2915_v36 }
 0x699   : > { %v2947_v63 = vpack.c.bf16 %v2935_v46, %v2933_v49  ;;  %3217 = vrot.lane.b32.xlu1 %v10073_v22, %s7537_s11  ;;  %3339 = vmatprep.subr.bf16.mxu0 %v2948_v61 }
 0x69b   : > { %3219 = vrot.lane.b32.xlu0 %v10079_v33, %s7537_s11  ;;  %3340 = vmatpush1.bf16.msra.mxu0 %v2947_v63 }
 0x69d   : > { %3205 = vrot.lane.b32.xlu1 %v10095_v43, %s7537_s11 }
 0x69f   : > { %v2890_v58 = vpop.permute.xlu1 %2889  ;;  %3207 = vrot.lane.b32.xlu0 %v10101_v13, %s7537_s11 }
 0x6a1   : > { %3221 = vrot.lane.b32.xlu1 %v10113_v39, %s7537_s11  ;;  %v2892_v11 = vpop.permute.xlu0 %2891 }
 0x6a3   : > { %v2906_v60 = vpop.permute.xlu1 %2905  ;;  %3223 = vrot.lane.b32.xlu0 %v10118_v54, %s7537_s11 }
 0x6a4   : > { %v2925_v50 = vsel %vm776_vm7, %v2906_v60, %v2890_v58  ;;  %v2917_v36 = vsel %vm776_vm7, %v2890_v58, %v2906_v60 }
 0x6a5   : > { %3265 = vrot.lane.b32.xlu1 %v10305_v12, %s7537_s11  ;;  %v2908_v17 = vpop.permute.xlu0 %2907  ;;  %v2937_v49 = vmul.f32 %v2925_v50, %v8313_v9 }
 0x6a6   : > { %v2918_v34 = vsel %vm776_vm7, %v2892_v11, %v2908_v17  ;;  %v2926_v32 = vsel %vm776_vm7, %v2908_v17, %v2892_v11 }
 0x6a7   : > { %v2939_v46 = vmul.f32 %v2926_v32, %v8313_v9  ;;  %3267 = vrot.lane.b32.xlu0 %v10316_v0, %s7537_s11  ;;  %v2950_v61 = vpack.c.bf16 %v2918_v34, %v2917_v36  ;;  %v2994_v36 = vsel %vm776_vm7, %v10289_v20, %v10162_v44 }
 0x6a9   : > { %v2949_v63 = vpack.c.bf16 %v2939_v46, %v2937_v49  ;;  %3281 = vrot.lane.b32.xlu1 %v10325_v8, %s7537_s11  ;;  %3341 = vmatprep.subr.bf16.mxu0 %v2950_v61  ;;  %v2986_v46 = vsel %vm776_vm7, %v10162_v44, %v10289_v20  ;;  %v3003_v44 = vmul.f32 %v2994_v36, %v8313_v9  ;;  %v14780_v36 = vld [vmem:[#allocation76_spill] sm:$0xff] }
 0x6ab   : > { %3283 = vrot.lane.b32.xlu0 %v10336_v2, %s7537_s11  ;;  %3342 = vmatpush1.bf16.msra.mxu0 %v2949_v63 }
 0x6ad   : > { %3269 = vrot.lane.b32.xlu1 %v10345_v24, %s7537_s11 }
 0x6af   : > { %v2894_v58 = vpop.permute.xlu1 %2893  ;;  %3271 = vrot.lane.b32.xlu0 %v10356_v30, %s7537_s11 }
 0x6b1   : > { %3285 = vrot.lane.b32.xlu1 %v10365_v25, %s7537_s11  ;;  %v2896_v11 = vpop.permute.xlu0 %2895 }
 0x6b3   : > { %v2910_v60 = vpop.permute.xlu1 %2909  ;;  %3287 = vrot.lane.b32.xlu0 %v10377_v38, %s7537_s11 }
 0x6b4   : > { %v2927_v50 = vsel %vm776_vm7, %v2910_v60, %v2894_v58  ;;  %v2919_v34 = vsel %vm776_vm7, %v2894_v58, %v2910_v60  ;;  %v2993_v60 = vsel %vm776_vm7, %v10367_v4, %v10160_v26 }
 0x6b5   : > { %3273 = vrot.lane.b32.xlu1 %v10385_v47, %s7537_s11  ;;  %v2912_v17 = vpop.permute.xlu0 %2911  ;;  %v2941_v61 = vmul.f32 %v2927_v50, %v8313_v9 }
 0x6b6   : > { %v2920_v32 = vsel %vm776_vm7, %v2896_v11, %v2912_v17  ;;  %v2928_v49 = vsel %vm776_vm7, %v2912_v17, %v2896_v11  ;;  %v2985_v11 = vsel %vm776_vm7, %v10160_v26, %v10367_v4  ;;  %v2995_v17 = vsel %vm776_vm7, %v10446_v31, %v10426_v35 }
 0x6b7   : > { %v2943_v63 = vmul.f32 %v2928_v49, %v8313_v9  ;;  %v3026_v47 = vpop.permute.xlu1 %3025  ;;  %3275 = vrot.lane.b32.xlu0 %v10395_v21, %s7537_s11  ;;  %v2952_v58 = vpack.c.bf16 %v2920_v32, %v2919_v34  ;;  %v3018_v34 = vpack.c.bf16 %v2986_v46, %v2985_v11  ;;  %v3001_v32 = vmul.f32 %v2993_v60, %v8313_v9 }
 0x6b8   : > { %v2987_v4 = vsel %vm776_vm7, %v10426_v35, %v10446_v31  ;;  %v2996_v49 = vsel %vm776_vm7, %v14780_v36, %v10309_v45  ;;  %v2988_v46 = vsel %vm776_vm7, %v10309_v45, %v14780_v36  ;;  %v2997_v31 = vsel %vm776_vm7, %v10462_v7, %v10454_v23 }
 0x6b9   : > { %v2951_v20 = vpack.c.bf16 %v2943_v63, %v2941_v61  ;;  %3289 = vrot.lane.b32.xlu1 %v10403_v57, %s7537_s11  ;;  %3343 = vmatprep.subr.bf16.mxu0 %v2952_v58  ;;  %v3028_v50 = vpop.permute.xlu0 %3027  ;;  %v3017_v61 = vpack.c.bf16 %v3003_v44, %v3001_v32  ;;  %v3005_v63 = vmul.f32 %v2995_v17, %v8313_v9  ;;  %v14781_v44 = vld [vmem:[#allocation77_spill] sm:$0xff] }
 0x6ba   : > { %v3020_v58 = vpack.c.bf16 %v2988_v46, %v2987_v4  ;;  %v3007_v60 = vmul.f32 %v2996_v49, %v8313_v9  ;;  %v2989_v11 = vsel %vm776_vm7, %v10454_v23, %v10462_v7  ;;  %v3009_v4 = vmul.f32 %v2997_v31, %v8313_v9  ;;  %v14783_v7 = vld [vmem:[#allocation80_spill] sm:$0xff] }
 0x6bb   : > { %v3042_v26 = vpop.permute.xlu1 %3041  ;;  %3291 = vrot.lane.b32.xlu0 %v10411_v37, %s7537_s11  ;;  %3344 = vmatpush1.bf16.msra.mxu0 %v2951_v20  ;;  %v14782_v20 = vld [vmem:[#allocation78_spill] sm:$0xff]  ;;  %v3000_v36 = vsel %vm776_vm7, %v10482_v5, %v14783_v7  ;;  %v2992_v46 = vsel %vm776_vm7, %v14783_v7, %v10482_v5  ;;  %v2999_v31 = vsel %vm776_vm7, %v10478_v55, %v10470_v41 }
 0x6bc   : > { %3345 = vmatprep.subr.bf16.mxu0 %v3018_v34  ;;  %v2998_v17 = vsel %vm776_vm7, %v14782_v20, %v14781_v44  ;;  %v3019_v34 = vpack.c.bf16 %v3007_v60, %v3005_v63  ;;  %v2990_v32 = vsel %vm776_vm7, %v14781_v44, %v14782_v20  ;;  %v2991_v60 = vsel %vm776_vm7, %v10470_v41, %v10478_v55 }
 0x6bd   : > { %3277 = vrot.lane.b32.xlu1 %v10419_v1, %s7537_s11  ;;  %v3044_v35 = vpop.permute.xlu0 %3043  ;;  %v3022_v49 = vpack.c.bf16 %v2990_v32, %v2989_v11  ;;  %v3015_v11 = vmul.f32 %v3000_v36, %v8313_v9  ;;  %v3024_v20 = vpack.c.bf16 %v2992_v46, %v2991_v60  ;;  %v3057_v41 = vsel %vm776_vm7, %v3026_v47, %v3042_v26 }
 0x6be   : > { %v3066_v44 = vsel %vm776_vm7, %v3044_v35, %v3028_v50 }
 0x6bf   : > { %v3030_v45 = vpop.permute.xlu1 %3029  ;;  %3279 = vrot.lane.b32.xlu0 %v10429_v10, %s7537_s11  ;;  %3346 = vmatpush1.bf16.msra.mxu0 %v3017_v61  ;;  %v3011_v61 = vmul.f32 %v2998_v17, %v8313_v9  ;;  %v3013_v17 = vmul.f32 %v2999_v31, %v8313_v9  ;;  %v3075_v55 = vmul.f32 %v3066_v44, %v8313_v9 }
 0x6c0   : > { %3347 = vmatprep.subr.bf16.mxu0 %v3020_v58 }
 0x6c1   : > { %3293 = vrot.lane.b32.xlu1 %v10437_v29, %s7537_s11  ;;  %v3032_v23 = vpop.permute.xlu0 %3031  ;;  %v3021_v58 = vpack.c.bf16 %v3011_v61, %v3009_v4  ;;  %v3065_v4 = vsel %vm776_vm7, %v3042_v26, %v3026_v47  ;;  %v3023_v7 = vpack.c.bf16 %v3015_v11, %v3013_v17 }
 0x6c2   : > { %v3073_v46 = vmul.f32 %v3065_v4, %v8313_v9 }
 0x6c3   : > { %v3046_v63 = vpop.permute.xlu1 %3045  ;;  %3295 = vrot.lane.b32.xlu0 %v10442_v52, %s7537_s11  ;;  %3348 = vmatpush1.bf16.msra.mxu0 %v3019_v34  ;;  %v3058_v34 = vsel %vm776_vm7, %v3028_v50, %v3044_v35 }
 0x6c4   : > { %3349 = vmatprep.subr.bf16.mxu0 %v3022_v49  ;;  %v3090_v61 = vpack.c.bf16 %v3058_v34, %v3057_v41  ;;  %v3067_v31 = vsel %vm776_vm7, %v3046_v63, %v3030_v45  ;;  %v3059_v47 = vsel %vm776_vm7, %v3030_v45, %v3046_v63 }
 0x6c5   : > { %v3048_v5 = vpop.permute.xlu0 %3047 }
 0x6c6   : > { %v3068_v49 = vsel %vm776_vm7, %v3048_v5, %v3032_v23  ;;  %v3060_v50 = vsel %vm776_vm7, %v3032_v23, %v3048_v5 }
 0x6c7   : > { %v3034_v32 = vpop.permute.xlu1 %3033  ;;  %3350 = vmatpush1.bf16.msra.mxu0 %v3021_v58  ;;  %v3089_v58 = vpack.c.bf16 %v3075_v55, %v3073_v46  ;;  %v3079_v26 = vmul.f32 %v3068_v49, %v8313_v9  ;;  %v3092_v44 = vpack.c.bf16 %v3060_v50, %v3059_v47 }
 0x6c8   : > { %3351 = vmatprep.subr.bf16.mxu0 %v3024_v20  ;;  %v3077_v20 = vmul.f32 %v3067_v31, %v8313_v9 }
 0x6c9   : > { %v3036_v36 = vpop.permute.xlu0 %3035 }
 0x6ca   : > { %v3091_v34 = vpack.c.bf16 %v3079_v26, %v3077_v20 }
 0x6cb   : > { %v3050_v35 = vpop.permute.xlu1 %3049  ;;  %3352 = vmatpush1.bf16.msra.mxu0 %v3023_v7 }
 0x6cc   : > { %3353 = vmatprep.subr.bf16.mxu0 %v3090_v61  ;;  %v3069_v17 = vsel %vm776_vm7, %v3050_v35, %v3034_v32  ;;  %v3061_v45 = vsel %vm776_vm7, %v3034_v32, %v3050_v35 }
 0x6cd   : > { %v3052_v60 = vpop.permute.xlu0 %3051  ;;  %v3081_v41 = vmul.f32 %v3069_v17, %v8313_v9 }
 0x6ce   : > { %v3070_v11 = vsel %vm776_vm7, %v3052_v60, %v3036_v36  ;;  %v3062_v23 = vsel %vm776_vm7, %v3036_v36, %v3052_v60 }
 0x6cf   : > { %v3038_v5 = vpop.permute.xlu1 %3037  ;;  %3354 = vmatpush1.bf16.msra.mxu0 %v3089_v58  ;;  %v3083_v63 = vmul.f32 %v3070_v11, %v8313_v9  ;;  %v3094_v7 = vpack.c.bf16 %v3062_v23, %v3061_v45  ;;  %v3098_v11 = vpack.c.bf16 %v10190_v42, %v10183_v6  ;;  %v3097_v23 = vpack.c.bf16 %v10174_v14, %v10167_v48  ;;  %v14784_v45 = vld [vmem:[#allocation68_spill] sm:$0xff]  ;;  %v14785_v6 = vld [vmem:[#allocation69_spill] sm:$0xff]  ;;  %v14788_v14 = vld [vmem:[#allocation70_spill] sm:$0xff] }
 0x6d0   : > { %3355 = vmatprep.subr.bf16.mxu0 %v3092_v44  ;;  %v3099_v42 = vpack.c.bf16 %v14785_v6, %v14784_v45  ;;  %v3107_v6 = vpack.c.bf16 %v10013_v51, %v10007_v53 }
 0x6d1   : > { %v3040_v4 = vpop.permute.xlu0 %3039  ;;  %v3093_v49 = vpack.c.bf16 %v3083_v63, %v3081_v41  ;;  %v14786_v63 = vld [vmem:[#allocation72_spill] sm:$0xff] }
 0x6d3   : > { %v3054_v55 = vpop.permute.xlu1 %3053  ;;  %3356 = vmatpush1.bf16.msra.mxu0 %v3091_v34 }
 0x6d4   : > { %v3071_v36 = vsel %vm776_vm7, %v3054_v55, %v3038_v5  ;;  %3357 = vmatprep.subr.bf16.mxu0 %v3094_v7  ;;  %v3063_v46 = vsel %vm776_vm7, %v3038_v5, %v3054_v55  ;;  %v3100_v5 = vpack.c.bf16 %v10226_v59, %v10219_v62  ;;  %v14789_v62 = vld [vmem:[#allocation71_spill] sm:$0xff] }
 0x6d5   : > { %v3056_v61 = vpop.permute.xlu0 %3055  ;;  %v3085_v35 = vmul.f32 %v3071_v36, %v8313_v9  ;;  %v3101_v59 = vpack.c.bf16 %v14789_v62, %v14788_v14  ;;  %v14790_v55 = vld [vmem:[#allocation75_spill] sm:$0xff]  ;;  %v3112_v14 = vpack.c.bf16 %v10118_v54, %v10113_v39  ;;  %v7276_v62 = vld [vmem:[#allocation6 + $0x28] ss:$20 sps:$4 sm:$0xff]  }
 0x6d6   : > { %v3064_v32 = vsel %vm776_vm7, %v3040_v4, %v3056_v61  ;;  %v3072_v50 = vsel %vm776_vm7, %v3056_v61, %v3040_v4  ;;  %v14787_v4 = vld [vmem:[#allocation73_spill] sm:$0xff]  ;;  %v3104_v36 = vpack.c.bf16 %v10296_v3, %v14790_v55  ;;  %v14793_v3 = vld [vmem:[#allocation42_spill] sm:$0xff] }
 0x6d7   : > { %v3087_v31 = vmul.f32 %v3072_v50, %v8313_v9  ;;  %v10708_v58 = vpop.permute.xlu1 %3121  ;;  %3358 = vmatpush1.bf16.msra.mxu0 %v3093_v49  ;;  %v3096_v47 = vpack.c.bf16 %v3064_v32, %v3063_v46  ;;  %v3102_v7 = vpack.c.bf16 %v14787_v4, %v14786_v63  ;;  %v14791_v46 = vld [vmem:[#allocation74_spill] sm:$0xff]  ;;  %v14792_v50 = vld [vmem:[#allocation45_spill] sm:$0xff] }
 0x6d8   : > { %v3103_v32 = vpack.c.bf16 %v10278_v40, %v14791_v46  ;;  %v7275_v40 = vld [vmem:[#allocation6 + $0x2c] ss:$20 sps:$4 sm:$0xff]   ;;  %v7277_v55 = vld [vmem:[#allocation6 + $0x54] ss:$20 sps:$4 sm:$0xff]   ;;  %v3111_v46 = vpack.c.bf16 %v10101_v13, %v10095_v43 }
 0x6d9   : > { %v3095_v26 = vpack.c.bf16 %v3087_v31, %v3085_v35  ;;  %3359 = vmatprep.subr.bf16.mxu0 %v3096_v47  ;;  %v10710_v60 = vpop.permute.xlu0 %3123  ;;  %v3106_v35 = vpack.c.bf16 %v14792_v50, %v9985_v19 }
 0x6db   : > { %v10714_v44 = vpop.permute.xlu1 %3137  ;;  %3360 = vmatpush1.bf16.msra.mxu0 %v3095_v26  ;;  %v3105_v26 = vpack.c.bf16 %v14793_v3, %v9960_v16 }
 0x6dc   : > { %3361 = vmatprep.subr.bf16.mxu0 %v3098_v11  ;;  %v7274_v11 = vld [vmem:[#allocation6] ss:$20 sps:$4 sm:$0xff]  }
 0x6dd   : > { %v10716_v20 = vpop.permute.xlu0 %3139 }
 0x6df   : > { %v10722_v17 = vpop.permute.xlu1 %3125  ;;  %3362 = vmatpush1.bf16.msra.mxu0 %v3097_v23  ;;  %v3108_v23 = vpack.c.bf16 %v10035_v28, %v10029_v15 }
 0x6e0   : > { %3363 = vmatprep.subr.bf16.mxu0 %v3100_v5 }
 0x6e1   : > { %v10724_v34 = vpop.permute.xlu0 %3127 }
 0x6e3   : > { %v10730_v41 = vpop.permute.xlu1 %3141  ;;  %3364 = vmatpush1.bf16.msra.mxu0 %v3099_v42  ;;  %v3110_v42 = vpack.c.bf16 %v10079_v33, %v10073_v22 }
 0x6e4   : > { %3365 = vmatprep.subr.bf16.mxu0 %v3102_v7  ;;  %v3109_v7 = vpack.c.bf16 %v10057_v27, %v10051_v56 }
 0x6e5   : > { %v10732_v48 = vpop.permute.xlu0 %3143 }
 0x6e7   : > { %v10738_v49 = vpop.permute.xlu1 %3129  ;;  %3366 = vmatpush1.bf16.msra.mxu0 %v3101_v59 }
 0x6e8   : > { %3367 = vmatprep.subr.bf16.mxu0 %v3104_v36 }
 0x6e9   : > { %v10740_v61 = vpop.permute.xlu0 %3131 }
 0x6eb   : > { %v10746_v31 = vpop.permute.xlu1 %3145  ;;  %3368 = vmatpush1.bf16.msra.mxu0 %v3103_v32  ;;  %v3114_v32 = vpack.c.bf16 %v10336_v2, %v10325_v8  ;;  %v3115_v2 = vpack.c.bf16 %v10356_v30, %v10345_v24  ;;  %v14795_v30 = vld [vmem:[#allocation20_spill] sm:$0xff] }
 0x6ec   : > { %3410 = vmatprep.subr.bf16.mxu0 %v3106_v35 }
 0x6ed   : > { %v10748_v47 = vpop.permute.xlu0 %3147 }
 0x6ee   : > { %3370 = vmatmul.mubr.bf16.vlgmr.msra.gmra.mrb[16].mxu0 %v7274_v11  ;;  %v3113_v11 = vpack.c.bf16 %v10316_v0, %v10305_v12  ;;  %v3162_v0 = vsel %vm1017_vm8, %v10716_v20, %v10710_v60  ;;  %v3161_v12 = vsel %vm1017_vm8, %v10714_v44, %v10708_v58 }
 0x6ef   : > { %v10754_v5 = vpop.permute.xlu1 %3133  ;;  %3411 = vmatpush1.bf16.msra.mxu0 %v3105_v26  ;;  %3379 = vmatprep.mubr.bf16.mxu0 %v7275_v40  ;;  %v7278_v40 = vld [vmem:[#allocation6 + $0x50] ss:$20 sps:$4 sm:$0xff]  }
 0x6f0   : > { %3412 = vmatprep.subr.bf16.mxu0 %v3108_v23  ;;  %v3116_v23 = vpack.c.bf16 %v10377_v38, %v10365_v25 }
 0x6f1   : > { %v10756_v45 = vpop.permute.xlu0 %3195 }
 0x6f3   : > { %v10762_v63 = vpop.permute.xlu1 %3149  ;;  %3413 = vmatpush1.bf16.msra.mxu0 %v3107_v6 }
 0x6f4   : > { %3414 = vmatprep.subr.bf16.mxu0 %v3110_v42  ;;  %v7279_v42 = vld [vmem:[#allocation6 + $0x7c] ss:$20 sps:$4 sm:$0xff]  }
 0x6f5   : > { %v10764_v4 = vpop.permute.xlu0 %3211 }
 0x6f6   : > { %3380 = vmatmul.mubr.bf16.gmra.mrb[20].mxu0 %v7276_v62  ;;  %v7280_v62 = vld [vmem:[#allocation6 + $0x78] ss:$20 sps:$4 sm:$0xff]  }
 0x6f7   : > { %v10770_v59 = vpop.permute.xlu1 %3193  ;;  %3415 = vmatpush1.bf16.msra.mxu0 %v3109_v7  ;;  %3389 = vmatprep.mubr.bf16.mxu0 %v7277_v55  ;;  %v3118_v7 = vpack.c.bf16 %v10411_v37, %v10403_v57  ;;  %v3172_v57 = vmul.f32 %v3162_v0, %v14795_v30  ;;  %v3120_v37 = vpack.c.bf16 %v10442_v52, %v10437_v29 }
 0x6f8   : > { %3416 = vmatprep.subr.bf16.mxu0 %v3112_v14  ;;  %v14794_v14 = vld [vmem:[#allocation79_spill] sm:$0xff]  ;;  %v3164_v55 = vsel %vm1017_vm8, %v10732_v48, %v10724_v34  ;;  %v3119_v52 = vpack.c.bf16 %v10429_v10, %v10419_v1  ;;  %v3153_v1 = vsel %vm1017_vm8, %v10708_v58, %v10714_v44 }
 0x6f9   : > { %v10772_v36 = vpop.permute.xlu0 %3199  ;;  %v3117_v24 = vpack.c.bf16 %v10395_v21, %v14794_v14  ;;  %v3163_v21 = vsel %vm1017_vm8, %v10730_v41, %v10722_v17 }
 0x6fa   : > { %v3174_v10 = vmul.f32 %v3163_v21, %v14795_v30  ;;  %v3157_v21 = vsel %vm1017_vm8, %v10738_v49, %v10746_v31 }
 0x6fb   : > { %v10778_v35 = vpop.permute.xlu1 %3209  ;;  %3417 = vmatpush1.bf16.msra.mxu0 %v3111_v46 }
 0x6fc   : > { %3418 = vmatprep.subr.bf16.mxu0 %v3114_v32  ;;  %v7281_v32 = vld [vmem:[#allocation6 + $0xc] ss:$20 sps:$4 sm:$0xff]  }
 0x6fd   : > { %v10780_v26 = vpop.permute.xlu0 %3215 }
 0x6fe   : > { %3390 = vmatmul.mubr.bf16.gmra.mrb[24].mxu0 %v7278_v40  ;;  %v3176_v40 = vmul.f32 %v3164_v55, %v14795_v30  ;;  %v3158_v55 = vsel %vm1017_vm8, %v10740_v61, %v10748_v47 }
 0x6ff   : > { %v10786_v6 = vpop.permute.xlu1 %3197  ;;  %3419 = vmatpush1.bf16.msra.mxu0 %v3113_v11  ;;  %3399 = vmatprep.mubr.bf16.mxu0 %v7279_v42  ;;  %v3170_v11 = vmul.f32 %v3161_v12, %v14795_v30  ;;  %v3156_v12 = vsel %vm1017_vm8, %v10724_v34, %v10732_v48  ;;  %v3167_v34 = vsel %vm1017_vm8, %v10762_v63, %v10754_v5 }
 0x700   : > { %3420 = vmatprep.subr.bf16.mxu0 %v3116_v23  ;;  %v3154_v23 = vsel %vm1017_vm8, %v10710_v60, %v10716_v20  ;;  %v3165_v20 = vsel %vm1017_vm8, %v10746_v31, %v10738_v49 }
 0x701   : > { %v3136_v8 = vpop.permute.xlu0 %3135  ;;  %v3186_v42 = vpack.c.bf16 %v3172_v57, %v3170_v11  ;;  %v3185_v60 = vpack.c.bf16 %v3154_v23, %v3153_v1  ;;  %v3155_v57 = vsel %vm1017_vm8, %v10722_v17, %v10730_v41  ;;  %v3233_v17 = vsel %vm1017_vm8, %v10778_v35, %v10770_v59 }
 0x702   : > { %v3159_v1 = vsel %vm1017_vm8, %v10754_v5, %v10762_v63 }
 0x703   : > { %v10796_v25 = vpop.permute.xlu1 %3213  ;;  %3421 = vmatpush1.bf16.msra.mxu0 %v3115_v2  ;;  %v3166_v2 = vsel %vm1017_vm8, %v10748_v47, %v10740_v61  ;;  %v3189_v61 = vpack.c.bf16 %v3158_v55, %v3157_v21  ;;  %v3234_v47 = vsel %vm1017_vm8, %v10764_v4, %v10756_v45  ;;  %v3228_v55 = vsel %vm1017_vm8, %v10772_v36, %v10780_v26 }
 0x704   : > { %3422 = vmatprep.subr.bf16.mxu0 %v3118_v7  ;;  %v3180_v14 = vmul.f32 %v3166_v2, %v14795_v30  ;;  %v3235_v49 = vsel %vm1017_vm8, %v10796_v25, %v10786_v6 }
 0x705   : > { %v3152_v38 = vpop.permute.xlu0 %3151 }
 0x706   : > { %3400 = vmatmul.mubr.bf16.gmra.mrb[28].mxu0 %v7280_v62  ;;  %v3168_v58 = vsel %vm1017_vm8, %v3152_v38, %v3136_v8  ;;  %v3187_v62 = vpack.c.bf16 %v3156_v12, %v3155_v57  ;;  %v3246_v12 = vmul.f32 %v3235_v49, %v14795_v30 }
 0x707   : > { %v10811_v46 = vpop.permute.xlu1 %3201  ;;  %3423 = vmatpush1.bf16.msra.mxu0 %v3117_v24  ;;  %3442 = vmatprep.mubr.bf16.mxu0 %v7281_v32  ;;  %v3188_v24 = vpack.c.bf16 %v3176_v40, %v3174_v10  ;;  %v3184_v32 = vmul.f32 %v3168_v58, %v14795_v30  ;;  %v3242_v40 = vmul.f32 %v3233_v17, %v14795_v30 }
 0x708   : > { %3424 = vmatprep.subr.bf16.mxu0 %v3120_v37  ;;  %v3178_v37 = vmul.f32 %v3165_v20, %v14795_v30  ;;  %v3244_v10 = vmul.f32 %v3234_v47, %v14795_v30  ;;  %v3225_v20 = vsel %vm1017_vm8, %v10770_v59, %v10778_v35 }
 0x709   : > { %v10818_v29 = vpop.permute.xlu0 %3203 }
 0x70a   : > { %v3190_v11 = vpack.c.bf16 %v3180_v14, %v3178_v37  ;;  %v3258_v14 = vpack.c.bf16 %v3244_v10, %v3242_v40  ;;  %v3227_v37 = vsel %vm1017_vm8, %v10786_v6, %v10796_v25 }
 0x70b   : > { %v10831_v7 = vpop.permute.xlu1 %3217  ;;  %3425 = vmatpush1.bf16.msra.mxu0 %v3119_v52  ;;  %v3182_v52 = vmul.f32 %v3167_v34, %v14795_v30 }
 0x70c   : > { %3426 = vmatprep.subr.bf16.mxu0 %v3186_v42  ;;  %v3160_v42 = vsel %vm1017_vm8, %v3136_v8, %v3152_v38  ;;  %v3236_v8 = vsel %vm1017_vm8, %v10780_v26, %v10772_v36  ;;  %v3237_v59 = vsel %vm1017_vm8, %v10831_v7, %v10811_v46 }
 0x70d   : > { %v3220_v0 = vpop.permute.xlu0 %3219  ;;  %v3192_v2 = vpack.c.bf16 %v3184_v32, %v3182_v52  ;;  %v3191_v38 = vpack.c.bf16 %v3160_v42, %v3159_v1  ;;  %v3248_v58 = vmul.f32 %v3236_v8, %v14795_v30  ;;  %v3250_v32 = vmul.f32 %v3237_v59, %v14795_v30  ;;  %v7282_v59 = vld [vmem:[#allocation6 + $0x8] ss:$20 sps:$4 sm:$0xff]  }
 0x70e   : > { %v3238_v5 = vsel %vm1017_vm8, %v3220_v0, %v10818_v29  ;;  %v3230_v17 = vsel %vm1017_vm8, %v10818_v29, %v3220_v0 }
 0x70f   : > { %v10849_v44 = vpop.permute.xlu1 %3205  ;;  %3427 = vmatpush1.bf16.msra.mxu0 %v3185_v60  ;;  %v3260_v34 = vpack.c.bf16 %v3248_v58, %v3246_v12 }
 0x710   : > { %3428 = vmatprep.subr.bf16.mxu0 %v3188_v24  ;;  %v3226_v24 = vsel %vm1017_vm8, %v10756_v45, %v10764_v4 }
 0x711   : > { %v3208_v48 = vpop.permute.xlu0 %3207  ;;  %v3257_v57 = vpack.c.bf16 %v3226_v24, %v3225_v20 }
 0x713   : > { %v10869_v41 = vpop.permute.xlu1 %3221  ;;  %3429 = vmatpush1.bf16.msra.mxu0 %v3187_v62  ;;  %v3252_v62 = vmul.f32 %v3238_v5, %v14795_v30 }
 0x714   : > { %3430 = vmatprep.subr.bf16.mxu0 %v3190_v11  ;;  %v3259_v11 = vpack.c.bf16 %v3228_v55, %v3227_v37  ;;  %v3239_v6 = vsel %vm1017_vm8, %v10869_v41, %v10849_v44 }
 0x715   : > { %v3224_v23 = vpop.permute.xlu0 %3223  ;;  %v3262_v52 = vpack.c.bf16 %v3252_v62, %v3250_v32  ;;  %v3254_v47 = vmul.f32 %v3239_v6, %v14795_v30  ;;  %v7283_v62 = vld [vmem:[#allocation6 + $0x34] ss:$20 sps:$4 sm:$0xff]  }
 0x716   : > { %v3240_v45 = vsel %vm1017_vm8, %v3224_v23, %v3208_v48  ;;  %v3232_v42 = vsel %vm1017_vm8, %v3208_v48, %v3224_v23 }
 0x717   : > { %v3266_v31 = vpop.permute.xlu1 %3265  ;;  %3431 = vmatpush1.bf16.msra.mxu0 %v3189_v61  ;;  %v3256_v21 = vmul.f32 %v3240_v45, %v14795_v30  ;;  %v3229_v61 = vsel %vm1017_vm8, %v10811_v46, %v10831_v7  ;;  %v3231_v46 = vsel %vm1017_vm8, %v10849_v44, %v10869_v41 }
 0x718   : > { %3432 = vmatprep.subr.bf16.mxu0 %v3192_v2  ;;  %v3261_v40 = vpack.c.bf16 %v3230_v17, %v3229_v61  ;;  %v3263_v8 = vpack.c.bf16 %v3232_v42, %v3231_v46  ;;  %v7289_v46 = vld [vmem:[#allocation6 + $0x10] ss:$20 sps:$4 sm:$0xff]  }
 0x719   : > { %v3268_v60 = vpop.permute.xlu0 %3267  ;;  %v3264_v49 = vpack.c.bf16 %v3256_v21, %v3254_v47 }
 0x71b   : > { %v3282_v63 = vpop.permute.xlu1 %3281  ;;  %3433 = vmatpush1.bf16.msra.mxu0 %v3191_v38 }
 0x71c   : > { %3434 = vmatprep.subr.bf16.mxu0 %v3258_v14  ;;  %v3305_v29 = vsel %vm1017_vm8, %v3282_v63, %v3266_v31  ;;  %v3297_v5 = vsel %vm1017_vm8, %v3266_v31, %v3282_v63 }
 0x71d   : > { %v3284_v35 = vpop.permute.xlu0 %3283  ;;  %v3314_v7 = vmul.f32 %v3305_v29, %v14795_v30 }
 0x71e   : > { %v3306_v36 = vsel %vm1017_vm8, %v3284_v35, %v3268_v60  ;;  %v3298_v38 = vsel %vm1017_vm8, %v3268_v60, %v3284_v35 }
 0x71f   : > { %v3270_v4 = vpop.permute.xlu1 %3269  ;;  %3435 = vmatpush1.bf16.msra.mxu0 %v3257_v57  ;;  %v3316_v2 = vmul.f32 %v3306_v36, %v14795_v30  ;;  %v3329_v24 = vpack.c.bf16 %v3298_v38, %v3297_v5  ;;  %v7284_v36 = vld [vmem:[#allocation6 + $0x30] ss:$20 sps:$4 sm:$0xff]  }
 0x720   : > { %3436 = vmatprep.subr.bf16.mxu0 %v3260_v34 }
 0x721   : > { %v3272_v25 = vpop.permute.xlu0 %3271  ;;  %v3330_v12 = vpack.c.bf16 %v3316_v2, %v3314_v7  ;;  %v7286_v2 = vld [vmem:[#allocation6 + $0x58] ss:$20 sps:$4 sm:$0xff]  }
 0x722   : > { %v7290_v7 = vld [vmem:[#allocation6 + $0x38] ss:$20 sps:$4 sm:$0xff]  }
 0x723   : > { %v3286_v26 = vpop.permute.xlu1 %3285  ;;  %3437 = vmatpush1.bf16.msra.mxu0 %v3259_v11 }
 0x724   : > { %3438 = vmatprep.subr.bf16.mxu0 %v3262_v52  ;;  %v3307_v48 = vsel %vm1017_vm8, %v3286_v26, %v3270_v4  ;;  %v3299_v34 = vsel %vm1017_vm8, %v3270_v4, %v3286_v26 }
 0x725   : > { %v3288_v0 = vpop.permute.xlu0 %3287  ;;  %v3318_v44 = vmul.f32 %v3307_v48, %v14795_v30  ;;  %v7292_v48 = vld [vmem:[#allocation6 + $0x88] ss:$20 sps:$4 sm:$0xff]  }
 0x726   : > { %v3308_v1 = vsel %vm1017_vm8, %v3288_v0, %v3272_v25  ;;  %v3300_v57 = vsel %vm1017_vm8, %v3272_v25, %v3288_v0 }
 0x727   : > { %v3274_v10 = vpop.permute.xlu1 %3273  ;;  %3439 = vmatpush1.bf16.msra.mxu0 %v3261_v40  ;;  %v3320_v20 = vmul.f32 %v3308_v1, %v14795_v30  ;;  %v3331_v45 = vpack.c.bf16 %v3300_v57, %v3299_v34  ;;  %v7285_v40 = vld [vmem:[#allocation6 + $0x5c] ss:$20 sps:$4 sm:$0xff]   ;;  %v7288_v1 = vld [vmem:[#allocation6 + $0x80] ss:$20 sps:$4 sm:$0xff]  }
 0x728   : > { %3440 = vmatprep.subr.bf16.mxu0 %v3264_v49  ;;  %v7287_v49 = vld [vmem:[#allocation6 + $0x84] ss:$20 sps:$4 sm:$0xff]  }
 0x729   : > { %v3276_v23 = vpop.permute.xlu0 %3275  ;;  %v3332_v35 = vpack.c.bf16 %v3320_v20, %v3318_v44  ;;  %v14797_v20 = vld [vmem:[#allocation22_spill] sm:$0xff]  ;;  %v14798_v44 = vld [vmem:[#allocation23_spill] sm:$0xff] }
 0x72b   : > { %v3290_v14 = vpop.permute.xlu1 %3289  ;;  %3441 = vmatpush1.bf16.msra.mxu0 %v3263_v8  ;;  %v7291_v8 = vld [vmem:[#allocation6 + $0x60] ss:$20 sps:$4 sm:$0xff]  }
 0x72c   : > { %v3309_v41 = vsel %vm1017_vm8, %v3290_v14, %v3274_v10  ;;  %3483 = vmatprep.subr.bf16.mxu0 %v3330_v12  ;;  %v3301_v25 = vsel %vm1017_vm8, %v3274_v10, %v3290_v14  ;;  %v14796_v10 = vmov 0  }
 0x72d   : > { %v3292_v58 = vpop.permute.xlu0 %3291  ;;  %v3322_v37 = vmul.f32 %v3309_v41, %v14795_v30 }
 0x72e   : > { %v3310_v60 = vsel %vm1017_vm8, %v3292_v58, %v3276_v23  ;;  %3443 = vmatmul.mubr.bf16.vlgmr.msra.gmra.mrb[16].mxu0 %v7282_v59  ;;  %v3302_v11 = vsel %vm1017_vm8, %v3276_v23, %v3292_v58  ;;  %v7293_v23 = vld [vmem:[#allocation6 + $0x4] ss:$20 sps:$4 sm:$0xff]   ;;  %v14800_v59 = vld [vmem:[#allocation16_spill] sm:$0xff] }
 0x72f   : > { %v3324_v31 = vmul.f32 %v3310_v60, %v14795_v30  ;;  %v3278_v63 = vpop.permute.xlu1 %3277  ;;  %3484 = vmatpush1.bf16.msra.mxu0 %v3329_v24  ;;  %3452 = vmatprep.mubr.bf16.mxu0 %v7283_v62  ;;  %v3333_v21 = vpack.c.bf16 %v3302_v11, %v3301_v25  ;;  %v14799_v24 = vld [vmem:[#allocation21_spill] sm:$0xff] }
 0x730   : > { %3485 = vmatprep.subr.bf16.mxu0 %v3332_v35 }
 0x731   : > { %v3280_v55 = vpop.permute.xlu0 %3279  ;;  %v3334_v32 = vpack.c.bf16 %v3324_v31, %v3322_v37 }
 0x733   : > { %v3294_v6 = vpop.permute.xlu1 %3293  ;;  %3486 = vmatpush1.bf16.msra.mxu0 %v3331_v45 }
 0x734   : > { %v3311_v17 = vsel %vm1017_vm8, %v3294_v6, %v3278_v63  ;;  %3487 = vmatprep.subr.bf16.mxu0 %v3334_v32  ;;  %v3303_v29 = vsel %vm1017_vm8, %v3278_v63, %v3294_v6 }
 0x735   : > { %v3296_v52 = vpop.permute.xlu0 %3295  ;;  %v3326_v26 = vmul.f32 %v3311_v17, %v14795_v30  ;;  %v14802_v17 = vld [vmem:[#allocation26_spill] sm:$0xff] }
 0x736   : > { %v3312_v4 = vsel %vm1017_vm8, %v3296_v52, %v3280_v55  ;;  %3453 = vmatmul.mubr.bf16.gmra.mrb[20].mxu0 %v7284_v36  ;;  %v3304_v61 = vsel %vm1017_vm8, %v3280_v55, %v3296_v52 }
 0x737   : > { %v3328_v47 = vmul.f32 %v3312_v4, %v14795_v30  ;;  %3488 = vmatpush1.bf16.msra.mxu0 %v3333_v21  ;;  %3462 = vmatprep.mubr.bf16.mxu0 %v7285_v40  ;;  %v3335_v42 = vpack.c.bf16 %v3304_v61, %v3303_v29  ;;  %v14805_v40 = vld [vmem:[#allocation29_spill] sm:$0xff] }
 0x739   : > { %v3336_v0 = vpack.c.bf16 %v3328_v47, %v3326_v26  ;;  %v14804_v26 = vld [vmem:[#allocation27_spill] sm:$0xff] }
 0x73b   : > { %3489 = vmatprep.subr.bf16.mxu0 %v3336_v0  ;;  %v14806_v0 = vld [vmem:[#allocation30_spill] sm:$0xff] }
 0x73c   : > { %3490 = vmatpush1.bf16.msra.mxu0 %v3335_v42 }
 0x73e   : > { %3463 = vmatmul.mubr.bf16.gmra.mrb[24].mxu0 %v7286_v2 }
 0x73f   : > { %3472 = vmatprep.mubr.bf16.mxu0 %v7287_v49 }
 0x746   : > { %3473 = vmatmul.mubr.bf16.gmra.mrb[28].mxu0 %v7288_v1 }
 0x747   : > { %3515 = vmatprep.mubr.bf16.mxu0 %v14796_v10 }
 0x74e   : > { %6799 = vmatmul.mubr.msk.bf16.vlgmr.msra.gmra.mrb[16].mxu0 %vm1326_vm10, %v7289_v46 }
 0x74f   : > { %3525 = vmatprep.mubr.bf16.mxu0 %v14796_v10 }
 0x756   : > { %6800 = vmatmul.mubr.msk.bf16.gmra.mrb[20].mxu0 %vm1326_vm10, %v7290_v7 }
 0x757   : > { %3535 = vmatprep.mubr.bf16.mxu0 %v14796_v10 }
 0x75e   : > { %6801 = vmatmul.mubr.msk.bf16.gmra.mrb[24].mxu0 %vm1326_vm10, %v7291_v8 }
 0x75f   : > { %3545 = vmatprep.mubr.bf16.mxu0 %v14796_v10 }
 0x766   : > { %6802 = vmatmul.mubr.msk.bf16.gmra.mrb[28].mxu0 %vm1326_vm10, %v7292_v48 }
 0x767   : > { %5071 = vmatprep.mubr.bf16.mxu0 %v7293_v23 }
 0x821   : > { %v3517_v38 = vpop.f32.mrb[16].mxu0 }
 0x822   : > { %v3556_v12 = vmul.f32 %v3517_v38, %v14797_v20  ;;  %v3519_v14 = vpop.f32.mrb[17].mxu0 }
 0x823   : > { %v3521_v5 = vpop.f32.mrb[18].mxu0  ;;  %v3557_v63 = vmul.f32 %v3519_v14, %v14797_v20 }
 0x824   : > { %v3572_v41 = vadd.f32 %v3556_v12, %v14798_v44  ;;  %v3558_v58 = vmul.f32 %v3521_v5, %v14799_v24  ;;  %v3523_v57 = vpop.f32.mrb[19].mxu0  ;;  %v14807_v5 = vld [vmem:[#allocation31_spill] sm:$0xff] }
 0x825   : > { %v3559_v45 = vmul.f32 %v3523_v57, %v14799_v24  ;;  %v3573_v32 = vadd.f32 %v3557_v63, %v14798_v44  ;;  %v14808_v57 = vld [vmem:[#allocation32_spill] sm:$0xff] }
 0x826   : > { %v10995_v60 = vmax.f32 %v3572_v41, 0.0  ;;  %v3574_v35 = vadd.f32 %v3558_v58, %v14800_v59 }
 0x827   : > { %v3575_v11 = vadd.f32 %v3559_v45, %v14800_v59  ;;  %v11014_v25 = vmax.f32 %v3573_v32, 0.0 }
 0x828   : > { %v10998_v37 = vmax.f32 %v3574_v35, 0.0  ;;  %3604 = vrot.lane.b32.xlu1 %v10995_v60, %s7533_s25 }
 0x829   : > { %v3527_v31 = vpop.f32.mrb[20].mxu0  ;;  %v11019_v36 = vmax.f32 %v3575_v11, 0.0 }
 0x82a   : > { %14801 = vst [vmem:[#allocation76_spill] sm:$0xff] %v10998_v37  ;;  %3606 = vrot.lane.b32.xlu0 %v10998_v37, %s7533_s25  ;;  %v3529_v62 = vpop.f32.mrb[21].mxu0  ;;  %v3560_v21 = vmul.f32 %v3527_v31, %v14802_v17  ;;  %v14809_v31 = vld [vmem:[#allocation33_spill] sm:$0xff] }
 0x82b   : > { %v3531_v34 = vpop.f32.mrb[22].mxu0  ;;  %14803 = vst [vmem:[#allocation77_spill] sm:$0xff] %v11019_v36  ;;  %v3561_v1 = vmul.f32 %v3529_v62, %v14802_v17  ;;  %v14810_v62 = vld [vmem:[#allocation34_spill] sm:$0xff] }
 0x82c   : > { %3668 = vrot.lane.b32.xlu1 %v10995_v60, %s7534_s27  ;;  %v3533_v55 = vpop.f32.mrb[23].mxu0  ;;  %v3562_v61 = vmul.f32 %v3531_v34, %v14804_v26  ;;  %v3576_v29 = vadd.f32 %v3560_v21, %v14805_v40 }
 0x82d   : > { %v3563_v48 = vmul.f32 %v3533_v55, %v14804_v26  ;;  %v3577_v38 = vadd.f32 %v3561_v1, %v14805_v40  ;;  %v14813_v1 = vld [vmem:[#allocation37_spill] sm:$0xff] }
 0x82e   : > { %3670 = vrot.lane.b32.xlu0 %v10998_v37, %s7534_s27  ;;  %v3578_v42 = vadd.f32 %v3562_v61, %v14806_v0  ;;  %v11030_v49 = vmax.f32 %v3576_v29, 0.0  ;;  %v14812_v29 = vld [vmem:[#allocation36_spill] sm:$0xff] }
 0x82f   : > { %v3579_v12 = vadd.f32 %v3563_v48, %v14806_v0  ;;  %v11046_v14 = vmax.f32 %v3577_v38, 0.0  ;;  %v14814_v38 = vld [vmem:[#allocation38_spill] sm:$0xff] }
 0x830   : > { %3804 = vrot.lane.b32.xlu1 %v10995_v60, %s7535_s16  ;;  %v11035_v8 = vmax.f32 %v3578_v42, 0.0 }
 0x831   : > { %v3537_v6 = vpop.f32.mrb[24].mxu0  ;;  %v11051_v58 = vmax.f32 %v3579_v12, 0.0 }
 0x832   : > { %3806 = vrot.lane.b32.xlu0 %v10998_v37, %s7535_s16  ;;  %v3539_v52 = vpop.f32.mrb[25].mxu0  ;;  %v3564_v41 = vmul.f32 %v3537_v6, %v14807_v5 }
 0x833   : > { %v3541_v4 = vpop.f32.mrb[26].mxu0  ;;  %v3565_v55 = vmul.f32 %v3539_v52, %v14807_v5 }
 0x834   : > { %3620 = vrot.lane.b32.xlu1 %v11014_v25, %s7533_s25  ;;  %v3543_v47 = vpop.f32.mrb[27].mxu0  ;;  %v3566_v35 = vmul.f32 %v3541_v4, %v14808_v57  ;;  %v3580_v63 = vadd.f32 %v3564_v41, %v14809_v31  ;;  %v14811_v4 = vld [vmem:[#allocation35_spill] sm:$0xff] }
 0x835   : > { %v3567_v11 = vmul.f32 %v3543_v47, %v14808_v57  ;;  %v3581_v6 = vadd.f32 %v3565_v55, %v14809_v31 }
 0x836   : > { %3622 = vrot.lane.b32.xlu0 %v11019_v36, %s7533_s25  ;;  %v3582_v34 = vadd.f32 %v3566_v35, %v14810_v62  ;;  %v11062_v45 = vmax.f32 %v3580_v63, 0.0 }
 0x837   : > { %v3583_v21 = vadd.f32 %v3567_v11, %v14810_v62  ;;  %v11078_v52 = vmax.f32 %v3581_v6, 0.0 }
 0x838   : > { %3684 = vrot.lane.b32.xlu1 %v11014_v25, %s7534_s27  ;;  %v11067_v32 = vmax.f32 %v3582_v34, 0.0 }
 0x839   : > { %v3547_v2 = vpop.f32.mrb[28].mxu0  ;;  %v11083_v47 = vmax.f32 %v3583_v21, 0.0 }
 0x83a   : > { %3686 = vrot.lane.b32.xlu0 %v11019_v36, %s7534_s27  ;;  %v3549_v46 = vpop.f32.mrb[29].mxu0  ;;  %v3568_v61 = vmul.f32 %v3547_v2, %v14811_v4 }
 0x83b   : > { %v3551_v7 = vpop.f32.mrb[30].mxu0  ;;  %v3569_v41 = vmul.f32 %v3549_v46, %v14811_v4 }
 0x83c   : > { %3608 = vrot.lane.b32.xlu1 %v11030_v49, %s7533_s25  ;;  %v3553_v23 = vpop.f32.mrb[31].mxu0  ;;  %v3570_v42 = vmul.f32 %v3551_v7, %v14812_v29  ;;  %v3584_v48 = vadd.f32 %v3568_v61, %v14813_v1 }
 0x83d   : > { %v3571_v35 = vmul.f32 %v3553_v23, %v14812_v29  ;;  %v3585_v63 = vadd.f32 %v3569_v41, %v14813_v1  ;;  %v14815_v41 = vld [vmem:[#allocation18_spill] sm:$0xff] }
 0x83e   : > { %3610 = vrot.lane.b32.xlu0 %v11035_v8, %s7533_s25  ;;  %v3586_v12 = vadd.f32 %v3570_v42, %v14814_v38  ;;  %v11094_v2 = vmax.f32 %v3584_v48, 0.0 }
 0x83f   : > { %v3587_v34 = vadd.f32 %v3571_v35, %v14814_v38  ;;  %v11110_v46 = vmax.f32 %v3585_v63, 0.0 }
 0x840   : > { %3672 = vrot.lane.b32.xlu1 %v11030_v49, %s7534_s27  ;;  %v11099_v7 = vmax.f32 %v3586_v12, 0.0 }
 0x841   : > { %v11114_v55 = vmax.f32 %v3587_v34, 0.0 }
 0x842   : > { %3674 = vrot.lane.b32.xlu0 %v11035_v8, %s7534_s27 }
 0x844   : > { %3624 = vrot.lane.b32.xlu1 %v11046_v14, %s7533_s25 }
 0x846   : > { %3626 = vrot.lane.b32.xlu0 %v11051_v58, %s7533_s25 }
 0x848   : > { %3688 = vrot.lane.b32.xlu1 %v11046_v14, %s7534_s27 }
 0x84a   : > { %3690 = vrot.lane.b32.xlu0 %v11051_v58, %s7534_s27 }
 0x84c   : > { %3612 = vrot.lane.b32.xlu1 %v11062_v45, %s7533_s25 }
 0x84e   : > { %3614 = vrot.lane.b32.xlu0 %v11067_v32, %s7533_s25 }
 0x850   : > { %3676 = vrot.lane.b32.xlu1 %v11062_v45, %s7534_s27 }
 0x852   : > { %3678 = vrot.lane.b32.xlu0 %v11067_v32, %s7534_s27 }
 0x854   : > { %3628 = vrot.lane.b32.xlu1 %v11078_v52, %s7533_s25 }
 0x856   : > { %3630 = vrot.lane.b32.xlu0 %v11083_v47, %s7533_s25 }
 0x858   : > { %3692 = vrot.lane.b32.xlu1 %v11078_v52, %s7534_s27 }
 0x85a   : > { %3694 = vrot.lane.b32.xlu0 %v11083_v47, %s7534_s27 }
 0x85c   : > { %3616 = vrot.lane.b32.xlu1 %v11094_v2, %s7533_s25 }
 0x85e   : > { %3618 = vrot.lane.b32.xlu0 %v11099_v7, %s7533_s25 }
 0x860   : > { %3680 = vrot.lane.b32.xlu1 %v11094_v2, %s7534_s27 }
 0x862   : > { %3682 = vrot.lane.b32.xlu0 %v11099_v7, %s7534_s27 }
 0x864   : > { %3632 = vrot.lane.b32.xlu1 %v11110_v46, %s7533_s25 }
 0x866   : > { %3634 = vrot.lane.b32.xlu0 %v11114_v55, %s7533_s25 }
 0x868   : > { %3820 = vrot.lane.b32.xlu1 %v11014_v25, %s7535_s16 }
 0x86a   : > { %3822 = vrot.lane.b32.xlu0 %v11019_v36, %s7535_s16 }
 0x86c   : > { %3696 = vrot.lane.b32.xlu1 %v11110_v46, %s7534_s27 }
 0x86e   : > { %3810 = vrot.lane.b32.xlu0 %v11035_v8, %s7535_s16 }
 0x870   : > { %3808 = vrot.lane.b32.xlu1 %v11030_v49, %s7535_s16 }
 0x872   : > { %3826 = vrot.lane.b32.xlu0 %v11051_v58, %s7535_s16 }
 0x874   : > { %3824 = vrot.lane.b32.xlu1 %v11046_v14, %s7535_s16 }
 0x876   : > { %3814 = vrot.lane.b32.xlu0 %v11067_v32, %s7535_s16 }
 0x878   : > { %3812 = vrot.lane.b32.xlu1 %v11062_v45, %s7535_s16 }
 0x87a   : > { %3830 = vrot.lane.b32.xlu0 %v11083_v47, %s7535_s16 }
 0x87c   : > { %3828 = vrot.lane.b32.xlu1 %v11078_v52, %s7535_s16 }
 0x87e   : > { %3818 = vrot.lane.b32.xlu0 %v11099_v7, %s7535_s16 }
 0x880   : > { %3816 = vrot.lane.b32.xlu1 %v11094_v2, %s7535_s16 }
 0x882   : > { %3698 = vrot.lane.b32.xlu0 %v11114_v55, %s7534_s27 }
 0x884   : > { %3832 = vrot.lane.b32.xlu1 %v11110_v46, %s7535_s16 }
 0x886   : > { %3834 = vrot.lane.b32.xlu0 %v11114_v55, %s7535_s16 }
 0x89a   : > { %v3605_v23 = vpop.permute.xlu1 %3604 }
 0x89c   : > { %v3607_v11 = vpop.permute.xlu0 %3606 }
 0x89e   : > { %v11152_v6 = vpop.permute.xlu1 %3668 }
 0x8a0   : > { %v11154_v21 = vpop.permute.xlu0 %3670 }
 0x8a2   : > { %v11156_v61 = vpop.permute.xlu1 %3804 }
 0x8a4   : > { %v11158_v42 = vpop.permute.xlu0 %3806 }
 0x8a6   : > { %v3621_v48 = vpop.permute.xlu1 %3620 }
 0x8a7   : > { %v3644_v12 = vsel %vm646_vm1, %v3621_v48, %v3605_v23  ;;  %v3636_v34 = vsel %vm646_vm1, %v3605_v23, %v3621_v48 }
 0x8a8   : > { %v11163_v35 = vmul.f32 %v3644_v12, %v14815_v41  ;;  %v3623_v63 = vpop.permute.xlu0 %3622  ;;  %v14816_v12 = vld [vmem:[#allocation19_spill] sm:$0xff] }
 0x8a9   : > { %v3645_v38 = vsel %vm646_vm1, %v3623_v63, %v3607_v11  ;;  %v3637_v4 = vsel %vm646_vm1, %v3607_v11, %v3623_v63  ;;  %v11179_v62 = vmul.f32 %v3636_v34, %v14816_v12 }
 0x8aa   : > { %v11170_v1 = vmul.f32 %v3645_v38, %v14815_v41  ;;  %v11172_v29 = vpop.permute.xlu1 %3684  ;;  %3732 = vrot.lane.b32.xlu1 %v11163_v35, %s7535_s16  ;;  %v11186_v23 = vmul.f32 %v3637_v4, %v14816_v12 }
 0x8ac   : > { %v11181_v31 = vpop.permute.xlu0 %3686  ;;  %3734 = vrot.lane.b32.xlu0 %v11170_v1, %s7535_s16 }
 0x8ae   : > { %v3609_v38 = vpop.permute.xlu1 %3608  ;;  %3748 = vrot.lane.b32.xlu1 %v11179_v62, %s7535_s16 }
 0x8b0   : > { %v3611_v48 = vpop.permute.xlu0 %3610  ;;  %3750 = vrot.lane.b32.xlu0 %v11186_v23, %s7535_s16 }
 0x8b2   : > { %v11192_v11 = vpop.permute.xlu1 %3672 }
 0x8b4   : > { %v11194_v63 = vpop.permute.xlu0 %3674 }
 0x8b6   : > { %v3625_v34 = vpop.permute.xlu1 %3624 }
 0x8b7   : > { %v3646_v57 = vsel %vm646_vm1, %v3625_v34, %v3609_v38  ;;  %v3638_v0 = vsel %vm646_vm1, %v3609_v38, %v3625_v34 }
 0x8b8   : > { %v11199_v5 = vmul.f32 %v3646_v57, %v14815_v41  ;;  %v3627_v4 = vpop.permute.xlu0 %3626  ;;  %v11215_v57 = vmul.f32 %v3638_v0, %v14816_v12 }
 0x8b9   : > { %v3647_v40 = vsel %vm646_vm1, %v3627_v4, %v3611_v48  ;;  %v3639_v59 = vsel %vm646_vm1, %v3611_v48, %v3627_v4 }
 0x8ba   : > { %14817 = vst [vmem:[#allocation78_spill] sm:$0xff] %v11199_v5  ;;  %v11206_v26 = vmul.f32 %v3647_v40, %v14815_v41  ;;  %v11208_v17 = vpop.permute.xlu1 %3688  ;;  %3736 = vrot.lane.b32.xlu1 %v11199_v5, %s7535_s16  ;;  %v11222_v38 = vmul.f32 %v3639_v59, %v14816_v12 }
 0x8bc   : > { %14818 = vst [vmem:[#allocation80_spill] sm:$0xff] %v11206_v26  ;;  %v11217_v24 = vpop.permute.xlu0 %3690  ;;  %3738 = vrot.lane.b32.xlu0 %v11206_v26, %s7535_s16 }
 0x8be   : > { %v3613_v40 = vpop.permute.xlu1 %3612  ;;  %3752 = vrot.lane.b32.xlu1 %v11215_v57, %s7535_s16 }
 0x8c0   : > { %v3615_v34 = vpop.permute.xlu0 %3614  ;;  %3754 = vrot.lane.b32.xlu0 %v11222_v38, %s7535_s16 }
 0x8c2   : > { %v11228_v48 = vpop.permute.xlu1 %3676 }
 0x8c4   : > { %v11230_v0 = vpop.permute.xlu0 %3678 }
 0x8c6   : > { %v3629_v4 = vpop.permute.xlu1 %3628 }
 0x8c7   : > { %v3648_v44 = vsel %vm646_vm1, %v3629_v4, %v3613_v40  ;;  %v3640_v54 = vsel %vm646_vm1, %v3613_v40, %v3629_v4 }
 0x8c8   : > { %v11235_v20 = vmul.f32 %v3648_v44, %v14815_v41  ;;  %v3631_v59 = vpop.permute.xlu0 %3630  ;;  %v11249_v44 = vmul.f32 %v3640_v54, %v14816_v12 }
 0x8c9   : > { %v3649_v39 = vsel %vm646_vm1, %v3631_v59, %v3615_v34  ;;  %v3641_v33 = vsel %vm646_vm1, %v3615_v34, %v3631_v59 }
 0x8ca   : > { %14819 = vst [vmem:[#allocation68_spill] sm:$0xff] %v11235_v20  ;;  %v11242_v13 = vmul.f32 %v3649_v39, %v14815_v41  ;;  %v3693_v43 = vpop.permute.xlu1 %3692  ;;  %3740 = vrot.lane.b32.xlu1 %v11235_v20, %s7535_s16  ;;  %14821 = vst [vmem:[#allocation72_spill] sm:$0xff] %v11249_v44  ;;  %v11254_v40 = vmul.f32 %v3641_v33, %v14816_v12 }
 0x8cc   : > { %14820 = vst [vmem:[#allocation69_spill] sm:$0xff] %v11242_v13  ;;  %v3695_v22 = vpop.permute.xlu0 %3694  ;;  %3742 = vrot.lane.b32.xlu0 %v11242_v13, %s7535_s16  ;;  %14822 = vst [vmem:[#allocation73_spill] sm:$0xff] %v11254_v40 }
 0x8ce   : > { %v3617_v4 = vpop.permute.xlu1 %3616  ;;  %3756 = vrot.lane.b32.xlu1 %v11249_v44, %s7535_s16 }
 0x8d0   : > { %v3619_v39 = vpop.permute.xlu0 %3618  ;;  %3758 = vrot.lane.b32.xlu0 %v11254_v40, %s7535_s16 }
 0x8d2   : > { %v11260_v27 = vpop.permute.xlu1 %3680 }
 0x8d4   : > { %v11262_v34 = vpop.permute.xlu0 %3682 }
 0x8d6   : > { %v3633_v54 = vpop.permute.xlu1 %3632 }
 0x8d7   : > { %v3650_v59 = vsel %vm646_vm1, %v3633_v54, %v3617_v4  ;;  %v3642_v28 = vsel %vm646_vm1, %v3617_v4, %v3633_v54 }
 0x8d8   : > { %v11267_v56 = vmul.f32 %v3650_v59, %v14815_v41  ;;  %v3635_v33 = vpop.permute.xlu0 %3634  ;;  %v11281_v50 = vmul.f32 %v3642_v28, %v14816_v12  ;;  %v3701_v28 = vsel %vm711_vm4, %v11154_v21, %v11181_v31 }
 0x8d9   : > { %v3651_v15 = vsel %vm646_vm1, %v3635_v33, %v3619_v39  ;;  %v3643_v53 = vsel %vm646_vm1, %v3619_v39, %v3635_v33  ;;  %v14825_v39 = vld [vmem:[#allocation24_spill] sm:$0xff] }
 0x8da   : > { %14823 = vst [vmem:[#allocation70_spill] sm:$0xff] %v11267_v56  ;;  %v11274_v51 = vmul.f32 %v3651_v15, %v14815_v41  ;;  %3744 = vrot.lane.b32.xlu1 %v11267_v56, %s7535_s16  ;;  %14824 = vst [vmem:[#allocation71_spill] sm:$0xff] %v11281_v50  ;;  %v3700_v15 = vsel %vm711_vm4, %v11152_v6, %v11172_v29  ;;  %v11292_v4 = vmul.f32 %v3643_v53, %v14816_v12  ;;  %v14826_v41 = vld [vmem:[#allocation25_spill] sm:$0xff]  ;;  %v11363_v10 = vpop.permute.xlu1 %3820 }
 0x8db   : > { %v11301_v54 = vmul.f32 %v3700_v15, %v14825_v39  ;;  %v3708_v53 = vsel %vm711_vm4, %v11172_v29, %v11152_v6  ;;  %v11312_v12 = vmul.f32 %v3701_v28, %v14825_v39  ;;  %v3709_v15 = vsel %vm711_vm4, %v11181_v31, %v11154_v21 }
 0x8dc   : > { %3746 = vrot.lane.b32.xlu0 %v11274_v51, %s7535_s16  ;;  %v11285_v59 = vpop.permute.xlu0 %3822  ;;  %v11321_v19 = vmul.f32 %v3708_v53, %v14826_v41  ;;  %v3702_v29 = vsel %vm711_vm4, %v11192_v11, %v11208_v17  ;;  %v11332_v6 = vmul.f32 %v3709_v15, %v14826_v41  ;;  %v3703_v31 = vsel %vm711_vm4, %v11194_v63, %v11217_v24 }
 0x8dd   : > { %v11341_v21 = vmul.f32 %v3702_v29, %v14825_v39  ;;  %v3710_v53 = vsel %vm711_vm4, %v11208_v17, %v11192_v11  ;;  %v11352_v15 = vmul.f32 %v3703_v31, %v14825_v39  ;;  %v3711_v29 = vsel %vm711_vm4, %v11217_v24, %v11194_v63 }
 0x8de   : > { %3760 = vrot.lane.b32.xlu1 %v11281_v50, %s7535_s16  ;;  %v11361_v16 = vmul.f32 %v3710_v53, %v14826_v41  ;;  %v3704_v11 = vsel %vm711_vm4, %v11228_v48, %v3693_v43  ;;  %v11373_v31 = vmul.f32 %v3711_v29, %v14826_v41  ;;  %v3705_v24 = vsel %vm711_vm4, %v11230_v0, %v3695_v22 }
 0x8df   : > { %v11381_v63 = vmul.f32 %v3704_v11, %v14825_v39  ;;  %v3712_v29 = vsel %vm711_vm4, %v3693_v43, %v11228_v48  ;;  %v11391_v30 = vmul.f32 %v3705_v24, %v14825_v39  ;;  %v3713_v11 = vsel %vm711_vm4, %v3695_v22, %v11230_v0 }
 0x8e0   : > { %3762 = vrot.lane.b32.xlu0 %v11292_v4, %s7535_s16  ;;  %v11305_v33 = vpop.permute.xlu0 %3810  ;;  %v11407_v48 = vmul.f32 %v3713_v11, %v14826_v41 }
 0x8e1   : > { %14830 = vst [vmem:[#allocation81_spill] sm:$0xff] %v11381_v63 }
 0x8e2   : > { %3876 = vrot.lane.b32.xlu1 %v11301_v54, %s7535_s16 }
 0x8e4   : > { %3878 = vrot.lane.b32.xlu0 %v11312_v12, %s7535_s16  ;;  %v11325_v3 = vpop.permute.xlu0 %3826 }
 0x8e5   : > { %14827 = vst [vmem:[#allocation75_spill] sm:$0xff] %v11325_v3 }
 0x8e6   : > { %3892 = vrot.lane.b32.xlu1 %v11321_v19, %s7535_s16 }
 0x8e8   : > { %3894 = vrot.lane.b32.xlu0 %v11332_v6, %s7535_s16  ;;  %v11345_v28 = vpop.permute.xlu0 %3814 }
 0x8e9   : > { %14828 = vst [vmem:[#allocation74_spill] sm:$0xff] %v11345_v28  ;;  %v11399_v28 = vmul.f32 %v3712_v29, %v14826_v41 }
 0x8ea   : > { %3880 = vrot.lane.b32.xlu1 %v11341_v21, %s7535_s16 }
 0x8ec   : > { %3882 = vrot.lane.b32.xlu0 %v11352_v15, %s7535_s16  ;;  %v11367_v17 = vpop.permute.xlu0 %3830 }
 0x8ed   : > { %14829 = vst [vmem:[#allocation79_spill] sm:$0xff] %v11367_v17  ;;  %v3697_v17 = vpop.permute.xlu1 %3696 }
 0x8ee   : > { %3896 = vrot.lane.b32.xlu1 %v11361_v16, %s7535_s16  ;;  %v3706_v43 = vsel %vm711_vm4, %v11260_v27, %v3697_v17  ;;  %v3714_v24 = vsel %vm711_vm4, %v3697_v17, %v11260_v27 }
 0x8ef   : > { %v11415_v0 = vmul.f32 %v3706_v43, %v14825_v39  ;;  %v11433_v3 = vmul.f32 %v3714_v24, %v14826_v41 }
 0x8f0   : > { %3898 = vrot.lane.b32.xlu0 %v11373_v31, %s7535_s16  ;;  %v11385_v53 = vpop.permute.xlu0 %3818 }
 0x8f1   : > { %14831 = vst [vmem:[#allocation82_spill] sm:$0xff] %v11385_v53  ;;  %v11422_v29 = vpop.permute.xlu1 %3808 }
 0x8f2   : > { %3884 = vrot.lane.b32.xlu1 %v11381_v63, %s7535_s16 }
 0x8f4   : > { %3886 = vrot.lane.b32.xlu0 %v11391_v30, %s7535_s16  ;;  %v3699_v53 = vpop.permute.xlu0 %3698 }
 0x8f5   : > { %v3707_v22 = vsel %vm711_vm4, %v11262_v34, %v3699_v53  ;;  %v3715_v43 = vsel %vm711_vm4, %v3699_v53, %v11262_v34  ;;  %v11442_v17 = vpop.permute.xlu1 %3824 }
 0x8f6   : > { %3900 = vrot.lane.b32.xlu1 %v11399_v28, %s7535_s16  ;;  %v11425_v11 = vmul.f32 %v3707_v22, %v14825_v39  ;;  %v11438_v27 = vmul.f32 %v3715_v43, %v14826_v41 }
 0x8f8   : > { %3902 = vrot.lane.b32.xlu0 %v11407_v48, %s7535_s16  ;;  %v11478_v43 = vpop.permute.xlu0 %3834 }
 0x8f9   : > { %v11450_v34 = vpop.permute.xlu1 %3812 }
 0x8fa   : > { %3888 = vrot.lane.b32.xlu1 %v11415_v0, %s7535_s16 }
 0x8fc   : > { %3890 = vrot.lane.b32.xlu0 %v11425_v11, %s7535_s16 }
 0x8fd   : > { %v11458_v53 = vpop.permute.xlu1 %3828 }
 0x8fe   : > { %3904 = vrot.lane.b32.xlu1 %v11433_v3, %s7535_s16 }
 0x900   : > { %3906 = vrot.lane.b32.xlu0 %v11438_v27, %s7535_s16 }
 0x901   : > { %v11466_v22 = vpop.permute.xlu1 %3816 }
 0x902   : > { %3972 = vrot.lane.b32.xlu1 %v11163_v35, %s7537_s11 }
 0x904   : > { %3974 = vrot.lane.b32.xlu0 %v11170_v1, %s7537_s11 }
 0x905   : > { %v11474_v24 = vpop.permute.xlu1 %3832 }
 0x906   : > { %3988 = vrot.lane.b32.xlu1 %v11179_v62, %s7537_s11 }
 0x908   : > { %3990 = vrot.lane.b32.xlu0 %v11186_v23, %s7537_s11 }
 0x90a   : > { %3976 = vrot.lane.b32.xlu1 %v11199_v5, %s7537_s11 }
 0x90c   : > { %3978 = vrot.lane.b32.xlu0 %v11206_v26, %s7537_s11 }
 0x90e   : > { %3992 = vrot.lane.b32.xlu1 %v11215_v57, %s7537_s11 }
 0x910   : > { %3994 = vrot.lane.b32.xlu0 %v11222_v38, %s7537_s11 }
 0x912   : > { %3980 = vrot.lane.b32.xlu1 %v11235_v20, %s7537_s11 }
 0x914   : > { %3982 = vrot.lane.b32.xlu0 %v11242_v13, %s7537_s11 }
 0x916   : > { %3996 = vrot.lane.b32.xlu1 %v11249_v44, %s7537_s11 }
 0x918   : > { %3998 = vrot.lane.b32.xlu0 %v11254_v40, %s7537_s11 }
 0x91a   : > { %3984 = vrot.lane.b32.xlu1 %v11267_v56, %s7537_s11 }
 0x91c   : > { %v3733_v41 = vpop.permute.xlu1 %3732  ;;  %4046 = vrot.lane.b32.xlu0 %v10998_v37, %s7537_s11 }
 0x91e   : > { %4000 = vrot.lane.b32.xlu1 %v11281_v50, %s7537_s11  ;;  %v3735_v39 = vpop.permute.xlu0 %3734 }
 0x920   : > { %v3749_v13 = vpop.permute.xlu1 %3748  ;;  %4062 = vrot.lane.b32.xlu0 %v11019_v36, %s7537_s11 }
 0x921   : > { %v3772_v20 = vsel %vm776_vm7, %v3749_v13, %v3733_v41  ;;  %v3764_v56 = vsel %vm776_vm7, %v3733_v41, %v3749_v13 }
 0x922   : > { %4044 = vrot.lane.b32.xlu1 %v10995_v60, %s7537_s11  ;;  %v3751_v40 = vpop.permute.xlu0 %3750  ;;  %v3780_v44 = vmul.f32 %v3772_v20, %v8313_v9 }
 0x923   : > { %v3765_v37 = vsel %vm776_vm7, %v3735_v39, %v3751_v40  ;;  %v3773_v50 = vsel %vm776_vm7, %v3751_v40, %v3735_v39 }
 0x924   : > { %v3782_v36 = vmul.f32 %v3773_v50, %v8313_v9  ;;  %4050 = vrot.lane.b32.xlu0 %v11035_v8, %s7537_s11  ;;  %v3797_v26 = vpack.c.bf16 %v3765_v37, %v3764_v56 }
 0x926   : > { %v3796_v5 = vpack.c.bf16 %v3782_v36, %v3780_v44  ;;  %4060 = vrot.lane.b32.xlu1 %v11014_v25, %s7537_s11  ;;  %4188 = vmatprep.subr.bf16.mxu1 %v3797_v26 }
 0x928   : > { %4066 = vrot.lane.b32.xlu0 %v11051_v58, %s7537_s11  ;;  %4189 = vmatpush1.bf16.msra.mxu1 %v3796_v5 }
 0x92a   : > { %4048 = vrot.lane.b32.xlu1 %v11030_v49, %s7537_s11 }
 0x92c   : > { %v3737_v13 = vpop.permute.xlu1 %3736  ;;  %3986 = vrot.lane.b32.xlu0 %v11274_v51, %s7537_s11 }
 0x92e   : > { %4064 = vrot.lane.b32.xlu1 %v11046_v14, %s7537_s11  ;;  %v3739_v56 = vpop.permute.xlu0 %3738 }
 0x930   : > { %v3753_v50 = vpop.permute.xlu1 %3752  ;;  %4002 = vrot.lane.b32.xlu0 %v11292_v4, %s7537_s11 }
 0x931   : > { %v3774_v20 = vsel %vm776_vm7, %v3753_v50, %v3737_v13  ;;  %v3766_v36 = vsel %vm776_vm7, %v3737_v13, %v3753_v50 }
 0x932   : > { %4052 = vrot.lane.b32.xlu1 %v11062_v45, %s7537_s11  ;;  %v3755_v37 = vpop.permute.xlu0 %3754  ;;  %v3784_v41 = vmul.f32 %v3774_v20, %v8313_v9 }
 0x933   : > { %v3767_v26 = vsel %vm776_vm7, %v3739_v56, %v3755_v37  ;;  %v3775_v5 = vsel %vm776_vm7, %v3755_v37, %v3739_v56 }
 0x934   : > { %v3786_v44 = vmul.f32 %v3775_v5, %v8313_v9  ;;  %4054 = vrot.lane.b32.xlu0 %v11067_v32, %s7537_s11  ;;  %v3799_v40 = vpack.c.bf16 %v3767_v26, %v3766_v36 }
 0x936   : > { %v3798_v39 = vpack.c.bf16 %v3786_v44, %v3784_v41  ;;  %4068 = vrot.lane.b32.xlu1 %v11078_v52, %s7537_s11  ;;  %4190 = vmatprep.subr.bf16.mxu1 %v3799_v40 }
 0x938   : > { %4070 = vrot.lane.b32.xlu0 %v11083_v47, %s7537_s11  ;;  %4191 = vmatpush1.bf16.msra.mxu1 %v3798_v39 }
 0x93a   : > { %4056 = vrot.lane.b32.xlu1 %v11094_v2, %s7537_s11 }
 0x93c   : > { %v3741_v13 = vpop.permute.xlu1 %3740  ;;  %4058 = vrot.lane.b32.xlu0 %v11099_v7, %s7537_s11 }
 0x93e   : > { %4072 = vrot.lane.b32.xlu1 %v11110_v46, %s7537_s11  ;;  %v3743_v56 = vpop.permute.xlu0 %3742 }
 0x940   : > { %v3757_v50 = vpop.permute.xlu1 %3756  ;;  %4074 = vrot.lane.b32.xlu0 %v11114_v55, %s7537_s11 }
 0x941   : > { %v3776_v20 = vsel %vm776_vm7, %v3757_v50, %v3741_v13  ;;  %v3768_v36 = vsel %vm776_vm7, %v3741_v13, %v3757_v50 }
 0x942   : > { %4116 = vrot.lane.b32.xlu1 %v11301_v54, %s7537_s11  ;;  %v3759_v37 = vpop.permute.xlu0 %3758  ;;  %v3788_v41 = vmul.f32 %v3776_v20, %v8313_v9 }
 0x943   : > { %v3769_v26 = vsel %vm776_vm7, %v3743_v56, %v3759_v37  ;;  %v3777_v5 = vsel %vm776_vm7, %v3759_v37, %v3743_v56 }
 0x944   : > { %v3790_v44 = vmul.f32 %v3777_v5, %v8313_v9  ;;  %4118 = vrot.lane.b32.xlu0 %v11312_v12, %s7537_s11  ;;  %v3801_v40 = vpack.c.bf16 %v3769_v26, %v3768_v36  ;;  %v3845_v36 = vsel %vm776_vm7, %v11285_v59, %v11158_v42 }
 0x946   : > { %v3800_v39 = vpack.c.bf16 %v3790_v44, %v3788_v41  ;;  %4132 = vrot.lane.b32.xlu1 %v11321_v19, %s7537_s11  ;;  %4192 = vmatprep.subr.bf16.mxu1 %v3801_v40  ;;  %v3837_v44 = vsel %vm776_vm7, %v11158_v42, %v11285_v59  ;;  %v3854_v42 = vmul.f32 %v3845_v36, %v8313_v9  ;;  %v14832_v36 = vld [vmem:[#allocation75_spill] sm:$0xff] }
 0x948   : > { %4134 = vrot.lane.b32.xlu0 %v11332_v6, %s7537_s11  ;;  %4193 = vmatpush1.bf16.msra.mxu1 %v3800_v39 }
 0x94a   : > { %4120 = vrot.lane.b32.xlu1 %v11341_v21, %s7537_s11 }
 0x94c   : > { %v3745_v13 = vpop.permute.xlu1 %3744  ;;  %4122 = vrot.lane.b32.xlu0 %v11352_v15, %s7537_s11 }
 0x94e   : > { %4136 = vrot.lane.b32.xlu1 %v11361_v16, %s7537_s11  ;;  %v3747_v56 = vpop.permute.xlu0 %3746 }
 0x950   : > { %v3761_v50 = vpop.permute.xlu1 %3760  ;;  %4138 = vrot.lane.b32.xlu0 %v11373_v31, %s7537_s11 }
 0x951   : > { %v3778_v20 = vsel %vm776_vm7, %v3761_v50, %v3745_v13  ;;  %v3770_v26 = vsel %vm776_vm7, %v3745_v13, %v3761_v50  ;;  %v3844_v50 = vsel %vm776_vm7, %v11363_v10, %v11156_v61 }
 0x952   : > { %4124 = vrot.lane.b32.xlu1 %v11381_v63, %s7537_s11  ;;  %v3763_v37 = vpop.permute.xlu0 %3762  ;;  %v3792_v40 = vmul.f32 %v3778_v20, %v8313_v9 }
 0x953   : > { %v3771_v5 = vsel %vm776_vm7, %v3747_v56, %v3763_v37  ;;  %v3779_v41 = vsel %vm776_vm7, %v3763_v37, %v3747_v56  ;;  %v3836_v56 = vsel %vm776_vm7, %v11156_v61, %v11363_v10  ;;  %v3846_v37 = vsel %vm776_vm7, %v11442_v17, %v11422_v29 }
 0x954   : > { %v3794_v39 = vmul.f32 %v3779_v41, %v8313_v9  ;;  %v3877_v63 = vpop.permute.xlu1 %3876  ;;  %4126 = vrot.lane.b32.xlu0 %v11391_v30, %s7537_s11  ;;  %v3803_v13 = vpack.c.bf16 %v3771_v5, %v3770_v26  ;;  %v3869_v26 = vpack.c.bf16 %v3837_v44, %v3836_v56  ;;  %v3852_v5 = vmul.f32 %v3844_v50, %v8313_v9 }
 0x955   : > { %v3838_v10 = vsel %vm776_vm7, %v11422_v29, %v11442_v17  ;;  %v3847_v41 = vsel %vm776_vm7, %v14832_v36, %v11305_v33  ;;  %v3839_v44 = vsel %vm776_vm7, %v11305_v33, %v14832_v36  ;;  %v3848_v17 = vsel %vm776_vm7, %v11458_v53, %v11450_v34 }
 0x956   : > { %v3802_v59 = vpack.c.bf16 %v3794_v39, %v3792_v40  ;;  %4140 = vrot.lane.b32.xlu1 %v11399_v28, %s7537_s11  ;;  %4194 = vmatprep.subr.bf16.mxu1 %v3803_v13  ;;  %v3879_v20 = vpop.permute.xlu0 %3878  ;;  %v3868_v40 = vpack.c.bf16 %v3854_v42, %v3852_v5  ;;  %v3856_v39 = vmul.f32 %v3846_v37, %v8313_v9  ;;  %v14833_v42 = vld [vmem:[#allocation74_spill] sm:$0xff] }
 0x957   : > { %v3871_v13 = vpack.c.bf16 %v3839_v44, %v3838_v10  ;;  %v3858_v50 = vmul.f32 %v3847_v41, %v8313_v9  ;;  %v3840_v56 = vsel %vm776_vm7, %v11450_v34, %v11458_v53  ;;  %v3860_v10 = vmul.f32 %v3848_v17, %v8313_v9  ;;  %v14835_v53 = vld [vmem:[#allocation82_spill] sm:$0xff] }
 0x958   : > { %v3893_v61 = vpop.permute.xlu1 %3892  ;;  %4142 = vrot.lane.b32.xlu0 %v11407_v48, %s7537_s11  ;;  %4195 = vmatpush1.bf16.msra.mxu1 %v3802_v59  ;;  %v14834_v59 = vld [vmem:[#allocation79_spill] sm:$0xff]  ;;  %v3851_v36 = vsel %vm776_vm7, %v11478_v43, %v14835_v53  ;;  %v3843_v44 = vsel %vm776_vm7, %v14835_v53, %v11478_v43  ;;  %v3850_v17 = vsel %vm776_vm7, %v11474_v24, %v11466_v22 }
 0x959   : > { %4196 = vmatprep.subr.bf16.mxu1 %v3869_v26  ;;  %v3849_v37 = vsel %vm776_vm7, %v14834_v59, %v14833_v42  ;;  %v3870_v26 = vpack.c.bf16 %v3858_v50, %v3856_v39  ;;  %v3841_v5 = vsel %vm776_vm7, %v14833_v42, %v14834_v59  ;;  %v3842_v50 = vsel %vm776_vm7, %v11466_v22, %v11474_v24 }
 0x95a   : > { %4128 = vrot.lane.b32.xlu1 %v11415_v0, %s7537_s11  ;;  %v3895_v29 = vpop.permute.xlu0 %3894  ;;  %v3873_v41 = vpack.c.bf16 %v3841_v5, %v3840_v56  ;;  %v3866_v56 = vmul.f32 %v3851_v36, %v8313_v9  ;;  %v3875_v59 = vpack.c.bf16 %v3843_v44, %v3842_v50  ;;  %v3908_v22 = vsel %vm776_vm7, %v3877_v63, %v3893_v61 }
 0x95b   : > { %v3917_v42 = vsel %vm776_vm7, %v3895_v29, %v3879_v20 }
 0x95c   : > { %v3881_v33 = vpop.permute.xlu1 %3880  ;;  %4130 = vrot.lane.b32.xlu0 %v11425_v11, %s7537_s11  ;;  %4197 = vmatpush1.bf16.msra.mxu1 %v3868_v40  ;;  %v3862_v40 = vmul.f32 %v3849_v37, %v8313_v9  ;;  %v3864_v37 = vmul.f32 %v3850_v17, %v8313_v9  ;;  %v3926_v24 = vmul.f32 %v3917_v42, %v8313_v9 }
 0x95d   : > { %4198 = vmatprep.subr.bf16.mxu1 %v3871_v13 }
 0x95e   : > { %4144 = vrot.lane.b32.xlu1 %v11433_v3, %s7537_s11  ;;  %v3883_v34 = vpop.permute.xlu0 %3882  ;;  %v3872_v13 = vpack.c.bf16 %v3862_v40, %v3860_v10  ;;  %v3916_v10 = vsel %vm776_vm7, %v3893_v61, %v3877_v63  ;;  %v3874_v53 = vpack.c.bf16 %v3866_v56, %v3864_v37 }
 0x95f   : > { %v3924_v44 = vmul.f32 %v3916_v10, %v8313_v9 }
 0x960   : > { %v3897_v39 = vpop.permute.xlu1 %3896  ;;  %4146 = vrot.lane.b32.xlu0 %v11438_v27, %s7537_s11  ;;  %4199 = vmatpush1.bf16.msra.mxu1 %v3870_v26  ;;  %v3909_v26 = vsel %vm776_vm7, %v3879_v20, %v3895_v29 }
 0x961   : > { %4200 = vmatprep.subr.bf16.mxu1 %v3873_v41  ;;  %v3941_v40 = vpack.c.bf16 %v3909_v26, %v3908_v22  ;;  %v3918_v17 = vsel %vm776_vm7, %v3897_v39, %v3881_v33  ;;  %v3910_v63 = vsel %vm776_vm7, %v3881_v33, %v3897_v39 }
 0x962   : > { %v3899_v43 = vpop.permute.xlu0 %3898 }
 0x963   : > { %v3919_v41 = vsel %vm776_vm7, %v3899_v43, %v3883_v34  ;;  %v3911_v20 = vsel %vm776_vm7, %v3883_v34, %v3899_v43 }
 0x964   : > { %v3885_v5 = vpop.permute.xlu1 %3884  ;;  %4201 = vmatpush1.bf16.msra.mxu1 %v3872_v13  ;;  %v3940_v13 = vpack.c.bf16 %v3926_v24, %v3924_v44  ;;  %v3930_v61 = vmul.f32 %v3919_v41, %v8313_v9  ;;  %v3943_v42 = vpack.c.bf16 %v3911_v20, %v3910_v63 }
 0x965   : > { %4202 = vmatprep.subr.bf16.mxu1 %v3875_v59  ;;  %v3928_v59 = vmul.f32 %v3918_v17, %v8313_v9 }
 0x966   : > { %v3887_v36 = vpop.permute.xlu0 %3886 }
 0x967   : > { %v3942_v26 = vpack.c.bf16 %v3930_v61, %v3928_v59 }
 0x968   : > { %v3901_v29 = vpop.permute.xlu1 %3900  ;;  %4203 = vmatpush1.bf16.msra.mxu1 %v3874_v53 }
 0x969   : > { %4204 = vmatprep.subr.bf16.mxu1 %v3941_v40  ;;  %v3920_v37 = vsel %vm776_vm7, %v3901_v29, %v3885_v5  ;;  %v3912_v33 = vsel %vm776_vm7, %v3885_v5, %v3901_v29 }
 0x96a   : > { %v3903_v50 = vpop.permute.xlu0 %3902  ;;  %v3932_v22 = vmul.f32 %v3920_v37, %v8313_v9 }
 0x96b   : > { %v3921_v56 = vsel %vm776_vm7, %v3903_v50, %v3887_v36  ;;  %v3913_v34 = vsel %vm776_vm7, %v3887_v36, %v3903_v50 }
 0x96c   : > { %v3889_v43 = vpop.permute.xlu1 %3888  ;;  %4205 = vmatpush1.bf16.msra.mxu1 %v3940_v13  ;;  %v3934_v39 = vmul.f32 %v3921_v56, %v8313_v9  ;;  %v3945_v53 = vpack.c.bf16 %v3913_v34, %v3912_v33  ;;  %v3949_v56 = vpack.c.bf16 %v11186_v23, %v11179_v62  ;;  %v3948_v34 = vpack.c.bf16 %v11170_v1, %v11163_v35  ;;  %v14836_v33 = vld [vmem:[#allocation78_spill] sm:$0xff]  ;;  %v14837_v62 = vld [vmem:[#allocation80_spill] sm:$0xff] }
 0x96d   : > { %4206 = vmatprep.subr.bf16.mxu1 %v3943_v42  ;;  %v3950_v23 = vpack.c.bf16 %v14837_v62, %v14836_v33  ;;  %v14840_v35 = vld [vmem:[#allocation68_spill] sm:$0xff]  ;;  %v3958_v33 = vpack.c.bf16 %v11035_v8, %v11030_v49  ;;  %v3961_v62 = vpack.c.bf16 %v11083_v47, %v11078_v52  ;;  %v3962_v52 = vpack.c.bf16 %v11099_v7, %v11094_v2  ;;  %v7299_v2 = vld [vmem:[#allocation8 + $0x7c] ss:$20 sps:$4 sm:$0xff]  }
 0x96e   : > { %v3891_v10 = vpop.permute.xlu0 %3890  ;;  %v3944_v41 = vpack.c.bf16 %v3934_v39, %v3932_v22  ;;  %v14838_v39 = vld [vmem:[#allocation72_spill] sm:$0xff]  ;;  %v3965_v47 = vpack.c.bf16 %v11332_v6, %v11321_v19  ;;  %v3966_v7 = vpack.c.bf16 %v11352_v15, %v11341_v21  ;;  %v3969_v6 = vpack.c.bf16 %v11407_v48, %v11399_v28 }
 0x96f   : > { %v7297_v49 = vld [vmem:[#allocation8 + $0x54] ss:$20 sps:$4 sm:$0xff]   ;;  %v3971_v48 = vpack.c.bf16 %v11438_v27, %v11433_v3  ;;  %v3970_v27 = vpack.c.bf16 %v11425_v11, %v11415_v0 }
 0x970   : > { %v3905_v24 = vpop.permute.xlu1 %3904  ;;  %4207 = vmatpush1.bf16.msra.mxu1 %v3942_v26  ;;  %v14847_v15 = vld [vmem:[#allocation20_spill] sm:$0xff] }
 0x971   : > { %v3922_v36 = vsel %vm776_vm7, %v3905_v24, %v3889_v43  ;;  %4208 = vmatprep.subr.bf16.mxu1 %v3945_v53  ;;  %v3914_v44 = vsel %vm776_vm7, %v3889_v43, %v3905_v24  ;;  %v3951_v43 = vpack.c.bf16 %v11222_v38, %v11215_v57  ;;  %v14841_v57 = vld [vmem:[#allocation69_spill] sm:$0xff]  ;;  %v14842_v24 = vld [vmem:[#allocation71_spill] sm:$0xff] }
 0x972   : > { %v3907_v40 = vpop.permute.xlu0 %3906  ;;  %v3936_v29 = vmul.f32 %v3922_v36, %v8313_v9  ;;  %v3952_v38 = vpack.c.bf16 %v14841_v57, %v14840_v35  ;;  %v3955_v36 = vpack.c.bf16 %v11292_v4, %v14842_v24  ;;  %v14845_v4 = vld [vmem:[#allocation76_spill] sm:$0xff]  ;;  %v14846_v57 = vld [vmem:[#allocation81_spill] sm:$0xff] }
 0x973   : > { %v3915_v5 = vsel %vm776_vm7, %v3891_v10, %v3907_v40  ;;  %v3923_v20 = vsel %vm776_vm7, %v3907_v40, %v3891_v10  ;;  %v14839_v10 = vld [vmem:[#allocation73_spill] sm:$0xff]  ;;  %v3968_v21 = vpack.c.bf16 %v11391_v30, %v14846_v57 }
 0x974   : > { %v3938_v17 = vmul.f32 %v3923_v20, %v8313_v9  ;;  %v11704_v13 = vpop.permute.xlu1 %3972  ;;  %4209 = vmatpush1.bf16.msra.mxu1 %v3944_v41  ;;  %v3947_v63 = vpack.c.bf16 %v3915_v5, %v3914_v44  ;;  %v3953_v53 = vpack.c.bf16 %v14839_v10, %v14838_v39  ;;  %v14843_v44 = vld [vmem:[#allocation70_spill] sm:$0xff]  ;;  %v14844_v20 = vld [vmem:[#allocation77_spill] sm:$0xff] }
 0x975   : > { %v3954_v5 = vpack.c.bf16 %v11274_v51, %v14843_v44  ;;  %v7295_v51 = vld [vmem:[#allocation8 + $0x2c] ss:$20 sps:$4 sm:$0xff]   ;;  %v7296_v39 = vld [vmem:[#allocation8 + $0x28] ss:$20 sps:$4 sm:$0xff]  }
 0x976   : > { %v3946_v61 = vpack.c.bf16 %v3938_v17, %v3936_v29  ;;  %4210 = vmatprep.subr.bf16.mxu1 %v3947_v63  ;;  %v11706_v50 = vpop.permute.xlu0 %3974  ;;  %v3957_v29 = vpack.c.bf16 %v14844_v20, %v11014_v25  ;;  %v7301_v44 = vld [vmem:[#allocation8 + $0xc] ss:$20 sps:$4 sm:$0xff]  }
 0x978   : > { %v11710_v42 = vpop.permute.xlu1 %3988  ;;  %4211 = vmatpush1.bf16.msra.mxu1 %v3946_v61  ;;  %v3956_v61 = vpack.c.bf16 %v14845_v4, %v10995_v60 }
 0x979   : > { %4212 = vmatprep.subr.bf16.mxu1 %v3949_v56  ;;  %v7294_v56 = vld [vmem:[#allocation8] ss:$20 sps:$4 sm:$0xff]   ;;  %v4004_v0 = vsel %vm1017_vm8, %v11704_v13, %v11710_v42 }
 0x97a   : > { %v11712_v59 = vpop.permute.xlu0 %3990 }
 0x97b   : > { %v4005_v20 = vsel %vm1017_vm8, %v11706_v50, %v11712_v59 }
 0x97c   : > { %v11718_v37 = vpop.permute.xlu1 %3976  ;;  %4213 = vmatpush1.bf16.msra.mxu1 %v3948_v34  ;;  %v3959_v34 = vpack.c.bf16 %v11051_v58, %v11046_v14  ;;  %v3960_v14 = vpack.c.bf16 %v11067_v32, %v11062_v45  ;;  %v3963_v58 = vpack.c.bf16 %v11114_v55, %v11110_v46  ;;  %v3964_v46 = vpack.c.bf16 %v11312_v12, %v11301_v54 }
 0x97d   : > { %4214 = vmatprep.subr.bf16.mxu1 %v3951_v43  ;;  %v3967_v55 = vpack.c.bf16 %v11373_v31, %v11361_v16  ;;  %v4013_v16 = vsel %vm1017_vm8, %v11712_v59, %v11706_v50  ;;  %v4012_v54 = vsel %vm1017_vm8, %v11710_v42, %v11704_v13  ;;  %v4036_v50 = vpack.c.bf16 %v4005_v20, %v4004_v0 }
 0x97e   : > { %v11720_v26 = vpop.permute.xlu0 %3978  ;;  %v4023_v28 = vmul.f32 %v4013_v16, %v14847_v15 }
 0x980   : > { %v11726_v22 = vpop.permute.xlu1 %3992  ;;  %4215 = vmatpush1.bf16.msra.mxu1 %v3950_v23 }
 0x981   : > { %4216 = vmatprep.subr.bf16.mxu1 %v3953_v53  ;;  %v7298_v53 = vld [vmem:[#allocation8 + $0x50] ss:$20 sps:$4 sm:$0xff]   ;;  %v4014_v3 = vsel %vm1017_vm8, %v11726_v22, %v11718_v37 }
 0x982   : > { %v11728_v1 = vpop.permute.xlu0 %3994  ;;  %v4025_v11 = vmul.f32 %v4014_v3, %v14847_v15 }
 0x983   : > { %v4015_v24 = vsel %vm1017_vm8, %v11728_v1, %v11720_v26 }
 0x984   : > { %v11734_v41 = vpop.permute.xlu1 %3980  ;;  %4217 = vmatpush1.bf16.msra.mxu1 %v3952_v38  ;;  %v7300_v38 = vld [vmem:[#allocation8 + $0x78] ss:$20 sps:$4 sm:$0xff]  }
 0x985   : > { %4218 = vmatprep.subr.bf16.mxu1 %v3955_v36 }
 0x986   : > { %v11736_v40 = vpop.permute.xlu0 %3982 }
 0x988   : > { %v11742_v17 = vpop.permute.xlu1 %3996  ;;  %4219 = vmatpush1.bf16.msra.mxu1 %v3954_v5  ;;  %v4021_v5 = vmul.f32 %v4012_v54, %v14847_v15 }
 0x989   : > { %4261 = vmatprep.subr.bf16.mxu1 %v3957_v29  ;;  %v4027_v29 = vmul.f32 %v4015_v24, %v14847_v15  ;;  %v4016_v59 = vsel %vm1017_vm8, %v11742_v17, %v11734_v41 }
 0x98a   : > { %v11744_v63 = vpop.permute.xlu0 %3998  ;;  %v4037_v4 = vpack.c.bf16 %v4023_v28, %v4021_v5 }
 0x98b   : > { %4221 = vmatmul.mubr.bf16.vlgmr.msra.gmra.mrb[16].mxu1 %v7294_v56 }
 0x98c   : > { %v11750_v43 = vpop.permute.xlu1 %3984  ;;  %4262 = vmatpush1.bf16.msra.mxu1 %v3956_v61  ;;  %4230 = vmatprep.mubr.bf16.mxu1 %v7295_v51  ;;  %v4017_v61 = vsel %vm1017_vm8, %v11744_v63, %v11736_v40  ;;  %v4007_v51 = vsel %vm1017_vm8, %v11720_v26, %v11728_v1 }
 0x98d   : > { %4263 = vmatprep.subr.bf16.mxu1 %v3959_v34 }
 0x98e   : > { %v11752_v25 = vpop.permute.xlu0 %4046 }
 0x990   : > { %v11758_v60 = vpop.permute.xlu1 %4000  ;;  %4264 = vmatpush1.bf16.msra.mxu1 %v3958_v33  ;;  %v4031_v33 = vmul.f32 %v4017_v61, %v14847_v15 }
 0x991   : > { %4265 = vmatprep.subr.bf16.mxu1 %v3961_v62  ;;  %v4039_v62 = vpack.c.bf16 %v4027_v29, %v4025_v11  ;;  %v4018_v26 = vsel %vm1017_vm8, %v11758_v60, %v11750_v43  ;;  %v4010_v16 = vsel %vm1017_vm8, %v11750_v43, %v11758_v60 }
 0x992   : > { %v11760_v23 = vpop.permute.xlu0 %4062 }
 0x993   : > { %4231 = vmatmul.mubr.bf16.gmra.mrb[20].mxu1 %v7296_v39 }
 0x994   : > { %v11766_v10 = vpop.permute.xlu1 %4044  ;;  %4266 = vmatpush1.bf16.msra.mxu1 %v3960_v14  ;;  %4240 = vmatprep.mubr.bf16.mxu1 %v7297_v49  ;;  %v4006_v14 = vsel %vm1017_vm8, %v11718_v37, %v11726_v22  ;;  %v4009_v49 = vsel %vm1017_vm8, %v11736_v40, %v11744_v63  ;;  %v4085_v63 = vsel %vm1017_vm8, %v11760_v23, %v11752_v25 }
 0x995   : > { %4267 = vmatprep.subr.bf16.mxu1 %v3963_v58  ;;  %v4029_v58 = vmul.f32 %v4016_v59, %v14847_v15  ;;  %v4038_v39 = vpack.c.bf16 %v4007_v51, %v4006_v14  ;;  %v4095_v54 = vmul.f32 %v4085_v63, %v14847_v15 }
 0x996   : > { %v11768_v8 = vpop.permute.xlu0 %4050 }
 0x998   : > { %v11774_v45 = vpop.permute.xlu1 %4060  ;;  %4268 = vmatpush1.bf16.msra.mxu1 %v3962_v52 }
 0x999   : > { %4269 = vmatprep.subr.bf16.mxu1 %v3965_v47  ;;  %v4041_v47 = vpack.c.bf16 %v4031_v33, %v4029_v58  ;;  %v4084_v37 = vsel %vm1017_vm8, %v11774_v45, %v11766_v10 }
 0x99a   : > { %v11776_v32 = vpop.permute.xlu0 %4066 }
 0x99b   : > { %4241 = vmatmul.mubr.bf16.gmra.mrb[24].mxu1 %v7298_v53  ;;  %v4079_v20 = vsel %vm1017_vm8, %v11768_v8, %v11776_v32 }
 0x99c   : > { %v11782_v35 = vpop.permute.xlu1 %4048  ;;  %4270 = vmatpush1.bf16.msra.mxu1 %v3964_v46  ;;  %4250 = vmatprep.mubr.bf16.mxu1 %v7299_v2  ;;  %v4008_v46 = vsel %vm1017_vm8, %v11734_v41, %v11742_v17  ;;  %v4093_v2 = vmul.f32 %v4084_v37, %v14847_v15 }
 0x99d   : > { %4271 = vmatprep.subr.bf16.mxu1 %v3967_v55  ;;  %v4033_v55 = vmul.f32 %v4018_v26, %v14847_v15  ;;  %v4040_v40 = vpack.c.bf16 %v4009_v49, %v4008_v46 }
 0x99e   : > { %v3987_v19 = vpop.permute.xlu0 %3986 }
 0x9a0   : > { %v11792_v12 = vpop.permute.xlu1 %4064  ;;  %4272 = vmatpush1.bf16.msra.mxu1 %v3966_v7 }
 0x9a1   : > { %4273 = vmatprep.subr.bf16.mxu1 %v3969_v6  ;;  %v4086_v41 = vsel %vm1017_vm8, %v11792_v12, %v11782_v35  ;;  %v4078_v5 = vsel %vm1017_vm8, %v11782_v35, %v11792_v12 }
 0x9a2   : > { %v4003_v31 = vpop.permute.xlu0 %4002  ;;  %v4097_v28 = vmul.f32 %v4086_v41, %v14847_v15 }
 0x9a3   : > { %4251 = vmatmul.mubr.bf16.gmra.mrb[28].mxu1 %v7300_v38  ;;  %v4019_v13 = vsel %vm1017_vm8, %v4003_v31, %v3987_v19  ;;  %v4011_v7 = vsel %vm1017_vm8, %v3987_v19, %v4003_v31  ;;  %v4087_v19 = vsel %vm1017_vm8, %v11776_v32, %v11768_v8  ;;  %v4077_v38 = vsel %vm1017_vm8, %v11752_v25, %v11760_v23 }
 0x9a4   : > { %v11807_v36 = vpop.permute.xlu1 %4052  ;;  %4274 = vmatpush1.bf16.msra.mxu1 %v3968_v21  ;;  %4293 = vmatprep.mubr.bf16.mxu1 %v7301_v44  ;;  %v4035_v52 = vmul.f32 %v4019_v13, %v14847_v15  ;;  %v4042_v31 = vpack.c.bf16 %v4011_v7, %v4010_v16  ;;  %v4076_v21 = vsel %vm1017_vm8, %v11766_v10, %v11774_v45  ;;  %v7303_v16 = vld [vmem:[#allocation8 + $0x34] ss:$20 sps:$4 sm:$0xff]  }
 0x9a5   : > { %4275 = vmatprep.subr.bf16.mxu1 %v3971_v48  ;;  %v4109_v48 = vpack.c.bf16 %v4095_v54, %v4093_v2  ;;  %v4099_v24 = vmul.f32 %v4087_v19, %v14847_v15  ;;  %v4108_v44 = vpack.c.bf16 %v4077_v38, %v4076_v21  ;;  %v7302_v2 = vld [vmem:[#allocation8 + $0x8] ss:$20 sps:$4 sm:$0xff]  }
 0x9a6   : > { %v11814_v30 = vpop.permute.xlu0 %4054  ;;  %v4043_v6 = vpack.c.bf16 %v4035_v52, %v4033_v55 }
 0x9a8   : > { %v11827_v56 = vpop.permute.xlu1 %4068  ;;  %4276 = vmatpush1.bf16.msra.mxu1 %v3970_v27  ;;  %v4111_v27 = vpack.c.bf16 %v4099_v24, %v4097_v28 }
 0x9a9   : > { %4277 = vmatprep.subr.bf16.mxu1 %v4037_v4  ;;  %v4088_v10 = vsel %vm1017_vm8, %v11827_v56, %v11807_v36  ;;  %v4110_v4 = vpack.c.bf16 %v4079_v20, %v4078_v5  ;;  %v7306_v20 = vld [vmem:[#allocation8 + $0x58] ss:$20 sps:$4 sm:$0xff]  }
 0x9aa   : > { %v4071_v34 = vpop.permute.xlu0 %4070  ;;  %v4101_v29 = vmul.f32 %v4088_v10, %v14847_v15 }
 0x9ab   : > { %v4089_v43 = vsel %vm1017_vm8, %v4071_v34, %v11814_v30  ;;  %v4081_v61 = vsel %vm1017_vm8, %v11814_v30, %v4071_v34 }
 0x9ac   : > { %v11845_v42 = vpop.permute.xlu1 %4056  ;;  %4278 = vmatpush1.bf16.msra.mxu1 %v4036_v50  ;;  %v4103_v3 = vmul.f32 %v4089_v43, %v14847_v15  ;;  %v4080_v50 = vsel %vm1017_vm8, %v11807_v36, %v11827_v56 }
 0x9ad   : > { %4279 = vmatprep.subr.bf16.mxu1 %v4039_v62  ;;  %v4112_v51 = vpack.c.bf16 %v4081_v61, %v4080_v50  ;;  %v7310_v61 = vld [vmem:[#allocation8 + $0x38] ss:$20 sps:$4 sm:$0xff]  }
 0x9ae   : > { %v4059_v1 = vpop.permute.xlu0 %4058  ;;  %v4113_v11 = vpack.c.bf16 %v4103_v3, %v4101_v29  ;;  %v7305_v3 = vld [vmem:[#allocation8 + $0x5c] ss:$20 sps:$4 sm:$0xff]   ;;  %v7307_v29 = vld [vmem:[#allocation8 + $0x84] ss:$20 sps:$4 sm:$0xff]  }
 0x9af   : > { %v14849_v50 = vld [vmem:[#allocation46_spill] sm:$0xff] }
 0x9b0   : > { %v11865_v22 = vpop.permute.xlu1 %4072  ;;  %4280 = vmatpush1.bf16.msra.mxu1 %v4038_v39 }
 0x9b1   : > { %4281 = vmatprep.subr.bf16.mxu1 %v4041_v47  ;;  %v4090_v35 = vsel %vm1017_vm8, %v11865_v22, %v11845_v42  ;;  %v4082_v36 = vsel %vm1017_vm8, %v11845_v42, %v11865_v22 }
 0x9b2   : > { %v4075_v53 = vpop.permute.xlu0 %4074  ;;  %v4105_v59 = vmul.f32 %v4090_v35, %v14847_v15  ;;  %v14848_v35 = vmov 0  }
 0x9b3   : > { %v4091_v25 = vsel %vm1017_vm8, %v4075_v53, %v4059_v1  ;;  %v4083_v33 = vsel %vm1017_vm8, %v4059_v1, %v4075_v53 }
 0x9b4   : > { %v4117_v17 = vpop.permute.xlu1 %4116  ;;  %4282 = vmatpush1.bf16.msra.mxu1 %v4040_v40  ;;  %v4107_v0 = vmul.f32 %v4091_v25, %v14847_v15  ;;  %v4114_v39 = vpack.c.bf16 %v4083_v33, %v4082_v36 }
 0x9b5   : > { %4283 = vmatprep.subr.bf16.mxu1 %v4043_v6 }
 0x9b6   : > { %v4119_v57 = vpop.permute.xlu0 %4118  ;;  %v4115_v13 = vpack.c.bf16 %v4107_v0, %v4105_v59  ;;  %v7311_v0 = vld [vmem:[#allocation8 + $0x60] ss:$20 sps:$4 sm:$0xff]  }
 0x9b8   : > { %v4133_v60 = vpop.permute.xlu1 %4132  ;;  %4284 = vmatpush1.bf16.msra.mxu1 %v4042_v31 }
 0x9b9   : > { %4285 = vmatprep.subr.bf16.mxu1 %v4109_v48  ;;  %v4156_v30 = vsel %vm1017_vm8, %v4133_v60, %v4117_v17  ;;  %v4148_v46 = vsel %vm1017_vm8, %v4117_v17, %v4133_v60 }
 0x9ba   : > { %v4135_v45 = vpop.permute.xlu0 %4134  ;;  %v4165_v56 = vmul.f32 %v4156_v30, %v14847_v15 }
 0x9bb   : > { %v4157_v8 = vsel %vm1017_vm8, %v4135_v45, %v4119_v57  ;;  %v4149_v49 = vsel %vm1017_vm8, %v4119_v57, %v4135_v45 }
 0x9bc   : > { %v4121_v23 = vpop.permute.xlu1 %4120  ;;  %4286 = vmatpush1.bf16.msra.mxu1 %v4108_v44  ;;  %v4167_v62 = vmul.f32 %v4157_v8, %v14847_v15  ;;  %v4180_v55 = vpack.c.bf16 %v4149_v49, %v4148_v46  ;;  %v7304_v44 = vld [vmem:[#allocation8 + $0x30] ss:$20 sps:$4 sm:$0xff]  }
 0x9bd   : > { %4287 = vmatprep.subr.bf16.mxu1 %v4111_v27  ;;  %v7313_v8 = vld [vmem:[#allocation8 + $0x4] ss:$20 sps:$4 sm:$0xff]  }
 0x9be   : > { %v4123_v12 = vpop.permute.xlu0 %4122  ;;  %v4181_v47 = vpack.c.bf16 %v4167_v62, %v4165_v56  ;;  %v14851_v62 = vld [vmem:[#allocation47_spill] sm:$0xff]  ;;  %v14854_v56 = vld [vmem:[#allocation50_spill] sm:$0xff] }
 0x9c0   : > { %v4137_v32 = vpop.permute.xlu1 %4136  ;;  %4288 = vmatpush1.bf16.msra.mxu1 %v4110_v4  ;;  %v7308_v4 = vld [vmem:[#allocation8 + $0x80] ss:$20 sps:$4 sm:$0xff]  }
 0x9c1   : > { %4289 = vmatprep.subr.bf16.mxu1 %v4113_v11  ;;  %v4158_v26 = vsel %vm1017_vm8, %v4137_v32, %v4121_v23  ;;  %v4150_v54 = vsel %vm1017_vm8, %v4121_v23, %v4137_v32  ;;  %v7312_v11 = vld [vmem:[#allocation8 + $0x88] ss:$20 sps:$4 sm:$0xff]  }
 0x9c2   : > { %v4139_v34 = vpop.permute.xlu0 %4138  ;;  %v4169_v42 = vmul.f32 %v4158_v26, %v14847_v15  ;;  %v14855_v26 = vld [vmem:[#allocation42_spill] sm:$0xff] }
 0x9c3   : > { %v4159_v14 = vsel %vm1017_vm8, %v4139_v34, %v4123_v12  ;;  %v4151_v63 = vsel %vm1017_vm8, %v4123_v12, %v4139_v34  ;;  %v7309_v12 = vld [vmem:[#allocation8 + $0x10] ss:$20 sps:$4 sm:$0xff]   ;;  %v14850_v34 = vld [vmem:[#allocation48_spill] sm:$0xff] }
 0x9c4   : > { %v4125_v58 = vpop.permute.xlu1 %4124  ;;  %4290 = vmatpush1.bf16.msra.mxu1 %v4112_v51  ;;  %v4171_v52 = vmul.f32 %v4159_v14, %v14847_v15  ;;  %v4182_v19 = vpack.c.bf16 %v4151_v63, %v4150_v54  ;;  %v14857_v63 = vld [vmem:[#allocation41_spill] sm:$0xff]  ;;  %v14862_v54 = vld [vmem:[#allocation40_spill] sm:$0xff] }
 0x9c5   : > { %4291 = vmatprep.subr.bf16.mxu1 %v4115_v13 }
 0x9c6   : > { %v4127_v1 = vpop.permute.xlu0 %4126  ;;  %v4183_v7 = vpack.c.bf16 %v4171_v52, %v4169_v42 }
 0x9c8   : > { %v4141_v37 = vpop.permute.xlu1 %4140  ;;  %4292 = vmatpush1.bf16.msra.mxu1 %v4114_v39 }
 0x9c9   : > { %v4160_v22 = vsel %vm1017_vm8, %v4141_v37, %v4125_v58  ;;  %4334 = vmatprep.subr.bf16.mxu1 %v4181_v47  ;;  %v4152_v48 = vsel %vm1017_vm8, %v4125_v58, %v4141_v37  ;;  %v14852_v58 = vld [vmem:[#allocation39_spill] sm:$0xff] }
 0x9ca   : > { %v4143_v40 = vpop.permute.xlu0 %4142  ;;  %v4173_v6 = vmul.f32 %v4160_v22, %v14847_v15 }
 0x9cb   : > { %v4161_v53 = vsel %vm1017_vm8, %v4143_v40, %v4127_v1  ;;  %4294 = vmatmul.mubr.bf16.vlgmr.msra.gmra.mrb[16].mxu1 %v7302_v2  ;;  %v4153_v21 = vsel %vm1017_vm8, %v4127_v1, %v4143_v40  ;;  %v14859_v2 = vld [vmem:[#allocation43_spill] sm:$0xff] }
 0x9cc   : > { %v4175_v41 = vmul.f32 %v4161_v53, %v14847_v15  ;;  %v4129_v17 = vpop.permute.xlu1 %4128  ;;  %4335 = vmatpush1.bf16.msra.mxu1 %v4180_v55  ;;  %4303 = vmatprep.mubr.bf16.mxu1 %v7303_v16  ;;  %v4184_v60 = vpack.c.bf16 %v4153_v21, %v4152_v48 }
 0x9cd   : > { %4336 = vmatprep.subr.bf16.mxu1 %v4183_v7 }
 0x9ce   : > { %v4131_v31 = vpop.permute.xlu0 %4130  ;;  %v4185_v57 = vpack.c.bf16 %v4175_v41, %v4173_v6 }
 0x9d0   : > { %v4145_v28 = vpop.permute.xlu1 %4144  ;;  %4337 = vmatpush1.bf16.msra.mxu1 %v4182_v19 }
 0x9d1   : > { %v4162_v43 = vsel %vm1017_vm8, %v4145_v28, %v4129_v17  ;;  %4338 = vmatprep.subr.bf16.mxu1 %v4185_v57  ;;  %v4154_v27 = vsel %vm1017_vm8, %v4129_v17, %v4145_v28  ;;  %v14860_v17 = vld [vmem:[#allocation45_spill] sm:$0xff]  ;;  %v14863_v57 = vld [vmem:[#allocation44_spill] sm:$0xff] }
 0x9d2   : > { %v4147_v38 = vpop.permute.xlu0 %4146  ;;  %v4177_v10 = vmul.f32 %v4162_v43, %v14847_v15  ;;  %v14864_v28 = vld [vmem:[#allocation28_spill] sm:$0xff] }
 0x9d3   : > { %v4163_v24 = vsel %vm1017_vm8, %v4147_v38, %v4131_v31  ;;  %4304 = vmatmul.mubr.bf16.gmra.mrb[20].mxu1 %v7304_v44  ;;  %v4155_v45 = vsel %vm1017_vm8, %v4131_v31, %v4147_v38 }
 0x9d4   : > { %v4179_v5 = vmul.f32 %v4163_v24, %v14847_v15  ;;  %4339 = vmatpush1.bf16.msra.mxu1 %v4184_v60  ;;  %4313 = vmatprep.mubr.bf16.mxu1 %v7305_v3  ;;  %v4186_v23 = vpack.c.bf16 %v4155_v45, %v4154_v27  ;;  %v14865_v60 = vld [vmem:[#allocation15_spill] sm:$0xff]  ;;  %v14867_v45 = vld [vmem:[#allocation17_spill] sm:$0xff] }
 0x9d6   : > { %v4187_v25 = vpack.c.bf16 %v4179_v5, %v4177_v10 }
 0x9d8   : > { %4340 = vmatprep.subr.bf16.mxu1 %v4187_v25 }
 0x9d9   : > { %4341 = vmatpush1.bf16.msra.mxu1 %v4186_v23 }
 0x9db   : > { %4314 = vmatmul.mubr.bf16.gmra.mrb[24].mxu1 %v7306_v20  ;;  %v14869_v20 = vld [vmem:[#allocation52_spill] sm:$0xff] }
 0x9dc   : > { %4323 = vmatprep.mubr.bf16.mxu1 %v7307_v29 }
 0x9e3   : > { %4324 = vmatmul.mubr.bf16.gmra.mrb[28].mxu1 %v7308_v4  ;;  %v14871_v4 = vld [vmem:[#allocation49_spill] sm:$0xff] }
 0x9e4   : > { %4366 = vmatprep.mubr.bf16.mxu1 %v14848_v35 }
 0x9eb   : > { %6803 = vmatmul.mubr.msk.bf16.vlgmr.msra.gmra.mrb[16].mxu1 %vm1326_vm10, %v7309_v12 }
 0x9ec   : > { %4376 = vmatprep.mubr.bf16.mxu1 %v14848_v35 }
 0x9f3   : > { %6804 = vmatmul.mubr.msk.bf16.gmra.mrb[20].mxu1 %vm1326_vm10, %v7310_v61  ;;  %v14872_v61 = vld [vmem:[#allocation53_spill] sm:$0xff] }
 0x9f4   : > { %4386 = vmatprep.mubr.bf16.mxu1 %v14848_v35 }
 0x9fb   : > { %6805 = vmatmul.mubr.msk.bf16.gmra.mrb[24].mxu1 %vm1326_vm10, %v7311_v0 }
 0x9fc   : > { %4396 = vmatprep.mubr.bf16.mxu1 %v14848_v35 }
 0xa03   : > { %6806 = vmatmul.mubr.msk.bf16.gmra.mrb[28].mxu1 %vm1326_vm10, %v7312_v11  ;;  %v14874_v11 = vld [vmem:[#allocation51_spill] sm:$0xff] }
 0xa04   : > { %5922 = vmatprep.mubr.bf16.mxu1 %v7313_v8 }
 0xabe   : > { %v4368_v32 = vpop.f32.mrb[16].mxu1 }
 0xabf   : > { %v4407_v59 = vmul.f32 %v4368_v32, %v14849_v50  ;;  %v4370_v51 = vpop.f32.mrb[17].mxu1  ;;  %v14875_v32 = vld [vmem:[#allocation54_spill] sm:$0xff] }
 0xac0   : > { %v4372_v30 = vpop.f32.mrb[18].mxu1  ;;  %v4408_v52 = vmul.f32 %v4370_v51, %v14849_v50  ;;  %v14876_v51 = vld [vmem:[#allocation55_spill] sm:$0xff] }
 0xac1   : > { %v4423_v33 = vadd.f32 %v4407_v59, %v14850_v34  ;;  %v4409_v13 = vmul.f32 %v4372_v30, %v14851_v62  ;;  %v4374_v14 = vpop.f32.mrb[19].mxu1 }
 0xac2   : > { %v4410_v46 = vmul.f32 %v4374_v14, %v14851_v62  ;;  %v4424_v22 = vadd.f32 %v4408_v52, %v14850_v34  ;;  %v14908_v34 = vld [vmem:[#allocation25_spill] sm:$0xff] }
 0xac3   : > { %v11992_v36 = vadd.f32 %v4423_v33, %v14852_v58  ;;  %v4425_v39 = vadd.f32 %v4409_v13, %v14854_v56  ;;  %v14877_v33 = vld [vmem:[#allocation56_spill] sm:$0xff] }
 0xac4   : > { %v4426_v55 = vadd.f32 %v4410_v46, %v14854_v56  ;;  %v12013_v53 = vadd.f32 %v4424_v22, %v14857_v63  ;;  %v14881_v46 = vld [vmem:[#allocation60_spill] sm:$0xff]  ;;  %v14883_v22 = vld [vmem:[#allocation58_spill] sm:$0xff] }
 0xac5   : > { %14853 = vst [vmem:[#allocation75_spill] sm:$0xff] %v11992_v36  ;;  %v11996_v1 = vadd.f32 %v4425_v39, %v14855_v26  ;;  %4455 = vrot.lane.b32.xlu1 %v11992_v36, %s7533_s25  ;;  %v14879_v39 = vld [vmem:[#allocation57_spill] sm:$0xff] }
 0xac6   : > { %v4378_v49 = vpop.f32.mrb[20].mxu1  ;;  %14858 = vst [vmem:[#allocation79_spill] sm:$0xff] %v12013_v53  ;;  %v12019_v16 = vadd.f32 %v4426_v55, %v14860_v17 }
 0xac7   : > { %14856 = vst [vmem:[#allocation74_spill] sm:$0xff] %v11996_v1  ;;  %4457 = vrot.lane.b32.xlu0 %v11996_v1, %s7533_s25  ;;  %v4380_v47 = vpop.f32.mrb[21].mxu1  ;;  %v4411_v7 = vmul.f32 %v4378_v49, %v14859_v2 }
 0xac8   : > { %v4382_v37 = vpop.f32.mrb[22].mxu1  ;;  %14861 = vst [vmem:[#allocation82_spill] sm:$0xff] %v12019_v16  ;;  %v4412_v24 = vmul.f32 %v4380_v47, %v14859_v2 }
 0xac9   : > { %4519 = vrot.lane.b32.xlu1 %v11992_v36, %s7534_s27  ;;  %v4384_v42 = vpop.f32.mrb[23].mxu1  ;;  %v4413_v19 = vmul.f32 %v4382_v37, %v14862_v54  ;;  %v4427_v21 = vadd.f32 %v4411_v7, %v14863_v57 }
 0xaca   : > { %v4414_v3 = vmul.f32 %v4384_v42, %v14862_v54  ;;  %v4428_v25 = vadd.f32 %v4412_v24, %v14863_v57 }
 0xacb   : > { %4521 = vrot.lane.b32.xlu0 %v11996_v1, %s7534_s27  ;;  %v4429_v48 = vadd.f32 %v4413_v19, %v14864_v28  ;;  %v12031_v38 = vadd.f32 %v4427_v21, %v14865_v60  ;;  %v14887_v19 = vld [vmem:[#allocation62_spill] sm:$0xff]  ;;  %v14888_v21 = vld [vmem:[#allocation63_spill] sm:$0xff] }
 0xacc   : > { %v4430_v23 = vadd.f32 %v4414_v3, %v14864_v28  ;;  %v12049_v29 = vadd.f32 %v4428_v25, %v14869_v20 }
 0xacd   : > { %4655 = vrot.lane.b32.xlu1 %v11992_v36, %s7535_s16  ;;  %14866 = vst [vmem:[#allocation78_spill] sm:$0xff] %v12031_v38  ;;  %v12037_v5 = vadd.f32 %v4429_v48, %v14867_v45 }
 0xace   : > { %v4388_v40 = vpop.f32.mrb[24].mxu1  ;;  %14870 = vst [vmem:[#allocation72_spill] sm:$0xff] %v12049_v29  ;;  %v12055_v0 = vadd.f32 %v4430_v23, %v14872_v61 }
 0xacf   : > { %4657 = vrot.lane.b32.xlu0 %v11996_v1, %s7535_s16  ;;  %v4390_v6 = vpop.f32.mrb[25].mxu1  ;;  %14868 = vst [vmem:[#allocation80_spill] sm:$0xff] %v12037_v5  ;;  %v4415_v12 = vmul.f32 %v4388_v40, %v14871_v4  ;;  %v14884_v40 = vld [vmem:[#allocation61_spill] sm:$0xff] }
 0xad0   : > { %v4392_v41 = vpop.f32.mrb[26].mxu1  ;;  %14873 = vst [vmem:[#allocation73_spill] sm:$0xff] %v12055_v0  ;;  %v4416_v14 = vmul.f32 %v4390_v6, %v14871_v4  ;;  %v14886_v6 = vld [vmem:[#allocation59_spill] sm:$0xff] }
 0xad1   : > { %4471 = vrot.lane.b32.xlu1 %v12013_v53, %s7533_s25  ;;  %v4394_v31 = vpop.f32.mrb[27].mxu1  ;;  %v4417_v8 = vmul.f32 %v4392_v41, %v14874_v11  ;;  %v4431_v59 = vadd.f32 %v4415_v12, %v14875_v32 }
 0xad2   : > { %v4418_v52 = vmul.f32 %v4394_v31, %v14874_v11  ;;  %v4432_v47 = vadd.f32 %v4416_v14, %v14875_v32 }
 0xad3   : > { %4473 = vrot.lane.b32.xlu0 %v12019_v16, %s7533_s25  ;;  %v4433_v30 = vadd.f32 %v4417_v8, %v14876_v51  ;;  %v12067_v13 = vadd.f32 %v4431_v59, %v14877_v33 }
 0xad4   : > { %v4434_v37 = vadd.f32 %v4418_v52, %v14876_v51  ;;  %v12085_v42 = vadd.f32 %v4432_v47, %v14881_v46 }
 0xad5   : > { %4535 = vrot.lane.b32.xlu1 %v12013_v53, %s7534_s27  ;;  %14878 = vst [vmem:[#allocation68_spill] sm:$0xff] %v12067_v13  ;;  %v12073_v49 = vadd.f32 %v4433_v30, %v14879_v39 }
 0xad6   : > { %v4398_v43 = vpop.f32.mrb[28].mxu1  ;;  %14882 = vst [vmem:[#allocation71_spill] sm:$0xff] %v12085_v42  ;;  %v12091_v7 = vadd.f32 %v4434_v37, %v14884_v40 }
 0xad7   : > { %4537 = vrot.lane.b32.xlu0 %v12019_v16, %s7534_s27  ;;  %v4400_v44 = vpop.f32.mrb[29].mxu1  ;;  %14880 = vst [vmem:[#allocation69_spill] sm:$0xff] %v12073_v49  ;;  %v4419_v55 = vmul.f32 %v4398_v43, %v14883_v22  ;;  %v14889_v43 = vld [vmem:[#allocation64_spill] sm:$0xff] }
 0xad8   : > { %v4402_v10 = vpop.f32.mrb[30].mxu1  ;;  %14885 = vst [vmem:[#allocation70_spill] sm:$0xff] %v12091_v7  ;;  %v4420_v3 = vmul.f32 %v4400_v44, %v14883_v22  ;;  %v14893_v44 = vld [vmem:[#allocation66_spill] sm:$0xff] }
 0xad9   : > { %4459 = vrot.lane.b32.xlu1 %v12031_v38, %s7533_s25  ;;  %v4404_v27 = vpop.f32.mrb[31].mxu1  ;;  %v4421_v41 = vmul.f32 %v4402_v10, %v14886_v6  ;;  %v4435_v31 = vadd.f32 %v4419_v55, %v14887_v19  ;;  %v14891_v10 = vld [vmem:[#allocation65_spill] sm:$0xff] }
 0xada   : > { %v4422_v23 = vmul.f32 %v4404_v27, %v14886_v6  ;;  %v4436_v12 = vadd.f32 %v4420_v3, %v14887_v19  ;;  %v14895_v27 = vld [vmem:[#allocation67_spill] sm:$0xff]  ;;  %v14897_v3 = vld [vmem:[#allocation18_spill] sm:$0xff] }
 0xadb   : > { %4461 = vrot.lane.b32.xlu0 %v12037_v5, %s7533_s25  ;;  %v4437_v48 = vadd.f32 %v4421_v41, %v14888_v21  ;;  %v12103_v24 = vadd.f32 %v4435_v31, %v14889_v43 }
 0xadc   : > { %v4438_v8 = vadd.f32 %v4422_v23, %v14888_v21  ;;  %v12121_v59 = vadd.f32 %v4436_v12, %v14893_v44 }
 0xadd   : > { %4523 = vrot.lane.b32.xlu1 %v12031_v38, %s7534_s27  ;;  %14890 = vst [vmem:[#allocation77_spill] sm:$0xff] %v12103_v24  ;;  %v12109_v25 = vadd.f32 %v4437_v48, %v14891_v10 }
 0xade   : > { %14894 = vst [vmem:[#allocation81_spill] sm:$0xff] %v12121_v59  ;;  %v12126_v30 = vadd.f32 %v4438_v8, %v14895_v27 }
 0xadf   : > { %4525 = vrot.lane.b32.xlu0 %v12037_v5, %s7534_s27  ;;  %14892 = vst [vmem:[#allocation76_spill] sm:$0xff] %v12109_v25 }
 0xae0   : > { %14896 = vst [vmem:[#allocation83_spill] sm:$0xff] %v12126_v30 }
 0xae1   : > { %4475 = vrot.lane.b32.xlu1 %v12049_v29, %s7533_s25 }
 0xae3   : > { %4477 = vrot.lane.b32.xlu0 %v12055_v0, %s7533_s25 }
 0xae5   : > { %4539 = vrot.lane.b32.xlu1 %v12049_v29, %s7534_s27 }
 0xae7   : > { %4541 = vrot.lane.b32.xlu0 %v12055_v0, %s7534_s27 }
 0xae9   : > { %4463 = vrot.lane.b32.xlu1 %v12067_v13, %s7533_s25 }
 0xaeb   : > { %4465 = vrot.lane.b32.xlu0 %v12073_v49, %s7533_s25 }
 0xaed   : > { %4527 = vrot.lane.b32.xlu1 %v12067_v13, %s7534_s27 }
 0xaef   : > { %4529 = vrot.lane.b32.xlu0 %v12073_v49, %s7534_s27 }
 0xaf1   : > { %4479 = vrot.lane.b32.xlu1 %v12085_v42, %s7533_s25 }
 0xaf3   : > { %4481 = vrot.lane.b32.xlu0 %v12091_v7, %s7533_s25 }
 0xaf5   : > { %4543 = vrot.lane.b32.xlu1 %v12085_v42, %s7534_s27 }
 0xaf7   : > { %4545 = vrot.lane.b32.xlu0 %v12091_v7, %s7534_s27 }
 0xaf9   : > { %4467 = vrot.lane.b32.xlu1 %v12103_v24, %s7533_s25 }
 0xafb   : > { %4469 = vrot.lane.b32.xlu0 %v12109_v25, %s7533_s25 }
 0xafd   : > { %4531 = vrot.lane.b32.xlu1 %v12103_v24, %s7534_s27 }
 0xaff   : > { %4533 = vrot.lane.b32.xlu0 %v12109_v25, %s7534_s27 }
 0xb01   : > { %4483 = vrot.lane.b32.xlu1 %v12121_v59, %s7533_s25 }
 0xb03   : > { %4485 = vrot.lane.b32.xlu0 %v12126_v30, %s7533_s25 }
 0xb05   : > { %4671 = vrot.lane.b32.xlu1 %v12013_v53, %s7535_s16 }
 0xb07   : > { %4673 = vrot.lane.b32.xlu0 %v12019_v16, %s7535_s16 }
 0xb09   : > { %4547 = vrot.lane.b32.xlu1 %v12121_v59, %s7534_s27 }
 0xb0b   : > { %4661 = vrot.lane.b32.xlu0 %v12037_v5, %s7535_s16 }
 0xb0d   : > { %4659 = vrot.lane.b32.xlu1 %v12031_v38, %s7535_s16 }
 0xb0f   : > { %4677 = vrot.lane.b32.xlu0 %v12055_v0, %s7535_s16 }
 0xb11   : > { %4675 = vrot.lane.b32.xlu1 %v12049_v29, %s7535_s16 }
 0xb13   : > { %4665 = vrot.lane.b32.xlu0 %v12073_v49, %s7535_s16 }
 0xb15   : > { %4663 = vrot.lane.b32.xlu1 %v12067_v13, %s7535_s16 }
 0xb17   : > { %4681 = vrot.lane.b32.xlu0 %v12091_v7, %s7535_s16 }
 0xb19   : > { %4679 = vrot.lane.b32.xlu1 %v12085_v42, %s7535_s16 }
 0xb1b   : > { %4669 = vrot.lane.b32.xlu0 %v12109_v25, %s7535_s16 }
 0xb1d   : > { %4667 = vrot.lane.b32.xlu1 %v12103_v24, %s7535_s16 }
 0xb1f   : > { %4549 = vrot.lane.b32.xlu0 %v12126_v30, %s7534_s27 }
 0xb21   : > { %4683 = vrot.lane.b32.xlu1 %v12121_v59, %s7535_s16 }
 0xb23   : > { %4685 = vrot.lane.b32.xlu0 %v12126_v30, %s7535_s16 }
 0xb37   : > { %v4456_v14 = vpop.permute.xlu1 %4455 }
 0xb39   : > { %v4458_v52 = vpop.permute.xlu0 %4457 }
 0xb3b   : > { %v12164_v47 = vpop.permute.xlu1 %4519 }
 0xb3d   : > { %v12166_v37 = vpop.permute.xlu0 %4521 }
 0xb3f   : > { %v12168_v55 = vpop.permute.xlu1 %4655 }
 0xb41   : > { %v12170_v41 = vpop.permute.xlu0 %4657 }
 0xb43   : > { %v4472_v31 = vpop.permute.xlu1 %4471 }
 0xb44   : > { %v4495_v48 = vsel %vm646_vm1, %v4472_v31, %v4456_v14  ;;  %v4487_v8 = vsel %vm646_vm1, %v4456_v14, %v4472_v31 }
 0xb45   : > { %v12175_v23 = vmul.f32 %v4495_v48, %v14897_v3  ;;  %v4474_v12 = vpop.permute.xlu0 %4473  ;;  %v14898_v48 = vld [vmem:[#allocation19_spill] sm:$0xff] }
 0xb46   : > { %v4496_v27 = vsel %vm646_vm1, %v4474_v12, %v4458_v52  ;;  %v4488_v43 = vsel %vm646_vm1, %v4458_v52, %v4474_v12  ;;  %v12191_v21 = vmul.f32 %v4487_v8, %v14898_v48 }
 0xb47   : > { %v12182_v10 = vmul.f32 %v4496_v27, %v14897_v3  ;;  %v12184_v44 = vpop.permute.xlu1 %4535  ;;  %4583 = vrot.lane.b32.xlu1 %v12175_v23, %s7535_s16  ;;  %v12198_v14 = vmul.f32 %v4488_v43, %v14898_v48 }
 0xb49   : > { %v12193_v6 = vpop.permute.xlu0 %4537  ;;  %4585 = vrot.lane.b32.xlu0 %v12182_v10, %s7535_s16 }
 0xb4b   : > { %v4460_v27 = vpop.permute.xlu1 %4459  ;;  %4599 = vrot.lane.b32.xlu1 %v12191_v21, %s7535_s16 }
 0xb4d   : > { %v4462_v31 = vpop.permute.xlu0 %4461  ;;  %4601 = vrot.lane.b32.xlu0 %v12198_v14, %s7535_s16 }
 0xb4f   : > { %v12204_v52 = vpop.permute.xlu1 %4523 }
 0xb51   : > { %v12206_v12 = vpop.permute.xlu0 %4525 }
 0xb53   : > { %v4476_v8 = vpop.permute.xlu1 %4475 }
 0xb54   : > { %v4497_v19 = vsel %vm646_vm1, %v4476_v8, %v4460_v27  ;;  %v4489_v39 = vsel %vm646_vm1, %v4460_v27, %v4476_v8 }
 0xb55   : > { %v12211_v40 = vmul.f32 %v4497_v19, %v14897_v3  ;;  %v4478_v43 = vpop.permute.xlu0 %4477  ;;  %v12227_v19 = vmul.f32 %v4489_v39, %v14898_v48 }
 0xb56   : > { %v4498_v22 = vsel %vm646_vm1, %v4478_v43, %v4462_v31  ;;  %v4490_v51 = vsel %vm646_vm1, %v4462_v31, %v4478_v43 }
 0xb57   : > { %14899 = vst [vmem:[#allocation84_spill] sm:$0xff] %v12211_v40  ;;  %v12218_v46 = vmul.f32 %v4498_v22, %v14897_v3  ;;  %v12220_v33 = vpop.permute.xlu1 %4539  ;;  %4587 = vrot.lane.b32.xlu1 %v12211_v40, %s7535_s16  ;;  %v12234_v27 = vmul.f32 %v4490_v51, %v14898_v48 }
 0xb59   : > { %14900 = vst [vmem:[#allocation85_spill] sm:$0xff] %v12218_v46  ;;  %v12229_v11 = vpop.permute.xlu0 %4541  ;;  %4589 = vrot.lane.b32.xlu0 %v12218_v46, %s7535_s16 }
 0xb5b   : > { %v4464_v22 = vpop.permute.xlu1 %4463  ;;  %4603 = vrot.lane.b32.xlu1 %v12227_v19, %s7535_s16 }
 0xb5d   : > { %v4466_v8 = vpop.permute.xlu0 %4465  ;;  %4605 = vrot.lane.b32.xlu0 %v12234_v27, %s7535_s16 }
 0xb5f   : > { %v12240_v31 = vpop.permute.xlu1 %4527 }
 0xb61   : > { %v12242_v39 = vpop.permute.xlu0 %4529 }
 0xb63   : > { %v4480_v43 = vpop.permute.xlu1 %4479 }
 0xb64   : > { %v4499_v32 = vsel %vm646_vm1, %v4480_v43, %v4464_v22  ;;  %v4491_v45 = vsel %vm646_vm1, %v4464_v22, %v4480_v43 }
 0xb65   : > { %v12247_v61 = vmul.f32 %v4499_v32, %v14897_v3  ;;  %v4482_v51 = vpop.permute.xlu0 %4481  ;;  %v12261_v32 = vmul.f32 %v4491_v45, %v14898_v48 }
 0xb66   : > { %v4500_v4 = vsel %vm646_vm1, %v4482_v51, %v4466_v8  ;;  %v4492_v28 = vsel %vm646_vm1, %v4466_v8, %v4482_v51 }
 0xb67   : > { %14901 = vst [vmem:[#allocation86_spill] sm:$0xff] %v12247_v61  ;;  %v12254_v20 = vmul.f32 %v4500_v4, %v14897_v3  ;;  %v4544_v60 = vpop.permute.xlu1 %4543  ;;  %4591 = vrot.lane.b32.xlu1 %v12247_v61, %s7535_s16  ;;  %14903 = vst [vmem:[#allocation88_spill] sm:$0xff] %v12261_v32  ;;  %v12266_v22 = vmul.f32 %v4492_v28, %v14898_v48 }
 0xb69   : > { %14902 = vst [vmem:[#allocation87_spill] sm:$0xff] %v12254_v20  ;;  %v4546_v54 = vpop.permute.xlu0 %4545  ;;  %4593 = vrot.lane.b32.xlu0 %v12254_v20, %s7535_s16  ;;  %14904 = vst [vmem:[#allocation89_spill] sm:$0xff] %v12266_v22 }
 0xb6b   : > { %v4468_v43 = vpop.permute.xlu1 %4467  ;;  %4607 = vrot.lane.b32.xlu1 %v12261_v32, %s7535_s16 }
 0xb6d   : > { %v4470_v4 = vpop.permute.xlu0 %4469  ;;  %4609 = vrot.lane.b32.xlu0 %v12266_v22, %s7535_s16 }
 0xb6f   : > { %v12272_v57 = vpop.permute.xlu1 %4531 }
 0xb71   : > { %v12274_v8 = vpop.permute.xlu0 %4533 }
 0xb73   : > { %v4484_v45 = vpop.permute.xlu1 %4483 }
 0xb74   : > { %v4501_v51 = vsel %vm646_vm1, %v4484_v45, %v4468_v43  ;;  %v4493_v26 = vsel %vm646_vm1, %v4468_v43, %v4484_v45 }
 0xb75   : > { %v12279_v17 = vmul.f32 %v4501_v51, %v14897_v3  ;;  %v4486_v28 = vpop.permute.xlu0 %4485  ;;  %v12293_v56 = vmul.f32 %v4493_v26, %v14898_v48  ;;  %v4552_v26 = vsel %vm711_vm4, %v12166_v37, %v12193_v6 }
 0xb76   : > { %v4502_v2 = vsel %vm646_vm1, %v4486_v28, %v4470_v4  ;;  %v4494_v58 = vsel %vm646_vm1, %v4470_v4, %v4486_v28  ;;  %v14907_v4 = vld [vmem:[#allocation24_spill] sm:$0xff] }
 0xb77   : > { %14905 = vst [vmem:[#allocation90_spill] sm:$0xff] %v12279_v17  ;;  %v12286_v63 = vmul.f32 %v4502_v2, %v14897_v3  ;;  %4595 = vrot.lane.b32.xlu1 %v12279_v17, %s7535_s16  ;;  %14906 = vst [vmem:[#allocation91_spill] sm:$0xff] %v12293_v56  ;;  %v4551_v2 = vsel %vm711_vm4, %v12164_v47, %v12184_v44  ;;  %v12304_v43 = vmul.f32 %v4494_v58, %v14898_v48  ;;  %v12375_v35 = vpop.permute.xlu1 %4671 }
 0xb78   : > { %v12313_v45 = vmul.f32 %v4551_v2, %v14907_v4  ;;  %v4559_v58 = vsel %vm711_vm4, %v12184_v44, %v12164_v47  ;;  %v12324_v62 = vmul.f32 %v4552_v26, %v14907_v4  ;;  %v4560_v2 = vsel %vm711_vm4, %v12193_v6, %v12166_v37 }
 0xb79   : > { %4597 = vrot.lane.b32.xlu0 %v12286_v63, %s7535_s16  ;;  %v12297_v51 = vpop.permute.xlu0 %4673  ;;  %v12333_v50 = vmul.f32 %v4559_v58, %v14908_v34  ;;  %v4553_v44 = vsel %vm711_vm4, %v12204_v52, %v12220_v33  ;;  %v12344_v47 = vmul.f32 %v4560_v2, %v14908_v34  ;;  %v4554_v6 = vsel %vm711_vm4, %v12206_v12, %v12229_v11 }
 0xb7a   : > { %v12353_v37 = vmul.f32 %v4553_v44, %v14907_v4  ;;  %v4561_v58 = vsel %vm711_vm4, %v12220_v33, %v12204_v52  ;;  %v12364_v2 = vmul.f32 %v4554_v6, %v14907_v4  ;;  %v4562_v44 = vsel %vm711_vm4, %v12229_v11, %v12206_v12 }
 0xb7b   : > { %4611 = vrot.lane.b32.xlu1 %v12293_v56, %s7535_s16  ;;  %v12373_v3 = vmul.f32 %v4561_v58, %v14908_v34  ;;  %v4555_v52 = vsel %vm711_vm4, %v12240_v31, %v4544_v60  ;;  %v12385_v6 = vmul.f32 %v4562_v44, %v14908_v34  ;;  %v4556_v11 = vsel %vm711_vm4, %v12242_v39, %v4546_v54 }
 0xb7c   : > { %v12393_v12 = vmul.f32 %v4555_v52, %v14907_v4  ;;  %v4563_v44 = vsel %vm711_vm4, %v4544_v60, %v12240_v31  ;;  %v12403_v15 = vmul.f32 %v4556_v11, %v14907_v4  ;;  %v4564_v52 = vsel %vm711_vm4, %v4546_v54, %v12242_v39 }
 0xb7d   : > { %4613 = vrot.lane.b32.xlu0 %v12304_v43, %s7535_s16  ;;  %v12317_v28 = vpop.permute.xlu0 %4661  ;;  %v12419_v31 = vmul.f32 %v4564_v52, %v14908_v34 }
 0xb7e   : > { %14912 = vst [vmem:[#allocation95_spill] sm:$0xff] %v12393_v12 }
 0xb7f   : > { %4727 = vrot.lane.b32.xlu1 %v12313_v45, %s7535_s16 }
 0xb81   : > { %4729 = vrot.lane.b32.xlu0 %v12324_v62, %s7535_s16  ;;  %v12337_v48 = vpop.permute.xlu0 %4677 }
 0xb82   : > { %14909 = vst [vmem:[#allocation92_spill] sm:$0xff] %v12337_v48 }
 0xb83   : > { %4743 = vrot.lane.b32.xlu1 %v12333_v50, %s7535_s16 }
 0xb85   : > { %4745 = vrot.lane.b32.xlu0 %v12344_v47, %s7535_s16  ;;  %v12357_v26 = vpop.permute.xlu0 %4665 }
 0xb86   : > { %14910 = vst [vmem:[#allocation93_spill] sm:$0xff] %v12357_v26  ;;  %v12411_v26 = vmul.f32 %v4563_v44, %v14908_v34 }
 0xb87   : > { %4731 = vrot.lane.b32.xlu1 %v12353_v37, %s7535_s16 }
 0xb89   : > { %4733 = vrot.lane.b32.xlu0 %v12364_v2, %s7535_s16  ;;  %v12379_v33 = vpop.permute.xlu0 %4681 }
 0xb8a   : > { %14911 = vst [vmem:[#allocation94_spill] sm:$0xff] %v12379_v33  ;;  %v4548_v33 = vpop.permute.xlu1 %4547 }
 0xb8b   : > { %4747 = vrot.lane.b32.xlu1 %v12373_v3, %s7535_s16  ;;  %v4557_v60 = vsel %vm711_vm4, %v12272_v57, %v4548_v33  ;;  %v4565_v11 = vsel %vm711_vm4, %v4548_v33, %v12272_v57 }
 0xb8c   : > { %v12427_v39 = vmul.f32 %v4557_v60, %v14907_v4  ;;  %v12445_v48 = vmul.f32 %v4565_v11, %v14908_v34 }
 0xb8d   : > { %4749 = vrot.lane.b32.xlu0 %v12385_v6, %s7535_s16  ;;  %v12397_v58 = vpop.permute.xlu0 %4669 }
 0xb8e   : > { %14913 = vst [vmem:[#allocation96_spill] sm:$0xff] %v12397_v58  ;;  %v12434_v44 = vpop.permute.xlu1 %4659 }
 0xb8f   : > { %4735 = vrot.lane.b32.xlu1 %v12393_v12, %s7535_s16 }
 0xb91   : > { %4737 = vrot.lane.b32.xlu0 %v12403_v15, %s7535_s16  ;;  %v4550_v58 = vpop.permute.xlu0 %4549 }
 0xb92   : > { %v4558_v54 = vsel %vm711_vm4, %v12274_v8, %v4550_v58  ;;  %v4566_v60 = vsel %vm711_vm4, %v4550_v58, %v12274_v8  ;;  %v12454_v33 = vpop.permute.xlu1 %4675 }
 0xb93   : > { %4751 = vrot.lane.b32.xlu1 %v12411_v26, %s7535_s16  ;;  %v12437_v52 = vmul.f32 %v4558_v54, %v14907_v4  ;;  %v12450_v57 = vmul.f32 %v4566_v60, %v14908_v34 }
 0xb95   : > { %4753 = vrot.lane.b32.xlu0 %v12419_v31, %s7535_s16  ;;  %v12490_v60 = vpop.permute.xlu0 %4685 }
 0xb96   : > { %v12462_v8 = vpop.permute.xlu1 %4663 }
 0xb97   : > { %4739 = vrot.lane.b32.xlu1 %v12427_v39, %s7535_s16 }
 0xb99   : > { %4741 = vrot.lane.b32.xlu0 %v12437_v52, %s7535_s16 }
 0xb9a   : > { %v12470_v58 = vpop.permute.xlu1 %4679 }
 0xb9b   : > { %4755 = vrot.lane.b32.xlu1 %v12445_v48, %s7535_s16 }
 0xb9d   : > { %4757 = vrot.lane.b32.xlu0 %v12450_v57, %s7535_s16 }
 0xb9e   : > { %v12478_v54 = vpop.permute.xlu1 %4667 }
 0xb9f   : > { %4823 = vrot.lane.b32.xlu1 %v12175_v23, %s7537_s11 }
 0xba1   : > { %4825 = vrot.lane.b32.xlu0 %v12182_v10, %s7537_s11 }
 0xba2   : > { %v12486_v11 = vpop.permute.xlu1 %4683 }
 0xba3   : > { %4839 = vrot.lane.b32.xlu1 %v12191_v21, %s7537_s11 }
 0xba5   : > { %4841 = vrot.lane.b32.xlu0 %v12198_v14, %s7537_s11 }
 0xba7   : > { %4827 = vrot.lane.b32.xlu1 %v12211_v40, %s7537_s11 }
 0xba9   : > { %4829 = vrot.lane.b32.xlu0 %v12218_v46, %s7537_s11 }
 0xbab   : > { %4843 = vrot.lane.b32.xlu1 %v12227_v19, %s7537_s11 }
 0xbad   : > { %4845 = vrot.lane.b32.xlu0 %v12234_v27, %s7537_s11 }
 0xbaf   : > { %4831 = vrot.lane.b32.xlu1 %v12247_v61, %s7537_s11 }
 0xbb1   : > { %4833 = vrot.lane.b32.xlu0 %v12254_v20, %s7537_s11 }
 0xbb3   : > { %4847 = vrot.lane.b32.xlu1 %v12261_v32, %s7537_s11 }
 0xbb5   : > { %4849 = vrot.lane.b32.xlu0 %v12266_v22, %s7537_s11 }
 0xbb7   : > { %4835 = vrot.lane.b32.xlu1 %v12279_v17, %s7537_s11 }
 0xbb9   : > { %v4584_v34 = vpop.permute.xlu1 %4583  ;;  %4897 = vrot.lane.b32.xlu0 %v11996_v1, %s7537_s11 }
 0xbbb   : > { %4851 = vrot.lane.b32.xlu1 %v12293_v56, %s7537_s11  ;;  %v4586_v4 = vpop.permute.xlu0 %4585 }
 0xbbd   : > { %v4600_v20 = vpop.permute.xlu1 %4599  ;;  %4913 = vrot.lane.b32.xlu0 %v12019_v16, %s7537_s11 }
 0xbbe   : > { %v4623_v61 = vsel %vm776_vm7, %v4600_v20, %v4584_v34  ;;  %v4615_v17 = vsel %vm776_vm7, %v4584_v34, %v4600_v20 }
 0xbbf   : > { %4895 = vrot.lane.b32.xlu1 %v11992_v36, %s7537_s11  ;;  %v4602_v22 = vpop.permute.xlu0 %4601  ;;  %v4631_v32 = vmul.f32 %v4623_v61, %v8313_v9 }
 0xbc0   : > { %v4616_v1 = vsel %vm776_vm7, %v4586_v4, %v4602_v22  ;;  %v4624_v56 = vsel %vm776_vm7, %v4602_v22, %v4586_v4 }
 0xbc1   : > { %v4633_v16 = vmul.f32 %v4624_v56, %v8313_v9  ;;  %4901 = vrot.lane.b32.xlu0 %v12037_v5, %s7537_s11  ;;  %v4648_v46 = vpack.c.bf16 %v4616_v1, %v4615_v17 }
 0xbc3   : > { %v4647_v40 = vpack.c.bf16 %v4633_v16, %v4631_v32  ;;  %4911 = vrot.lane.b32.xlu1 %v12013_v53, %s7537_s11  ;;  %5039 = vmatprep.subr.bf16.mxu0 %v4648_v46 }
 0xbc5   : > { %4917 = vrot.lane.b32.xlu0 %v12055_v0, %s7537_s11  ;;  %5040 = vmatpush1.bf16.msra.mxu0 %v4647_v40 }
 0xbc7   : > { %4899 = vrot.lane.b32.xlu1 %v12031_v38, %s7537_s11 }
 0xbc9   : > { %v4588_v34 = vpop.permute.xlu1 %4587  ;;  %4837 = vrot.lane.b32.xlu0 %v12286_v63, %s7537_s11 }
 0xbcb   : > { %4915 = vrot.lane.b32.xlu1 %v12049_v29, %s7537_s11  ;;  %v4590_v56 = vpop.permute.xlu0 %4589 }
 0xbcd   : > { %v4604_v1 = vpop.permute.xlu1 %4603  ;;  %4853 = vrot.lane.b32.xlu0 %v12304_v43, %s7537_s11 }
 0xbce   : > { %v4625_v17 = vsel %vm776_vm7, %v4604_v1, %v4588_v34  ;;  %v4617_v20 = vsel %vm776_vm7, %v4588_v34, %v4604_v1 }
 0xbcf   : > { %4903 = vrot.lane.b32.xlu1 %v12067_v13, %s7537_s11  ;;  %v4606_v16 = vpop.permute.xlu0 %4605  ;;  %v4635_v40 = vmul.f32 %v4625_v17, %v8313_v9 }
 0xbd0   : > { %v4618_v61 = vsel %vm776_vm7, %v4590_v56, %v4606_v16  ;;  %v4626_v46 = vsel %vm776_vm7, %v4606_v16, %v4590_v56 }
 0xbd1   : > { %v4637_v32 = vmul.f32 %v4626_v46, %v8313_v9  ;;  %4905 = vrot.lane.b32.xlu0 %v12073_v49, %s7537_s11  ;;  %v4650_v22 = vpack.c.bf16 %v4618_v61, %v4617_v20 }
 0xbd3   : > { %v4649_v4 = vpack.c.bf16 %v4637_v32, %v4635_v40  ;;  %4919 = vrot.lane.b32.xlu1 %v12085_v42, %s7537_s11  ;;  %5041 = vmatprep.subr.bf16.mxu0 %v4650_v22 }
 0xbd5   : > { %4921 = vrot.lane.b32.xlu0 %v12091_v7, %s7537_s11  ;;  %5042 = vmatpush1.bf16.msra.mxu0 %v4649_v4 }
 0xbd7   : > { %4907 = vrot.lane.b32.xlu1 %v12103_v24, %s7537_s11 }
 0xbd9   : > { %v4592_v34 = vpop.permute.xlu1 %4591  ;;  %4909 = vrot.lane.b32.xlu0 %v12109_v25, %s7537_s11 }
 0xbdb   : > { %4923 = vrot.lane.b32.xlu1 %v12121_v59, %s7537_s11  ;;  %v4594_v56 = vpop.permute.xlu0 %4593 }
 0xbdd   : > { %v4608_v1 = vpop.permute.xlu1 %4607  ;;  %4925 = vrot.lane.b32.xlu0 %v12126_v30, %s7537_s11 }
 0xbde   : > { %v4627_v17 = vsel %vm776_vm7, %v4608_v1, %v4592_v34  ;;  %v4619_v20 = vsel %vm776_vm7, %v4592_v34, %v4608_v1 }
 0xbdf   : > { %4967 = vrot.lane.b32.xlu1 %v12313_v45, %s7537_s11  ;;  %v4610_v16 = vpop.permute.xlu0 %4609  ;;  %v4639_v40 = vmul.f32 %v4627_v17, %v8313_v9 }
 0xbe0   : > { %v4620_v61 = vsel %vm776_vm7, %v4594_v56, %v4610_v16  ;;  %v4628_v46 = vsel %vm776_vm7, %v4610_v16, %v4594_v56 }
 0xbe1   : > { %v4641_v32 = vmul.f32 %v4628_v46, %v8313_v9  ;;  %4969 = vrot.lane.b32.xlu0 %v12324_v62, %s7537_s11  ;;  %v4652_v22 = vpack.c.bf16 %v4620_v61, %v4619_v20  ;;  %v4696_v20 = vsel %vm776_vm7, %v12297_v51, %v12170_v41 }
 0xbe3   : > { %v4651_v4 = vpack.c.bf16 %v4641_v32, %v4639_v40  ;;  %4983 = vrot.lane.b32.xlu1 %v12333_v50, %s7537_s11  ;;  %5043 = vmatprep.subr.bf16.mxu0 %v4652_v22  ;;  %v4688_v32 = vsel %vm776_vm7, %v12170_v41, %v12297_v51  ;;  %v4705_v41 = vmul.f32 %v4696_v20, %v8313_v9  ;;  %v14914_v20 = vld [vmem:[#allocation92_spill] sm:$0xff] }
 0xbe5   : > { %4985 = vrot.lane.b32.xlu0 %v12344_v47, %s7537_s11  ;;  %5044 = vmatpush1.bf16.msra.mxu0 %v4651_v4 }
 0xbe7   : > { %4971 = vrot.lane.b32.xlu1 %v12353_v37, %s7537_s11 }
 0xbe9   : > { %v4596_v34 = vpop.permute.xlu1 %4595  ;;  %4973 = vrot.lane.b32.xlu0 %v12364_v2, %s7537_s11 }
 0xbeb   : > { %4987 = vrot.lane.b32.xlu1 %v12373_v3, %s7537_s11  ;;  %v4598_v56 = vpop.permute.xlu0 %4597 }
 0xbed   : > { %v4612_v1 = vpop.permute.xlu1 %4611  ;;  %4989 = vrot.lane.b32.xlu0 %v12385_v6, %s7537_s11 }
 0xbee   : > { %v4629_v17 = vsel %vm776_vm7, %v4612_v1, %v4596_v34  ;;  %v4621_v61 = vsel %vm776_vm7, %v4596_v34, %v4612_v1  ;;  %v4695_v1 = vsel %vm776_vm7, %v12375_v35, %v12168_v55 }
 0xbef   : > { %4975 = vrot.lane.b32.xlu1 %v12393_v12, %s7537_s11  ;;  %v4614_v16 = vpop.permute.xlu0 %4613  ;;  %v4643_v22 = vmul.f32 %v4629_v17, %v8313_v9 }
 0xbf0   : > { %v4622_v46 = vsel %vm776_vm7, %v4598_v56, %v4614_v16  ;;  %v4630_v40 = vsel %vm776_vm7, %v4614_v16, %v4598_v56  ;;  %v4687_v56 = vsel %vm776_vm7, %v12168_v55, %v12375_v35  ;;  %v4697_v16 = vsel %vm776_vm7, %v12454_v33, %v12434_v44 }
 0xbf1   : > { %v4645_v4 = vmul.f32 %v4630_v40, %v8313_v9  ;;  %v4728_v12 = vpop.permute.xlu1 %4727  ;;  %4977 = vrot.lane.b32.xlu0 %v12403_v15, %s7537_s11  ;;  %v4654_v34 = vpack.c.bf16 %v4622_v46, %v4621_v61  ;;  %v4720_v61 = vpack.c.bf16 %v4688_v32, %v4687_v56  ;;  %v4703_v46 = vmul.f32 %v4695_v1, %v8313_v9 }
 0xbf2   : > { %v4689_v35 = vsel %vm776_vm7, %v12434_v44, %v12454_v33  ;;  %v4698_v40 = vsel %vm776_vm7, %v14914_v20, %v12317_v28  ;;  %v4690_v32 = vsel %vm776_vm7, %v12317_v28, %v14914_v20  ;;  %v4699_v33 = vsel %vm776_vm7, %v12470_v58, %v12462_v8 }
 0xbf3   : > { %v4653_v51 = vpack.c.bf16 %v4645_v4, %v4643_v22  ;;  %4991 = vrot.lane.b32.xlu1 %v12411_v26, %s7537_s11  ;;  %5045 = vmatprep.subr.bf16.mxu0 %v4654_v34  ;;  %v4730_v17 = vpop.permute.xlu0 %4729  ;;  %v4719_v22 = vpack.c.bf16 %v4705_v41, %v4703_v46  ;;  %v4707_v4 = vmul.f32 %v4697_v16, %v8313_v9  ;;  %v14915_v41 = vld [vmem:[#allocation93_spill] sm:$0xff] }
 0xbf4   : > { %v4722_v34 = vpack.c.bf16 %v4690_v32, %v4689_v35  ;;  %v4709_v1 = vmul.f32 %v4698_v40, %v8313_v9  ;;  %v4691_v56 = vsel %vm776_vm7, %v12462_v8, %v12470_v58  ;;  %v4711_v35 = vmul.f32 %v4699_v33, %v8313_v9  ;;  %v14917_v58 = vld [vmem:[#allocation96_spill] sm:$0xff] }
 0xbf5   : > { %v4744_v55 = vpop.permute.xlu1 %4743  ;;  %4993 = vrot.lane.b32.xlu0 %v12419_v31, %s7537_s11  ;;  %5046 = vmatpush1.bf16.msra.mxu0 %v4653_v51  ;;  %v14916_v51 = vld [vmem:[#allocation94_spill] sm:$0xff]  ;;  %v4702_v20 = vsel %vm776_vm7, %v12490_v60, %v14917_v58  ;;  %v4694_v32 = vsel %vm776_vm7, %v14917_v58, %v12490_v60  ;;  %v4701_v33 = vsel %vm776_vm7, %v12486_v11, %v12478_v54 }
 0xbf6   : > { %5047 = vmatprep.subr.bf16.mxu0 %v4720_v61  ;;  %v4700_v16 = vsel %vm776_vm7, %v14916_v51, %v14915_v41  ;;  %v4721_v61 = vpack.c.bf16 %v4709_v1, %v4707_v4  ;;  %v4692_v46 = vsel %vm776_vm7, %v14915_v41, %v14916_v51  ;;  %v4693_v1 = vsel %vm776_vm7, %v12478_v54, %v12486_v11 }
 0xbf7   : > { %4979 = vrot.lane.b32.xlu1 %v12427_v39, %s7537_s11  ;;  %v4746_v44 = vpop.permute.xlu0 %4745  ;;  %v4724_v40 = vpack.c.bf16 %v4692_v46, %v4691_v56  ;;  %v4717_v56 = vmul.f32 %v4702_v20, %v8313_v9  ;;  %v4726_v51 = vpack.c.bf16 %v4694_v32, %v4693_v1  ;;  %v4759_v54 = vsel %vm776_vm7, %v4728_v12, %v4744_v55 }
 0xbf8   : > { %v4768_v41 = vsel %vm776_vm7, %v4746_v44, %v4730_v17 }
 0xbf9   : > { %v4732_v28 = vpop.permute.xlu1 %4731  ;;  %4981 = vrot.lane.b32.xlu0 %v12437_v52, %s7537_s11  ;;  %5048 = vmatpush1.bf16.msra.mxu0 %v4719_v22  ;;  %v4713_v22 = vmul.f32 %v4700_v16, %v8313_v9  ;;  %v4715_v16 = vmul.f32 %v4701_v33, %v8313_v9  ;;  %v4777_v11 = vmul.f32 %v4768_v41, %v8313_v9 }
 0xbfa   : > { %5049 = vmatprep.subr.bf16.mxu0 %v4722_v34 }
 0xbfb   : > { %4995 = vrot.lane.b32.xlu1 %v12445_v48, %s7537_s11  ;;  %v4734_v8 = vpop.permute.xlu0 %4733  ;;  %v4723_v34 = vpack.c.bf16 %v4713_v22, %v4711_v35  ;;  %v4767_v35 = vsel %vm776_vm7, %v4744_v55, %v4728_v12  ;;  %v4725_v58 = vpack.c.bf16 %v4717_v56, %v4715_v16 }
 0xbfc   : > { %v4775_v32 = vmul.f32 %v4767_v35, %v8313_v9 }
 0xbfd   : > { %v4748_v4 = vpop.permute.xlu1 %4747  ;;  %4997 = vrot.lane.b32.xlu0 %v12450_v57, %s7537_s11  ;;  %5050 = vmatpush1.bf16.msra.mxu0 %v4721_v61  ;;  %v4760_v61 = vsel %vm776_vm7, %v4730_v17, %v4746_v44 }
 0xbfe   : > { %5051 = vmatprep.subr.bf16.mxu0 %v4724_v40  ;;  %v4792_v22 = vpack.c.bf16 %v4760_v61, %v4759_v54  ;;  %v4769_v33 = vsel %vm776_vm7, %v4748_v4, %v4732_v28  ;;  %v4761_v12 = vsel %vm776_vm7, %v4732_v28, %v4748_v4 }
 0xbff   : > { %v4750_v60 = vpop.permute.xlu0 %4749 }
 0xc00   : > { %v4770_v40 = vsel %vm776_vm7, %v4750_v60, %v4734_v8  ;;  %v4762_v17 = vsel %vm776_vm7, %v4734_v8, %v4750_v60 }
 0xc01   : > { %v4736_v46 = vpop.permute.xlu1 %4735  ;;  %5052 = vmatpush1.bf16.msra.mxu0 %v4723_v34  ;;  %v4791_v34 = vpack.c.bf16 %v4777_v11, %v4775_v32  ;;  %v4781_v55 = vmul.f32 %v4770_v40, %v8313_v9  ;;  %v4794_v41 = vpack.c.bf16 %v4762_v17, %v4761_v12 }
 0xc02   : > { %5053 = vmatprep.subr.bf16.mxu0 %v4726_v51  ;;  %v4779_v51 = vmul.f32 %v4769_v33, %v8313_v9 }
 0xc03   : > { %v4738_v20 = vpop.permute.xlu0 %4737 }
 0xc04   : > { %v4793_v61 = vpack.c.bf16 %v4781_v55, %v4779_v51 }
 0xc05   : > { %v4752_v44 = vpop.permute.xlu1 %4751  ;;  %5054 = vmatpush1.bf16.msra.mxu0 %v4725_v58 }
 0xc06   : > { %5055 = vmatprep.subr.bf16.mxu0 %v4792_v22  ;;  %v4771_v16 = vsel %vm776_vm7, %v4752_v44, %v4736_v46  ;;  %v4763_v28 = vsel %vm776_vm7, %v4736_v46, %v4752_v44 }
 0xc07   : > { %v4754_v1 = vpop.permute.xlu0 %4753  ;;  %v4783_v54 = vmul.f32 %v4771_v16, %v8313_v9 }
 0xc08   : > { %v4772_v56 = vsel %vm776_vm7, %v4754_v1, %v4738_v20  ;;  %v4764_v8 = vsel %vm776_vm7, %v4738_v20, %v4754_v1 }
 0xc09   : > { %v4740_v60 = vpop.permute.xlu1 %4739  ;;  %5056 = vmatpush1.bf16.msra.mxu0 %v4791_v34  ;;  %v4785_v4 = vmul.f32 %v4772_v56, %v8313_v9  ;;  %v4796_v58 = vpack.c.bf16 %v4764_v8, %v4763_v28  ;;  %v4800_v56 = vpack.c.bf16 %v12198_v14, %v12191_v21  ;;  %v4799_v8 = vpack.c.bf16 %v12182_v10, %v12175_v23  ;;  %v14918_v28 = vld [vmem:[#allocation84_spill] sm:$0xff]  ;;  %v14919_v21 = vld [vmem:[#allocation85_spill] sm:$0xff]  ;;  %v14922_v23 = vld [vmem:[#allocation86_spill] sm:$0xff] }
 0xc0a   : > { %5057 = vmatprep.subr.bf16.mxu0 %v4794_v41  ;;  %v4801_v14 = vpack.c.bf16 %v14919_v21, %v14918_v28  ;;  %v4809_v21 = vpack.c.bf16 %v12037_v5, %v12031_v38 }
 0xc0b   : > { %v4742_v35 = vpop.permute.xlu0 %4741  ;;  %v4795_v40 = vpack.c.bf16 %v4785_v4, %v4783_v54  ;;  %v14920_v4 = vld [vmem:[#allocation88_spill] sm:$0xff] }
 0xc0d   : > { %v4756_v11 = vpop.permute.xlu1 %4755  ;;  %5058 = vmatpush1.bf16.msra.mxu0 %v4793_v61 }
 0xc0e   : > { %v4773_v20 = vsel %vm776_vm7, %v4756_v11, %v4740_v60  ;;  %5059 = vmatprep.subr.bf16.mxu0 %v4796_v58  ;;  %v4765_v32 = vsel %vm776_vm7, %v4740_v60, %v4756_v11  ;;  %v4802_v60 = vpack.c.bf16 %v12234_v27, %v12227_v19  ;;  %v14923_v19 = vld [vmem:[#allocation87_spill] sm:$0xff] }
 0xc0f   : > { %v4758_v22 = vpop.permute.xlu0 %4757  ;;  %v4787_v44 = vmul.f32 %v4773_v20, %v8313_v9  ;;  %v4803_v27 = vpack.c.bf16 %v14923_v19, %v14922_v23  ;;  %v14924_v11 = vld [vmem:[#allocation91_spill] sm:$0xff]  ;;  %v4814_v23 = vpack.c.bf16 %v12126_v30, %v12121_v59  ;;  %v7316_v19 = vld [vmem:[#allocation6 + $0x28] ss:$20 sps:$4 sm:$0xff]  }
 0xc10   : > { %v4766_v46 = vsel %vm776_vm7, %v4742_v35, %v4758_v22  ;;  %v4774_v17 = vsel %vm776_vm7, %v4758_v22, %v4742_v35  ;;  %v14921_v35 = vld [vmem:[#allocation89_spill] sm:$0xff]  ;;  %v4806_v20 = vpack.c.bf16 %v12304_v43, %v14924_v11  ;;  %v14927_v43 = vld [vmem:[#allocation74_spill] sm:$0xff] }
 0xc11   : > { %v4789_v33 = vmul.f32 %v4774_v17, %v8313_v9  ;;  %v12716_v34 = vpop.permute.xlu1 %4823  ;;  %5060 = vmatpush1.bf16.msra.mxu0 %v4795_v40  ;;  %v4798_v12 = vpack.c.bf16 %v4766_v46, %v4765_v32  ;;  %v4804_v58 = vpack.c.bf16 %v14921_v35, %v14920_v4  ;;  %v14925_v32 = vld [vmem:[#allocation90_spill] sm:$0xff]  ;;  %v7317_v11 = vld [vmem:[#allocation6 + $0x54] ss:$20 sps:$4 sm:$0xff]  }
 0xc12   : > { %v4805_v46 = vpack.c.bf16 %v12286_v63, %v14925_v32  ;;  %v14926_v17 = vld [vmem:[#allocation82_spill] sm:$0xff]  ;;  %v7315_v63 = vld [vmem:[#allocation6 + $0x2c] ss:$20 sps:$4 sm:$0xff]   ;;  %v4813_v32 = vpack.c.bf16 %v12109_v25, %v12103_v24 }
 0xc13   : > { %v4797_v55 = vpack.c.bf16 %v4789_v33, %v4787_v44  ;;  %5061 = vmatprep.subr.bf16.mxu0 %v4798_v12  ;;  %v12718_v1 = vpop.permute.xlu0 %4825  ;;  %v4808_v44 = vpack.c.bf16 %v14926_v17, %v12013_v53 }
 0xc15   : > { %v12722_v41 = vpop.permute.xlu1 %4839  ;;  %5062 = vmatpush1.bf16.msra.mxu0 %v4797_v55  ;;  %v4807_v55 = vpack.c.bf16 %v14927_v43, %v11992_v36 }
 0xc16   : > { %5063 = vmatprep.subr.bf16.mxu0 %v4800_v56  ;;  %v7314_v56 = vld [vmem:[#allocation6] ss:$20 sps:$4 sm:$0xff]  }
 0xc17   : > { %v12724_v51 = vpop.permute.xlu0 %4841 }
 0xc19   : > { %v12730_v16 = vpop.permute.xlu1 %4827  ;;  %5064 = vmatpush1.bf16.msra.mxu0 %v4799_v8  ;;  %v4810_v8 = vpack.c.bf16 %v12055_v0, %v12049_v29 }
 0xc1a   : > { %5065 = vmatprep.subr.bf16.mxu0 %v4802_v60 }
 0xc1b   : > { %v12732_v61 = vpop.permute.xlu0 %4829 }
 0xc1d   : > { %v12738_v54 = vpop.permute.xlu1 %4843  ;;  %5066 = vmatpush1.bf16.msra.mxu0 %v4801_v14  ;;  %v4812_v14 = vpack.c.bf16 %v12091_v7, %v12085_v42 }
 0xc1e   : > { %5067 = vmatprep.subr.bf16.mxu0 %v4804_v58  ;;  %v4811_v58 = vpack.c.bf16 %v12073_v49, %v12067_v13 }
 0xc1f   : > { %v12740_v10 = vpop.permute.xlu0 %4845 }
 0xc21   : > { %v12746_v40 = vpop.permute.xlu1 %4831  ;;  %5068 = vmatpush1.bf16.msra.mxu0 %v4803_v27 }
 0xc22   : > { %5069 = vmatprep.subr.bf16.mxu0 %v4806_v20 }
 0xc23   : > { %v12748_v22 = vpop.permute.xlu0 %4833 }
 0xc25   : > { %v12754_v33 = vpop.permute.xlu1 %4847  ;;  %5070 = vmatpush1.bf16.msra.mxu0 %v4805_v46  ;;  %v4816_v46 = vpack.c.bf16 %v12344_v47, %v12333_v50  ;;  %v4817_v47 = vpack.c.bf16 %v12364_v2, %v12353_v37  ;;  %v14929_v2 = vld [vmem:[#allocation20_spill] sm:$0xff] }
 0xc26   : > { %5112 = vmatprep.subr.bf16.mxu0 %v4808_v44 }
 0xc27   : > { %v12756_v12 = vpop.permute.xlu0 %4849 }
 0xc28   : > { %5072 = vmatmul.mubr.bf16.vlgmr.msra.gmra.mrb[32].mxu0 %v7314_v56  ;;  %v4815_v56 = vpack.c.bf16 %v12324_v62, %v12313_v45  ;;  %v4864_v62 = vsel %vm1017_vm8, %v12724_v51, %v12718_v1  ;;  %v4863_v45 = vsel %vm1017_vm8, %v12722_v41, %v12716_v34 }
 0xc29   : > { %v12762_v60 = vpop.permute.xlu1 %4835  ;;  %5113 = vmatpush1.bf16.msra.mxu0 %v4807_v55  ;;  %5081 = vmatprep.mubr.bf16.mxu0 %v7315_v63  ;;  %v7318_v63 = vld [vmem:[#allocation6 + $0x50] ss:$20 sps:$4 sm:$0xff]  }
 0xc2a   : > { %5114 = vmatprep.subr.bf16.mxu0 %v4810_v8  ;;  %v4818_v8 = vpack.c.bf16 %v12385_v6, %v12373_v3 }
 0xc2b   : > { %v12764_v28 = vpop.permute.xlu0 %4897 }
 0xc2d   : > { %v12770_v4 = vpop.permute.xlu1 %4851  ;;  %5115 = vmatpush1.bf16.msra.mxu0 %v4809_v21 }
 0xc2e   : > { %5116 = vmatprep.subr.bf16.mxu0 %v4812_v14  ;;  %v7319_v14 = vld [vmem:[#allocation6 + $0x7c] ss:$20 sps:$4 sm:$0xff]  }
 0xc2f   : > { %v12772_v35 = vpop.permute.xlu0 %4913 }
 0xc30   : > { %5082 = vmatmul.mubr.bf16.gmra.mrb[36].mxu0 %v7316_v19  ;;  %v7320_v19 = vld [vmem:[#allocation6 + $0x78] ss:$20 sps:$4 sm:$0xff]  }
 0xc31   : > { %v12778_v27 = vpop.permute.xlu1 %4895  ;;  %5117 = vmatpush1.bf16.msra.mxu0 %v4811_v58  ;;  %5091 = vmatprep.mubr.bf16.mxu0 %v7317_v11  ;;  %v4820_v58 = vpack.c.bf16 %v12419_v31, %v12411_v26  ;;  %v4874_v26 = vmul.f32 %v4864_v62, %v14929_v2  ;;  %v4822_v31 = vpack.c.bf16 %v12450_v57, %v12445_v48 }
 0xc32   : > { %5118 = vmatprep.subr.bf16.mxu0 %v4814_v23  ;;  %v14928_v23 = vld [vmem:[#allocation95_spill] sm:$0xff]  ;;  %v4866_v11 = vsel %vm1017_vm8, %v12740_v10, %v12732_v61  ;;  %v4821_v57 = vpack.c.bf16 %v12437_v52, %v12427_v39  ;;  %v4855_v39 = vsel %vm1017_vm8, %v12716_v34, %v12722_v41 }
 0xc33   : > { %v12780_v20 = vpop.permute.xlu0 %4901  ;;  %v4819_v37 = vpack.c.bf16 %v12403_v15, %v14928_v23  ;;  %v4865_v15 = vsel %vm1017_vm8, %v12738_v54, %v12730_v16 }
 0xc34   : > { %v4876_v52 = vmul.f32 %v4865_v15, %v14929_v2  ;;  %v4859_v15 = vsel %vm1017_vm8, %v12746_v40, %v12754_v33 }
 0xc35   : > { %v12786_v44 = vpop.permute.xlu1 %4911  ;;  %5119 = vmatpush1.bf16.msra.mxu0 %v4813_v32 }
 0xc36   : > { %5120 = vmatprep.subr.bf16.mxu0 %v4816_v46  ;;  %v7321_v46 = vld [vmem:[#allocation6 + $0xc] ss:$20 sps:$4 sm:$0xff]  }
 0xc37   : > { %v12788_v55 = vpop.permute.xlu0 %4917 }
 0xc38   : > { %5092 = vmatmul.mubr.bf16.gmra.mrb[40].mxu0 %v7318_v63  ;;  %v4878_v63 = vmul.f32 %v4866_v11, %v14929_v2  ;;  %v4860_v11 = vsel %vm1017_vm8, %v12748_v22, %v12756_v12 }
 0xc39   : > { %v12794_v21 = vpop.permute.xlu1 %4899  ;;  %5121 = vmatpush1.bf16.msra.mxu0 %v4815_v56  ;;  %5101 = vmatprep.mubr.bf16.mxu0 %v7319_v14  ;;  %v4872_v56 = vmul.f32 %v4863_v45, %v14929_v2  ;;  %v4858_v45 = vsel %vm1017_vm8, %v12732_v61, %v12740_v10  ;;  %v4869_v61 = vsel %vm1017_vm8, %v12770_v4, %v12762_v60 }
 0xc3a   : > { %5122 = vmatprep.subr.bf16.mxu0 %v4818_v8  ;;  %v4856_v8 = vsel %vm1017_vm8, %v12718_v1, %v12724_v51  ;;  %v4867_v51 = vsel %vm1017_vm8, %v12754_v33, %v12746_v40 }
 0xc3b   : > { %v4838_v50 = vpop.permute.xlu0 %4837  ;;  %v4888_v14 = vpack.c.bf16 %v4874_v26, %v4872_v56  ;;  %v4887_v1 = vpack.c.bf16 %v4856_v8, %v4855_v39  ;;  %v4857_v26 = vsel %vm1017_vm8, %v12730_v16, %v12738_v54  ;;  %v4935_v16 = vsel %vm1017_vm8, %v12786_v44, %v12778_v27 }
 0xc3c   : > { %v4861_v39 = vsel %vm1017_vm8, %v12762_v60, %v12770_v4 }
 0xc3d   : > { %v12804_v3 = vpop.permute.xlu1 %4915  ;;  %5123 = vmatpush1.bf16.msra.mxu0 %v4817_v47  ;;  %v4868_v47 = vsel %vm1017_vm8, %v12756_v12, %v12748_v22  ;;  %v4891_v22 = vpack.c.bf16 %v4860_v11, %v4859_v15  ;;  %v4936_v12 = vsel %vm1017_vm8, %v12772_v35, %v12764_v28  ;;  %v4930_v11 = vsel %vm1017_vm8, %v12780_v20, %v12788_v55 }
 0xc3e   : > { %5124 = vmatprep.subr.bf16.mxu0 %v4820_v58  ;;  %v4882_v23 = vmul.f32 %v4868_v47, %v14929_v2  ;;  %v4937_v40 = vsel %vm1017_vm8, %v12804_v3, %v12794_v21 }
 0xc3f   : > { %v4854_v6 = vpop.permute.xlu0 %4853 }
 0xc40   : > { %5102 = vmatmul.mubr.bf16.gmra.mrb[44].mxu0 %v7320_v19  ;;  %v4870_v34 = vsel %vm1017_vm8, %v4854_v6, %v4838_v50  ;;  %v4889_v19 = vpack.c.bf16 %v4858_v45, %v4857_v26  ;;  %v4948_v45 = vmul.f32 %v4937_v40, %v14929_v2 }
 0xc41   : > { %v12819_v32 = vpop.permute.xlu1 %4903  ;;  %5125 = vmatpush1.bf16.msra.mxu0 %v4819_v37  ;;  %5144 = vmatprep.mubr.bf16.mxu0 %v7321_v46  ;;  %v4890_v37 = vpack.c.bf16 %v4878_v63, %v4876_v52  ;;  %v4886_v46 = vmul.f32 %v4870_v34, %v14929_v2  ;;  %v4944_v63 = vmul.f32 %v4935_v16, %v14929_v2 }
 0xc42   : > { %5126 = vmatprep.subr.bf16.mxu0 %v4822_v31  ;;  %v4880_v31 = vmul.f32 %v4867_v51, %v14929_v2  ;;  %v4946_v52 = vmul.f32 %v4936_v12, %v14929_v2  ;;  %v4927_v51 = vsel %vm1017_vm8, %v12778_v27, %v12786_v44 }
 0xc43   : > { %v12826_v48 = vpop.permute.xlu0 %4905 }
 0xc44   : > { %v4892_v56 = vpack.c.bf16 %v4882_v23, %v4880_v31  ;;  %v4960_v23 = vpack.c.bf16 %v4946_v52, %v4944_v63  ;;  %v4929_v31 = vsel %vm1017_vm8, %v12794_v21, %v12804_v3 }
 0xc45   : > { %v12839_v58 = vpop.permute.xlu1 %4919  ;;  %5127 = vmatpush1.bf16.msra.mxu0 %v4821_v57  ;;  %v4884_v57 = vmul.f32 %v4869_v61, %v14929_v2 }
 0xc46   : > { %5128 = vmatprep.subr.bf16.mxu0 %v4888_v14  ;;  %v4862_v14 = vsel %vm1017_vm8, %v4838_v50, %v4854_v6  ;;  %v4938_v50 = vsel %vm1017_vm8, %v12788_v55, %v12780_v20  ;;  %v4939_v27 = vsel %vm1017_vm8, %v12839_v58, %v12819_v32 }
 0xc47   : > { %v4922_v62 = vpop.permute.xlu0 %4921  ;;  %v4894_v47 = vpack.c.bf16 %v4886_v46, %v4884_v57  ;;  %v4893_v6 = vpack.c.bf16 %v4862_v14, %v4861_v39  ;;  %v4950_v34 = vmul.f32 %v4938_v50, %v14929_v2  ;;  %v4952_v46 = vmul.f32 %v4939_v27, %v14929_v2  ;;  %v7322_v27 = vld [vmem:[#allocation6 + $0x8] ss:$20 sps:$4 sm:$0xff]  }
 0xc48   : > { %v4940_v60 = vsel %vm1017_vm8, %v4922_v62, %v12826_v48  ;;  %v4932_v16 = vsel %vm1017_vm8, %v12826_v48, %v4922_v62 }
 0xc49   : > { %v12857_v41 = vpop.permute.xlu1 %4907  ;;  %5129 = vmatpush1.bf16.msra.mxu0 %v4887_v1  ;;  %v4962_v61 = vpack.c.bf16 %v4950_v34, %v4948_v45 }
 0xc4a   : > { %5130 = vmatprep.subr.bf16.mxu0 %v4890_v37  ;;  %v4928_v37 = vsel %vm1017_vm8, %v12764_v28, %v12772_v35 }
 0xc4b   : > { %v4910_v10 = vpop.permute.xlu0 %4909  ;;  %v4959_v26 = vpack.c.bf16 %v4928_v37, %v4927_v51 }
 0xc4d   : > { %v12877_v54 = vpop.permute.xlu1 %4923  ;;  %5131 = vmatpush1.bf16.msra.mxu0 %v4889_v19  ;;  %v4954_v19 = vmul.f32 %v4940_v60, %v14929_v2 }
 0xc4e   : > { %5132 = vmatprep.subr.bf16.mxu0 %v4892_v56  ;;  %v4961_v56 = vpack.c.bf16 %v4930_v11, %v4929_v31  ;;  %v4941_v21 = vsel %vm1017_vm8, %v12877_v54, %v12857_v41 }
 0xc4f   : > { %v4926_v8 = vpop.permute.xlu0 %4925  ;;  %v4964_v57 = vpack.c.bf16 %v4954_v19, %v4952_v46  ;;  %v4956_v12 = vmul.f32 %v4941_v21, %v14929_v2  ;;  %v7323_v19 = vld [vmem:[#allocation6 + $0x34] ss:$20 sps:$4 sm:$0xff]  }
 0xc50   : > { %v4942_v28 = vsel %vm1017_vm8, %v4926_v8, %v4910_v10  ;;  %v4934_v14 = vsel %vm1017_vm8, %v4910_v10, %v4926_v8 }
 0xc51   : > { %v4968_v33 = vpop.permute.xlu1 %4967  ;;  %5133 = vmatpush1.bf16.msra.mxu0 %v4891_v22  ;;  %v4958_v15 = vmul.f32 %v4942_v28, %v14929_v2  ;;  %v4931_v22 = vsel %vm1017_vm8, %v12819_v32, %v12839_v58  ;;  %v4933_v32 = vsel %vm1017_vm8, %v12857_v41, %v12877_v54 }
 0xc52   : > { %5134 = vmatprep.subr.bf16.mxu0 %v4894_v47  ;;  %v4963_v63 = vpack.c.bf16 %v4932_v16, %v4931_v22  ;;  %v4965_v50 = vpack.c.bf16 %v4934_v14, %v4933_v32  ;;  %v14931_v32 = vmov 0  }
 0xc53   : > { %v4970_v1 = vpop.permute.xlu0 %4969  ;;  %v4966_v40 = vpack.c.bf16 %v4958_v15, %v4956_v12 }
 0xc55   : > { %v4984_v4 = vpop.permute.xlu1 %4983  ;;  %5135 = vmatpush1.bf16.msra.mxu0 %v4893_v6 }
 0xc56   : > { %5136 = vmatprep.subr.bf16.mxu0 %v4960_v23  ;;  %v5007_v48 = vsel %vm1017_vm8, %v4984_v4, %v4968_v33  ;;  %v4999_v60 = vsel %vm1017_vm8, %v4968_v33, %v4984_v4 }
 0xc57   : > { %v4986_v44 = vpop.permute.xlu0 %4985  ;;  %v5016_v58 = vmul.f32 %v5007_v48, %v14929_v2 }
 0xc58   : > { %v5008_v20 = vsel %vm1017_vm8, %v4986_v44, %v4970_v1  ;;  %v5000_v6 = vsel %vm1017_vm8, %v4970_v1, %v4986_v44 }
 0xc59   : > { %v4972_v35 = vpop.permute.xlu1 %4971  ;;  %5137 = vmatpush1.bf16.msra.mxu0 %v4959_v26  ;;  %v5018_v47 = vmul.f32 %v5008_v20, %v14929_v2  ;;  %v5031_v37 = vpack.c.bf16 %v5000_v6, %v4999_v60  ;;  %v7324_v20 = vld [vmem:[#allocation6 + $0x30] ss:$20 sps:$4 sm:$0xff]  }
 0xc5a   : > { %5138 = vmatprep.subr.bf16.mxu0 %v4962_v61 }
 0xc5b   : > { %v4974_v3 = vpop.permute.xlu0 %4973  ;;  %v5032_v45 = vpack.c.bf16 %v5018_v47, %v5016_v58  ;;  %v14930_v47 = vmov 0.0   ;;  %v7329_v58 = vld [vmem:[#allocation6 + $0x10] ss:$20 sps:$4 sm:$0xff]  }
 0xc5d   : > { %v4988_v55 = vpop.permute.xlu1 %4987  ;;  %5139 = vmatpush1.bf16.msra.mxu0 %v4961_v56 }
 0xc5e   : > { %5140 = vmatprep.subr.bf16.mxu0 %v4964_v57  ;;  %v5009_v10 = vsel %vm1017_vm8, %v4988_v55, %v4972_v35  ;;  %v5001_v61 = vsel %vm1017_vm8, %v4972_v35, %v4988_v55 }
 0xc5f   : > { %v4990_v62 = vpop.permute.xlu0 %4989  ;;  %v5020_v41 = vmul.f32 %v5009_v10, %v14929_v2  ;;  %v7331_v10 = vld [vmem:[#allocation6 + $0x60] ss:$20 sps:$4 sm:$0xff]  }
 0xc60   : > { %v5010_v39 = vsel %vm1017_vm8, %v4990_v62, %v4974_v3  ;;  %v5002_v26 = vsel %vm1017_vm8, %v4974_v3, %v4990_v62 }
 0xc61   : > { %v4976_v52 = vpop.permute.xlu1 %4975  ;;  %5141 = vmatpush1.bf16.msra.mxu0 %v4963_v63  ;;  %v5022_v51 = vmul.f32 %v5010_v39, %v14929_v2  ;;  %v5033_v28 = vpack.c.bf16 %v5002_v26, %v5001_v61  ;;  %v7325_v63 = vld [vmem:[#allocation6 + $0x5c] ss:$20 sps:$4 sm:$0xff]   ;;  %v7327_v39 = vld [vmem:[#allocation6 + $0x84] ss:$20 sps:$4 sm:$0xff]  }
 0xc62   : > { %5142 = vmatprep.subr.bf16.mxu0 %v4966_v40  ;;  %v7326_v40 = vld [vmem:[#allocation6 + $0x58] ss:$20 sps:$4 sm:$0xff]  }
 0xc63   : > { %v4978_v8 = vpop.permute.xlu0 %4977  ;;  %v5034_v44 = vpack.c.bf16 %v5022_v51, %v5020_v41  ;;  %v14932_v51 = vld [vmem:[#allocation22_spill] sm:$0xff]  ;;  %v14933_v41 = vld [vmem:[#allocation23_spill] sm:$0xff] }
 0xc65   : > { %v4992_v23 = vpop.permute.xlu1 %4991  ;;  %5143 = vmatpush1.bf16.msra.mxu0 %v4965_v50  ;;  %v7330_v50 = vld [vmem:[#allocation6 + $0x38] ss:$20 sps:$4 sm:$0xff]  }
 0xc66   : > { %v5011_v54 = vsel %vm1017_vm8, %v4992_v23, %v4976_v52  ;;  %5185 = vmatprep.subr.bf16.mxu0 %v5032_v45  ;;  %v5003_v3 = vsel %vm1017_vm8, %v4976_v52, %v4992_v23  ;;  %v7328_v52 = vld [vmem:[#allocation6 + $0x80] ss:$20 sps:$4 sm:$0xff]  }
 0xc67   : > { %v4994_v34 = vpop.permute.xlu0 %4993  ;;  %v5024_v31 = vmul.f32 %v5011_v54, %v14929_v2 }
 0xc68   : > { %v5012_v1 = vsel %vm1017_vm8, %v4994_v34, %v4978_v8  ;;  %5145 = vmatmul.mubr.bf16.vlgmr.msra.gmra.mrb[32].mxu0 %v7322_v27  ;;  %v5004_v56 = vsel %vm1017_vm8, %v4978_v8, %v4994_v34  ;;  %v7332_v8 = vld [vmem:[#allocation6 + $0x88] ss:$20 sps:$4 sm:$0xff]  }
 0xc69   : > { %v5026_v33 = vmul.f32 %v5012_v1, %v14929_v2  ;;  %v4980_v4 = vpop.permute.xlu1 %4979  ;;  %5186 = vmatpush1.bf16.msra.mxu0 %v5031_v37  ;;  %5154 = vmatprep.mubr.bf16.mxu0 %v7323_v19  ;;  %v5035_v15 = vpack.c.bf16 %v5004_v56, %v5003_v3  ;;  %v14934_v37 = vld [vmem:[#allocation21_spill] sm:$0xff]  ;;  %v14935_v27 = vld [vmem:[#allocation16_spill] sm:$0xff] }
 0xc6a   : > { %5187 = vmatprep.subr.bf16.mxu0 %v5034_v44 }
 0xc6b   : > { %v4982_v11 = vpop.permute.xlu0 %4981  ;;  %v5036_v46 = vpack.c.bf16 %v5026_v33, %v5024_v31 }
 0xc6d   : > { %v4996_v21 = vpop.permute.xlu1 %4995  ;;  %5188 = vmatpush1.bf16.msra.mxu0 %v5033_v28 }
 0xc6e   : > { %v5013_v16 = vsel %vm1017_vm8, %v4996_v21, %v4980_v4  ;;  %5189 = vmatprep.subr.bf16.mxu0 %v5036_v46  ;;  %v5005_v48 = vsel %vm1017_vm8, %v4980_v4, %v4996_v21 }
 0xc6f   : > { %v4998_v57 = vpop.permute.xlu0 %4997  ;;  %v5028_v55 = vmul.f32 %v5013_v16, %v14929_v2  ;;  %v14937_v16 = vld [vmem:[#allocation26_spill] sm:$0xff] }
 0xc70   : > { %v5014_v35 = vsel %vm1017_vm8, %v4998_v57, %v4982_v11  ;;  %5155 = vmatmul.mubr.bf16.gmra.mrb[36].mxu0 %v7324_v20  ;;  %v5006_v22 = vsel %vm1017_vm8, %v4982_v11, %v4998_v57 }
 0xc71   : > { %v5030_v12 = vmul.f32 %v5014_v35, %v14929_v2  ;;  %5190 = vmatpush1.bf16.msra.mxu0 %v5035_v15  ;;  %5164 = vmatprep.mubr.bf16.mxu0 %v7325_v63  ;;  %v5037_v14 = vpack.c.bf16 %v5006_v22, %v5005_v48  ;;  %v14940_v63 = vld [vmem:[#allocation29_spill] sm:$0xff] }
 0xc73   : > { %v5038_v62 = vpack.c.bf16 %v5030_v12, %v5028_v55  ;;  %v14939_v55 = vld [vmem:[#allocation27_spill] sm:$0xff] }
 0xc75   : > { %5191 = vmatprep.subr.bf16.mxu0 %v5038_v62  ;;  %v14941_v62 = vld [vmem:[#allocation30_spill] sm:$0xff] }
 0xc76   : > { %5192 = vmatpush1.bf16.msra.mxu0 %v5037_v14 }
 0xc77   : > { %6852 = vmatprep.subr.bf16.mxu0 %v14930_v47 }
 0xc78   : > { %5165 = vmatmul.mubr.bf16.gmra.mrb[40].mxu0 %v7326_v40 }
 0xc79   : > { %5174 = vmatprep.mubr.bf16.mxu0 %v7327_v39 }
 0xc80   : > { %5175 = vmatmul.mubr.bf16.gmra.mrb[44].mxu0 %v7328_v52 }
 0xc81   : > { %5217 = vmatprep.mubr.bf16.mxu0 %v14931_v32 }
 0xc88   : > { %6807 = vmatmul.mubr.msk.bf16.vlgmr.msra.gmra.mrb[32].mxu0 %vm1326_vm10, %v7329_v58 }
 0xc89   : > { %5227 = vmatprep.mubr.bf16.mxu0 %v14931_v32 }
 0xc90   : > { %6808 = vmatmul.mubr.msk.bf16.gmra.mrb[36].mxu0 %vm1326_vm10, %v7330_v50 }
 0xc91   : > { %5237 = vmatprep.mubr.bf16.mxu0 %v14931_v32 }
 0xc98   : > { %6809 = vmatmul.mubr.msk.bf16.gmra.mrb[40].mxu0 %vm1326_vm10, %v7331_v10 }
 0xc99   : > { %5247 = vmatprep.mubr.bf16.mxu0 %v14931_v32 }
 0xca0   : > { %6810 = vmatmul.mubr.msk.bf16.gmra.mrb[44].mxu0 %vm1326_vm10, %v7332_v8 }
 0xd5b   : > { %v5219_v6 = vpop.f32.mrb[32].mxu0 }
 0xd5c   : > { %v5258_v45 = vmul.f32 %v5219_v6, %v14932_v51  ;;  %v5221_v23 = vpop.f32.mrb[33].mxu0 }
 0xd5d   : > { %v5223_v60 = vpop.f32.mrb[34].mxu0  ;;  %v5259_v4 = vmul.f32 %v5221_v23, %v14932_v51 }
 0xd5e   : > { %v5274_v54 = vadd.f32 %v5258_v45, %v14933_v41  ;;  %v5260_v34 = vmul.f32 %v5223_v60, %v14934_v37  ;;  %v5225_v26 = vpop.f32.mrb[35].mxu0  ;;  %v14942_v60 = vld [vmem:[#allocation31_spill] sm:$0xff] }
 0xd5f   : > { %v5261_v28 = vmul.f32 %v5225_v26, %v14934_v37  ;;  %v5275_v46 = vadd.f32 %v5259_v4, %v14933_v41  ;;  %v14943_v37 = vld [vmem:[#allocation32_spill] sm:$0xff]  ;;  %v14944_v26 = vld [vmem:[#allocation33_spill] sm:$0xff] }
 0xd60   : > { %v13004_v1 = vmax.f32 %v5274_v54, 0.0  ;;  %v5276_v44 = vadd.f32 %v5260_v34, %v14935_v27 }
 0xd61   : > { %v5277_v56 = vadd.f32 %v5261_v28, %v14935_v27  ;;  %v13023_v3 = vmax.f32 %v5275_v46, 0.0 }
 0xd62   : > { %v13007_v31 = vmax.f32 %v5276_v44, 0.0  ;;  %5306 = vrot.lane.b32.xlu1 %v13004_v1, %s7533_s25  ;;  %v14945_v44 = vld [vmem:[#allocation34_spill] sm:$0xff] }
 0xd63   : > { %v5229_v33 = vpop.f32.mrb[36].mxu0  ;;  %v13028_v20 = vmax.f32 %v5277_v56, 0.0 }
 0xd64   : > { %14936 = vst [vmem:[#allocation92_spill] sm:$0xff] %v13007_v31  ;;  %5308 = vrot.lane.b32.xlu0 %v13007_v31, %s7533_s25  ;;  %v5231_v19 = vpop.f32.mrb[37].mxu0  ;;  %v5262_v15 = vmul.f32 %v5229_v33, %v14937_v16 }
 0xd65   : > { %v5233_v61 = vpop.f32.mrb[38].mxu0  ;;  %14938 = vst [vmem:[#allocation93_spill] sm:$0xff] %v13028_v20  ;;  %v5263_v52 = vmul.f32 %v5231_v19, %v14937_v16 }
 0xd66   : > { %5370 = vrot.lane.b32.xlu1 %v13004_v1, %s7534_s27  ;;  %v5235_v11 = vpop.f32.mrb[39].mxu0  ;;  %v5264_v22 = vmul.f32 %v5233_v61, %v14939_v55  ;;  %v5278_v48 = vadd.f32 %v5262_v15, %v14940_v63 }
 0xd67   : > { %v5265_v8 = vmul.f32 %v5235_v11, %v14939_v55  ;;  %v5279_v51 = vadd.f32 %v5263_v52, %v14940_v63  ;;  %v14948_v55 = vld [vmem:[#allocation37_spill] sm:$0xff] }
 0xd68   : > { %5372 = vrot.lane.b32.xlu0 %v13007_v31, %s7534_s27  ;;  %v5280_v14 = vadd.f32 %v5264_v22, %v14941_v62  ;;  %v13039_v39 = vmax.f32 %v5278_v48, 0.0 }
 0xd69   : > { %v5281_v45 = vadd.f32 %v5265_v8, %v14941_v62  ;;  %v13055_v23 = vmax.f32 %v5279_v51, 0.0 }
 0xd6a   : > { %5506 = vrot.lane.b32.xlu1 %v13004_v1, %s7535_s16  ;;  %v13044_v10 = vmax.f32 %v5280_v14, 0.0 }
 0xd6b   : > { %v5239_v21 = vpop.f32.mrb[40].mxu0  ;;  %v13060_v54 = vmax.f32 %v5281_v45, 0.0 }
 0xd6c   : > { %5508 = vrot.lane.b32.xlu0 %v13007_v31, %s7535_s16  ;;  %v5241_v57 = vpop.f32.mrb[41].mxu0  ;;  %v5266_v41 = vmul.f32 %v5239_v21, %v14942_v60  ;;  %v14946_v21 = vld [vmem:[#allocation35_spill] sm:$0xff] }
 0xd6d   : > { %v5243_v35 = vpop.f32.mrb[42].mxu0  ;;  %v5267_v19 = vmul.f32 %v5241_v57, %v14942_v60  ;;  %v14947_v57 = vld [vmem:[#allocation36_spill] sm:$0xff] }
 0xd6e   : > { %5322 = vrot.lane.b32.xlu1 %v13023_v3, %s7533_s25  ;;  %v5245_v12 = vpop.f32.mrb[43].mxu0  ;;  %v5268_v34 = vmul.f32 %v5243_v35, %v14943_v37  ;;  %v5282_v27 = vadd.f32 %v5266_v41, %v14944_v26 }
 0xd6f   : > { %v5269_v28 = vmul.f32 %v5245_v12, %v14943_v37  ;;  %v5283_v11 = vadd.f32 %v5267_v19, %v14944_v26  ;;  %v14949_v12 = vld [vmem:[#allocation38_spill] sm:$0xff] }
 0xd70   : > { %5324 = vrot.lane.b32.xlu0 %v13028_v20, %s7533_s25  ;;  %v5284_v33 = vadd.f32 %v5268_v34, %v14945_v44  ;;  %v13071_v4 = vmax.f32 %v5282_v27, 0.0  ;;  %v14950_v27 = vld [vmem:[#allocation18_spill] sm:$0xff] }
 0xd71   : > { %v5285_v46 = vadd.f32 %v5269_v28, %v14945_v44  ;;  %v13087_v56 = vmax.f32 %v5283_v11, 0.0 }
 0xd72   : > { %5386 = vrot.lane.b32.xlu1 %v13023_v3, %s7534_s27  ;;  %v13076_v61 = vmax.f32 %v5284_v33, 0.0 }
 0xd73   : > { %v5249_v40 = vpop.f32.mrb[44].mxu0  ;;  %v13092_v15 = vmax.f32 %v5285_v46, 0.0 }
 0xd74   : > { %5388 = vrot.lane.b32.xlu0 %v13028_v20, %s7534_s27  ;;  %v5251_v58 = vpop.f32.mrb[45].mxu0  ;;  %v5270_v16 = vmul.f32 %v5249_v40, %v14946_v21 }
 0xd75   : > { %v5253_v50 = vpop.f32.mrb[46].mxu0  ;;  %v5271_v62 = vmul.f32 %v5251_v58, %v14946_v21 }
 0xd76   : > { %5310 = vrot.lane.b32.xlu1 %v13039_v39, %s7533_s25  ;;  %v5255_v6 = vpop.f32.mrb[47].mxu0  ;;  %v5272_v35 = vmul.f32 %v5253_v50, %v14947_v57  ;;  %v5286_v22 = vadd.f32 %v5270_v16, %v14948_v55  ;;  %v14951_v16 = vld [vmem:[#allocation19_spill] sm:$0xff] }
 0xd77   : > { %v5273_v40 = vmul.f32 %v5255_v6, %v14947_v57  ;;  %v5287_v52 = vadd.f32 %v5271_v62, %v14948_v55 }
 0xd78   : > { %5312 = vrot.lane.b32.xlu0 %v13044_v10, %s7533_s25  ;;  %v5288_v63 = vadd.f32 %v5272_v35, %v14949_v12  ;;  %v13103_v48 = vmax.f32 %v5286_v22, 0.0 }
 0xd79   : > { %v5289_v50 = vadd.f32 %v5273_v40, %v14949_v12  ;;  %v13119_v58 = vmax.f32 %v5287_v52, 0.0 }
 0xd7a   : > { %5374 = vrot.lane.b32.xlu1 %v13039_v39, %s7534_s27  ;;  %v13108_v14 = vmax.f32 %v5288_v63, 0.0 }
 0xd7b   : > { %v13123_v8 = vmax.f32 %v5289_v50, 0.0 }
 0xd7c   : > { %5376 = vrot.lane.b32.xlu0 %v13044_v10, %s7534_s27 }
 0xd7e   : > { %5326 = vrot.lane.b32.xlu1 %v13055_v23, %s7533_s25 }
 0xd80   : > { %5328 = vrot.lane.b32.xlu0 %v13060_v54, %s7533_s25 }
 0xd82   : > { %5390 = vrot.lane.b32.xlu1 %v13055_v23, %s7534_s27 }
 0xd84   : > { %5392 = vrot.lane.b32.xlu0 %v13060_v54, %s7534_s27 }
 0xd86   : > { %5314 = vrot.lane.b32.xlu1 %v13071_v4, %s7533_s25 }
 0xd88   : > { %5316 = vrot.lane.b32.xlu0 %v13076_v61, %s7533_s25 }
 0xd8a   : > { %5378 = vrot.lane.b32.xlu1 %v13071_v4, %s7534_s27 }
 0xd8c   : > { %5380 = vrot.lane.b32.xlu0 %v13076_v61, %s7534_s27 }
 0xd8e   : > { %5330 = vrot.lane.b32.xlu1 %v13087_v56, %s7533_s25 }
 0xd90   : > { %5332 = vrot.lane.b32.xlu0 %v13092_v15, %s7533_s25 }
 0xd92   : > { %5394 = vrot.lane.b32.xlu1 %v13087_v56, %s7534_s27 }
 0xd94   : > { %5396 = vrot.lane.b32.xlu0 %v13092_v15, %s7534_s27 }
 0xd96   : > { %5318 = vrot.lane.b32.xlu1 %v13103_v48, %s7533_s25 }
 0xd98   : > { %5320 = vrot.lane.b32.xlu0 %v13108_v14, %s7533_s25 }
 0xd9a   : > { %5382 = vrot.lane.b32.xlu1 %v13103_v48, %s7534_s27 }
 0xd9c   : > { %5384 = vrot.lane.b32.xlu0 %v13108_v14, %s7534_s27 }
 0xd9e   : > { %5334 = vrot.lane.b32.xlu1 %v13119_v58, %s7533_s25 }
 0xda0   : > { %5336 = vrot.lane.b32.xlu0 %v13123_v8, %s7533_s25  ;;  %s15037_s25 = sld [smem:[#allocation97_spill]] }
 0xda2   : > { %5522 = vrot.lane.b32.xlu1 %v13023_v3, %s7535_s16 }
 0xda4   : > { %5524 = vrot.lane.b32.xlu0 %v13028_v20, %s7535_s16 }
 0xda6   : > { %5398 = vrot.lane.b32.xlu1 %v13119_v58, %s7534_s27 }
 0xda8   : > { %5512 = vrot.lane.b32.xlu0 %v13044_v10, %s7535_s16 }
 0xdaa   : > { %5510 = vrot.lane.b32.xlu1 %v13039_v39, %s7535_s16 }
 0xdac   : > { %5528 = vrot.lane.b32.xlu0 %v13060_v54, %s7535_s16 }
 0xdae   : > { %5526 = vrot.lane.b32.xlu1 %v13055_v23, %s7535_s16 }
 0xdb0   : > { %5516 = vrot.lane.b32.xlu0 %v13076_v61, %s7535_s16 }
 0xdb2   : > { %5514 = vrot.lane.b32.xlu1 %v13071_v4, %s7535_s16 }
 0xdb4   : > { %5532 = vrot.lane.b32.xlu0 %v13092_v15, %s7535_s16 }
 0xdb6   : > { %5530 = vrot.lane.b32.xlu1 %v13087_v56, %s7535_s16 }
 0xdb8   : > { %5520 = vrot.lane.b32.xlu0 %v13108_v14, %s7535_s16 }
 0xdba   : > { %5518 = vrot.lane.b32.xlu1 %v13103_v48, %s7535_s16 }
 0xdbc   : > { %5400 = vrot.lane.b32.xlu0 %v13123_v8, %s7534_s27  ;;  %s6841_s27 = sshll.u32 %s7646_s14, 11  ;;  %s6633_s14 = scalar_lea.sflag [#allocation5], %s7797_s29 }
 0xdbe   : > { %5534 = vrot.lane.b32.xlu1 %v13119_v58, %s7535_s16 }
 0xdc0   : > { %5536 = vrot.lane.b32.xlu0 %v13123_v8, %s7535_s16 }
 0xdd4   : > { %v5307_v6 = vpop.permute.xlu1 %5306 }
 0xdd6   : > { %v5309_v51 = vpop.permute.xlu0 %5308 }
 0xdd8   : > { %v13161_v45 = vpop.permute.xlu1 %5370 }
 0xdda   : > { %v13163_v60 = vpop.permute.xlu0 %5372 }
 0xddc   : > { %v13165_v41 = vpop.permute.xlu1 %5506 }
 0xdde   : > { %v13167_v37 = vpop.permute.xlu0 %5508 }
 0xde0   : > { %v5323_v34 = vpop.permute.xlu1 %5322 }
 0xde1   : > { %v5346_v26 = vsel %vm646_vm1, %v5323_v34, %v5307_v6  ;;  %v5338_v19 = vsel %vm646_vm1, %v5307_v6, %v5323_v34 }
 0xde2   : > { %v13172_v44 = vmul.f32 %v5346_v26, %v14950_v27  ;;  %v5325_v33 = vpop.permute.xlu0 %5324  ;;  %v13188_v57 = vmul.f32 %v5338_v19, %v14951_v16 }
 0xde3   : > { %v5347_v28 = vsel %vm646_vm1, %v5325_v33, %v5309_v51  ;;  %v5339_v21 = vsel %vm646_vm1, %v5309_v51, %v5325_v33 }
 0xde4   : > { %v13179_v11 = vmul.f32 %v5347_v28, %v14950_v27  ;;  %v13181_v46 = vpop.permute.xlu1 %5386  ;;  %5434 = vrot.lane.b32.xlu1 %v13172_v44, %s7535_s16  ;;  %v13195_v55 = vmul.f32 %v5339_v21, %v14951_v16 }
 0xde6   : > { %v13190_v35 = vpop.permute.xlu0 %5388  ;;  %5436 = vrot.lane.b32.xlu0 %v13179_v11, %s7535_s16 }
 0xde8   : > { %v5311_v22 = vpop.permute.xlu1 %5310  ;;  %5450 = vrot.lane.b32.xlu1 %v13188_v57, %s7535_s16 }
 0xdea   : > { %v5313_v12 = vpop.permute.xlu0 %5312  ;;  %5452 = vrot.lane.b32.xlu0 %v13195_v55, %s7535_s16 }
 0xdec   : > { %v13201_v63 = vpop.permute.xlu1 %5374 }
 0xdee   : > { %v13203_v62 = vpop.permute.xlu0 %5376 }
 0xdf0   : > { %v5327_v40 = vpop.permute.xlu1 %5326 }
 0xdf1   : > { %v5348_v52 = vsel %vm646_vm1, %v5327_v40, %v5311_v22  ;;  %v5340_v51 = vsel %vm646_vm1, %v5311_v22, %v5327_v40 }
 0xdf2   : > { %v13208_v50 = vmul.f32 %v5348_v52, %v14950_v27  ;;  %v5329_v6 = vpop.permute.xlu0 %5328  ;;  %v13224_v28 = vmul.f32 %v5340_v51, %v14951_v16 }
 0xdf3   : > { %v5349_v34 = vsel %vm646_vm1, %v5329_v6, %v5313_v12  ;;  %v5341_v19 = vsel %vm646_vm1, %v5313_v12, %v5329_v6 }
 0xdf4   : > { %14952 = vst [vmem:[#allocation94_spill] sm:$0xff] %v13208_v50  ;;  %v13215_v26 = vmul.f32 %v5349_v34, %v14950_v27  ;;  %v13217_v33 = vpop.permute.xlu1 %5390  ;;  %5438 = vrot.lane.b32.xlu1 %v13208_v50, %s7535_s16  ;;  %v13231_v22 = vmul.f32 %v5341_v19, %v14951_v16 }
 0xdf6   : > { %14953 = vst [vmem:[#allocation96_spill] sm:$0xff] %v13215_v26  ;;  %v13226_v21 = vpop.permute.xlu0 %5392  ;;  %5440 = vrot.lane.b32.xlu0 %v13215_v26, %s7535_s16 }
 0xdf8   : > { %v5315_v40 = vpop.permute.xlu1 %5314  ;;  %5454 = vrot.lane.b32.xlu1 %v13224_v28, %s7535_s16 }
 0xdfa   : > { %v5317_v52 = vpop.permute.xlu0 %5316  ;;  %5456 = vrot.lane.b32.xlu0 %v13231_v22, %s7535_s16 }
 0xdfc   : > { %v13237_v12 = vpop.permute.xlu1 %5378 }
 0xdfe   : > { %v13239_v6 = vpop.permute.xlu0 %5380 }
 0xe00   : > { %v5331_v51 = vpop.permute.xlu1 %5330 }
 0xe01   : > { %v5350_v34 = vsel %vm646_vm1, %v5331_v51, %v5315_v40  ;;  %v5342_v30 = vsel %vm646_vm1, %v5315_v40, %v5331_v51 }
 0xe02   : > { %v13244_v47 = vmul.f32 %v5350_v34, %v14950_v27  ;;  %v5333_v19 = vpop.permute.xlu0 %5332  ;;  %v13258_v34 = vmul.f32 %v5342_v30, %v14951_v16 }
 0xe03   : > { %v5351_v25 = vsel %vm646_vm1, %v5333_v19, %v5317_v52  ;;  %v5343_v7 = vsel %vm646_vm1, %v5317_v52, %v5333_v19 }
 0xe04   : > { %14954 = vst [vmem:[#allocation84_spill] sm:$0xff] %v13244_v47  ;;  %v13251_v59 = vmul.f32 %v5351_v25, %v14950_v27  ;;  %v5395_v24 = vpop.permute.xlu1 %5394  ;;  %5442 = vrot.lane.b32.xlu1 %v13244_v47, %s7535_s16  ;;  %14956 = vst [vmem:[#allocation88_spill] sm:$0xff] %v13258_v34  ;;  %v13263_v40 = vmul.f32 %v5343_v7, %v14951_v16 }
 0xe06   : > { %14955 = vst [vmem:[#allocation85_spill] sm:$0xff] %v13251_v59  ;;  %v5397_v49 = vpop.permute.xlu0 %5396  ;;  %5444 = vrot.lane.b32.xlu0 %v13251_v59, %s7535_s16  ;;  %14957 = vst [vmem:[#allocation89_spill] sm:$0xff] %v13263_v40 }
 0xe08   : > { %v5319_v51 = vpop.permute.xlu1 %5318  ;;  %5458 = vrot.lane.b32.xlu1 %v13258_v34, %s7535_s16 }
 0xe0a   : > { %v5321_v25 = vpop.permute.xlu0 %5320  ;;  %5460 = vrot.lane.b32.xlu0 %v13263_v40, %s7535_s16 }
 0xe0c   : > { %v13269_v42 = vpop.permute.xlu1 %5382 }
 0xe0e   : > { %v13271_v52 = vpop.permute.xlu0 %5384 }
 0xe10   : > { %v5335_v30 = vpop.permute.xlu1 %5334 }
 0xe11   : > { %v5352_v19 = vsel %vm646_vm1, %v5335_v30, %v5319_v51  ;;  %v5344_v0 = vsel %vm646_vm1, %v5319_v51, %v5335_v30  ;;  %v14960_v51 = vld [vmem:[#allocation24_spill] sm:$0xff] }
 0xe12   : > { %v13276_v13 = vmul.f32 %v5352_v19, %v14950_v27  ;;  %v5337_v7 = vpop.permute.xlu0 %5336  ;;  %v13290_v17 = vmul.f32 %v5344_v0, %v14951_v16  ;;  %v5403_v0 = vsel %vm711_vm4, %v13163_v60, %v13190_v35 }
 0xe13   : > { %v5353_v5 = vsel %vm646_vm1, %v5337_v7, %v5321_v25  ;;  %v5345_v38 = vsel %vm646_vm1, %v5321_v25, %v5337_v7  ;;  %v5411_v7 = vsel %vm711_vm4, %v13190_v35, %v13163_v60  ;;  %v5405_v60 = vsel %vm711_vm4, %v13203_v62, %v13226_v21 }
 0xe14   : > { %14958 = vst [vmem:[#allocation86_spill] sm:$0xff] %v13276_v13  ;;  %v13283_v29 = vmul.f32 %v5353_v5, %v14950_v27  ;;  %5446 = vrot.lane.b32.xlu1 %v13276_v13, %s7535_s16  ;;  %14959 = vst [vmem:[#allocation87_spill] sm:$0xff] %v13290_v17  ;;  %v5402_v5 = vsel %vm711_vm4, %v13161_v45, %v13181_v46  ;;  %v13301_v27 = vmul.f32 %v5345_v38, %v14951_v16  ;;  %v13372_v32 = vpop.permute.xlu1 %5522 }
 0xe15   : > { %v13310_v25 = vmul.f32 %v5402_v5, %v14960_v51  ;;  %v5410_v38 = vsel %vm711_vm4, %v13181_v46, %v13161_v45  ;;  %v13321_v16 = vmul.f32 %v5403_v0, %v14960_v51  ;;  %v14961_v5 = vld [vmem:[#allocation25_spill] sm:$0xff]  ;;  %v5404_v45 = vsel %vm711_vm4, %v13201_v63, %v13217_v33 }
 0xe16   : > { %5448 = vrot.lane.b32.xlu0 %v13283_v29, %s7535_s16  ;;  %v13294_v19 = vpop.permute.xlu0 %5524  ;;  %v13330_v43 = vmul.f32 %v5410_v38, %v14961_v5  ;;  %v13341_v46 = vmul.f32 %v5411_v7, %v14961_v5  ;;  %v13350_v35 = vmul.f32 %v5404_v45, %v14960_v51  ;;  %v5412_v38 = vsel %vm711_vm4, %v13217_v33, %v13201_v63 }
 0xe17   : > { %v13361_v7 = vmul.f32 %v5405_v60, %v14960_v51  ;;  %v5413_v45 = vsel %vm711_vm4, %v13226_v21, %v13203_v62  ;;  %v13370_v36 = vmul.f32 %v5412_v38, %v14961_v5  ;;  %v5406_v33 = vsel %vm711_vm4, %v13237_v12, %v5395_v24 }
 0xe18   : > { %5462 = vrot.lane.b32.xlu1 %v13290_v17, %s7535_s16  ;;  %v13382_v60 = vmul.f32 %v5413_v45, %v14961_v5  ;;  %v5407_v62 = vsel %vm711_vm4, %v13239_v6, %v5397_v49  ;;  %v13390_v21 = vmul.f32 %v5406_v33, %v14960_v51  ;;  %v5414_v45 = vsel %vm711_vm4, %v5395_v24, %v13237_v12 }
 0xe19   : > { %14964 = vst [vmem:[#allocation95_spill] sm:$0xff] %v13361_v7  ;;  %v13400_v2 = vmul.f32 %v5407_v62, %v14960_v51  ;;  %v5415_v33 = vsel %vm711_vm4, %v5397_v49, %v13239_v6 }
 0xe1a   : > { %5464 = vrot.lane.b32.xlu0 %v13301_v27, %s7535_s16  ;;  %v13314_v30 = vpop.permute.xlu0 %5512  ;;  %14966 = vst [vmem:[#allocation23_spill] sm:$0xff] %v13390_v21  ;;  %v13416_v12 = vmul.f32 %v5415_v33, %v14961_v5 }
 0xe1c   : > { %5578 = vrot.lane.b32.xlu1 %v13310_v25, %s7535_s16 }
 0xe1e   : > { %5580 = vrot.lane.b32.xlu0 %v13321_v16, %s7535_s16  ;;  %v13334_v53 = vpop.permute.xlu0 %5528 }
 0xe1f   : > { %14962 = vst [vmem:[#allocation91_spill] sm:$0xff] %v13334_v53 }
 0xe20   : > { %5594 = vrot.lane.b32.xlu1 %v13330_v43, %s7535_s16 }
 0xe22   : > { %5596 = vrot.lane.b32.xlu0 %v13341_v46, %s7535_s16  ;;  %v13354_v0 = vpop.permute.xlu0 %5516 }
 0xe23   : > { %14963 = vst [vmem:[#allocation90_spill] sm:$0xff] %v13354_v0  ;;  %v13408_v0 = vmul.f32 %v5414_v45, %v14961_v5 }
 0xe24   : > { %5582 = vrot.lane.b32.xlu1 %v13350_v35, %s7535_s16 }
 0xe26   : > { %5584 = vrot.lane.b32.xlu0 %v13361_v7, %s7535_s16  ;;  %v13376_v63 = vpop.permute.xlu0 %5532 }
 0xe27   : > { %14965 = vst [vmem:[#allocation22_spill] sm:$0xff] %v13376_v63  ;;  %v5399_v63 = vpop.permute.xlu1 %5398 }
 0xe28   : > { %5598 = vrot.lane.b32.xlu1 %v13370_v36, %s7535_s16  ;;  %v5408_v24 = vsel %vm711_vm4, %v13269_v42, %v5399_v63  ;;  %v5416_v62 = vsel %vm711_vm4, %v5399_v63, %v13269_v42 }
 0xe29   : > { %v13424_v6 = vmul.f32 %v5408_v24, %v14960_v51  ;;  %v13442_v53 = vmul.f32 %v5416_v62, %v14961_v5 }
 0xe2a   : > { %5600 = vrot.lane.b32.xlu0 %v13382_v60, %s7535_s16  ;;  %v13394_v38 = vpop.permute.xlu0 %5520 }
 0xe2b   : > { %14967 = vst [vmem:[#allocation21_spill] sm:$0xff] %v13394_v38  ;;  %v13431_v45 = vpop.permute.xlu1 %5510 }
 0xe2c   : > { %5586 = vrot.lane.b32.xlu1 %v13390_v21, %s7535_s16 }
 0xe2e   : > { %5588 = vrot.lane.b32.xlu0 %v13400_v2, %s7535_s16  ;;  %v5401_v38 = vpop.permute.xlu0 %5400 }
 0xe2f   : > { %v5409_v49 = vsel %vm711_vm4, %v13271_v52, %v5401_v38  ;;  %v5417_v24 = vsel %vm711_vm4, %v5401_v38, %v13271_v52 }
 0xe30   : > { %5602 = vrot.lane.b32.xlu1 %v13408_v0, %s7535_s16  ;;  %v13434_v33 = vmul.f32 %v5409_v49, %v14960_v51  ;;  %v13447_v42 = vmul.f32 %v5417_v24, %v14961_v5  ;;  %v13451_v51 = vpop.permute.xlu1 %5526 }
 0xe32   : > { %5604 = vrot.lane.b32.xlu0 %v13416_v12, %s7535_s16  ;;  %v13487_v49 = vpop.permute.xlu0 %5536 }
 0xe34   : > { %5590 = vrot.lane.b32.xlu1 %v13424_v6, %s7535_s16  ;;  %v13459_v52 = vpop.permute.xlu1 %5514 }
 0xe36   : > { %5592 = vrot.lane.b32.xlu0 %v13434_v33, %s7535_s16 }
 0xe38   : > { %5606 = vrot.lane.b32.xlu1 %v13442_v53, %s7535_s16  ;;  %v13467_v5 = vpop.permute.xlu1 %5530 }
 0xe3a   : > { %5608 = vrot.lane.b32.xlu0 %v13447_v42, %s7535_s16 }
 0xe3c   : > { %5674 = vrot.lane.b32.xlu1 %v13172_v44, %s7537_s11  ;;  %v13475_v63 = vpop.permute.xlu1 %5518 }
 0xe3e   : > { %5676 = vrot.lane.b32.xlu0 %v13179_v11, %s7537_s11 }
 0xe40   : > { %5690 = vrot.lane.b32.xlu1 %v13188_v57, %s7537_s11  ;;  %v13483_v38 = vpop.permute.xlu1 %5534 }
 0xe42   : > { %5692 = vrot.lane.b32.xlu0 %v13195_v55, %s7537_s11 }
 0xe44   : > { %5678 = vrot.lane.b32.xlu1 %v13208_v50, %s7537_s11 }
 0xe46   : > { %5680 = vrot.lane.b32.xlu0 %v13215_v26, %s7537_s11 }
 0xe48   : > { %5694 = vrot.lane.b32.xlu1 %v13224_v28, %s7537_s11 }
 0xe4a   : > { %5696 = vrot.lane.b32.xlu0 %v13231_v22, %s7537_s11 }
 0xe4c   : > { %5682 = vrot.lane.b32.xlu1 %v13244_v47, %s7537_s11 }
 0xe4e   : > { %5684 = vrot.lane.b32.xlu0 %v13251_v59, %s7537_s11 }
 0xe50   : > { %5698 = vrot.lane.b32.xlu1 %v13258_v34, %s7537_s11 }
 0xe52   : > { %5700 = vrot.lane.b32.xlu0 %v13263_v40, %s7537_s11 }
 0xe54   : > { %5686 = vrot.lane.b32.xlu1 %v13276_v13, %s7537_s11 }
 0xe56   : > { %v5435_v62 = vpop.permute.xlu1 %5434  ;;  %5748 = vrot.lane.b32.xlu0 %v13007_v31, %s7537_s11 }
 0xe58   : > { %5702 = vrot.lane.b32.xlu1 %v13290_v17, %s7537_s11  ;;  %v5437_v24 = vpop.permute.xlu0 %5436 }
 0xe5a   : > { %v5451_v59 = vpop.permute.xlu1 %5450  ;;  %5764 = vrot.lane.b32.xlu0 %v13028_v20, %s7537_s11 }
 0xe5b   : > { %v5474_v47 = vsel %vm776_vm7, %v5451_v59, %v5435_v62  ;;  %v5466_v13 = vsel %vm776_vm7, %v5435_v62, %v5451_v59 }
 0xe5c   : > { %5746 = vrot.lane.b32.xlu1 %v13004_v1, %s7537_s11  ;;  %v5453_v40 = vpop.permute.xlu0 %5452  ;;  %v5482_v34 = vmul.f32 %v5474_v47, %v8313_v9 }
 0xe5d   : > { %v5467_v31 = vsel %vm776_vm7, %v5437_v24, %v5453_v40  ;;  %v5475_v17 = vsel %vm776_vm7, %v5453_v40, %v5437_v24 }
 0xe5e   : > { %v5484_v20 = vmul.f32 %v5475_v17, %v8313_v9  ;;  %v5499_v26 = vpack.c.bf16 %v5467_v31, %v5466_v13  ;;  %5752 = vrot.lane.b32.xlu0 %v13044_v10, %s7537_s11 }
 0xe60   : > { %v5498_v50 = vpack.c.bf16 %v5484_v20, %v5482_v34  ;;  %5762 = vrot.lane.b32.xlu1 %v13023_v3, %s7537_s11  ;;  %5890 = vmatprep.subr.bf16.mxu1 %v5499_v26 }
 0xe62   : > { %5768 = vrot.lane.b32.xlu0 %v13060_v54, %s7537_s11  ;;  %5891 = vmatpush1.bf16.msra.mxu1 %v5498_v50 }
 0xe64   : > { %5750 = vrot.lane.b32.xlu1 %v13039_v39, %s7537_s11 }
 0xe66   : > { %v5439_v59 = vpop.permute.xlu1 %5438  ;;  %5688 = vrot.lane.b32.xlu0 %v13283_v29, %s7537_s11 }
 0xe68   : > { %5766 = vrot.lane.b32.xlu1 %v13055_v23, %s7537_s11  ;;  %v5441_v13 = vpop.permute.xlu0 %5440 }
 0xe6a   : > { %v5455_v17 = vpop.permute.xlu1 %5454  ;;  %5704 = vrot.lane.b32.xlu0 %v13301_v27, %s7537_s11 }
 0xe6b   : > { %v5476_v47 = vsel %vm776_vm7, %v5455_v17, %v5439_v59  ;;  %v5468_v20 = vsel %vm776_vm7, %v5439_v59, %v5455_v17 }
 0xe6c   : > { %5754 = vrot.lane.b32.xlu1 %v13071_v4, %s7537_s11  ;;  %v5457_v31 = vpop.permute.xlu0 %5456  ;;  %v5486_v34 = vmul.f32 %v5476_v47, %v8313_v9 }
 0xe6d   : > { %v5469_v50 = vsel %vm776_vm7, %v5441_v13, %v5457_v31  ;;  %v5477_v26 = vsel %vm776_vm7, %v5457_v31, %v5441_v13 }
 0xe6e   : > { %v5488_v40 = vmul.f32 %v5477_v26, %v8313_v9  ;;  %v5501_v62 = vpack.c.bf16 %v5469_v50, %v5468_v20  ;;  %5756 = vrot.lane.b32.xlu0 %v13076_v61, %s7537_s11 }
 0xe70   : > { %v5500_v24 = vpack.c.bf16 %v5488_v40, %v5486_v34  ;;  %5770 = vrot.lane.b32.xlu1 %v13087_v56, %s7537_s11  ;;  %5892 = vmatprep.subr.bf16.mxu1 %v5501_v62 }
 0xe72   : > { %5772 = vrot.lane.b32.xlu0 %v13092_v15, %s7537_s11  ;;  %5893 = vmatpush1.bf16.msra.mxu1 %v5500_v24 }
 0xe74   : > { %5758 = vrot.lane.b32.xlu1 %v13103_v48, %s7537_s11 }
 0xe76   : > { %v5443_v59 = vpop.permute.xlu1 %5442  ;;  %5760 = vrot.lane.b32.xlu0 %v13108_v14, %s7537_s11 }
 0xe78   : > { %5774 = vrot.lane.b32.xlu1 %v13119_v58, %s7537_s11  ;;  %v5445_v13 = vpop.permute.xlu0 %5444 }
 0xe7a   : > { %v5459_v17 = vpop.permute.xlu1 %5458  ;;  %5776 = vrot.lane.b32.xlu0 %v13123_v8, %s7537_s11 }
 0xe7b   : > { %v5478_v47 = vsel %vm776_vm7, %v5459_v17, %v5443_v59  ;;  %v5470_v20 = vsel %vm776_vm7, %v5443_v59, %v5459_v17 }
 0xe7c   : > { %5818 = vrot.lane.b32.xlu1 %v13310_v25, %s7537_s11  ;;  %v5461_v31 = vpop.permute.xlu0 %5460  ;;  %v5490_v34 = vmul.f32 %v5478_v47, %v8313_v9 }
 0xe7d   : > { %v5471_v50 = vsel %vm776_vm7, %v5445_v13, %v5461_v31  ;;  %v5479_v26 = vsel %vm776_vm7, %v5461_v31, %v5445_v13 }
 0xe7e   : > { %v5492_v40 = vmul.f32 %v5479_v26, %v8313_v9  ;;  %v5503_v62 = vpack.c.bf16 %v5471_v50, %v5470_v20  ;;  %5820 = vrot.lane.b32.xlu0 %v13321_v16, %s7537_s11  ;;  %v5547_v20 = vsel %vm776_vm7, %v13294_v19, %v13167_v37 }
 0xe80   : > { %v5502_v24 = vpack.c.bf16 %v5492_v40, %v5490_v34  ;;  %5834 = vrot.lane.b32.xlu1 %v13330_v43, %s7537_s11  ;;  %5894 = vmatprep.subr.bf16.mxu1 %v5503_v62  ;;  %v5539_v40 = vsel %vm776_vm7, %v13167_v37, %v13294_v19  ;;  %v5556_v37 = vmul.f32 %v5547_v20, %v8313_v9 }
 0xe82   : > { %5836 = vrot.lane.b32.xlu0 %v13341_v46, %s7537_s11  ;;  %5895 = vmatpush1.bf16.msra.mxu1 %v5502_v24 }
 0xe84   : > { %5822 = vrot.lane.b32.xlu1 %v13350_v35, %s7537_s11 }
 0xe86   : > { %v5447_v59 = vpop.permute.xlu1 %5446  ;;  %5824 = vrot.lane.b32.xlu0 %v13361_v7, %s7537_s11 }
 0xe88   : > { %5838 = vrot.lane.b32.xlu1 %v13370_v36, %s7537_s11  ;;  %v5449_v13 = vpop.permute.xlu0 %5448 }
 0xe8a   : > { %v5463_v17 = vpop.permute.xlu1 %5462  ;;  %5840 = vrot.lane.b32.xlu0 %v13382_v60, %s7537_s11 }
 0xe8b   : > { %v5480_v47 = vsel %vm776_vm7, %v5463_v17, %v5447_v59  ;;  %v5472_v50 = vsel %vm776_vm7, %v5447_v59, %v5463_v17  ;;  %v5546_v59 = vsel %vm776_vm7, %v13372_v32, %v13165_v41 }
 0xe8c   : > { %5826 = vrot.lane.b32.xlu1 %v13390_v21, %s7537_s11  ;;  %v5465_v31 = vpop.permute.xlu0 %5464  ;;  %v5494_v62 = vmul.f32 %v5480_v47, %v8313_v9  ;;  %v5548_v47 = vsel %vm776_vm7, %v13451_v51, %v13431_v45 }
 0xe8d   : > { %v5473_v26 = vsel %vm776_vm7, %v5449_v13, %v5465_v31  ;;  %v5481_v34 = vsel %vm776_vm7, %v5465_v31, %v5449_v13  ;;  %v5538_v13 = vsel %vm776_vm7, %v13165_v41, %v13372_v32  ;;  %v5540_v32 = vsel %vm776_vm7, %v13431_v45, %v13451_v51 }
 0xe8e   : > { %v5496_v24 = vmul.f32 %v5481_v34, %v8313_v9  ;;  %v5505_v21 = vpack.c.bf16 %v5473_v26, %v5472_v50  ;;  %v5579_v7 = vpop.permute.xlu1 %5578  ;;  %5828 = vrot.lane.b32.xlu0 %v13400_v2, %s7537_s11  ;;  %v5571_v31 = vpack.c.bf16 %v5539_v40, %v5538_v13  ;;  %v5554_v50 = vmul.f32 %v5546_v59, %v8313_v9  ;;  %v14969_v13 = vld [vmem:[#allocation90_spill] sm:$0xff] }
 0xe8f   : > { %v5558_v40 = vmul.f32 %v5548_v47, %v8313_v9  ;;  %v5550_v51 = vsel %vm776_vm7, %v13467_v5, %v13459_v52  ;;  %v5542_v59 = vsel %vm776_vm7, %v13459_v52, %v13467_v5  ;;  %v14971_v5 = vld [vmem:[#allocation21_spill] sm:$0xff] }
 0xe90   : > { %v5504_v19 = vpack.c.bf16 %v5496_v24, %v5494_v62  ;;  %5842 = vrot.lane.b32.xlu1 %v13408_v0, %s7537_s11  ;;  %5896 = vmatprep.subr.bf16.mxu1 %v5505_v21  ;;  %v5581_v17 = vpop.permute.xlu0 %5580  ;;  %v14968_v21 = vld [vmem:[#allocation91_spill] sm:$0xff]  ;;  %v5570_v26 = vpack.c.bf16 %v5556_v37, %v5554_v50  ;;  %v14970_v37 = vld [vmem:[#allocation22_spill] sm:$0xff]  ;;  %v5562_v50 = vmul.f32 %v5550_v51, %v8313_v9 }
 0xe91   : > { %v5549_v20 = vsel %vm776_vm7, %v14968_v21, %v13314_v30  ;;  %v5541_v34 = vsel %vm776_vm7, %v13314_v30, %v14968_v21 }
 0xe92   : > { %v5595_v41 = vpop.permute.xlu1 %5594  ;;  %5844 = vrot.lane.b32.xlu0 %v13416_v12, %s7537_s11  ;;  %5897 = vmatpush1.bf16.msra.mxu1 %v5504_v19  ;;  %v5573_v62 = vpack.c.bf16 %v5541_v34, %v5540_v32  ;;  %v5560_v24 = vmul.f32 %v5549_v20, %v8313_v9  ;;  %v5551_v19 = vsel %vm776_vm7, %v14970_v37, %v14969_v13 }
 0xe93   : > { %5898 = vmatprep.subr.bf16.mxu1 %v5571_v31  ;;  %v5543_v31 = vsel %vm776_vm7, %v14969_v13, %v14970_v37  ;;  %v5553_v32 = vsel %vm776_vm7, %v13487_v49, %v14971_v5  ;;  %v5564_v20 = vmul.f32 %v5551_v19, %v8313_v9 }
 0xe94   : > { %5830 = vrot.lane.b32.xlu1 %v13424_v6, %s7537_s11  ;;  %v5597_v45 = vpop.permute.xlu0 %5596  ;;  %v5572_v47 = vpack.c.bf16 %v5560_v24, %v5558_v40  ;;  %v5575_v21 = vpack.c.bf16 %v5543_v31, %v5542_v59  ;;  %v5552_v40 = vsel %vm776_vm7, %v13483_v38, %v13475_v63  ;;  %v5568_v24 = vmul.f32 %v5553_v32, %v8313_v9 }
 0xe95   : > { %v5574_v51 = vpack.c.bf16 %v5564_v20, %v5562_v50  ;;  %v5619_v59 = vsel %vm776_vm7, %v5597_v45, %v5581_v17  ;;  %v5566_v37 = vmul.f32 %v5552_v40, %v8313_v9  ;;  %v5611_v19 = vsel %vm776_vm7, %v5581_v17, %v5597_v45 }
 0xe96   : > { %v5583_v30 = vpop.permute.xlu1 %5582  ;;  %5832 = vrot.lane.b32.xlu0 %v13434_v33, %s7537_s11  ;;  %5899 = vmatpush1.bf16.msra.mxu1 %v5570_v26  ;;  %v5545_v26 = vsel %vm776_vm7, %v14971_v5, %v13487_v49  ;;  %v5618_v31 = vsel %vm776_vm7, %v5595_v41, %v5579_v7 }
 0xe97   : > { %5900 = vmatprep.subr.bf16.mxu1 %v5573_v62  ;;  %v5544_v62 = vsel %vm776_vm7, %v13475_v63, %v13483_v38  ;;  %v5576_v50 = vpack.c.bf16 %v5568_v24, %v5566_v37  ;;  %v5610_v63 = vsel %vm776_vm7, %v5579_v7, %v5595_v41  ;;  %v5628_v38 = vmul.f32 %v5619_v59, %v8313_v9 }
 0xe98   : > { %5846 = vrot.lane.b32.xlu1 %v13442_v53, %s7537_s11  ;;  %v5585_v52 = vpop.permute.xlu0 %5584  ;;  %v5577_v13 = vpack.c.bf16 %v5545_v26, %v5544_v62  ;;  %v5643_v32 = vpack.c.bf16 %v5611_v19, %v5610_v63  ;;  %v5626_v20 = vmul.f32 %v5618_v31, %v8313_v9 }
 0xe9a   : > { %v5599_v34 = vpop.permute.xlu1 %5598  ;;  %5848 = vrot.lane.b32.xlu0 %v13447_v42, %s7537_s11  ;;  %5901 = vmatpush1.bf16.msra.mxu1 %v5572_v47  ;;  %v5642_v40 = vpack.c.bf16 %v5628_v38, %v5626_v20  ;;  %s14259_s11 = scalar_lea.vmem [#allocation9], %s6747_s24 }
 0xe9b   : > { %5902 = vmatprep.subr.bf16.mxu1 %v5575_v21  ;;  %v5620_v26 = vsel %vm776_vm7, %v5599_v34, %v5583_v30  ;;  %v5612_v7 = vsel %vm776_vm7, %v5583_v30, %v5599_v34 }
 0xe9c   : > { %v5601_v49 = vpop.permute.xlu0 %5600  ;;  %v5630_v59 = vmul.f32 %v5620_v26, %v8313_v9 }
 0xe9d   : > { %v5621_v21 = vsel %vm776_vm7, %v5601_v49, %v5585_v52  ;;  %v5613_v17 = vsel %vm776_vm7, %v5585_v52, %v5601_v49 }
 0xe9e   : > { %v5587_v47 = vpop.permute.xlu1 %5586  ;;  %5903 = vmatpush1.bf16.msra.mxu1 %v5574_v51  ;;  %v5632_v41 = vmul.f32 %v5621_v21, %v8313_v9  ;;  %v5645_v62 = vpack.c.bf16 %v5613_v17, %v5612_v7 }
 0xe9f   : > { %5904 = vmatprep.subr.bf16.mxu1 %v5577_v13 }
 0xea0   : > { %v5589_v5 = vpop.permute.xlu0 %5588  ;;  %v5644_v37 = vpack.c.bf16 %v5632_v41, %v5630_v59  ;;  %v5653_v59 = vpack.c.bf16 %v13231_v22, %v13224_v28  ;;  %v14977_v28 = vld [vmem:[#allocation85_spill] sm:$0xff] }
 0xea2   : > { %v5603_v45 = vpop.permute.xlu1 %5602  ;;  %5905 = vmatpush1.bf16.msra.mxu1 %v5576_v50 }
 0xea3   : > { %5906 = vmatprep.subr.bf16.mxu1 %v5643_v32  ;;  %v5622_v13 = vsel %vm776_vm7, %v5603_v45, %v5587_v47  ;;  %v5614_v30 = vsel %vm776_vm7, %v5587_v47, %v5603_v45 }
 0xea4   : > { %v5605_v51 = vpop.permute.xlu0 %5604  ;;  %v5634_v50 = vmul.f32 %v5622_v13, %v8313_v9  ;;  %v14972_v13 = vld [vmem:[#allocation94_spill] sm:$0xff] }
 0xea5   : > { %v5623_v24 = vsel %vm776_vm7, %v5605_v51, %v5589_v5  ;;  %v5615_v52 = vsel %vm776_vm7, %v5589_v5, %v5605_v51  ;;  %v5651_v51 = vpack.c.bf16 %v13195_v55, %v13188_v57  ;;  %v14973_v57 = vld [vmem:[#allocation96_spill] sm:$0xff] }
 0xea6   : > { %v5591_v49 = vpop.permute.xlu1 %5590  ;;  %5907 = vmatpush1.bf16.msra.mxu1 %v5642_v40  ;;  %v5636_v34 = vmul.f32 %v5623_v24, %v8313_v9  ;;  %v5647_v31 = vpack.c.bf16 %v5615_v52, %v5614_v30  ;;  %v5652_v55 = vpack.c.bf16 %v14973_v57, %v14972_v13  ;;  %v14975_v30 = vld [vmem:[#allocation89_spill] sm:$0xff]  ;;  %v7335_v57 = vld [vmem:[#allocation8 + $0x28] ss:$20 sps:$4 sm:$0xff]  }
 0xea7   : > { %5908 = vmatprep.subr.bf16.mxu1 %v5645_v62 }
 0xea8   : > { %v5593_v19 = vpop.permute.xlu0 %5592  ;;  %v5646_v5 = vpack.c.bf16 %v5636_v34, %v5634_v50 }
 0xeaa   : > { %v5607_v63 = vpop.permute.xlu1 %5606  ;;  %5909 = vmatpush1.bf16.msra.mxu1 %v5644_v37  ;;  %v14974_v37 = vld [vmem:[#allocation88_spill] sm:$0xff] }
 0xeab   : > { %v5624_v38 = vsel %vm776_vm7, %v5607_v63, %v5591_v49  ;;  %5910 = vmatprep.subr.bf16.mxu1 %v5647_v31  ;;  %v5616_v21 = vsel %vm776_vm7, %v5591_v49, %v5607_v63  ;;  %v5655_v34 = vpack.c.bf16 %v14975_v30, %v14974_v37  ;;  %v14978_v31 = vld [vmem:[#allocation87_spill] sm:$0xff] }
 0xeac   : > { %v5609_v32 = vpop.permute.xlu0 %5608  ;;  %v5638_v17 = vmul.f32 %v5624_v38, %v8313_v9  ;;  %v5657_v50 = vpack.c.bf16 %v13301_v27, %v14978_v31  ;;  %v14981_v27 = vld [vmem:[#allocation92_spill] sm:$0xff]  ;;  %v7337_v37 = vld [vmem:[#allocation8 + $0x50] ss:$20 sps:$4 sm:$0xff]  }
 0xead   : > { %v5617_v47 = vsel %vm776_vm7, %v5593_v19, %v5609_v32  ;;  %v5625_v20 = vsel %vm776_vm7, %v5609_v32, %v5593_v19 }
 0xeae   : > { %v5640_v45 = vmul.f32 %v5625_v20, %v8313_v9  ;;  %v5649_v26 = vpack.c.bf16 %v5617_v47, %v5616_v21  ;;  %v13713_v40 = vpop.permute.xlu1 %5674  ;;  %5911 = vmatpush1.bf16.msra.mxu1 %v5646_v5  ;;  %v5650_v9 = vpack.c.bf16 %v13179_v11, %v13172_v44  ;;  %v14976_v11 = vld [vmem:[#allocation84_spill] sm:$0xff]  ;;  %v14979_v5 = vld [vmem:[#allocation86_spill] sm:$0xff]  ;;  %v14980_v21 = vld [vmem:[#allocation93_spill] sm:$0xff] }
 0xeaf   : > { %v5654_v22 = vpack.c.bf16 %v14977_v28, %v14976_v11  ;;  %v5656_v32 = vpack.c.bf16 %v13283_v29, %v14979_v5  ;;  %v5659_v47 = vpack.c.bf16 %v14980_v21, %v13023_v3  ;;  %v7334_v29 = vld [vmem:[#allocation8 + $0x2c] ss:$20 sps:$4 sm:$0xff]  }
 0xeb0   : > { %v5648_v7 = vpack.c.bf16 %v5640_v45, %v5638_v17  ;;  %5912 = vmatprep.subr.bf16.mxu1 %v5649_v26  ;;  %v13715_v41 = vpop.permute.xlu0 %5676  ;;  %v5658_v45 = vpack.c.bf16 %v14981_v27, %v13004_v1  ;;  %v7333_v26 = vld [vmem:[#allocation8] ss:$20 sps:$4 sm:$0xff]   ;;  %v14984_v28 = vld [vmem:[#allocation20_spill] sm:$0xff] }
 0xeb1   : > { %v14983_v11 = vld [vmem:[#allocation23_spill] sm:$0xff] }
 0xeb2   : > { %v13719_v62 = vpop.permute.xlu1 %5690  ;;  %5913 = vmatpush1.bf16.msra.mxu1 %v5648_v7  ;;  %v5661_v7 = vpack.c.bf16 %v13060_v54, %v13055_v23  ;;  %v5662_v23 = vpack.c.bf16 %v13076_v61, %v13071_v4  ;;  %v5665_v54 = vpack.c.bf16 %v13123_v8, %v13119_v58  ;;  %v5666_v58 = vpack.c.bf16 %v13321_v16, %v13310_v25  ;;  %v7340_v5 = vld [vmem:[#allocation8 + $0xc] ss:$20 sps:$4 sm:$0xff]  }
 0xeb3   : > { %5914 = vmatprep.subr.bf16.mxu1 %v5651_v51  ;;  %v5669_v8 = vpack.c.bf16 %v13382_v60, %v13370_v36  ;;  %v5714_v16 = vsel %vm1017_vm8, %v13719_v62, %v13713_v40 }
 0xeb4   : > { %v13721_v24 = vpop.permute.xlu0 %5692 }
 0xeb5   : > { %v5715_v36 = vsel %vm1017_vm8, %v13721_v24, %v13715_v41  ;;  %v5707_v21 = vsel %vm1017_vm8, %v13715_v41, %v13721_v24 }
 0xeb6   : > { %v13727_v52 = vpop.permute.xlu1 %5678  ;;  %5915 = vmatpush1.bf16.msra.mxu1 %v5650_v9  ;;  %v5660_v9 = vpack.c.bf16 %v13044_v10, %v13039_v39  ;;  %v7336_v39 = vld [vmem:[#allocation8 + $0x54] ss:$20 sps:$4 sm:$0xff]  }
 0xeb7   : > { %5916 = vmatprep.subr.bf16.mxu1 %v5653_v59  ;;  %v5663_v59 = vpack.c.bf16 %v13092_v15, %v13087_v56  ;;  %v5664_v56 = vpack.c.bf16 %v13108_v14, %v13103_v48  ;;  %v5667_v15 = vpack.c.bf16 %v13341_v46, %v13330_v43  ;;  %v7338_v48 = vld [vmem:[#allocation8 + $0x7c] ss:$20 sps:$4 sm:$0xff]   ;;  %v14982_v14 = vld [vmem:[#allocation95_spill] sm:$0xff] }
 0xeb8   : > { %v13729_v49 = vpop.permute.xlu0 %5680  ;;  %v5668_v46 = vpack.c.bf16 %v14982_v14, %v13350_v35  ;;  %v5670_v35 = vpack.c.bf16 %v13400_v2, %v14983_v11 }
 0xeba   : > { %v13735_v19 = vpop.permute.xlu1 %5694  ;;  %5917 = vmatpush1.bf16.msra.mxu1 %v5652_v55 }
 0xebb   : > { %5918 = vmatprep.subr.bf16.mxu1 %v5655_v34  ;;  %v5671_v34 = vpack.c.bf16 %v13416_v12, %v13408_v0  ;;  %v5725_v0 = vmul.f32 %v5715_v36, %v14984_v28  ;;  %v5673_v12 = vpack.c.bf16 %v13447_v42, %v13442_v53  ;;  %v5716_v53 = vsel %vm1017_vm8, %v13735_v19, %v13727_v52 }
 0xebc   : > { %v13737_v44 = vpop.permute.xlu0 %5696  ;;  %v5672_v42 = vpack.c.bf16 %v13434_v33, %v13424_v6  ;;  %v5706_v6 = vsel %vm1017_vm8, %v13713_v40, %v13719_v62  ;;  %v5727_v33 = vmul.f32 %v5716_v53, %v14984_v28 }
 0xebd   : > { %v5717_v31 = vsel %vm1017_vm8, %v13737_v44, %v13729_v49  ;;  %v5738_v41 = vpack.c.bf16 %v5707_v21, %v5706_v6 }
 0xebe   : > { %v13743_v63 = vpop.permute.xlu1 %5682  ;;  %5919 = vmatpush1.bf16.msra.mxu1 %v5654_v22  ;;  %v7339_v22 = vld [vmem:[#allocation8 + $0x78] ss:$20 sps:$4 sm:$0xff]  }
 0xebf   : > { %5920 = vmatprep.subr.bf16.mxu1 %v5657_v50 }
 0xec0   : > { %v13745_v38 = vpop.permute.xlu0 %5684 }
 0xec2   : > { %v13751_v20 = vpop.permute.xlu1 %5698  ;;  %5921 = vmatpush1.bf16.msra.mxu1 %v5656_v32  ;;  %v5723_v32 = vmul.f32 %v5714_v16, %v14984_v28 }
 0xec3   : > { %5963 = vmatprep.subr.bf16.mxu1 %v5659_v47  ;;  %v5729_v47 = vmul.f32 %v5717_v31, %v14984_v28  ;;  %v5718_v24 = vsel %vm1017_vm8, %v13751_v20, %v13743_v63 }
 0xec4   : > { %v13753_v17 = vpop.permute.xlu0 %5700  ;;  %v5739_v27 = vpack.c.bf16 %v5725_v0, %v5723_v32 }
 0xec5   : > { %5923 = vmatmul.mubr.bf16.vlgmr.msra.gmra.mrb[32].mxu1 %v7333_v26 }
 0xec6   : > { %v13759_v51 = vpop.permute.xlu1 %5686  ;;  %5964 = vmatpush1.bf16.msra.mxu1 %v5658_v45  ;;  %5932 = vmatprep.mubr.bf16.mxu1 %v7334_v29  ;;  %v5719_v45 = vsel %vm1017_vm8, %v13753_v17, %v13745_v38  ;;  %v5709_v29 = vsel %vm1017_vm8, %v13729_v49, %v13737_v44 }
 0xec7   : > { %5965 = vmatprep.subr.bf16.mxu1 %v5661_v7 }
 0xec8   : > { %v13761_v3 = vpop.permute.xlu0 %5748 }
 0xeca   : > { %v13767_v1 = vpop.permute.xlu1 %5702  ;;  %5966 = vmatpush1.bf16.msra.mxu1 %v5660_v9  ;;  %v5733_v9 = vmul.f32 %v5719_v45, %v14984_v28 }
 0xecb   : > { %5967 = vmatprep.subr.bf16.mxu1 %v5663_v59  ;;  %v5741_v59 = vpack.c.bf16 %v5729_v47, %v5727_v33  ;;  %v5720_v49 = vsel %vm1017_vm8, %v13767_v1, %v13759_v51 }
 0xecc   : > { %v13769_v13 = vpop.permute.xlu0 %5764 }
 0xecd   : > { %5933 = vmatmul.mubr.bf16.gmra.mrb[36].mxu1 %v7335_v57 }
 0xece   : > { %v13775_v55 = vpop.permute.xlu1 %5746  ;;  %5968 = vmatpush1.bf16.msra.mxu1 %v5662_v23  ;;  %5942 = vmatprep.mubr.bf16.mxu1 %v7336_v39  ;;  %v5708_v23 = vsel %vm1017_vm8, %v13727_v52, %v13735_v19  ;;  %v5711_v39 = vsel %vm1017_vm8, %v13745_v38, %v13753_v17  ;;  %v5787_v17 = vsel %vm1017_vm8, %v13769_v13, %v13761_v3 }
 0xecf   : > { %5969 = vmatprep.subr.bf16.mxu1 %v5665_v54  ;;  %v5731_v54 = vmul.f32 %v5718_v24, %v14984_v28  ;;  %v5740_v57 = vpack.c.bf16 %v5709_v29, %v5708_v23  ;;  %v5797_v36 = vmul.f32 %v5787_v17, %v14984_v28 }
 0xed0   : > { %v13777_v10 = vpop.permute.xlu0 %5752 }
 0xed2   : > { %v13783_v4 = vpop.permute.xlu1 %5762  ;;  %5970 = vmatpush1.bf16.msra.mxu1 %v5664_v56 }
 0xed3   : > { %5971 = vmatprep.subr.bf16.mxu1 %v5667_v15  ;;  %v5743_v15 = vpack.c.bf16 %v5733_v9, %v5731_v54  ;;  %v5786_v52 = vsel %vm1017_vm8, %v13783_v4, %v13775_v55  ;;  %v5778_v11 = vsel %vm1017_vm8, %v13775_v55, %v13783_v4 }
 0xed4   : > { %v13785_v61 = vpop.permute.xlu0 %5768 }
 0xed5   : > { %5943 = vmatmul.mubr.bf16.gmra.mrb[40].mxu1 %v7337_v37 }
 0xed6   : > { %v13791_v30 = vpop.permute.xlu1 %5750  ;;  %5972 = vmatpush1.bf16.msra.mxu1 %v5666_v58  ;;  %5952 = vmatprep.mubr.bf16.mxu1 %v7338_v48  ;;  %v5710_v58 = vsel %vm1017_vm8, %v13743_v63, %v13751_v20  ;;  %v5795_v48 = vmul.f32 %v5786_v52, %v14984_v28 }
 0xed7   : > { %5973 = vmatprep.subr.bf16.mxu1 %v5669_v8  ;;  %v5735_v8 = vmul.f32 %v5720_v49, %v14984_v28  ;;  %v5742_v38 = vpack.c.bf16 %v5711_v39, %v5710_v58 }
 0xed8   : > { %v5689_v43 = vpop.permute.xlu0 %5688  ;;  %v5811_v0 = vpack.c.bf16 %v5797_v36, %v5795_v48 }
 0xeda   : > { %v13801_v25 = vpop.permute.xlu1 %5766  ;;  %5974 = vmatpush1.bf16.msra.mxu1 %v5668_v46 }
 0xedb   : > { %5975 = vmatprep.subr.bf16.mxu1 %v5671_v34  ;;  %v5788_v63 = vsel %vm1017_vm8, %v13801_v25, %v13791_v30  ;;  %v5712_v34 = vsel %vm1017_vm8, %v13759_v51, %v13767_v1 }
 0xedc   : > { %v5705_v60 = vpop.permute.xlu0 %5704 }
 0xedd   : > { %5953 = vmatmul.mubr.bf16.gmra.mrb[44].mxu1 %v7339_v22  ;;  %v5721_v40 = vsel %vm1017_vm8, %v5705_v60, %v5689_v43  ;;  %v5713_v14 = vsel %vm1017_vm8, %v5689_v43, %v5705_v60  ;;  %v5789_v43 = vsel %vm1017_vm8, %v13785_v61, %v13777_v10 }
 0xede   : > { %v13816_v50 = vpop.permute.xlu1 %5754  ;;  %5976 = vmatpush1.bf16.msra.mxu1 %v5670_v35  ;;  %5995 = vmatprep.mubr.bf16.mxu1 %v7340_v5  ;;  %v5737_v56 = vmul.f32 %v5721_v40, %v14984_v28  ;;  %v5744_v16 = vpack.c.bf16 %v5713_v14, %v5712_v34  ;;  %v5799_v35 = vmul.f32 %v5788_v63, %v14984_v28 }
 0xedf   : > { %5977 = vmatprep.subr.bf16.mxu1 %v5673_v12  ;;  %v5779_v12 = vsel %vm1017_vm8, %v13761_v3, %v13769_v13  ;;  %v5801_v22 = vmul.f32 %v5789_v43, %v14984_v28  ;;  %v5780_v5 = vsel %vm1017_vm8, %v13791_v30, %v13801_v25 }
 0xee0   : > { %v13823_v2 = vpop.permute.xlu0 %5756  ;;  %v5745_v46 = vpack.c.bf16 %v5737_v56, %v5735_v8  ;;  %v5810_v31 = vpack.c.bf16 %v5779_v12, %v5778_v11 }
 0xee1   : > { %v5813_v53 = vpack.c.bf16 %v5801_v22, %v5799_v35  ;;  %v7343_v22 = vld [vmem:[#allocation8 + $0x30] ss:$20 sps:$4 sm:$0xff]  }
 0xee2   : > { %v13836_v26 = vpop.permute.xlu1 %5770  ;;  %5978 = vmatpush1.bf16.msra.mxu1 %v5672_v42  ;;  %v5781_v42 = vsel %vm1017_vm8, %v13777_v10, %v13785_v61 }
 0xee3   : > { %5979 = vmatprep.subr.bf16.mxu1 %v5739_v27  ;;  %v5790_v55 = vsel %vm1017_vm8, %v13836_v26, %v13816_v50  ;;  %v5812_v47 = vpack.c.bf16 %v5781_v42, %v5780_v5  ;;  %v5782_v33 = vsel %vm1017_vm8, %v13816_v50, %v13836_v26  ;;  %v7344_v5 = vld [vmem:[#allocation8 + $0x5c] ss:$20 sps:$4 sm:$0xff]   ;;  %v7346_v42 = vld [vmem:[#allocation8 + $0x84] ss:$20 sps:$4 sm:$0xff]  }
 0xee4   : > { %v5773_v7 = vpop.permute.xlu0 %5772  ;;  %v5803_v21 = vmul.f32 %v5790_v55, %v14984_v28 }
 0xee5   : > { %v5791_v51 = vsel %vm1017_vm8, %v5773_v7, %v13823_v2  ;;  %v5783_v27 = vsel %vm1017_vm8, %v13823_v2, %v5773_v7 }
 0xee6   : > { %v13854_v62 = vpop.permute.xlu1 %5758  ;;  %5980 = vmatpush1.bf16.msra.mxu1 %v5738_v41  ;;  %v5805_v32 = vmul.f32 %v5791_v51, %v14984_v28  ;;  %v5814_v24 = vpack.c.bf16 %v5783_v27, %v5782_v33 }
 0xee7   : > { %5981 = vmatprep.subr.bf16.mxu1 %v5741_v59 }
 0xee8   : > { %v5761_v44 = vpop.permute.xlu0 %5760  ;;  %v5815_v6 = vpack.c.bf16 %v5805_v32, %v5803_v21  ;;  %v7347_v21 = vld [vmem:[#allocation8 + $0x80] ss:$20 sps:$4 sm:$0xff]  }
 0xeea   : > { %v13874_v19 = vpop.permute.xlu1 %5774  ;;  %5982 = vmatpush1.bf16.msra.mxu1 %v5740_v57 }
 0xeeb   : > { %5983 = vmatprep.subr.bf16.mxu1 %v5743_v15  ;;  %v5792_v30 = vsel %vm1017_vm8, %v13874_v19, %v13854_v62  ;;  %v5784_v50 = vsel %vm1017_vm8, %v13854_v62, %v13874_v19 }
 0xeec   : > { %v5777_v37 = vpop.permute.xlu0 %5776  ;;  %v5807_v41 = vmul.f32 %v5792_v30, %v14984_v28  ;;  %v7348_v30 = vld [vmem:[#allocation8 + $0x10] ss:$20 sps:$4 sm:$0xff]  }
 0xeed   : > { %v5793_v3 = vsel %vm1017_vm8, %v5777_v37, %v5761_v44  ;;  %v5785_v29 = vsel %vm1017_vm8, %v5761_v44, %v5777_v37  ;;  %v7341_v37 = vld [vmem:[#allocation8 + $0x8] ss:$20 sps:$4 sm:$0xff]  }
 0xeee   : > { %v5819_v20 = vpop.permute.xlu1 %5818  ;;  %5984 = vmatpush1.bf16.msra.mxu1 %v5742_v38  ;;  %v5809_v45 = vmul.f32 %v5793_v3, %v14984_v28  ;;  %v5816_v54 = vpack.c.bf16 %v5785_v29, %v5784_v50  ;;  %v14990_v50 = vld [vmem:[#allocation50_spill] sm:$0xff] }
 0xeef   : > { %5985 = vmatprep.subr.bf16.mxu1 %v5745_v46 }
 0xef0   : > { %v5821_v60 = vpop.permute.xlu0 %5820  ;;  %v5817_v59 = vpack.c.bf16 %v5809_v45, %v5807_v41  ;;  %v14986_v45 = vld [vmem:[#allocation46_spill] sm:$0xff]  ;;  %v14987_v41 = vld [vmem:[#allocation48_spill] sm:$0xff] }
 0xef2   : > { %v5835_v1 = vpop.permute.xlu1 %5834  ;;  %5986 = vmatpush1.bf16.msra.mxu1 %v5744_v16 }
 0xef3   : > { %5987 = vmatprep.subr.bf16.mxu1 %v5811_v0  ;;  %v5858_v2 = vsel %vm1017_vm8, %v5835_v1, %v5819_v20  ;;  %v5850_v52 = vsel %vm1017_vm8, %v5819_v20, %v5835_v1  ;;  %v7342_v20 = vld [vmem:[#allocation8 + $0x34] ss:$20 sps:$4 sm:$0xff]  }
 0xef4   : > { %v5837_v4 = vpop.permute.xlu0 %5836  ;;  %v5867_v26 = vmul.f32 %v5858_v2, %v14984_v28  ;;  %v14988_v2 = vld [vmem:[#allocation47_spill] sm:$0xff] }
 0xef5   : > { %v5859_v10 = vsel %vm1017_vm8, %v5837_v4, %v5821_v60  ;;  %v5851_v44 = vsel %vm1017_vm8, %v5821_v60, %v5837_v4 }
 0xef6   : > { %v5823_v13 = vpop.permute.xlu1 %5822  ;;  %5988 = vmatpush1.bf16.msra.mxu1 %v5810_v31  ;;  %v5869_v9 = vmul.f32 %v5859_v10, %v14984_v28  ;;  %v5882_v58 = vpack.c.bf16 %v5851_v44, %v5850_v52  ;;  %v14992_v44 = vld [vmem:[#allocation74_spill] sm:$0xff] }
 0xef7   : > { %5989 = vmatprep.subr.bf16.mxu1 %v5813_v53  ;;  %v14994_v52 = vld [vmem:[#allocation82_spill] sm:$0xff] }
 0xef8   : > { %v5825_v25 = vpop.permute.xlu0 %5824  ;;  %v5883_v56 = vpack.c.bf16 %v5869_v9, %v5867_v26 }
 0xefa   : > { %v5839_v61 = vpop.permute.xlu1 %5838  ;;  %5990 = vmatpush1.bf16.msra.mxu1 %v5812_v47  ;;  %v14985_v47 = vmov 0  }
 0xefb   : > { %5991 = vmatprep.subr.bf16.mxu1 %v5815_v6  ;;  %v5860_v57 = vsel %vm1017_vm8, %v5839_v61, %v5823_v13  ;;  %v5852_v34 = vsel %vm1017_vm8, %v5823_v13, %v5839_v61  ;;  %v7345_v13 = vld [vmem:[#allocation8 + $0x58] ss:$20 sps:$4 sm:$0xff]  }
 0xefc   : > { %v5841_v7 = vpop.permute.xlu0 %5840  ;;  %v5871_v62 = vmul.f32 %v5860_v57, %v14984_v28 }
 0xefd   : > { %v5861_v40 = vsel %vm1017_vm8, %v5841_v7, %v5825_v25  ;;  %v5853_v38 = vsel %vm1017_vm8, %v5825_v25, %v5841_v7  ;;  %v7351_v25 = vld [vmem:[#allocation8 + $0x88] ss:$20 sps:$4 sm:$0xff]  }
 0xefe   : > { %v5827_v23 = vpop.permute.xlu1 %5826  ;;  %5992 = vmatpush1.bf16.msra.mxu1 %v5814_v24  ;;  %v5873_v39 = vmul.f32 %v5861_v40, %v14984_v28  ;;  %v5884_v36 = vpack.c.bf16 %v5853_v38, %v5852_v34  ;;  %v14989_v40 = vld [vmem:[#allocation75_spill] sm:$0xff]  ;;  %v14998_v34 = vld [vmem:[#allocation45_spill] sm:$0xff] }
 0xeff   : > { %5993 = vmatprep.subr.bf16.mxu1 %v5817_v59  ;;  %v14996_v38 = vld [vmem:[#allocation43_spill] sm:$0xff] }
 0xf00   : > { %v5829_v49 = vpop.permute.xlu0 %5828  ;;  %v5885_v48 = vpack.c.bf16 %v5873_v39, %v5871_v62 }
 0xf02   : > { %v5843_v15 = vpop.permute.xlu1 %5842  ;;  %5994 = vmatpush1.bf16.msra.mxu1 %v5816_v54  ;;  %v14991_v54 = vld [vmem:[#allocation79_spill] sm:$0xff] }
 0xf03   : > { %v5862_v19 = vsel %vm1017_vm8, %v5843_v15, %v5827_v23  ;;  %6036 = vmatprep.subr.bf16.mxu1 %v5883_v56  ;;  %v5854_v35 = vsel %vm1017_vm8, %v5827_v23, %v5843_v15  ;;  %v14993_v56 = vld [vmem:[#allocation39_spill] sm:$0xff] }
 0xf04   : > { %v5845_v8 = vpop.permute.xlu0 %5844  ;;  %v5875_v14 = vmul.f32 %v5862_v19, %v14984_v28 }
 0xf05   : > { %v5863_v17 = vsel %vm1017_vm8, %v5845_v8, %v5829_v49  ;;  %5996 = vmatmul.mubr.bf16.vlgmr.msra.gmra.mrb[32].mxu1 %v7341_v37  ;;  %v5855_v60 = vsel %vm1017_vm8, %v5829_v49, %v5845_v8 }
 0xf06   : > { %v5877_v46 = vmul.f32 %v5863_v17, %v14984_v28  ;;  %v5831_v63 = vpop.permute.xlu1 %5830  ;;  %6037 = vmatpush1.bf16.msra.mxu1 %v5882_v58  ;;  %6005 = vmatprep.mubr.bf16.mxu1 %v7342_v20  ;;  %v5886_v51 = vpack.c.bf16 %v5855_v60, %v5854_v35  ;;  %v14995_v58 = vld [vmem:[#allocation41_spill] sm:$0xff]  ;;  %v15000_v60 = vld [vmem:[#allocation40_spill] sm:$0xff] }
 0xf07   : > { %6038 = vmatprep.subr.bf16.mxu1 %v5885_v48  ;;  %v14997_v48 = vld [vmem:[#allocation42_spill] sm:$0xff] }
 0xf08   : > { %v5833_v43 = vpop.permute.xlu0 %5832  ;;  %v5887_v16 = vpack.c.bf16 %v5877_v46, %v5875_v14 }
 0xf0a   : > { %v5847_v11 = vpop.permute.xlu1 %5846  ;;  %6039 = vmatpush1.bf16.msra.mxu1 %v5884_v36 }
 0xf0b   : > { %v5864_v0 = vsel %vm1017_vm8, %v5847_v11, %v5831_v63  ;;  %6040 = vmatprep.subr.bf16.mxu1 %v5887_v16  ;;  %v5856_v32 = vsel %vm1017_vm8, %v5831_v63, %v5847_v11 }
 0xf0c   : > { %v5849_v1 = vpop.permute.xlu0 %5848  ;;  %v5879_v31 = vmul.f32 %v5864_v0, %v14984_v28 }
 0xf0d   : > { %v5865_v12 = vsel %vm1017_vm8, %v5849_v1, %v5833_v43  ;;  %6006 = vmatmul.mubr.bf16.gmra.mrb[36].mxu1 %v7343_v22  ;;  %v5857_v55 = vsel %vm1017_vm8, %v5833_v43, %v5849_v1  ;;  %v14999_v43 = vld [vmem:[#allocation44_spill] sm:$0xff] }
 0xf0e   : > { %v5881_v4 = vmul.f32 %v5865_v12, %v14984_v28  ;;  %6041 = vmatpush1.bf16.msra.mxu1 %v5886_v51  ;;  %6015 = vmatprep.mubr.bf16.mxu1 %v7344_v5  ;;  %v5888_v3 = vpack.c.bf16 %v5857_v55, %v5856_v32  ;;  %v7349_v28 = vld [vmem:[#allocation8 + $0x38] ss:$20 sps:$4 sm:$0xff]  }
 0xf0f   : > { %v15001_v12 = vld [vmem:[#allocation78_spill] sm:$0xff] }
 0xf10   : > { %v5889_v53 = vpack.c.bf16 %v5881_v4, %v5879_v31  ;;  %v15002_v31 = vld [vmem:[#allocation28_spill] sm:$0xff] }
 0xf11   : > { %v15003_v4 = vld [vmem:[#allocation72_spill] sm:$0xff] }
 0xf12   : > { %6042 = vmatprep.subr.bf16.mxu1 %v5889_v53  ;;  %v15004_v53 = vld [vmem:[#allocation80_spill] sm:$0xff] }
 0xf13   : > { %6043 = vmatpush1.bf16.msra.mxu1 %v5888_v3 }
 0xf15   : > { %6016 = vmatmul.mubr.bf16.gmra.mrb[40].mxu1 %v7345_v13  ;;  %v15005_v13 = vld [vmem:[#allocation15_spill] sm:$0xff] }
 0xf16   : > { %6025 = vmatprep.mubr.bf16.mxu1 %v7346_v42 }
 0xf1d   : > { %6026 = vmatmul.mubr.bf16.gmra.mrb[44].mxu1 %v7347_v21  ;;  %v15006_v21 = vld [vmem:[#allocation73_spill] sm:$0xff] }
 0xf1e   : > { %6068 = vmatprep.mubr.bf16.mxu1 %v14985_v47 }
 0xf25   : > { %6811 = vmatmul.mubr.msk.bf16.vlgmr.msra.gmra.mrb[32].mxu1 %vm1326_vm10, %v7348_v30 }
 0xf26   : > { %6078 = vmatprep.mubr.bf16.mxu1 %v14985_v47 }
 0xf2d   : > { %6812 = vmatmul.mubr.msk.bf16.gmra.mrb[36].mxu1 %vm1326_vm10, %v7349_v28 }
 0xf2e   : > { %6088 = vmatprep.mubr.bf16.mxu1 %v14985_v47 }
 0xf35   : > { %6813 = vmatmul.mubr.msk.bf16.gmra.mrb[40].mxu1 %vm1326_vm10, %v7350_v18  ;;  %v15007_v18 = vld [vmem:[#allocation52_spill] sm:$0xff] }
 0xf36   : > { %6098 = vmatprep.mubr.bf16.mxu1 %v14985_v47 }
 0xf3d   : > { %6814 = vmatmul.mubr.msk.bf16.gmra.mrb[44].mxu1 %vm1326_vm10, %v7351_v25 }
 0xff8   : > { %v6070_v27 = vpop.f32.mrb[32].mxu1 }
 0xff9   : > { %v6109_v6 = vmul.f32 %v6070_v27, %v14986_v45  ;;  %v6072_v10 = vpop.f32.mrb[33].mxu1  ;;  %v15008_v27 = vld [vmem:[#allocation49_spill] sm:$0xff] }
 0xffa   : > { %v6110_v61 = vmul.f32 %v6072_v10, %v14986_v45  ;;  %v6074_v33 = vpop.f32.mrb[34].mxu1  ;;  %v15009_v10 = vld [vmem:[#allocation17_spill] sm:$0xff] }
 0xffb   : > { %v6125_v24 = vadd.f32 %v6109_v6, %v14987_v41  ;;  %v6111_v7 = vmul.f32 %v6074_v33, %v14988_v2  ;;  %v6076_v29 = vpop.f32.mrb[35].mxu1 }
 0xffc   : > { %v6126_v9 = vadd.f32 %v6110_v61, %v14987_v41  ;;  %v6112_v59 = vmul.f32 %v6076_v29, %v14988_v2  ;;  %v15010_v2 = vld [vmem:[#allocation53_spill] sm:$0xff]  ;;  %v15011_v29 = vld [vmem:[#allocation54_spill] sm:$0xff] }
 0xffd   : > { %v6141_v23 = vadd.f32 %v6125_v24, %v14989_v40  ;;  %v6127_v26 = vadd.f32 %v6111_v7, %v14990_v50 }
 0xffe   : > { %v6142_v57 = vadd.f32 %v6126_v9, %v14991_v54  ;;  %v6128_v49 = vadd.f32 %v6112_v59, %v14990_v50  ;;  %v15012_v59 = vld [vmem:[#allocation51_spill] sm:$0xff] }
 0xfff   : > { %v6143_v39 = vadd.f32 %v6127_v26, %v14992_v44  ;;  %v14009_v15 = vadd.f32 %v6141_v23, %v14993_v56  ;;  %v15014_v44 = vld [vmem:[#allocation55_spill] sm:$0xff] }
0x1000   : > { %v6144_v62 = vadd.f32 %v6128_v49, %v14994_v52  ;;  %v6080_v19 = vpop.f32.mrb[36].mxu1  ;;  %v14013_v8 = vadd.f32 %v6142_v57, %v14995_v58  ;;  %v15013_v57 = vld [vmem:[#allocation68_spill] sm:$0xff]  ;;  %v15015_v56 = vld [vmem:[#allocation71_spill] sm:$0xff] }
0x1001   : > { %v6113_v17 = vmul.f32 %v6080_v19, %v14996_v38  ;;  %v6082_v37 = vpop.f32.mrb[37].mxu1  ;;  %v14017_v14 = vadd.f32 %v6143_v39, %v14997_v48  ;;  %v15016_v19 = vld [vmem:[#allocation69_spill] sm:$0xff] }
0x1002   : > { %v6114_v46 = vmul.f32 %v6082_v37, %v14996_v38  ;;  %v6084_v63 = vpop.f32.mrb[38].mxu1  ;;  %v6173_v20 = vadd.f32 %v14013_v8, %v14009_v15  ;;  %v14023_v36 = vadd.f32 %v6144_v62, %v14998_v34  ;;  %v15017_v38 = vld [vmem:[#allocation56_spill] sm:$0xff]  ;;  %v15018_v37 = vld [vmem:[#allocation70_spill] sm:$0xff] }
0x1003   : > { %v6129_v16 = vadd.f32 %v6113_v17, %v14999_v43  ;;  %v6115_v11 = vmul.f32 %v6084_v63, %v15000_v60  ;;  %v6086_v35 = vpop.f32.mrb[39].mxu1  ;;  %v15019_v63 = vld [vmem:[#allocation60_spill] sm:$0xff]  ;;  %v15020_v34 = vld [vmem:[#allocation58_spill] sm:$0xff] }
0x1004   : > { %v6130_v0 = vadd.f32 %v6114_v46, %v14999_v43  ;;  %v6116_v51 = vmul.f32 %v6086_v35, %v15000_v60  ;;  %6174 = vadd.xlane.f32.xlu1 %v6173_v20  ;;  %v6176_v1 = vadd.f32 %v14023_v36, %v14017_v14  ;;  %v15021_v60 = vld [vmem:[#allocation57_spill] sm:$0xff] }
0x1005   : > { %v6145_v22 = vadd.f32 %v6129_v16, %v15001_v12  ;;  %v6131_v55 = vadd.f32 %v6115_v11, %v15002_v31 }
0x1006   : > { %v6146_v5 = vadd.f32 %v6130_v0, %v15003_v4  ;;  %v6132_v32 = vadd.f32 %v6116_v51, %v15002_v31  ;;  %6177 = vadd.xlane.f32.xlu0 %v6176_v1  ;;  %v15022_v1 = vld [vmem:[#allocation61_spill] sm:$0xff] }
0x1007   : > { %v6147_v3 = vadd.f32 %v6131_v55, %v15004_v53  ;;  %v14037_v42 = vadd.f32 %v6145_v22, %v15005_v13  ;;  %v15023_v22 = vld [vmem:[#allocation62_spill] sm:$0xff]  ;;  %v15024_v55 = vld [vmem:[#allocation59_spill] sm:$0xff]  ;;  %v15025_v13 = vld [vmem:[#allocation77_spill] sm:$0xff] }
0x1008   : > { %v6148_v30 = vadd.f32 %v6132_v32, %v15006_v21  ;;  %v6090_v28 = vpop.f32.mrb[40].mxu1  ;;  %v14041_v25 = vadd.f32 %v6146_v5, %v15007_v18  ;;  %v15027_v18 = vld [vmem:[#allocation81_spill] sm:$0xff] }
0x1009   : > { %v6117_v45 = vmul.f32 %v6090_v28, %v15008_v27  ;;  %v6092_v6 = vpop.f32.mrb[41].mxu1  ;;  %v14045_v61 = vadd.f32 %v6147_v3, %v15009_v10 }
0x100a   : > { %v6118_v33 = vmul.f32 %v6092_v6, %v15008_v27  ;;  %v6094_v41 = vpop.f32.mrb[42].mxu1  ;;  %v6179_v24 = vadd.f32 %v14041_v25, %v14037_v42  ;;  %v14051_v7 = vadd.f32 %v6148_v30, %v15010_v2  ;;  %v15026_v30 = vld [vmem:[#allocation63_spill] sm:$0xff]  ;;  %v15028_v6 = vld [vmem:[#allocation76_spill] sm:$0xff] }
0x100b   : > { %v6133_v9 = vadd.f32 %v6117_v45, %v15011_v29  ;;  %v6119_v40 = vmul.f32 %v6094_v41, %v15012_v59  ;;  %v6096_v23 = vpop.f32.mrb[43].mxu1 }
0x100c   : > { %v6134_v50 = vadd.f32 %v6118_v33, %v15011_v29  ;;  %v6120_v26 = vmul.f32 %v6096_v23, %v15012_v59  ;;  %6180 = vadd.xlane.f32.xlu0 %v6179_v24  ;;  %v6182_v54 = vadd.f32 %v14051_v7, %v14045_v61  ;;  %v15029_v33 = vld [vmem:[#allocation64_spill] sm:$0xff]  ;;  %v15030_v24 = vld [vmem:[#allocation83_spill] sm:$0xff]  ;;  %v15031_v29 = vld [vmem:[#allocation66_spill] sm:$0xff] }
0x100d   : > { %v6149_v49 = vadd.f32 %v6133_v9, %v15013_v57  ;;  %v6135_v39 = vadd.f32 %v6119_v40, %v15014_v44  ;;  %v15032_v59 = vld [vmem:[#allocation65_spill] sm:$0xff]  ;;  %v15034_v57 = vmov 0.0  }
0x100e   : > { %v6150_v52 = vadd.f32 %v6134_v50, %v15015_v56  ;;  %v6136_v62 = vadd.f32 %v6120_v26, %v15014_v44  ;;  %6183 = vadd.xlane.f32.xlu1 %v6182_v54  ;;  %v15033_v50 = vld [vmem:[#allocation67_spill] sm:$0xff]  ;;  %6860 = vmatprep.mubr.msk.bf16.mxu0 %vm7539_vm11, %v15034_v57 }
0x100f   : > { %v6151_v58 = vadd.f32 %v6135_v39, %v15016_v19  ;;  %v14065_v17 = vadd.f32 %v6149_v49, %v15017_v38 }
0x1010   : > { %v6152_v48 = vadd.f32 %v6136_v62, %v15018_v37  ;;  %v6100_v46 = vpop.f32.mrb[44].mxu1  ;;  %v14069_v20 = vadd.f32 %v6150_v52, %v15019_v63 }
0x1011   : > { %v6121_v43 = vmul.f32 %v6100_v46, %v15020_v34  ;;  %v6102_v16 = vpop.f32.mrb[45].mxu1  ;;  %v14073_v11 = vadd.f32 %v6151_v58, %v15021_v60 }
0x1012   : > { %v6122_v35 = vmul.f32 %v6102_v16, %v15020_v34  ;;  %v6104_v0 = vpop.f32.mrb[46].mxu1  ;;  %v6185_v51 = vadd.f32 %v14069_v20, %v14065_v17  ;;  %v14079_v12 = vadd.f32 %v6152_v48, %v15022_v1  ;;  %v6206_v1 = vld [vmem:[%s14351_s7] sm:$0xf] }
0x1013   : > { %v6137_v31 = vadd.f32 %v6121_v43, %v15023_v22  ;;  %v6123_v4 = vmul.f32 %v6104_v0, %v15024_v55  ;;  %v6106_v5 = vpop.f32.mrb[47].mxu1 }
0x1014   : > { %v6138_v32 = vadd.f32 %v6122_v35, %v15023_v22  ;;  %v6124_v53 = vmul.f32 %v6106_v5, %v15024_v55  ;;  %6186 = vadd.xlane.f32.xlu0 %v6185_v51  ;;  %v6188_v3 = vadd.f32 %v14079_v12, %v14073_v11  ;;  %v7204_v22 = vld [vmem:[%s14353_s9] sm:$0xff]  }
0x1015   : > { %v6153_v21 = vadd.f32 %v6137_v31, %v15025_v13  ;;  %v6139_v28 = vadd.f32 %v6123_v4, %v15026_v30  ;;  %6866 = vmatprep.mubr.msk.bf16.mxu1 %vm6293_vm12, %v7204_v22  ;;  %v6211_v31 = vld [vmem:[%s14352_s8] sm:$0xff] }
0x1016   : > { %v6154_v27 = vadd.f32 %v6138_v32, %v15027_v18  ;;  %v6140_v45 = vadd.f32 %v6124_v53, %v15026_v30  ;;  %6189 = vadd.xlane.f32.xlu1 %v6188_v3  ;;  %v7206_v30 = vld [vmem:[%s14353_s9 + $0x10] sm:$0xff]  }
0x1017   : > { %v6155_v10 = vadd.f32 %v6139_v28, %v15028_v6  ;;  %v14093_v41 = vadd.f32 %v6153_v21, %v15029_v33  ;;  %v7205_v21 = vld [vmem:[%s14353_s9 + $0x8] sm:$0xff]   ;;  %v7207_v28 = vld [vmem:[%s14353_s9 + $0x18] sm:$0xff]   ;;  %v6267_v18 = vld [vmem:[%s14354_s10 + $0x10] sm:$0xff] }
0x1018   : > { %v6156_v2 = vadd.f32 %v6140_v45, %v15030_v24  ;;  %v14097_v9 = vadd.f32 %v6154_v27, %v15031_v29  ;;  %v6265_v27 = vld [vmem:[%s14354_s10] sm:$0xff]  ;;  %v6268_v6 = vld [vmem:[%s14354_s10 + $0x18] sm:$0xff]  ;;  %v6266_v24 = vld [vmem:[%s14354_s10 + $0x8] sm:$0xff] }
0x1019   : > { %v14100_v40 = vadd.f32 %v6155_v10, %v15032_v59 }
0x101a   : > { %v6191_v23 = vadd.f32 %v14097_v9, %v14093_v41  ;;  %v14105_v26 = vadd.f32 %v6156_v2, %v15033_v50 }
0x101c   : > { %6192 = vadd.xlane.f32.xlu0 %v6191_v23  ;;  %v6194_v54 = vadd.f32 %v14105_v26, %v14100_v40 }
0x101e   : > { %6195 = vadd.xlane.f32.xlu1 %v6194_v54 }
0x1091   : > { %v6175_v49 = vpop.xlane.xlu1 %6174 }
0x1092   : > { %v6198_v39 = vmul.f32 0.00390625, %v6175_v49 }
0x1093   : > { %v6178_v44 = vpop.xlane.xlu0 %6177 }
0x1094   : > { %v6199_v56 = vmul.f32 0.00390625, %v6178_v44 }
0x1096   : > { %v6207_v52 = vpack.c.bf16 %v6199_v56, %v6198_v39  ;;  %v6271_v39 = vld [vmem:[%s14354_s10 + $0x30] sm:$0xff]  ;;  %v6269_v56 = vld [vmem:[%s14354_s10 + $0x20] sm:$0xff] }
0x1098   : > { %6853 = vmatpush3.bf16.msra.mxu0 %v6207_v52 }
0x1099   : > { %v6181_v62 = vpop.xlane.xlu0 %6180  ;;  %6854 = vmatprep.subr.bf16.mxu0 %v15034_v57 }
0x109a   : > { %v6200_v58 = vmul.f32 0.00390625, %v6181_v62  ;;  %v6272_v62 = vld [vmem:[%s14354_s10 + $0x38] sm:$0xff] }
0x109b   : > { %v6184_v19 = vpop.xlane.xlu1 %6183 }
0x109c   : > { %v6201_v38 = vmul.f32 0.00390625, %v6184_v19 }
0x109e   : > { %v6208_v37 = vpack.c.bf16 %v6201_v38, %v6200_v58  ;;  %v6270_v38 = vld [vmem:[%s14354_s10 + $0x28] sm:$0xff] }
0x10a0   : > { %6855 = vmatpush3.bf16.msra.mxu0 %v6208_v37 }
0x10a1   : > { %v6187_v48 = vpop.xlane.xlu0 %6186  ;;  %6856 = vmatprep.subr.bf16.mxu0 %v15034_v57 }
0x10a2   : > { %v6202_v63 = vmul.f32 0.00390625, %v6187_v48 }
0x10a3   : > { %v6190_v46 = vpop.xlane.xlu1 %6189 }
0x10a4   : > { %v6203_v34 = vmul.f32 0.00390625, %v6190_v46 }
0x10a6   : > { %v6209_v43 = vpack.c.bf16 %v6203_v34, %v6202_v63 }
0x10a8   : > { %6857 = vmatpush3.bf16.msra.mxu0 %v6209_v43 }
0x10a9   : > { %v6193_v16 = vpop.xlane.xlu0 %6192  ;;  %6858 = vmatprep.subr.bf16.mxu0 %v15034_v57 }
0x10aa   : > { %v6204_v35 = vmul.f32 0.00390625, %v6193_v16 }
0x10ab   : > { %v6196_v60 = vpop.xlane.xlu1 %6195 }
0x10ac   : > { %v6205_v0 = vmul.f32 0.00390625, %v6196_v60 }
0x10ae   : > { %v6210_v51 = vpack.c.bf16 %v6205_v0, %v6204_v35 }
0x10b0   : > { %6859 = vmatpush3.bf16.msra.mxu0 %v6210_v51 }
0x10b3   : > { %6861 = vmatmul.mubr.msk.bf16.vlgmr.msra.gmra.mrb[48].mxu0 %vm1326_vm10, %v6206_v1 }
0x10b4   : > { %6529 = vmatprep.mubr.bf16.mxu0 %v14985_v47 }
0x1186   : > { %v6249_v55 = vpop.f32.mrb[48].mxu0 }
0x1187   : > { %v6250_v4 = vadd.f32 %v6249_v55, %v6211_v31  ;;  %v6862_v5 = vpop.f32.mrb[49].mxu0 }
0x1188   : > { %v6252_v32 = vpop.f32.mrb[50].mxu0 }
0x1189   : > { %v6255_v53 = vmax.f32 %v6250_v4, 0.0  ;;  %v6863_v3 = vpop.f32.mrb[51].mxu0 }
0x118b   : > { %v6264_v13 = vpack.c.bf16 %v6255_v53, %v6255_v53 }
0x118d   : > { %7066 = vmatprep.subr.msk.bf16.mxu1 %vm6306_vm13, %v6264_v13  ;;  %v6308_v47 = vsel %vm6306_vm13, %v6264_v13, 0 }
0x118e   : > { %6865 = vmatpush3.bf16.msra.mxu1 %v6308_v47 }
0x1191   : > { %6867 = vmatmul.mubr.msk.bf16.vlgmr.msra.gmra.mrb[48].mxu1 %vm6293_vm12, %v7205_v21 }
0x1192   : > { %6870 = vmatprep.mubr.msk.bf16.mxu1 %vm6293_vm12, %v7206_v30 }
0x1199   : > { %6871 = vmatmul.mubr.msk.bf16.gmra.mrb[52].mxu1 %vm6293_vm12, %v7207_v28 }
0x1264   : > { %v6868_v45 = vpop.f32.mrb[48].mxu1 }
0x1265   : > { %v6353_v10 = vadd.f32 %v6868_v45, %v6267_v18  ;;  %v6344_v33 = vpop.f32.mrb[49].mxu1 }
0x1266   : > { %v6345_v2 = vadd.f32 %v6344_v33, %v6265_v27  ;;  %v6869_v29 = vpop.f32.mrb[50].mxu1 }
0x1267   : > { %v6826_v59 = vmul.f32 -1.442695, %v6353_v10  ;;  %v6356_v23 = vadd.f32 %v6869_v29, %v6268_v6  ;;  %v6347_v50 = vpop.f32.mrb[51].mxu1  ;;  %v6488_v29 = vld [vmem:[%s15035_s15] sm:$0xff]  ;;  %s6646_s15 = sshll.u32 %s14259_s11, 4  ;;  %s14291_s15 = int_to_ptr.vmem [resolvable:$true] %s6646_s15 }
0x1268   : > { %v6824_v54 = vmul.f32 -1.442695, %v6345_v2  ;;  %v6348_v57 = vadd.f32 %v6347_v50, %v6266_v24  ;;  %p7461_p7 = scmp.lt.s32.totalorder %s14291_s15, %s7459_s26 }
0x1269   : > { %7208 = vpow2.f32 %v6826_v59  ;;  %v6827_v49 = vmul.f32 -1.442695, %v6356_v23  ;;  %v6540_v59 = vld [vmem:[%s15036_s30] sm:$0xff]  ;;  %s14279_s30 = scalar_lea.hbm %s15039_s12, %s6841_s27 }
0x126a   : > { %7210 = vpow2.f32 %v6824_v54  ;;  %v6825_v44 = vmul.f32 -1.442695, %v6348_v57  ;;  %v6560_v23 = vld [vmem:[#allocation2] sm:$0x1] }
0x126b   : > { %7212 = vpow2.f32 %v6827_v49 }
0x126c   : > { %7214 = vpow2.f32 %v6825_v44  ;;  %v6872_v52 = vpop.f32.mrb[52].mxu1 }
0x126d   : > { %v6369_v19 = vadd.f32 %v6872_v52, %v6271_v39  ;;  %v6360_v58 = vpop.f32.mrb[53].mxu1 }
0x126e   : > { %v6361_v37 = vadd.f32 %v6360_v58, %v6269_v56  ;;  %v6873_v48 = vpop.f32.mrb[54].mxu1 }
0x126f   : > { %v6830_v46 = vmul.f32 -1.442695, %v6369_v19  ;;  %v6372_v63 = vadd.f32 %v6873_v48, %v6272_v62  ;;  %v6363_v34 = vpop.f32.mrb[55].mxu1 }
0x1270   : > { %v6828_v43 = vmul.f32 -1.442695, %v6361_v37  ;;  %v6364_v16 = vadd.f32 %v6363_v34, %v6270_v38 }
0x1271   : > { %7216 = vpow2.f32 %v6830_v46  ;;  %v6831_v60 = vmul.f32 -1.442695, %v6372_v63 }
0x1272   : > { %7218 = vpow2.f32 %v6828_v43  ;;  %v6829_v35 = vmul.f32 -1.442695, %v6364_v16 }
0x1273   : > { %v7209_v0 = vpop.eup %7208  ;;  %7220 = vpow2.f32 %v6831_v60 }
0x1274   : > { %v7211_v51 = vpop.eup %7210  ;;  %7222 = vpow2.f32 %v6829_v35  ;;  %v6401_v5 = vadd.f32 1.0, %v7209_v0 }
0x1275   : > { %v7213_v1 = vpop.eup %7212  ;;  %v6399_v22 = vadd.f32 1.0, %v7211_v51 }
0x1276   : > { %v7215_v31 = vpop.eup %7214  ;;  %v6402_v55 = vadd.f32 1.0, %v7213_v1 }
0x1277   : > { %7224 = vrcp.f32 %v6399_v22  ;;  %v6400_v4 = vadd.f32 1.0, %v7215_v31 }
0x1279   : > { %7226 = vrcp.f32 %v6400_v4 }
0x127a   : > { %7228 = vrcp.f32 %v6402_v55 }
0x127b   : > { %v7217_v32 = vpop.eup %7216  ;;  %7230 = vrcp.f32 %v6401_v5 }
0x127c   : > { %v7219_v53 = vpop.eup %7218  ;;  %v6405_v30 = vadd.f32 1.0, %v7217_v32 }
0x127d   : > { %v7221_v3 = vpop.eup %7220  ;;  %v6403_v13 = vadd.f32 1.0, %v7219_v53 }
0x127e   : > { %v7223_v47 = vpop.eup %7222  ;;  %v6406_v18 = vadd.f32 1.0, %v7221_v3  ;;  %v15038_v3 = vlaneseq }
0x127f   : > { %v6404_v21 = vadd.f32 1.0, %v7223_v47  ;;  %7232 = vrcp.f32 %v6403_v13 }
0x1280   : > { %v6567_v13 = vshrl.u32 %v15038_v3, 7 }
0x1281   : > { %v7225_v28 = vpop.eup %7224  ;;  %7234 = vrcp.f32 %v6404_v21 }
0x1282   : > { %6425 = vperm.xlu0 %7146, %v7225_v28   ;;  %7236 = vrcp.f32 %v6405_v30 }
0x1283   : > { %v7227_v27 = vpop.eup %7226  ;;  %7238 = vrcp.f32 %v6406_v18  ;;  %v6568_v18 = vsub.s32 0, %v6567_v13  ;;  %v7364_v13 = vld [vmem:[%s7803_s17 + $0x60] sm:$0xff] }
0x1284   : > { %6430 = vperm.xlu1 %7147, %v7227_v27   ;;  %v7229_v45 = vpop.eup %7228 }
0x1285   : > { %v7231_v6 = vpop.eup %7230 }
0x1286   : > { %6440 = vperm.xlu0 %7146, %v7229_v45  }
0x1288   : > { %6435 = vperm.xlu1 %7147, %v7231_v6  }
0x1289   : > { %v7233_v10 = vpop.eup %7232 }
0x128b   : > { %v7235_v33 = vpop.eup %7234 }
0x128c   : > { %6445 = vperm.xlu1 %7147, %v7233_v10   ;;  %6450 = vperm.xlu0 %7146, %v7235_v33   ;;  %v7237_v24 = vpop.eup %7236 }
0x128d   : > { %v7239_v2 = vpop.eup %7238 }
0x1290   : > { %6455 = vperm.xlu1 %7147, %v7237_v24   ;;  %6460 = vperm.xlu0 %7146, %v7239_v2  }
0x1294   : > { %6491 = vperm.xlu1 %7147, %v6488_v29   ;;  %6543 = vperm.xlu0 %7146, %v6540_v59  }
0x1298   : > { %6563 = vperm.xlu1 %7147, %v6560_v23  }
0x1301   : > { %v6426_v50 = vpop.permute.xlu0 %6425 }
0x1302   : > { %v14168_v57 = vmul.f32 %v6426_v50, %v14009_v15  ;;  %v14171_v49 = vmul.f32 %v6426_v50, %v14013_v8 }
0x1303   : > { %v6431_v54 = vpop.permute.xlu1 %6430 }
0x1304   : > { %v14174_v44 = vmul.f32 %v6431_v54, %v14017_v14  ;;  %v14177_v39 = vmul.f32 %v6431_v54, %v14023_v36 }
0x1305   : > { %v6441_v56 = vpop.permute.xlu0 %6440 }
0x1306   : > { %v6480_v52 = vpack.c.bf16 %v14174_v44, %v14168_v57  ;;  %v6481_v62 = vpack.c.bf16 %v14177_v39, %v14171_v49  ;;  %v14184_v15 = vmul.f32 %v6441_v56, %v14045_v61  ;;  %v14187_v8 = vmul.f32 %v6441_v56, %v14051_v7 }
0x1307   : > { %v6436_v19 = vpop.permute.xlu1 %6435 }
0x1308   : > { %v14190_v14 = vmul.f32 %v6436_v19, %v14037_v42  ;;  %v14193_v36 = vmul.f32 %v6436_v19, %v14041_v25  ;;  %6497 = vmatprep.subr.bf16.mxu0 %v6481_v62 }
0x1309   : > { %6498 = vmatpush1.bf16.msra.mxu0 %v6480_v52 }
0x130a   : > { %v6482_v58 = vpack.c.bf16 %v14184_v15, %v14190_v14  ;;  %v6483_v38 = vpack.c.bf16 %v14187_v8, %v14193_v36 }
0x130b   : > { %v6446_v37 = vpop.permute.xlu1 %6445  ;;  %v6451_v61 = vpop.permute.xlu0 %6450 }
0x130c   : > { %v14200_v48 = vmul.f32 %v6446_v37, %v14065_v17  ;;  %v14203_v7 = vmul.f32 %v6446_v37, %v14069_v20  ;;  %v14206_v42 = vmul.f32 %v6451_v61, %v14073_v11  ;;  %v14209_v25 = vmul.f32 %v6451_v61, %v14079_v12  ;;  %6499 = vmatprep.subr.bf16.mxu0 %v6483_v38 }
0x130d   : > { %6500 = vmatpush1.bf16.msra.mxu0 %v6482_v58 }
0x130e   : > { %v6484_v46 = vpack.c.bf16 %v14206_v42, %v14200_v48  ;;  %v6485_v63 = vpack.c.bf16 %v14209_v25, %v14203_v7 }
0x130f   : > { %v6456_v34 = vpop.permute.xlu1 %6455  ;;  %v6461_v17 = vpop.permute.xlu0 %6460 }
0x1310   : > { %v14216_v43 = vmul.f32 %v6456_v34, %v14093_v41  ;;  %v14219_v20 = vmul.f32 %v6456_v34, %v14097_v9  ;;  %v14222_v11 = vmul.f32 %v6461_v17, %v14100_v40  ;;  %v14225_v12 = vmul.f32 %v6461_v17, %v14105_v26  ;;  %6501 = vmatprep.subr.bf16.mxu0 %v6485_v63  ;;  %v6479_v41 = vld [vmem:[%s15037_s25] sm:$0xf]  ;;  %s7460_s25 = scalar_lea.vmem %s7459_s26, 4096 }
0x1311   : > { %6502 = vmatpush1.bf16.msra.mxu0 %v6484_v46 }
0x1312   : > { %v6486_v16 = vpack.c.bf16 %v14222_v11, %v14216_v43  ;;  %v6487_v60 = vpack.c.bf16 %v14225_v12, %v14219_v20 }
0x1313   : > { %v6492_v9 = vpop.permute.xlu1 %6491  ;;  %v6544_v31 = vpop.permute.xlu0 %6543 }
0x1314   : > { %6503 = vmatprep.subr.bf16.mxu0 %v6487_v60 }
0x1315   : > { %6504 = vmatpush1.bf16.msra.mxu0 %v6486_v16 }
0x1317   : > { %v6564_v45 = vpop.permute.xlu1 %6563 }
0x1318   : > { %6832 = vmatmul.mubr.msk.bf16.vlgmr.msra.gmra.mrb[52].mxu0 %vm1326_vm10, %v6479_v41  ;;  %v6569_v24 = vrot.slane %v6564_v45, %v6568_v18  ;;  %v7353_v41 = vld [vmem:[%s7803_s17 + $0x8] sm:$0xff] }
0x13eb   : > { %v6531_v40 = vpop.f32.mrb[52].mxu0 }
0x13ec   : > { %v6532_v26 = vadd.f32 %v6531_v40, %v6492_v9  ;;  %v6533_v35 = vpop.f32.mrb[53].mxu0  ;;  %v7355_v40 = vld [vmem:[%s7803_s17 + $0x18] sm:$0xff] }
0x13ed   : > { %v6534_v0 = vadd.f32 %v6533_v35, %v6492_v9  ;;  %v6535_v51 = vpop.f32.mrb[54].mxu0  ;;  %v7354_v9 = vld [vmem:[%s7803_s17 + $0x10] sm:$0xff] }
0x13ee   : > { %v6538_v1 = vmax.f32 %v6532_v26, 0.0  ;;  %v6536_v22 = vpop.f32.mrb[55].mxu0  ;;  %v7358_v35 = vld [vmem:[%s7803_s17 + $0x30] sm:$0xff]  ;;  %v7359_v51 = vld [vmem:[%s7803_s17 + $0x38] sm:$0xff] }
0x13ef   : > { %v6539_v55 = vmax.f32 %v6534_v0, 0.0  ;;  %v7360_v22 = vld [vmem:[%s7803_s17 + $0x40] sm:$0xff] }
0x13f0   : > { %v6546_v4 = vmul.f32 %v6544_v31, %v6538_v1 }
0x13f1   : > { %v6547_v5 = vmul.f32 %v6544_v31, %v6539_v55  ;;  %v7361_v55 = vld [vmem:[%s7803_s17 + $0x48] sm:$0xff] }
0x13f2   : > { %v6548_v32 = vrot.slane %v6546_v4, 4 }
0x13f3   : > { %v6554_v53 = vrot.slane %v6547_v5, 4 }
0x13f4   : > { %v6549_v47 = vadd.f32 %v6548_v32, %v6546_v4 }
0x13f5   : > { %v6555_v21 = vadd.f32 %v6554_v53, %v6547_v5  ;;  %v7362_v5 = vld [vmem:[%s7803_s17 + $0x50] sm:$0xff]  ;;  %v7363_v53 = vld [vmem:[%s7803_s17 + $0x58] sm:$0xff] }
0x13f6   : > { %v6550_v30 = vrot.slane %v6549_v47, 2 }
0x13f7   : > { %v6556_v28 = vrot.slane %v6555_v21, 2 }
0x13f8   : > { %v6551_v27 = vadd.f32 %v6550_v30, %v6549_v47 }
0x13f9   : > { %v6557_v6 = vadd.f32 %v6556_v28, %v6555_v21  ;;  %v7365_v21 = vld [vmem:[%s7803_s17 + $0x68] sm:$0xff]  ;;  %v7366_v28 = vld [vmem:[%s7803_s17 + $0x70] sm:$0xff] }
0x13fa   : > { %v6552_v10 = vrot.slane %v6551_v27, 1 }
0x13fb   : > { %v6558_v33 = vrot.slane %v6557_v6, 1 }
0x13fc   : > { %v6553_v2 = vadd.f32 %v6552_v10, %v6551_v27  ;;  %v7367_v27 = vld [vmem:[%s7803_s17 + $0x78] sm:$0xff] }
0x13fd   : > { %v6559_v29 = vadd.f32 %v6558_v33, %v6557_v6 }
0x13fe   : > { %v6570_v59 = vadd.f32 %v6569_v24, %v6553_v2 }
0x13ff   : > { %v6571_v23 = vadd.f32 %v6569_v24, %v6559_v29 }
0x1400   : > { %v6833_v50 = vmul.f32 -1.442695, %v6570_v59 }
0x1401   : > { %v6834_v54 = vmul.f32 -1.442695, %v6571_v23 }
0x1402   : > { %7240 = vpow2.f32 %v6833_v50 }
0x1403   : > { %7242 = vpow2.f32 %v6834_v54 }
0x140c   : > { %v7241_v56 = vpop.eup %7240 }
0x140d   : > { %v7243_v52 = vpop.eup %7242  ;;  %v6578_v62 = vadd.f32 1.0, %v7241_v56 }
0x140e   : > { %v6579_v19 = vadd.f32 1.0, %v7243_v52 }
0x140f   : > { %7244 = vrcp.f32 %v6578_v62 }
0x1410   : > { %7246 = vrcp.f32 %v6579_v19 }
0x1419   : > { %v7245_v58 = vpop.eup %7244 }
0x141a   : > { %v7247_v38 = vpop.eup %7246  ;;  %v6584_v37 = vmul.f32 %v7245_v58, %v14168_v57  ;;  %v6586_v61 = vmul.f32 %v7245_v58, %v14174_v44  ;;  %v6588_v46 = vmul.f32 %v7245_v58, %v14190_v14  ;;  %v6590_v63 = vmul.f32 %v7245_v58, %v14184_v15 }
0x141b   : > { %v6585_v34 = vmul.f32 %v7247_v38, %v14171_v49  ;;  %v6587_v17 = vmul.f32 %v7247_v38, %v14177_v39  ;;  %v6589_v16 = vmul.f32 %v7247_v38, %v14193_v36  ;;  %v6591_v60 = vmul.f32 %v7247_v38, %v14187_v8 }
0x141c   : > { %v6592_v57 = vmul.f32 %v7245_v58, %v14200_v48  ;;  %v6593_v44 = vmul.f32 %v7247_v38, %v14203_v7  ;;  %v6594_v14 = vmul.f32 %v7245_v58, %v14206_v42  ;;  %v6595_v15 = vmul.f32 %v7247_v38, %v14209_v25  ;;  %v7352_v48 = vld [vmem:[%s7803_s17] sm:$0xff] }
0x141d   : > { %v6596_v49 = vmul.f32 %v7245_v58, %v14216_v43  ;;  %v6597_v39 = vmul.f32 %v7247_v38, %v14219_v20  ;;  %v6598_v36 = vmul.f32 %v7245_v58, %v14222_v11  ;;  %v6599_v8 = vmul.f32 %v7247_v38, %v14225_v12  ;;  %v7356_v20 = vld [vmem:[%s7803_s17 + $0x20] sm:$0xff]  ;;  %v7357_v12 = vld [vmem:[%s7803_s17 + $0x28] sm:$0xff]  ;;  %s7454_s17 = scalar_lea.vmem %s14291_s15, 2048 }
0x141e   : > { %v6600_v7 = vadd.f32 %v7352_v48, %v6584_v37  ;;  %v6601_v42 = vadd.f32 %v7353_v41, %v6585_v34  ;;  %v6602_v25 = vadd.f32 %v7354_v9, %v6586_v61  ;;  %v6603_v43 = vadd.f32 %v7355_v40, %v6587_v17  ;;  %p7455_p11 = scmp.ne.s32.totalorder %s14291_s15, %s7454_s17  ;;  %p7462_p9 = scmp.lt.s32.totalorder %s7460_s25, %s7454_s17 }
0x141f   : > { %v6604_v11 = vadd.f32 %v7356_v20, %v6588_v46  ;;  %v6605_v26 = vadd.f32 %v7357_v12, %v6589_v16  ;;  %v6606_v0 = vadd.f32 %v7358_v35, %v6590_v63  ;;  %v6607_v1 = vadd.f32 %v7359_v51, %v6591_v60 }
0x1420   : > { %v6608_v31 = vadd.f32 %v7360_v22, %v6592_v57  ;;  %v6609_v4 = vadd.f32 %v7361_v55, %v6593_v44  ;;  %v6610_v32 = vadd.f32 %v7362_v5, %v6594_v14  ;;  %v6611_v3 = vadd.f32 %v7363_v53, %v6595_v15  ;;  %6616 = vst [vmem:[%s14259_s11] sm:$0xff] %v6600_v7  ;;  %p7456_p1 = pnand %p7455_p11, %p15040_p0  ;;  %p7463_p12 = por %p7462_p9, %p7461_p7 }
0x1421   : > { %6617 = vst [vmem:[%s14259_s11 + $0x8] sm:$0xff] %v6601_v42  ;;  %6618 = vst [vmem:[%s14259_s11 + $0x10] sm:$0xff] %v6602_v25  ;;  %v6612_v47 = vadd.f32 %v7364_v13, %v6596_v49  ;;  %v6613_v30 = vadd.f32 %v7365_v21, %v6597_v39  ;;  %v6614_v18 = vadd.f32 %v7366_v28, %v6598_v36 }
0x1422   : > { %6619 = vst [vmem:[%s14259_s11 + $0x18] sm:$0xff] %v6603_v43  ;;  %v6615_v45 = vadd.f32 %v7367_v27, %v6599_v8  ;;  %6620 = vst [vmem:[%s14259_s11 + $0x20] sm:$0xff] %v6604_v11  ;;  %p7457_p3 = pneg %p7456_p1 }
0x1423   : > { %6621 = vst [vmem:[%s14259_s11 + $0x28] sm:$0xff] %v6605_v26  ;;  %6622 = vst [vmem:[%s14259_s11 + $0x30] sm:$0xff] %v6606_v0 }
0x1424   : > { %6623 = vst [vmem:[%s14259_s11 + $0x38] sm:$0xff] %v6607_v1  ;;  %6624 = vst [vmem:[%s14259_s11 + $0x40] sm:$0xff] %v6608_v31  ;;  %p7464_p2 = pnand %p7463_p12, %p7457_p3 }
0x1425   : > { %6625 = vst [vmem:[%s14259_s11 + $0x48] sm:$0xff] %v6609_v4  ;;  %6626 = vst [vmem:[%s14259_s11 + $0x50] sm:$0xff] %v6610_v32 }
0x1426   : > { %6627 = vst [vmem:[%s14259_s11 + $0x58] sm:$0xff] %v6611_v3  ;;  %6628 = vst [vmem:[%s14259_s11 + $0x60] sm:$0xff] %v6612_v47 }
0x1427   : > { %6629 = vst [vmem:[%s14259_s11 + $0x68] sm:$0xff] %v6613_v30  ;;  %6630 = vst [vmem:[%s14259_s11 + $0x70] sm:$0xff] %v6614_v18 }
0x1428   : > { %6631 = vst [vmem:[%s14259_s11 + $0x78] sm:$0xff] %v6615_v45 }
0x1429   : > { %7467 = shalt.err (!%p7464_p2)
}
0x142a   : > { %s7468_s27 = scalar_lea.hbm %s14279_s30, 2048  ;;  %s7472_s28 = scalar_lea.hbm %s15039_s12, 4096 }
0x142b   : > { %p7469_p13 = scmp.ne.s32.totalorder %s14279_s30, %s7468_s27  ;;  %p7473_p4 = scmp.lt.u32.totalorder %s14279_s30, %s15039_s12 }
0x142c   : > { %p7474_p5 = scmp.lt.u32.totalorder %s7472_s28, %s7468_s27  ;;  %p7476_p11 = scmp.lt.u32.totalorder %s7468_s27, %s14279_s30 }
0x142d   : > { %p7470_p6 = pnand %p7469_p13, %p15040_p0 }
0x142e   : > { %p7475_p8 = por %p7474_p5, %p7473_p4 }
0x142f   : > { %p7471_p10 = pneg %p7470_p6 }
0x1430   : > { %p7477_p1 = por %p7476_p11, %p7475_p8 }
0x1432   : > { %p7478_p3 = pnand %p7477_p1, %p7471_p10 }
0x1434   : > { %7481 = shalt.err (!%p7478_p3)
}
0x1435   : > { %s7541_s17 = smov 256  }
0x1436   : > { %7077 = dma.vmem_to_hbm [thread:$0]  (%p15040_p0), %s14291_s15, 2048, %s14279_s30, %s6633_s14, %s7541_s17, %s7541_s17, %s7535_s16  }
0x1437 PF: > { %s15041_s25 = sld [smem:[#allocation13_spill]]  ;;  %s15042_s11 = sld [smem:[#allocation14_spill]] }
0x1438   : > { %p15044_p9 = scmp.ge.s32.totalorder %s7524_s23, 2 }
0x143d   : > { %s6661_s24 = sand.u32 1, %s15041_s25   ;;  %p15043_p7 = scmp.ne.s32.totalorder %s15042_s11, 0 }
0x143e   : > { %s6662_s27 = scalar_lea.sflag [#allocation5], %s6661_s24 }
0x143f   : > { %p7091_p12 = pnand %p15044_p9, %p15043_p7 }
0x1441   : > { %7507 = dma.done.wait (!%p7091_p12), %s6662_s27, 2048  }
0x1442   : > { %7509 = vsyncadd (!%p7091_p12), %s6662_s27, 4294965248  ;;  %p31_p2 = scmp.ge.s32.totalorder %s7735_s13, 4   ;;  %s15045_s20 = smov %s7516_s21 }
0x1443   : > { %s15046_s21 = smov %s7520_s22  ;;  %s15047_s22 = smov %s7751_s19 }
0x1444   : > { %s15048_s23 = smov %s7735_s13  ;;  %33 = sbr.rel (!%p31_p2) target bundleno = 11 (0xb), region = 133 }
0x144b   :  { %6667 = vsyncpa [#allocation4], 1 }
0x144c   :  { %6669 = vsyncpa [#allocation4 + $0x1], 1 }
0x144d   :  { %6670 = vsyncpa [#allocation7], 1 }
0x144e   :  { %6671 = vsyncpa [#allocation5], 1 }
0x144f   :  { %6673 = vsyncpa [#allocation5 + $0x1], 1 }

</bundles_post_ra>
